<compile_context>
chip_gen: v7x
topology: tpu7x:2x2x1
jax: 0.10.0
libtpu: 0.0.40
codegen_flags: <defaults>
</compile_context>

<pallas_src>
import functools

import jax
import jax.numpy as jnp
from jax import lax
from jax.experimental import pallas as pl
from jax.experimental.pallas import tpu as pltpu

EPS = 1e-5
VMEM_LIMIT = 48 * 1024 * 1024   # < 64 MiB (v7x physical), > 32 MiB default scoped
TIME_BLOCK = 8                  # GRU timesteps processed per grid step
ROW_TILE = 256                  # row tile for the FC head matmul


# ----------------------------- Pallas kernels -----------------------------

def _bn_htanh_mask_kernel(x_ref, scale_ref, shift_ref, o_ref):
    # BatchNorm2d (eval) + Hardtanh(0, 20) + MaskConv time masking.
    # scale/shift already carry the per-(batch,time) validity mask, so a
    # masked frame maps to clip(0) = 0.
    y = x_ref[...] * scale_ref[...] + shift_ref[...]
    o_ref[...] = jnp.clip(y, 0.0, 20.0)


def _bn_relu_proj_kernel(x_ref, scale_ref, shift_ref,
                         wf_ref, bf_ref, wb_ref, bb_ref, of_ref, ob_ref):
    # BNReluRNN front half: BatchNorm1d (eval) + ReLU fused with the GRU input
    # projection of both directions (bf16 MXU operands, f32 accumulation).
    x = jnp.maximum(x_ref[...] * scale_ref[...] + shift_ref[...], 0.0)
    xb = x.astype(jnp.bfloat16)
    of_ref[...] = jnp.dot(xb, wf_ref[...],
                          preferred_element_type=jnp.float32) + bf_ref[...]
    ob_ref[...] = jnp.dot(xb, wb_ref[...],
                          preferred_element_type=jnp.float32) + bb_ref[...]


def _bigru_kernel(gxf_ref, gxb_ref, len_ref,
                  whhf_ref, bhhf_ref, whhb_ref, bhhb_ref,
                  of_ref, ob_ref, hf_ref, hb_ref):
    # Fused bidirectional GRU.  One grid step handles TB forward timesteps and
    # the TB mirrored backward timesteps (reversed index_map on gxb / ob).
    # Hidden states persist in VMEM scratch across grid steps.  Packed
    # sequence semantics: hidden frozen on pad frames, outputs zero-filled.
    s = pl.program_id(0)
    n_chunks = pl.num_programs(0)
    TB = gxf_ref.shape[0]
    H = hf_ref.shape[-1]
    t_total = n_chunks * TB

    @pl.when(s == 0)
    def _():
        hf_ref[...] = jnp.zeros_like(hf_ref)
        hb_ref[...] = jnp.zeros_like(hb_ref)

    lengths = len_ref[...]            # (B, 1) int32, resident
    whh_f = whhf_ref[...]
    whh_b = whhb_ref[...]
    bhh_f = bhhf_ref[...]
    bhh_b = bhhb_ref[...]

    def cell(gx, h, whh, bhh):
        # PyTorch GRU gate order (r, z, n); bhh is inside the r * (.) term.
        gh = jnp.dot(h.astype(jnp.bfloat16), whh,
                     preferred_element_type=jnp.float32) + bhh
        r = jax.nn.sigmoid(gx[:, 0 * H:1 * H] + gh[:, 0 * H:1 * H])
        z = jax.nn.sigmoid(gx[:, 1 * H:2 * H] + gh[:, 1 * H:2 * H])
        n = jnp.tanh(gx[:, 2 * H:3 * H] + r * gh[:, 2 * H:3 * H])
        return (1.0 - z) * n + z * h

    def step(j, carry):
        h_f, h_b = carry
        t_f = s * TB + j                      # forward global time index
        t_b = t_total - 1 - t_f               # backward global time index
        valid_f = (t_f < lengths).astype(jnp.float32)     # (B, 1)
        valid_b = (t_b < lengths).astype(jnp.float32)
        hf_new = cell(gxf_ref[j], h_f, whh_f, bhh_f)
        hb_new = cell(gxb_ref[TB - 1 - j], h_b, whh_b, bhh_b)
        h_f = valid_f * hf_new + (1.0 - valid_f) * h_f    # freeze on pads
        h_b = valid_b * hb_new + (1.0 - valid_b) * h_b
        of_ref[j] = valid_f * hf_new                      # zero-fill pads
        ob_ref[TB - 1 - j] = valid_b * hb_new
        return h_f, h_b

    h_f, h_b = lax.fori_loop(0, TB, step, (hf_ref[...], hb_ref[...]),
                             unroll=True)
    hf_ref[...] = h_f
    hb_ref[...] = h_b


def _fc_head_kernel(x_ref, w1_ref, b1_ref, w2_ref, o_ref, *, num_classes):
    # Linear + ReLU + Linear(bias=False) + log_softmax over a lane-dense,
    # zero-padded class dimension (padded columns masked to -inf).
    h = jnp.dot(x_ref[...].astype(jnp.bfloat16), w1_ref[...],
                preferred_element_type=jnp.float32) + b1_ref[...]
    h = jnp.maximum(h, 0.0)
    logits = jnp.dot(h.astype(jnp.bfloat16), w2_ref[...],
                     preferred_element_type=jnp.float32)
    col = lax.broadcasted_iota(jnp.int32, logits.shape, 1)
    logits = jnp.where(col < num_classes, logits, -1e30)
    mx = jnp.max(logits, axis=-1, keepdims=True)
    lse = mx + jnp.log(jnp.sum(jnp.exp(logits - mx), axis=-1, keepdims=True))
    o_ref[...] = logits - lse


# ----------------------------- kernel wrappers -----------------------------

def _conv_bn_htanh_mask(x_nchw, w, bn, stride, padding, lengths):
    """Conv2d(bias=False) via lax.conv (bf16 MXU, f32 accum) + fused Pallas
    BatchNorm2d(eval) + Hardtanh(0,20) + MaskConv time masking."""
    pf, pt = padding
    y = lax.conv_general_dilated(
        x_nchw.astype(jnp.bfloat16), w.astype(jnp.bfloat16),
        window_strides=stride, padding=[(pf, pf), (pt, pt)],
        dimension_numbers=("NCHW", "OIHW", "NCHW"),
        preferred_element_type=jnp.float32)
    B, OC, Fo, To = y.shape
    gamma, beta, mean, var = bn
    sc = gamma * lax.rsqrt(var + EPS)
    sh = beta - mean * sc
    mask = (jnp.arange(To)[None, :] < lengths[:, None]).astype(jnp.float32)
    # Fold the time-validity mask into the folded-BN scale/shift so the kernel
    # only needs a cheap sublane broadcast:  clip((x*sc + sh) * m) == clip(.)*m.
    scale2 = sc.reshape(1, OC, 1, 1) * mask.reshape(B, 1, 1, To)   # (B,OC,1,To)
    shift2 = sh.reshape(1, OC, 1, 1) * mask.reshape(B, 1, 1, To)   # (B,OC,1,To)

    ct = min(8, OC)
    return pl.pallas_call(
        _bn_htanh_mask_kernel,
        out_shape=jax.ShapeDtypeStruct((B, OC, Fo, To), jnp.float32),
        grid=(B, OC // ct),
        in_specs=[
            pl.BlockSpec((1, ct, Fo, To), lambda b, c: (b, c, 0, 0)),
            pl.BlockSpec((1, ct, 1, To), lambda b, c: (b, c, 0, 0)),
            pl.BlockSpec((1, ct, 1, To), lambda b, c: (b, c, 0, 0)),
        ],
        out_specs=pl.BlockSpec((1, ct, Fo, To), lambda b, c: (b, c, 0, 0)),
        compiler_params=pltpu.CompilerParams(
            dimension_semantics=("parallel", "parallel"),
            vmem_limit_bytes=VMEM_LIMIT),
    )(y, scale2, shift2)


def _bn_relu_proj(x2, scale, shift, wf, bf, wb, bb, row_tile):
    """Row-tiled BN(eval)+ReLU+input-projection for both GRU directions."""
    R, D = x2.shape
    G = wf.shape[1]
    res = lambda i: (0, 0)
    return pl.pallas_call(
        _bn_relu_proj_kernel,
        out_shape=(jax.ShapeDtypeStruct((R, G), jnp.float32),
                   jax.ShapeDtypeStruct((R, G), jnp.float32)),
        grid=(R // row_tile,),
        in_specs=[
            pl.BlockSpec((row_tile, D), lambda i: (i, 0)),
            pl.BlockSpec((1, D), res),
            pl.BlockSpec((1, D), res),
            pl.BlockSpec((D, G), res),       # resident bf16 W_ih^T (fwd)
            pl.BlockSpec((1, G), res),
            pl.BlockSpec((D, G), res),       # resident bf16 W_ih^T (bwd)
            pl.BlockSpec((1, G), res),
        ],
        out_specs=(pl.BlockSpec((row_tile, G), lambda i: (i, 0)),
                   pl.BlockSpec((row_tile, G), lambda i: (i, 0))),
        compiler_params=pltpu.CompilerParams(
            dimension_semantics=("parallel",),
            vmem_limit_bytes=VMEM_LIMIT),
    )(x2, scale, shift, wf, bf, wb, bb)


def _bigru(gx_f, gx_b, lenv, whh_f, bhh_f, whh_b, bhh_b, time_block):
    """Fused bidirectional GRU scan over time (chunked by time_block)."""
    Tp, B, G = gx_f.shape
    H = G // 3
    n_chunks = Tp // time_block
    fwd = lambda s: (s, 0, 0)
    bwd = lambda s, n=n_chunks: (n - 1 - s, 0, 0)
    res = lambda s: (0, 0)
    return pl.pallas_call(
        _bigru_kernel,
        out_shape=(jax.ShapeDtypeStruct((Tp, B, H), jnp.float32),
                   jax.ShapeDtypeStruct((Tp, B, H), jnp.float32)),
        grid=(n_chunks,),
        in_specs=[
            pl.BlockSpec((time_block, B, G), fwd),    # forward gates
            pl.BlockSpec((time_block, B, G), bwd),    # backward gates (reversed)
            pl.BlockSpec((B, 1), res),                # lengths, resident
            pl.BlockSpec((H, G), res),                # W_hh^T fwd (bf16, resident)
            pl.BlockSpec((1, G), res),
            pl.BlockSpec((H, G), res),                # W_hh^T bwd (bf16, resident)
            pl.BlockSpec((1, G), res),
        ],
        out_specs=(pl.BlockSpec((time_block, B, H), fwd),
                   pl.BlockSpec((time_block, B, H), bwd)),
        scratch_shapes=[pltpu.VMEM((B, H), jnp.float32),
                        pltpu.VMEM((B, H), jnp.float32)],
        compiler_params=pltpu.CompilerParams(
            dimension_semantics=("arbitrary",),       # sequential recurrence
            vmem_limit_bytes=VMEM_LIMIT),
    )(gx_f, gx_b, lenv, whh_f, bhh_f, whh_b, bhh_b)


def _fc_head(x2, w1, b1, w2p, num_classes):
    """Row-tiled Linear+ReLU+Linear+log_softmax with lane-dense class padding."""
    R, Din = x2.shape
    Hd = w1.shape[1]
    Cp = w2p.shape[1]
    rt = min(ROW_TILE, R)
    Rp = ((R + rt - 1) // rt) * rt
    if Rp != R:
        x2 = jnp.pad(x2, ((0, Rp - R), (0, 0)))
    res = lambda i: (0, 0)
    out = pl.pallas_call(
        functools.partial(_fc_head_kernel, num_classes=num_classes),
        out_shape=jax.ShapeDtypeStruct((Rp, Cp), jnp.float32),
        grid=(Rp // rt,),
        in_specs=[
            pl.BlockSpec((rt, Din), lambda i: (i, 0)),
            pl.BlockSpec((Din, Hd), res),
            pl.BlockSpec((1, Hd), res),
            pl.BlockSpec((Hd, Cp), res),
        ],
        out_specs=pl.BlockSpec((rt, Cp), lambda i: (i, 0)),
        compiler_params=pltpu.CompilerParams(
            dimension_semantics=("parallel",),
            vmem_limit_bytes=VMEM_LIMIT),
    )(x2, w1, b1, w2p)
    return out[:R, :num_classes]


# ----------------------------- parameters -----------------------------

def init_params(key, input_size, num_classes, num_rnn_layers, hidden):
    keys = iter(jax.random.split(key, 128))

    def nrm(shape, s=0.1):
        return jax.random.normal(next(keys), shape, jnp.float32) * s

    def bn(ch):
        return (jax.random.uniform(next(keys), (ch,), jnp.float32, 0.8, 1.2),  # gamma
                nrm((ch,)),                                                     # beta
                nrm((ch,)),                                                     # running_mean
                jax.random.uniform(next(keys), (ch,), jnp.float32, 0.5, 1.5))   # running_var

    p = {'conv1_w': nrm((32, 1, 41, 11)), 'bn1': bn(32),
         'conv2_w': nrm((32, 32, 21, 11)), 'bn2': bn(32)}

    f1 = (input_size + 2 * 20 - 41) // 2 + 1
    f2 = (f1 + 2 * 10 - 21) // 2 + 1
    rnn_in = f2 * 32                       # input_size <<= 5
    rnn_out = hidden * 2                   # bidirectional

    p['rnn'] = []
    d = rnn_in
    for _ in range(num_rnn_layers):
        p['rnn'].append({
            'bn': bn(d),
            'wih_f': nrm((3 * hidden, d)), 'whh_f': nrm((3 * hidden, hidden)),
            'bih_f': nrm((3 * hidden,)), 'bhh_f': nrm((3 * hidden,)),
            'wih_b': nrm((3 * hidden, d)), 'whh_b': nrm((3 * hidden, hidden)),
            'bih_b': nrm((3 * hidden,)), 'bhh_b': nrm((3 * hidden,)),
        })
        d = rnn_out

    p['fc1_w'] = nrm((hidden, rnn_out))
    p['fc1_b'] = nrm((hidden,))
    p['fc2_w'] = nrm((num_classes, hidden))
    return p


# ----------------------------- forward -----------------------------

@jax.jit
def deepspeech2_forward(params, inputs, input_lengths):
    B, T, F = inputs.shape
    H = params['fc1_w'].shape[0]          # rnn_hidden_dim

    # inputs.unsqueeze(1).permute(0, 1, 3, 2) -> (B, 1, F, T)
    x = inputs.transpose(0, 2, 1)[:, None, :, :]

    # conv block 1 (+ MaskConv time masking)
    len1 = (input_lengths + 2 * 5 - 11) // 2 + 1
    y = _conv_bn_htanh_mask(x, params['conv1_w'], params['bn1'], (2, 2), (20, 5), len1)

    # conv block 2 (+ MaskConv time masking)
    len2 = (len1 + 2 * 5 - 11) // 1 + 1
    y = _conv_bn_htanh_mask(y, params['conv2_w'], params['bn2'], (2, 1), (10, 5), len2)

    # (B, 32, F2, T2) -> view(B, 32*F2, T2) -> permute(2, 0, 1) = (T2, B, D)
    Bc, C, F2, T2 = y.shape
    out = y.reshape(Bc, C * F2, T2).transpose(2, 0, 1)

    # pad time to a multiple of the GRU chunk (pad frames masked via lengths)
    tb = min(TIME_BLOCK, T2)
    Tp = ((T2 + tb - 1) // tb) * tb
    if Tp != T2:
        out = jnp.pad(out, ((0, Tp - T2), (0, 0), (0, 0)))
    lenv = len2.reshape(B, 1).astype(jnp.int32)

    for lp in params['rnn']:
        Tt, Bb, D = out.shape             # Tt == Tp
        gamma, beta, mean, var = lp['bn']
        sc = gamma * lax.rsqrt(var + EPS)
        scale = sc.reshape(1, D)
        shift = (beta - mean * sc).reshape(1, D)
        gx_f, gx_b = _bn_relu_proj(
            out.reshape(Tt * Bb, D), scale, shift,
            lp['wih_f'].T.astype(jnp.bfloat16), lp['bih_f'].reshape(1, -1),
            lp['wih_b'].T.astype(jnp.bfloat16), lp['bih_b'].reshape(1, -1),
            row_tile=tb * Bb)
        out_f, out_b = _bigru(
            gx_f.reshape(Tt, Bb, 3 * H), gx_b.reshape(Tt, Bb, 3 * H), lenv,
            lp['whh_f'].T.astype(jnp.bfloat16), lp['bhh_f'].reshape(1, -1),
            lp['whh_b'].T.astype(jnp.bfloat16), lp['bhh_b'].reshape(1, -1),
            time_block=tb)
        out = jnp.concatenate([out_f, out_b], axis=-1)            # (Tp, B, 2H)

    # output.transpose(0, 1) -> (B, T2, 2H); fc + log_softmax (lane-dense classes)
    out = out[:T2].transpose(1, 0, 2).reshape(B * T2, 2 * H)
    num_classes = params['fc2_w'].shape[0]
    c_pad = ((num_classes + 127) // 128) * 128
    w2p = jnp.zeros((H, c_pad), jnp.bfloat16).at[:, :num_classes].set(
        params['fc2_w'].T.astype(jnp.bfloat16))
    logp = _fc_head(out, params['fc1_w'].T.astype(jnp.bfloat16),
                    params['fc1_b'].reshape(1, -1), w2p, num_classes)
    return logp.reshape(B, T2, num_classes), len2


# ----------------------------- main -----------------------------

if __name__ == "__main__":
    B, T, F = 2, 8, 16             # batch, time frames, spectrogram features
    hidden = 32                    # rnn_hidden_dim
    num_classes = 10
    num_rnn_layers = 5

    key = jax.random.PRNGKey(0)
    kp, kx = jax.random.split(key)
    params = init_params(kp, F, num_classes, num_rnn_layers, hidden)

    inputs = jax.random.normal(kx, (B, T, F), jnp.float32)
    input_lengths = jnp.array([8, 6], dtype=jnp.int32)

    log_probs, out_lengths = deepspeech2_forward(params, inputs, input_lengths)
    jax.block_until_ready((log_probs, out_lengths))
    assert log_probs.shape == (B, 4, num_classes)
    assert bool(jnp.all(jnp.isfinite(log_probs)))
    print("KERNEL_OK")
</pallas_src>

<mosaic_0001>
module attributes {stable_mosaic.version = 11 : i64} {
  func.func @_bn_htanh_mask_kernel(%arg0: i32, %arg1: i32, %arg2: memref<1x8x8x4xf32, #tpu.memory_space<vmem>>, %arg3: memref<1x8x1x4xf32, #tpu.memory_space<vmem>>, %arg4: memref<1x8x1x4xf32, #tpu.memory_space<vmem>>, %arg5: memref<1x8x8x4xf32, #tpu.memory_space<vmem>>) attributes {dimension_semantics = [#tpu.dimension_semantics<parallel>, #tpu.dimension_semantics<parallel>], iteration_bounds = array<i64: 2, 4>, scalar_prefetch = 0 : i64, scratch_operands = 0 : i64, tpu.core_type = #tpu.core_type<tc>, window_params = [{transform_indices = @transform_0, window_bounds = array<i64: 1, 8, 8, 4>}, {transform_indices = @transform_1, window_bounds = array<i64: 1, 8, 1, 4>}, {transform_indices = @transform_2, window_bounds = array<i64: 1, 8, 1, 4>}, {transform_indices = @transform_3, window_bounds = array<i64: 1, 8, 8, 4>}]} {
    %c0 = arith.constant 0 : index
    %c0_0 = arith.constant 0 : index
    %c0_1 = arith.constant 0 : index
    %c0_2 = arith.constant 0 : index
    %0 = vector.load %arg2[%c0, %c0_0, %c0_1, %c0_2] : memref<1x8x8x4xf32, #tpu.memory_space<vmem>>, vector<1x8x8x4xf32>
    %c0_3 = arith.constant 0 : index
    %c0_4 = arith.constant 0 : index
    %c0_5 = arith.constant 0 : index
    %c0_6 = arith.constant 0 : index
    %1 = vector.load %arg3[%c0_3, %c0_4, %c0_5, %c0_6] : memref<1x8x1x4xf32, #tpu.memory_space<vmem>>, vector<1x8x1x4xf32>
    %2 = vector.broadcast %1 : vector<1x8x1x4xf32> to vector<1x8x8x4xf32>
    %3 = arith.mulf %0, %2 : vector<1x8x8x4xf32>
    %c0_7 = arith.constant 0 : index
    %c0_8 = arith.constant 0 : index
    %c0_9 = arith.constant 0 : index
    %c0_10 = arith.constant 0 : index
    %4 = vector.load %arg4[%c0_7, %c0_8, %c0_9, %c0_10] : memref<1x8x1x4xf32, #tpu.memory_space<vmem>>, vector<1x8x1x4xf32>
    %5 = vector.broadcast %4 : vector<1x8x1x4xf32> to vector<1x8x8x4xf32>
    %6 = arith.addf %3, %5 : vector<1x8x8x4xf32>
    %cst = arith.constant 0.000000e+00 : f32
    %cst_11 = arith.constant 2.000000e+01 : f32
    %7 = vector.broadcast %cst : f32 to vector<1x8x8x4xf32>
    %8 = arith.maximumf %7, %6 : vector<1x8x8x4xf32>
    %9 = vector.broadcast %cst_11 : f32 to vector<1x8x8x4xf32>
    %10 = arith.minimumf %9, %8 : vector<1x8x8x4xf32>
    %c0_12 = arith.constant 0 : index
    %c0_13 = arith.constant 0 : index
    %c0_14 = arith.constant 0 : index
    %c0_15 = arith.constant 0 : index
    %11 = vector.load %arg5[%c0_12, %c0_13, %c0_14, %c0_15] : memref<1x8x8x4xf32, #tpu.memory_space<vmem>>, vector<1x8x8x4xf32>
    tpu.vector_store %arg5[%c0_12, %c0_13, %c0_14, %c0_15], %10 {strides = array<i32>} : memref<1x8x8x4xf32, #tpu.memory_space<vmem>>, vector<1x8x8x4xf32>,
    return
  }
  func.func @transform_0(%arg0: i32, %arg1: i32) -> (i32, i32, i32, i32) {
    %c0_i32 = arith.constant 0 : i32
    %c0_i32_0 = arith.constant 0 : i32
    %c0_i32_1 = arith.constant 0 : i32
    return %arg0, %arg1, %c0_i32, %c0_i32_0 : i32, i32, i32, i32
  }
  func.func @transform_1(%arg0: i32, %arg1: i32) -> (i32, i32, i32, i32) {
    %c0_i32 = arith.constant 0 : i32
    %c0_i32_0 = arith.constant 0 : i32
    %c0_i32_1 = arith.constant 0 : i32
    return %arg0, %arg1, %c0_i32, %c0_i32_0 : i32, i32, i32, i32
  }
  func.func @transform_2(%arg0: i32, %arg1: i32) -> (i32, i32, i32, i32) {
    %c0_i32 = arith.constant 0 : i32
    %c0_i32_0 = arith.constant 0 : i32
    %c0_i32_1 = arith.constant 0 : i32
    return %arg0, %arg1, %c0_i32, %c0_i32_0 : i32, i32, i32, i32
  }
  func.func @transform_3(%arg0: i32, %arg1: i32) -> (i32, i32, i32, i32) {
    %c0_i32 = arith.constant 0 : i32
    %c0_i32_0 = arith.constant 0 : i32
    %c0_i32_1 = arith.constant 0 : i32
    return %arg0, %arg1, %c0_i32, %c0_i32_0 : i32, i32, i32, i32
  }
}

module attributes {stable_mosaic.version = 11 : i64} {
  func.func @_bn_htanh_mask_kernel(%arg0: i32, %arg1: i32, %arg2: memref<1x8x4x4xf32, #tpu.memory_space<vmem>>, %arg3: memref<1x8x1x4xf32, #tpu.memory_space<vmem>>, %arg4: memref<1x8x1x4xf32, #tpu.memory_space<vmem>>, %arg5: memref<1x8x4x4xf32, #tpu.memory_space<vmem>>) attributes {dimension_semantics = [#tpu.dimension_semantics<parallel>, #tpu.dimension_semantics<parallel>], iteration_bounds = array<i64: 2, 4>, scalar_prefetch = 0 : i64, scratch_operands = 0 : i64, tpu.core_type = #tpu.core_type<tc>, window_params = [{transform_indices = @transform_0, window_bounds = array<i64: 1, 8, 4, 4>}, {transform_indices = @transform_1, window_bounds = array<i64: 1, 8, 1, 4>}, {transform_indices = @transform_2, window_bounds = array<i64: 1, 8, 1, 4>}, {transform_indices = @transform_3, window_bounds = array<i64: 1, 8, 4, 4>}]} {
    %c0 = arith.constant 0 : index
    %c0_0 = arith.constant 0 : index
    %c0_1 = arith.constant 0 : index
    %c0_2 = arith.constant 0 : index
    %0 = vector.load %arg2[%c0, %c0_0, %c0_1, %c0_2] : memref<1x8x4x4xf32, #tpu.memory_space<vmem>>, vector<1x8x4x4xf32>
    %c0_3 = arith.constant 0 : index
    %c0_4 = arith.constant 0 : index
    %c0_5 = arith.constant 0 : index
    %c0_6 = arith.constant 0 : index
    %1 = vector.load %arg3[%c0_3, %c0_4, %c0_5, %c0_6] : memref<1x8x1x4xf32, #tpu.memory_space<vmem>>, vector<1x8x1x4xf32>
    %2 = vector.broadcast %1 : vector<1x8x1x4xf32> to vector<1x8x4x4xf32>
    %3 = arith.mulf %0, %2 : vector<1x8x4x4xf32>
    %c0_7 = arith.constant 0 : index
    %c0_8 = arith.constant 0 : index
    %c0_9 = arith.constant 0 : index
    %c0_10 = arith.constant 0 : index
    %4 = vector.load %arg4[%c0_7, %c0_8, %c0_9, %c0_10] : memref<1x8x1x4xf32, #tpu.memory_space<vmem>>, vector<1x8x1x4xf32>
    %5 = vector.broadcast %4 : vector<1x8x1x4xf32> to vector<1x8x4x4xf32>
    %6 = arith.addf %3, %5 : vector<1x8x4x4xf32>
    %cst = arith.constant 0.000000e+00 : f32
    %cst_11 = arith.constant 2.000000e+01 : f32
    %7 = vector.broadcast %cst : f32 to vector<1x8x4x4xf32>
    %8 = arith.maximumf %7, %6 : vector<1x8x4x4xf32>
    %9 = vector.broadcast %cst_11 : f32 to vector<1x8x4x4xf32>
    %10 = arith.minimumf %9, %8 : vector<1x8x4x4xf32>
    %c0_12 = arith.constant 0 : index
    %c0_13 = arith.constant 0 : index
    %c0_14 = arith.constant 0 : index
    %c0_15 = arith.constant 0 : index
    %11 = vector.load %arg5[%c0_12, %c0_13, %c0_14, %c0_15] : memref<1x8x4x4xf32, #tpu.memory_space<vmem>>, vector<1x8x4x4xf32>
    tpu.vector_store %arg5[%c0_12, %c0_13, %c0_14, %c0_15], %10 {strides = array<i32>} : memref<1x8x4x4xf32, #tpu.memory_space<vmem>>, vector<1x8x4x4xf32>,
    return
  }
  func.func @transform_0(%arg0: i32, %arg1: i32) -> (i32, i32, i32, i32) {
    %c0_i32 = arith.constant 0 : i32
    %c0_i32_0 = arith.constant 0 : i32
    %c0_i32_1 = arith.constant 0 : i32
    return %arg0, %arg1, %c0_i32, %c0_i32_0 : i32, i32, i32, i32
  }
  func.func @transform_1(%arg0: i32, %arg1: i32) -> (i32, i32, i32, i32) {
    %c0_i32 = arith.constant 0 : i32
    %c0_i32_0 = arith.constant 0 : i32
    %c0_i32_1 = arith.constant 0 : i32
    return %arg0, %arg1, %c0_i32, %c0_i32_0 : i32, i32, i32, i32
  }
  func.func @transform_2(%arg0: i32, %arg1: i32) -> (i32, i32, i32, i32) {
    %c0_i32 = arith.constant 0 : i32
    %c0_i32_0 = arith.constant 0 : i32
    %c0_i32_1 = arith.constant 0 : i32
    return %arg0, %arg1, %c0_i32, %c0_i32_0 : i32, i32, i32, i32
  }
  func.func @transform_3(%arg0: i32, %arg1: i32) -> (i32, i32, i32, i32) {
    %c0_i32 = arith.constant 0 : i32
    %c0_i32_0 = arith.constant 0 : i32
    %c0_i32_1 = arith.constant 0 : i32
    return %arg0, %arg1, %c0_i32, %c0_i32_0 : i32, i32, i32, i32
  }
}

module attributes {stable_mosaic.version = 11 : i64} {
  func.func @_bn_relu_proj_kernel(%arg0: i32, %arg1: memref<8x128xf32, #tpu.memory_space<vmem>>, %arg2: memref<1x128xf32, #tpu.memory_space<vmem>>, %arg3: memref<1x128xf32, #tpu.memory_space<vmem>>, %arg4: memref<128x96xbf16, #tpu.memory_space<vmem>>, %arg5: memref<1x96xf32, #tpu.memory_space<vmem>>, %arg6: memref<128x96xbf16, #tpu.memory_space<vmem>>, %arg7: memref<1x96xf32, #tpu.memory_space<vmem>>, %arg8: memref<8x96xf32, #tpu.memory_space<vmem>>, %arg9: memref<8x96xf32, #tpu.memory_space<vmem>>) attributes {dimension_semantics = [#tpu.dimension_semantics<parallel>], iteration_bounds = array<i64: 1>, scalar_prefetch = 0 : i64, scratch_operands = 0 : i64, tpu.core_type = #tpu.core_type<tc>, window_params = [{transform_indices = @transform_0, window_bounds = array<i64: 8, 128>}, {pipeline_mode = #tpu.pipeline_mode<synchronous>, transform_indices = @transform_1, window_bounds = array<i64: 1, 128>}, {pipeline_mode = #tpu.pipeline_mode<synchronous>, transform_indices = @transform_2, window_bounds = array<i64: 1, 128>}, {pipeline_mode = #tpu.pipeline_mode<synchronous>, transform_indices = @transform_3, window_bounds = array<i64: 128, 96>}, {pipeline_mode = #tpu.pipeline_mode<synchronous>, transform_indices = @transform_4, window_bounds = array<i64: 1, 96>}, {pipeline_mode = #tpu.pipeline_mode<synchronous>, transform_indices = @transform_5, window_bounds = array<i64: 128, 96>}, {pipeline_mode = #tpu.pipeline_mode<synchronous>, transform_indices = @transform_6, window_bounds = array<i64: 1, 96>}, {transform_indices = @transform_7, window_bounds = array<i64: 8, 96>}, {transform_indices = @transform_8, window_bounds = array<i64: 8, 96>}]} {
    %c0 = arith.constant 0 : index
    %c0_0 = arith.constant 0 : index
    %0 = vector.load %arg1[%c0, %c0_0] : memref<8x128xf32, #tpu.memory_space<vmem>>, vector<8x128xf32>
    %c0_1 = arith.constant 0 : index
    %c0_2 = arith.constant 0 : index
    %1 = vector.load %arg2[%c0_1, %c0_2] : memref<1x128xf32, #tpu.memory_space<vmem>>, vector<1x128xf32>
    %2 = vector.broadcast %1 : vector<1x128xf32> to vector<8x128xf32>
    %3 = arith.mulf %0, %2 : vector<8x128xf32>
    %c0_3 = arith.constant 0 : index
    %c0_4 = arith.constant 0 : index
    %4 = vector.load %arg3[%c0_3, %c0_4] : memref<1x128xf32, #tpu.memory_space<vmem>>, vector<1x128xf32>
    %5 = vector.broadcast %4 : vector<1x128xf32> to vector<8x128xf32>
    %6 = arith.addf %3, %5 : vector<8x128xf32>
    %cst = arith.constant 0.000000e+00 : f32
    %7 = vector.broadcast %cst : f32 to vector<8x128xf32>
    %8 = arith.maximumf %6, %7 : vector<8x128xf32>
    %9 = arith.truncf %8 : vector<8x128xf32> to vector<8x128xbf16>
    %c0_5 = arith.constant 0 : index
    %c0_6 = arith.constant 0 : index
    %10 = vector.load %arg4[%c0_5, %c0_6] : memref<128x96xbf16, #tpu.memory_space<vmem>>, vector<128x96xbf16>
    %cst_7 = arith.constant dense<0.000000e+00> : vector<8x96xf32>
    %11 = tpu.matmul %9, %10, %cst_7 {dimension_numbers = #tpu.dot_dimension_numbers<[1], [0], [0], [1], [0, 0, 1, 1], [], []>} : vector<8x128xbf16>, vector<128x96xbf16>, vector<8x96xf32> -> vector<8x96xf32>
    %c0_8 = arith.constant 0 : index
    %c0_9 = arith.constant 0 : index
    %12 = vector.load %arg5[%c0_8, %c0_9] : memref<1x96xf32, #tpu.memory_space<vmem>>, vector<1x96xf32>
    %13 = vector.broadcast %12 : vector<1x96xf32> to vector<8x96xf32>
    %14 = arith.addf %11, %13 : vector<8x96xf32>
    %c0_10 = arith.constant 0 : index
    %c0_11 = arith.constant 0 : index
    %15 = vector.load %arg8[%c0_10, %c0_11] : memref<8x96xf32, #tpu.memory_space<vmem>>, vector<8x96xf32>
    tpu.vector_store %arg8[%c0_10, %c0_11], %14 {strides = array<i32>} : memref<8x96xf32, #tpu.memory_space<vmem>>, vector<8x96xf32>,
    %c0_12 = arith.constant 0 : index
    %c0_13 = arith.constant 0 : index
    %16 = vector.load %arg6[%c0_12, %c0_13] : memref<128x96xbf16, #tpu.memory_space<vmem>>, vector<128x96xbf16>
    %cst_14 = arith.constant dense<0.000000e+00> : vector<8x96xf32>
    %17 = tpu.matmul %9, %16, %cst_14 {dimension_numbers = #tpu.dot_dimension_numbers<[1], [0], [0], [1], [0, 0, 1, 1], [], []>} : vector<8x128xbf16>, vector<128x96xbf16>, vector<8x96xf32> -> vector<8x96xf32>
    %c0_15 = arith.constant 0 : index
    %c0_16 = arith.constant 0 : index
    %18 = vector.load %arg7[%c0_15, %c0_16] : memref<1x96xf32, #tpu.memory_space<vmem>>, vector<1x96xf32>
    %19 = vector.broadcast %18 : vector<1x96xf32> to vector<8x96xf32>
    %20 = arith.addf %17, %19 : vector<8x96xf32>
    %c0_17 = arith.constant 0 : index
    %c0_18 = arith.constant 0 : index
    %21 = vector.load %arg9[%c0_17, %c0_18] : memref<8x96xf32, #tpu.memory_space<vmem>>, vector<8x96xf32>
    tpu.vector_store %arg9[%c0_17, %c0_18], %20 {strides = array<i32>} : memref<8x96xf32, #tpu.memory_space<vmem>>, vector<8x96xf32>,
    return
  }
  func.func @transform_0(%arg0: i32) -> (i32, i32) {
    %c0_i32 = arith.constant 0 : i32
    %c0_i32_0 = arith.constant 0 : i32
    return %arg0, %c0_i32 : i32, i32
  }
  func.func @transform_1(%arg0: i32) -> (i32, i32) {
    %c0_i32 = arith.constant 0 : i32
    %c0_i32_0 = arith.constant 0 : i32
    %c0_i32_1 = arith.constant 0 : i32
    return %c0_i32, %c0_i32_0 : i32, i32
  }
  func.func @transform_2(%arg0: i32) -> (i32, i32) {
    %c0_i32 = arith.constant 0 : i32
    %c0_i32_0 = arith.constant 0 : i32
    %c0_i32_1 = arith.constant 0 : i32
    return %c0_i32, %c0_i32_0 : i32, i32
  }
  func.func @transform_3(%arg0: i32) -> (i32, i32) {
    %c0_i32 = arith.constant 0 : i32
    %c0_i32_0 = arith.constant 0 : i32
    %c0_i32_1 = arith.constant 0 : i32
    return %c0_i32, %c0_i32_0 : i32, i32
  }
  func.func @transform_4(%arg0: i32) -> (i32, i32) {
    %c0_i32 = arith.constant 0 : i32
    %c0_i32_0 = arith.constant 0 : i32
    %c0_i32_1 = arith.constant 0 : i32
    return %c0_i32, %c0_i32_0 : i32, i32
  }
  func.func @transform_5(%arg0: i32) -> (i32, i32) {
    %c0_i32 = arith.constant 0 : i32
    %c0_i32_0 = arith.constant 0 : i32
    %c0_i32_1 = arith.constant 0 : i32
    return %c0_i32, %c0_i32_0 : i32, i32
  }
  func.func @transform_6(%arg0: i32) -> (i32, i32) {
    %c0_i32 = arith.constant 0 : i32
    %c0_i32_0 = arith.constant 0 : i32
    %c0_i32_1 = arith.constant 0 : i32
    return %c0_i32, %c0_i32_0 : i32, i32
  }
  func.func @transform_7(%arg0: i32) -> (i32, i32) {
    %c0_i32 = arith.constant 0 : i32
    %c0_i32_0 = arith.constant 0 : i32
    return %arg0, %c0_i32 : i32, i32
  }
  func.func @transform_8(%arg0: i32) -> (i32, i32) {
    %c0_i32 = arith.constant 0 : i32
    %c0_i32_0 = arith.constant 0 : i32
    return %arg0, %c0_i32 : i32, i32
  }
}

module attributes {stable_mosaic.version = 11 : i64} {
  func.func @_bigru_kernel(%arg0: i32, %arg1: memref<4x2x96xf32, #tpu.memory_space<vmem>>, %arg2: memref<4x2x96xf32, #tpu.memory_space<vmem>>, %arg3: memref<2x1xi32, #tpu.memory_space<vmem>>, %arg4: memref<32x96xbf16, #tpu.memory_space<vmem>>, %arg5: memref<1x96xf32, #tpu.memory_space<vmem>>, %arg6: memref<32x96xbf16, #tpu.memory_space<vmem>>, %arg7: memref<1x96xf32, #tpu.memory_space<vmem>>, %arg8: memref<4x2x32xf32, #tpu.memory_space<vmem>>, %arg9: memref<4x2x32xf32, #tpu.memory_space<vmem>>, %arg10: memref<2x32xf32, #tpu.memory_space<vmem>>, %arg11: memref<2x32xf32, #tpu.memory_space<vmem>>) attributes {dimension_semantics = [#tpu.dimension_semantics<arbitrary>], iteration_bounds = array<i64: 1>, scalar_prefetch = 0 : i64, scratch_operands = 2 : i64, tpu.core_type = #tpu.core_type<tc>, window_params = [{transform_indices = @transform_0, window_bounds = array<i64: 4, 2, 96>}, {transform_indices = @transform_1, window_bounds = array<i64: 4, 2, 96>}, {pipeline_mode = #tpu.pipeline_mode<synchronous>, transform_indices = @transform_2, window_bounds = array<i64: 2, 1>}, {pipeline_mode = #tpu.pipeline_mode<synchronous>, transform_indices = @transform_3, window_bounds = array<i64: 32, 96>}, {pipeline_mode = #tpu.pipeline_mode<synchronous>, transform_indices = @transform_4, window_bounds = array<i64: 1, 96>}, {pipeline_mode = #tpu.pipeline_mode<synchronous>, transform_indices = @transform_5, window_bounds = array<i64: 32, 96>}, {pipeline_mode = #tpu.pipeline_mode<synchronous>, transform_indices = @transform_6, window_bounds = array<i64: 1, 96>}, {transform_indices = @transform_7, window_bounds = array<i64: 4, 2, 32>}, {transform_indices = @transform_8, window_bounds = array<i64: 4, 2, 32>}]} {
    %c0_i32 = arith.constant 0 : i32
    %0 = arith.cmpi eq, %arg0, %c0_i32 : i32
    %1 = arith.extui %0 : i1 to i32
    %c0_i32_0 = arith.constant 0 : i32
    %2 = arith.cmpi ne, %1, %c0_i32_0 : i32
    scf.if %2 {
      %cst_106 = arith.constant 0.000000e+00 : f32
      %432 = vector.broadcast %cst_106 : f32 to vector<2x32xf32>
      %c0_107 = arith.constant 0 : index
      %c0_108 = arith.constant 0 : index
      %433 = vector.load %arg10[%c0_107, %c0_108] : memref<2x32xf32, #tpu.memory_space<vmem>>, vector<2x32xf32>
      tpu.vector_store %arg10[%c0_107, %c0_108], %432 {strides = array<i32>} : memref<2x32xf32, #tpu.memory_space<vmem>>, vector<2x32xf32>,
      %cst_109 = arith.constant 0.000000e+00 : f32
      %434 = vector.broadcast %cst_109 : f32 to vector<2x32xf32>
      %c0_110 = arith.constant 0 : index
      %c0_111 = arith.constant 0 : index
      %435 = vector.load %arg11[%c0_110, %c0_111] : memref<2x32xf32, #tpu.memory_space<vmem>>, vector<2x32xf32>
      tpu.vector_store %arg11[%c0_110, %c0_111], %434 {strides = array<i32>} : memref<2x32xf32, #tpu.memory_space<vmem>>, vector<2x32xf32>,
    } else {
    }
    %c0 = arith.constant 0 : index
    %c0_1 = arith.constant 0 : index
    %3 = vector.load %arg3[%c0, %c0_1] : memref<2x1xi32, #tpu.memory_space<vmem>>, vector<2x1xi32>
    %c0_2 = arith.constant 0 : index
    %c0_3 = arith.constant 0 : index
    %4 = vector.load %arg4[%c0_2, %c0_3] : memref<32x96xbf16, #tpu.memory_space<vmem>>, vector<32x96xbf16>
    %c0_4 = arith.constant 0 : index
    %c0_5 = arith.constant 0 : index
    %5 = vector.load %arg6[%c0_4, %c0_5] : memref<32x96xbf16, #tpu.memory_space<vmem>>, vector<32x96xbf16>
    %c0_6 = arith.constant 0 : index
    %c0_7 = arith.constant 0 : index
    %6 = vector.load %arg5[%c0_6, %c0_7] : memref<1x96xf32, #tpu.memory_space<vmem>>, vector<1x96xf32>
    %c0_8 = arith.constant 0 : index
    %c0_9 = arith.constant 0 : index
    %7 = vector.load %arg7[%c0_8, %c0_9] : memref<1x96xf32, #tpu.memory_space<vmem>>, vector<1x96xf32>
    %c0_10 = arith.constant 0 : index
    %c0_11 = arith.constant 0 : index
    %8 = vector.load %arg10[%c0_10, %c0_11] : memref<2x32xf32, #tpu.memory_space<vmem>>, vector<2x32xf32>
    %c0_12 = arith.constant 0 : index
    %c0_13 = arith.constant 0 : index
    %9 = vector.load %arg11[%c0_12, %c0_13] : memref<2x32xf32, #tpu.memory_space<vmem>>, vector<2x32xf32>
    %c0_i32_14 = arith.constant 0 : i32
    %c4_i32 = arith.constant 4 : i32
    %10 = arith.muli %arg0, %c4_i32 : i32
    %11 = arith.addi %10, %c0_i32_14 : i32
    %c3_i32 = arith.constant 3 : i32
    %12 = arith.subi %c3_i32, %11 : i32
    %13 = vector.broadcast %11 : i32 to vector<2x1xi32>
    %14 = arith.cmpi slt, %13, %3 : vector<2x1xi32>
    %15 = arith.extui %14 : vector<2x1xi1> to vector<2x1xi32>
    %16 = arith.sitofp %15 : vector<2x1xi32> to vector<2x1xf32>
    %17 = vector.broadcast %12 : i32 to vector<2x1xi32>
    %18 = arith.cmpi slt, %17, %3 : vector<2x1xi32>
    %19 = arith.extui %18 : vector<2x1xi1> to vector<2x1xi32>
    %20 = arith.sitofp %19 : vector<2x1xi32> to vector<2x1xf32>
    %21 = arith.index_cast %c0_i32_14 : i32 to index
    %c0_15 = arith.constant 0 : index
    %c0_16 = arith.constant 0 : index
    %22 = vector.load %arg1[%21, %c0_15, %c0_16] : memref<4x2x96xf32, #tpu.memory_space<vmem>>, vector<1x2x96xf32>
    %23 = vector.shape_cast %22 : vector<1x2x96xf32> to vector<2x96xf32>
    %24 = arith.truncf %8 : vector<2x32xf32> to vector<2x32xbf16>
    %cst = arith.constant dense<0.000000e+00> : vector<2x96xf32>
    %25 = tpu.matmul %24, %4, %cst {dimension_numbers = #tpu.dot_dimension_numbers<[1], [0], [0], [1], [0, 0, 1, 1], [], []>} : vector<2x32xbf16>, vector<32x96xbf16>, vector<2x96xf32> -> vector<2x96xf32>
    %26 = vector.broadcast %6 : vector<1x96xf32> to vector<2x96xf32>
    %27 = arith.addf %25, %26 : vector<2x96xf32>
    %28 = vector.extract_strided_slice %23 {offsets = [0, 0], sizes = [2, 32], strides = [1, 1]} : vector<2x96xf32> to vector<2x32xf32>
    %29 = vector.extract_strided_slice %27 {offsets = [0, 0], sizes = [2, 32], strides = [1, 1]} : vector<2x96xf32> to vector<2x32xf32>
    %30 = arith.addf %28, %29 : vector<2x32xf32>
    %31 = arith.negf %30 : vector<2x32xf32>
    %32 = math.exp %31 : vector<2x32xf32>
    %cst_17 = arith.constant 1.000000e+00 : f32
    %33 = vector.broadcast %cst_17 : f32 to vector<2x32xf32>
    %34 = arith.addf %33, %32 : vector<2x32xf32>
    %35 = arith.divf %33, %34 : vector<2x32xf32>
    %36 = vector.extract_strided_slice %23 {offsets = [0, 32], sizes = [2, 32], strides = [1, 1]} : vector<2x96xf32> to vector<2x32xf32>
    %37 = vector.extract_strided_slice %27 {offsets = [0, 32], sizes = [2, 32], strides = [1, 1]} : vector<2x96xf32> to vector<2x32xf32>
    %38 = arith.addf %36, %37 : vector<2x32xf32>
    %39 = arith.negf %38 : vector<2x32xf32>
    %40 = math.exp %39 : vector<2x32xf32>
    %cst_18 = arith.constant 1.000000e+00 : f32
    %41 = vector.broadcast %cst_18 : f32 to vector<2x32xf32>
    %42 = arith.addf %41, %40 : vector<2x32xf32>
    %43 = arith.divf %41, %42 : vector<2x32xf32>
    %44 = vector.extract_strided_slice %23 {offsets = [0, 64], sizes = [2, 32], strides = [1, 1]} : vector<2x96xf32> to vector<2x32xf32>
    %45 = vector.extract_strided_slice %27 {offsets = [0, 64], sizes = [2, 32], strides = [1, 1]} : vector<2x96xf32> to vector<2x32xf32>
    %46 = arith.mulf %35, %45 : vector<2x32xf32>
    %47 = arith.addf %44, %46 : vector<2x32xf32>
    %48 = math.tanh %47 : vector<2x32xf32>
    %cst_19 = arith.constant 1.000000e+00 : f32
    %49 = vector.broadcast %cst_19 : f32 to vector<2x32xf32>
    %50 = arith.subf %49, %43 : vector<2x32xf32>
    %51 = arith.mulf %50, %48 : vector<2x32xf32>
    %52 = arith.mulf %43, %8 : vector<2x32xf32>
    %53 = arith.addf %51, %52 : vector<2x32xf32>
    %c3_i32_20 = arith.constant 3 : i32
    %54 = arith.subi %c3_i32_20, %c0_i32_14 : i32
    %55 = arith.index_cast %54 : i32 to index
    %c0_21 = arith.constant 0 : index
    %c0_22 = arith.constant 0 : index
    %56 = vector.load %arg2[%55, %c0_21, %c0_22] : memref<4x2x96xf32, #tpu.memory_space<vmem>>, vector<1x2x96xf32>
    %57 = vector.shape_cast %56 : vector<1x2x96xf32> to vector<2x96xf32>
    %58 = arith.truncf %9 : vector<2x32xf32> to vector<2x32xbf16>
    %cst_23 = arith.constant dense<0.000000e+00> : vector<2x96xf32>
    %59 = tpu.matmul %58, %5, %cst_23 {dimension_numbers = #tpu.dot_dimension_numbers<[1], [0], [0], [1], [0, 0, 1, 1], [], []>} : vector<2x32xbf16>, vector<32x96xbf16>, vector<2x96xf32> -> vector<2x96xf32>
    %60 = vector.broadcast %7 : vector<1x96xf32> to vector<2x96xf32>
    %61 = arith.addf %59, %60 : vector<2x96xf32>
    %62 = vector.extract_strided_slice %57 {offsets = [0, 0], sizes = [2, 32], strides = [1, 1]} : vector<2x96xf32> to vector<2x32xf32>
    %63 = vector.extract_strided_slice %61 {offsets = [0, 0], sizes = [2, 32], strides = [1, 1]} : vector<2x96xf32> to vector<2x32xf32>
    %64 = arith.addf %62, %63 : vector<2x32xf32>
    %65 = arith.negf %64 : vector<2x32xf32>
    %66 = math.exp %65 : vector<2x32xf32>
    %cst_24 = arith.constant 1.000000e+00 : f32
    %67 = vector.broadcast %cst_24 : f32 to vector<2x32xf32>
    %68 = arith.addf %67, %66 : vector<2x32xf32>
    %69 = arith.divf %67, %68 : vector<2x32xf32>
    %70 = vector.extract_strided_slice %57 {offsets = [0, 32], sizes = [2, 32], strides = [1, 1]} : vector<2x96xf32> to vector<2x32xf32>
    %71 = vector.extract_strided_slice %61 {offsets = [0, 32], sizes = [2, 32], strides = [1, 1]} : vector<2x96xf32> to vector<2x32xf32>
    %72 = arith.addf %70, %71 : vector<2x32xf32>
    %73 = arith.negf %72 : vector<2x32xf32>
    %74 = math.exp %73 : vector<2x32xf32>
    %cst_25 = arith.constant 1.000000e+00 : f32
    %75 = vector.broadcast %cst_25 : f32 to vector<2x32xf32>
    %76 = arith.addf %75, %74 : vector<2x32xf32>
    %77 = arith.divf %75, %76 : vector<2x32xf32>
    %78 = vector.extract_strided_slice %57 {offsets = [0, 64], sizes = [2, 32], strides = [1, 1]} : vector<2x96xf32> to vector<2x32xf32>
    %79 = vector.extract_strided_slice %61 {offsets = [0, 64], sizes = [2, 32], strides = [1, 1]} : vector<2x96xf32> to vector<2x32xf32>
    %80 = arith.mulf %69, %79 : vector<2x32xf32>
    %81 = arith.addf %78, %80 : vector<2x32xf32>
    %82 = math.tanh %81 : vector<2x32xf32>
    %cst_26 = arith.constant 1.000000e+00 : f32
    %83 = vector.broadcast %cst_26 : f32 to vector<2x32xf32>
    %84 = arith.subf %83, %77 : vector<2x32xf32>
    %85 = arith.mulf %84, %82 : vector<2x32xf32>
    %86 = arith.mulf %77, %9 : vector<2x32xf32>
    %87 = arith.addf %85, %86 : vector<2x32xf32>
    %88 = vector.broadcast %16 : vector<2x1xf32> to vector<2x32xf32>
    %89 = arith.mulf %88, %53 : vector<2x32xf32>
    %cst_27 = arith.constant 1.000000e+00 : f32
    %90 = vector.broadcast %cst_27 : f32 to vector<2x1xf32>
    %91 = arith.subf %90, %16 : vector<2x1xf32>
    %92 = vector.broadcast %91 : vector<2x1xf32> to vector<2x32xf32>
    %93 = arith.mulf %92, %8 : vector<2x32xf32>
    %94 = arith.addf %89, %93 : vector<2x32xf32>
    %95 = vector.broadcast %20 : vector<2x1xf32> to vector<2x32xf32>
    %96 = arith.mulf %95, %87 : vector<2x32xf32>
    %cst_28 = arith.constant 1.000000e+00 : f32
    %97 = vector.broadcast %cst_28 : f32 to vector<2x1xf32>
    %98 = arith.subf %97, %20 : vector<2x1xf32>
    %99 = vector.broadcast %98 : vector<2x1xf32> to vector<2x32xf32>
    %100 = arith.mulf %99, %9 : vector<2x32xf32>
    %101 = arith.addf %96, %100 : vector<2x32xf32>
    %102 = vector.broadcast %16 : vector<2x1xf32> to vector<2x32xf32>
    %103 = arith.mulf %102, %53 : vector<2x32xf32>
    %104 = arith.index_cast %c0_i32_14 : i32 to index
    %c0_29 = arith.constant 0 : index
    %c0_30 = arith.constant 0 : index
    %105 = vector.load %arg8[%104, %c0_29, %c0_30] : memref<4x2x32xf32, #tpu.memory_space<vmem>>, vector<1x2x32xf32>
    %106 = vector.shape_cast %105 : vector<1x2x32xf32> to vector<2x32xf32>
    %107 = vector.shape_cast %103 : vector<2x32xf32> to vector<1x2x32xf32>
    tpu.vector_store %arg8[%104, %c0_29, %c0_30], %107 {strides = array<i32>} : memref<4x2x32xf32, #tpu.memory_space<vmem>>, vector<1x2x32xf32>,
    %108 = vector.broadcast %20 : vector<2x1xf32> to vector<2x32xf32>
    %109 = arith.mulf %108, %87 : vector<2x32xf32>
    %c3_i32_31 = arith.constant 3 : i32
    %110 = arith.subi %c3_i32_31, %c0_i32_14 : i32
    %111 = arith.index_cast %110 : i32 to index
    %c0_32 = arith.constant 0 : index
    %c0_33 = arith.constant 0 : index
    %112 = vector.load %arg9[%111, %c0_32, %c0_33] : memref<4x2x32xf32, #tpu.memory_space<vmem>>, vector<1x2x32xf32>
    %113 = vector.shape_cast %112 : vector<1x2x32xf32> to vector<2x32xf32>
    %114 = vector.shape_cast %109 : vector<2x32xf32> to vector<1x2x32xf32>
    tpu.vector_store %arg9[%111, %c0_32, %c0_33], %114 {strides = array<i32>} : memref<4x2x32xf32, #tpu.memory_space<vmem>>, vector<1x2x32xf32>,
    %c1_i32 = arith.constant 1 : i32
    %c4_i32_34 = arith.constant 4 : i32
    %115 = arith.muli %arg0, %c4_i32_34 : i32
    %116 = arith.addi %115, %c1_i32 : i32
    %c3_i32_35 = arith.constant 3 : i32
    %117 = arith.subi %c3_i32_35, %116 : i32
    %118 = vector.broadcast %116 : i32 to vector<2x1xi32>
    %119 = arith.cmpi slt, %118, %3 : vector<2x1xi32>
    %120 = arith.extui %119 : vector<2x1xi1> to vector<2x1xi32>
    %121 = arith.sitofp %120 : vector<2x1xi32> to vector<2x1xf32>
    %122 = vector.broadcast %117 : i32 to vector<2x1xi32>
    %123 = arith.cmpi slt, %122, %3 : vector<2x1xi32>
    %124 = arith.extui %123 : vector<2x1xi1> to vector<2x1xi32>
    %125 = arith.sitofp %124 : vector<2x1xi32> to vector<2x1xf32>
    %126 = arith.index_cast %c1_i32 : i32 to index
    %c0_36 = arith.constant 0 : index
    %c0_37 = arith.constant 0 : index
    %127 = vector.load %arg1[%126, %c0_36, %c0_37] : memref<4x2x96xf32, #tpu.memory_space<vmem>>, vector<1x2x96xf32>
    %128 = vector.shape_cast %127 : vector<1x2x96xf32> to vector<2x96xf32>
    %129 = arith.truncf %94 : vector<2x32xf32> to vector<2x32xbf16>
    %cst_38 = arith.constant dense<0.000000e+00> : vector<2x96xf32>
    %130 = tpu.matmul %129, %4, %cst_38 {dimension_numbers = #tpu.dot_dimension_numbers<[1], [0], [0], [1], [0, 0, 1, 1], [], []>} : vector<2x32xbf16>, vector<32x96xbf16>, vector<2x96xf32> -> vector<2x96xf32>
    %131 = vector.broadcast %6 : vector<1x96xf32> to vector<2x96xf32>
    %132 = arith.addf %130, %131 : vector<2x96xf32>
    %133 = vector.extract_strided_slice %128 {offsets = [0, 0], sizes = [2, 32], strides = [1, 1]} : vector<2x96xf32> to vector<2x32xf32>
    %134 = vector.extract_strided_slice %132 {offsets = [0, 0], sizes = [2, 32], strides = [1, 1]} : vector<2x96xf32> to vector<2x32xf32>
    %135 = arith.addf %133, %134 : vector<2x32xf32>
    %136 = arith.negf %135 : vector<2x32xf32>
    %137 = math.exp %136 : vector<2x32xf32>
    %cst_39 = arith.constant 1.000000e+00 : f32
    %138 = vector.broadcast %cst_39 : f32 to vector<2x32xf32>
    %139 = arith.addf %138, %137 : vector<2x32xf32>
    %140 = arith.divf %138, %139 : vector<2x32xf32>
    %141 = vector.extract_strided_slice %128 {offsets = [0, 32], sizes = [2, 32], strides = [1, 1]} : vector<2x96xf32> to vector<2x32xf32>
    %142 = vector.extract_strided_slice %132 {offsets = [0, 32], sizes = [2, 32], strides = [1, 1]} : vector<2x96xf32> to vector<2x32xf32>
    %143 = arith.addf %141, %142 : vector<2x32xf32>
    %144 = arith.negf %143 : vector<2x32xf32>
    %145 = math.exp %144 : vector<2x32xf32>
    %cst_40 = arith.constant 1.000000e+00 : f32
    %146 = vector.broadcast %cst_40 : f32 to vector<2x32xf32>
    %147 = arith.addf %146, %145 : vector<2x32xf32>
    %148 = arith.divf %146, %147 : vector<2x32xf32>
    %149 = vector.extract_strided_slice %128 {offsets = [0, 64], sizes = [2, 32], strides = [1, 1]} : vector<2x96xf32> to vector<2x32xf32>
    %150 = vector.extract_strided_slice %132 {offsets = [0, 64], sizes = [2, 32], strides = [1, 1]} : vector<2x96xf32> to vector<2x32xf32>
    %151 = arith.mulf %140, %150 : vector<2x32xf32>
    %152 = arith.addf %149, %151 : vector<2x32xf32>
    %153 = math.tanh %152 : vector<2x32xf32>
    %cst_41 = arith.constant 1.000000e+00 : f32
    %154 = vector.broadcast %cst_41 : f32 to vector<2x32xf32>
    %155 = arith.subf %154, %148 : vector<2x32xf32>
    %156 = arith.mulf %155, %153 : vector<2x32xf32>
    %157 = arith.mulf %148, %94 : vector<2x32xf32>
    %158 = arith.addf %156, %157 : vector<2x32xf32>
    %c3_i32_42 = arith.constant 3 : i32
    %159 = arith.subi %c3_i32_42, %c1_i32 : i32
    %160 = arith.index_cast %159 : i32 to index
    %c0_43 = arith.constant 0 : index
    %c0_44 = arith.constant 0 : index
    %161 = vector.load %arg2[%160, %c0_43, %c0_44] : memref<4x2x96xf32, #tpu.memory_space<vmem>>, vector<1x2x96xf32>
    %162 = vector.shape_cast %161 : vector<1x2x96xf32> to vector<2x96xf32>
    %163 = arith.truncf %101 : vector<2x32xf32> to vector<2x32xbf16>
    %cst_45 = arith.constant dense<0.000000e+00> : vector<2x96xf32>
    %164 = tpu.matmul %163, %5, %cst_45 {dimension_numbers = #tpu.dot_dimension_numbers<[1], [0], [0], [1], [0, 0, 1, 1], [], []>} : vector<2x32xbf16>, vector<32x96xbf16>, vector<2x96xf32> -> vector<2x96xf32>
    %165 = vector.broadcast %7 : vector<1x96xf32> to vector<2x96xf32>
    %166 = arith.addf %164, %165 : vector<2x96xf32>
    %167 = vector.extract_strided_slice %162 {offsets = [0, 0], sizes = [2, 32], strides = [1, 1]} : vector<2x96xf32> to vector<2x32xf32>
    %168 = vector.extract_strided_slice %166 {offsets = [0, 0], sizes = [2, 32], strides = [1, 1]} : vector<2x96xf32> to vector<2x32xf32>
    %169 = arith.addf %167, %168 : vector<2x32xf32>
    %170 = arith.negf %169 : vector<2x32xf32>
    %171 = math.exp %170 : vector<2x32xf32>
    %cst_46 = arith.constant 1.000000e+00 : f32
    %172 = vector.broadcast %cst_46 : f32 to vector<2x32xf32>
    %173 = arith.addf %172, %171 : vector<2x32xf32>
    %174 = arith.divf %172, %173 : vector<2x32xf32>
    %175 = vector.extract_strided_slice %162 {offsets = [0, 32], sizes = [2, 32], strides = [1, 1]} : vector<2x96xf32> to vector<2x32xf32>
    %176 = vector.extract_strided_slice %166 {offsets = [0, 32], sizes = [2, 32], strides = [1, 1]} : vector<2x96xf32> to vector<2x32xf32>
    %177 = arith.addf %175, %176 : vector<2x32xf32>
    %178 = arith.negf %177 : vector<2x32xf32>
    %179 = math.exp %178 : vector<2x32xf32>
    %cst_47 = arith.constant 1.000000e+00 : f32
    %180 = vector.broadcast %cst_47 : f32 to vector<2x32xf32>
    %181 = arith.addf %180, %179 : vector<2x32xf32>
    %182 = arith.divf %180, %181 : vector<2x32xf32>
    %183 = vector.extract_strided_slice %162 {offsets = [0, 64], sizes = [2, 32], strides = [1, 1]} : vector<2x96xf32> to vector<2x32xf32>
    %184 = vector.extract_strided_slice %166 {offsets = [0, 64], sizes = [2, 32], strides = [1, 1]} : vector<2x96xf32> to vector<2x32xf32>
    %185 = arith.mulf %174, %184 : vector<2x32xf32>
    %186 = arith.addf %183, %185 : vector<2x32xf32>
    %187 = math.tanh %186 : vector<2x32xf32>
    %cst_48 = arith.constant 1.000000e+00 : f32
    %188 = vector.broadcast %cst_48 : f32 to vector<2x32xf32>
    %189 = arith.subf %188, %182 : vector<2x32xf32>
    %190 = arith.mulf %189, %187 : vector<2x32xf32>
    %191 = arith.mulf %182, %101 : vector<2x32xf32>
    %192 = arith.addf %190, %191 : vector<2x32xf32>
    %193 = vector.broadcast %121 : vector<2x1xf32> to vector<2x32xf32>
    %194 = arith.mulf %193, %158 : vector<2x32xf32>
    %cst_49 = arith.constant 1.000000e+00 : f32
    %195 = vector.broadcast %cst_49 : f32 to vector<2x1xf32>
    %196 = arith.subf %195, %121 : vector<2x1xf32>
    %197 = vector.broadcast %196 : vector<2x1xf32> to vector<2x32xf32>
    %198 = arith.mulf %197, %94 : vector<2x32xf32>
    %199 = arith.addf %194, %198 : vector<2x32xf32>
    %200 = vector.broadcast %125 : vector<2x1xf32> to vector<2x32xf32>
    %201 = arith.mulf %200, %192 : vector<2x32xf32>
    %cst_50 = arith.constant 1.000000e+00 : f32
    %202 = vector.broadcast %cst_50 : f32 to vector<2x1xf32>
    %203 = arith.subf %202, %125 : vector<2x1xf32>
    %204 = vector.broadcast %203 : vector<2x1xf32> to vector<2x32xf32>
    %205 = arith.mulf %204, %101 : vector<2x32xf32>
    %206 = arith.addf %201, %205 : vector<2x32xf32>
    %207 = vector.broadcast %121 : vector<2x1xf32> to vector<2x32xf32>
    %208 = arith.mulf %207, %158 : vector<2x32xf32>
    %209 = arith.index_cast %c1_i32 : i32 to index
    %c0_51 = arith.constant 0 : index
    %c0_52 = arith.constant 0 : index
    %210 = vector.load %arg8[%209, %c0_51, %c0_52] : memref<4x2x32xf32, #tpu.memory_space<vmem>>, vector<1x2x32xf32>
    %211 = vector.shape_cast %210 : vector<1x2x32xf32> to vector<2x32xf32>
    %212 = vector.shape_cast %208 : vector<2x32xf32> to vector<1x2x32xf32>
    tpu.vector_store %arg8[%209, %c0_51, %c0_52], %212 {strides = array<i32>} : memref<4x2x32xf32, #tpu.memory_space<vmem>>, vector<1x2x32xf32>,
    %213 = vector.broadcast %125 : vector<2x1xf32> to vector<2x32xf32>
    %214 = arith.mulf %213, %192 : vector<2x32xf32>
    %c3_i32_53 = arith.constant 3 : i32
    %215 = arith.subi %c3_i32_53, %c1_i32 : i32
    %216 = arith.index_cast %215 : i32 to index
    %c0_54 = arith.constant 0 : index
    %c0_55 = arith.constant 0 : index
    %217 = vector.load %arg9[%216, %c0_54, %c0_55] : memref<4x2x32xf32, #tpu.memory_space<vmem>>, vector<1x2x32xf32>
    %218 = vector.shape_cast %217 : vector<1x2x32xf32> to vector<2x32xf32>
    %219 = vector.shape_cast %214 : vector<2x32xf32> to vector<1x2x32xf32>
    tpu.vector_store %arg9[%216, %c0_54, %c0_55], %219 {strides = array<i32>} : memref<4x2x32xf32, #tpu.memory_space<vmem>>, vector<1x2x32xf32>,
    %c2_i32 = arith.constant 2 : i32
    %c4_i32_56 = arith.constant 4 : i32
    %220 = arith.muli %arg0, %c4_i32_56 : i32
    %221 = arith.addi %220, %c2_i32 : i32
    %c3_i32_57 = arith.constant 3 : i32
    %222 = arith.subi %c3_i32_57, %221 : i32
    %223 = vector.broadcast %221 : i32 to vector<2x1xi32>
    %224 = arith.cmpi slt, %223, %3 : vector<2x1xi32>
    %225 = arith.extui %224 : vector<2x1xi1> to vector<2x1xi32>
    %226 = arith.sitofp %225 : vector<2x1xi32> to vector<2x1xf32>
    %227 = vector.broadcast %222 : i32 to vector<2x1xi32>
    %228 = arith.cmpi slt, %227, %3 : vector<2x1xi32>
    %229 = arith.extui %228 : vector<2x1xi1> to vector<2x1xi32>
    %230 = arith.sitofp %229 : vector<2x1xi32> to vector<2x1xf32>
    %231 = arith.index_cast %c2_i32 : i32 to index
    %c0_58 = arith.constant 0 : index
    %c0_59 = arith.constant 0 : index
    %232 = vector.load %arg1[%231, %c0_58, %c0_59] : memref<4x2x96xf32, #tpu.memory_space<vmem>>, vector<1x2x96xf32>
    %233 = vector.shape_cast %232 : vector<1x2x96xf32> to vector<2x96xf32>
    %234 = arith.truncf %199 : vector<2x32xf32> to vector<2x32xbf16>
    %cst_60 = arith.constant dense<0.000000e+00> : vector<2x96xf32>
    %235 = tpu.matmul %234, %4, %cst_60 {dimension_numbers = #tpu.dot_dimension_numbers<[1], [0], [0], [1], [0, 0, 1, 1], [], []>} : vector<2x32xbf16>, vector<32x96xbf16>, vector<2x96xf32> -> vector<2x96xf32>
    %236 = vector.broadcast %6 : vector<1x96xf32> to vector<2x96xf32>
    %237 = arith.addf %235, %236 : vector<2x96xf32>
    %238 = vector.extract_strided_slice %233 {offsets = [0, 0], sizes = [2, 32], strides = [1, 1]} : vector<2x96xf32> to vector<2x32xf32>
    %239 = vector.extract_strided_slice %237 {offsets = [0, 0], sizes = [2, 32], strides = [1, 1]} : vector<2x96xf32> to vector<2x32xf32>
    %240 = arith.addf %238, %239 : vector<2x32xf32>
    %241 = arith.negf %240 : vector<2x32xf32>
    %242 = math.exp %241 : vector<2x32xf32>
    %cst_61 = arith.constant 1.000000e+00 : f32
    %243 = vector.broadcast %cst_61 : f32 to vector<2x32xf32>
    %244 = arith.addf %243, %242 : vector<2x32xf32>
    %245 = arith.divf %243, %244 : vector<2x32xf32>
    %246 = vector.extract_strided_slice %233 {offsets = [0, 32], sizes = [2, 32], strides = [1, 1]} : vector<2x96xf32> to vector<2x32xf32>
    %247 = vector.extract_strided_slice %237 {offsets = [0, 32], sizes = [2, 32], strides = [1, 1]} : vector<2x96xf32> to vector<2x32xf32>
    %248 = arith.addf %246, %247 : vector<2x32xf32>
    %249 = arith.negf %248 : vector<2x32xf32>
    %250 = math.exp %249 : vector<2x32xf32>
    %cst_62 = arith.constant 1.000000e+00 : f32
    %251 = vector.broadcast %cst_62 : f32 to vector<2x32xf32>
    %252 = arith.addf %251, %250 : vector<2x32xf32>
    %253 = arith.divf %251, %252 : vector<2x32xf32>
    %254 = vector.extract_strided_slice %233 {offsets = [0, 64], sizes = [2, 32], strides = [1, 1]} : vector<2x96xf32> to vector<2x32xf32>
    %255 = vector.extract_strided_slice %237 {offsets = [0, 64], sizes = [2, 32], strides = [1, 1]} : vector<2x96xf32> to vector<2x32xf32>
    %256 = arith.mulf %245, %255 : vector<2x32xf32>
    %257 = arith.addf %254, %256 : vector<2x32xf32>
    %258 = math.tanh %257 : vector<2x32xf32>
    %cst_63 = arith.constant 1.000000e+00 : f32
    %259 = vector.broadcast %cst_63 : f32 to vector<2x32xf32>
    %260 = arith.subf %259, %253 : vector<2x32xf32>
    %261 = arith.mulf %260, %258 : vector<2x32xf32>
    %262 = arith.mulf %253, %199 : vector<2x32xf32>
    %263 = arith.addf %261, %262 : vector<2x32xf32>
    %c3_i32_64 = arith.constant 3 : i32
    %264 = arith.subi %c3_i32_64, %c2_i32 : i32
    %265 = arith.index_cast %264 : i32 to index
    %c0_65 = arith.constant 0 : index
    %c0_66 = arith.constant 0 : index
    %266 = vector.load %arg2[%265, %c0_65, %c0_66] : memref<4x2x96xf32, #tpu.memory_space<vmem>>, vector<1x2x96xf32>
    %267 = vector.shape_cast %266 : vector<1x2x96xf32> to vector<2x96xf32>
    %268 = arith.truncf %206 : vector<2x32xf32> to vector<2x32xbf16>
    %cst_67 = arith.constant dense<0.000000e+00> : vector<2x96xf32>
    %269 = tpu.matmul %268, %5, %cst_67 {dimension_numbers = #tpu.dot_dimension_numbers<[1], [0], [0], [1], [0, 0, 1, 1], [], []>} : vector<2x32xbf16>, vector<32x96xbf16>, vector<2x96xf32> -> vector<2x96xf32>
    %270 = vector.broadcast %7 : vector<1x96xf32> to vector<2x96xf32>
    %271 = arith.addf %269, %270 : vector<2x96xf32>
    %272 = vector.extract_strided_slice %267 {offsets = [0, 0], sizes = [2, 32], strides = [1, 1]} : vector<2x96xf32> to vector<2x32xf32>
    %273 = vector.extract_strided_slice %271 {offsets = [0, 0], sizes = [2, 32], strides = [1, 1]} : vector<2x96xf32> to vector<2x32xf32>
    %274 = arith.addf %272, %273 : vector<2x32xf32>
    %275 = arith.negf %274 : vector<2x32xf32>
    %276 = math.exp %275 : vector<2x32xf32>
    %cst_68 = arith.constant 1.000000e+00 : f32
    %277 = vector.broadcast %cst_68 : f32 to vector<2x32xf32>
    %278 = arith.addf %277, %276 : vector<2x32xf32>
    %279 = arith.divf %277, %278 : vector<2x32xf32>
    %280 = vector.extract_strided_slice %267 {offsets = [0, 32], sizes = [2, 32], strides = [1, 1]} : vector<2x96xf32> to vector<2x32xf32>
    %281 = vector.extract_strided_slice %271 {offsets = [0, 32], sizes = [2, 32], strides = [1, 1]} : vector<2x96xf32> to vector<2x32xf32>
    %282 = arith.addf %280, %281 : vector<2x32xf32>
    %283 = arith.negf %282 : vector<2x32xf32>
    %284 = math.exp %283 : vector<2x32xf32>
    %cst_69 = arith.constant 1.000000e+00 : f32
    %285 = vector.broadcast %cst_69 : f32 to vector<2x32xf32>
    %286 = arith.addf %285, %284 : vector<2x32xf32>
    %287 = arith.divf %285, %286 : vector<2x32xf32>
    %288 = vector.extract_strided_slice %267 {offsets = [0, 64], sizes = [2, 32], strides = [1, 1]} : vector<2x96xf32> to vector<2x32xf32>
    %289 = vector.extract_strided_slice %271 {offsets = [0, 64], sizes = [2, 32], strides = [1, 1]} : vector<2x96xf32> to vector<2x32xf32>
    %290 = arith.mulf %279, %289 : vector<2x32xf32>
    %291 = arith.addf %288, %290 : vector<2x32xf32>
    %292 = math.tanh %291 : vector<2x32xf32>
    %cst_70 = arith.constant 1.000000e+00 : f32
    %293 = vector.broadcast %cst_70 : f32 to vector<2x32xf32>
    %294 = arith.subf %293, %287 : vector<2x32xf32>
    %295 = arith.mulf %294, %292 : vector<2x32xf32>
    %296 = arith.mulf %287, %206 : vector<2x32xf32>
    %297 = arith.addf %295, %296 : vector<2x32xf32>
    %298 = vector.broadcast %226 : vector<2x1xf32> to vector<2x32xf32>
    %299 = arith.mulf %298, %263 : vector<2x32xf32>
    %cst_71 = arith.constant 1.000000e+00 : f32
    %300 = vector.broadcast %cst_71 : f32 to vector<2x1xf32>
    %301 = arith.subf %300, %226 : vector<2x1xf32>
    %302 = vector.broadcast %301 : vector<2x1xf32> to vector<2x32xf32>
    %303 = arith.mulf %302, %199 : vector<2x32xf32>
    %304 = arith.addf %299, %303 : vector<2x32xf32>
    %305 = vector.broadcast %230 : vector<2x1xf32> to vector<2x32xf32>
    %306 = arith.mulf %305, %297 : vector<2x32xf32>
    %cst_72 = arith.constant 1.000000e+00 : f32
    %307 = vector.broadcast %cst_72 : f32 to vector<2x1xf32>
    %308 = arith.subf %307, %230 : vector<2x1xf32>
    %309 = vector.broadcast %308 : vector<2x1xf32> to vector<2x32xf32>
    %310 = arith.mulf %309, %206 : vector<2x32xf32>
    %311 = arith.addf %306, %310 : vector<2x32xf32>
    %312 = vector.broadcast %226 : vector<2x1xf32> to vector<2x32xf32>
    %313 = arith.mulf %312, %263 : vector<2x32xf32>
    %314 = arith.index_cast %c2_i32 : i32 to index
    %c0_73 = arith.constant 0 : index
    %c0_74 = arith.constant 0 : index
    %315 = vector.load %arg8[%314, %c0_73, %c0_74] : memref<4x2x32xf32, #tpu.memory_space<vmem>>, vector<1x2x32xf32>
    %316 = vector.shape_cast %315 : vector<1x2x32xf32> to vector<2x32xf32>
    %317 = vector.shape_cast %313 : vector<2x32xf32> to vector<1x2x32xf32>
    tpu.vector_store %arg8[%314, %c0_73, %c0_74], %317 {strides = array<i32>} : memref<4x2x32xf32, #tpu.memory_space<vmem>>, vector<1x2x32xf32>,
    %318 = vector.broadcast %230 : vector<2x1xf32> to vector<2x32xf32>
    %319 = arith.mulf %318, %297 : vector<2x32xf32>
    %c3_i32_75 = arith.constant 3 : i32
    %320 = arith.subi %c3_i32_75, %c2_i32 : i32
    %321 = arith.index_cast %320 : i32 to index
    %c0_76 = arith.constant 0 : index
    %c0_77 = arith.constant 0 : index
    %322 = vector.load %arg9[%321, %c0_76, %c0_77] : memref<4x2x32xf32, #tpu.memory_space<vmem>>, vector<1x2x32xf32>
    %323 = vector.shape_cast %322 : vector<1x2x32xf32> to vector<2x32xf32>
    %324 = vector.shape_cast %319 : vector<2x32xf32> to vector<1x2x32xf32>
    tpu.vector_store %arg9[%321, %c0_76, %c0_77], %324 {strides = array<i32>} : memref<4x2x32xf32, #tpu.memory_space<vmem>>, vector<1x2x32xf32>,
    %c3_i32_78 = arith.constant 3 : i32
    %c4_i32_79 = arith.constant 4 : i32
    %325 = arith.muli %arg0, %c4_i32_79 : i32
    %326 = arith.addi %325, %c3_i32_78 : i32
    %c3_i32_80 = arith.constant 3 : i32
    %327 = arith.subi %c3_i32_80, %326 : i32
    %328 = vector.broadcast %326 : i32 to vector<2x1xi32>
    %329 = arith.cmpi slt, %328, %3 : vector<2x1xi32>
    %330 = arith.extui %329 : vector<2x1xi1> to vector<2x1xi32>
    %331 = arith.sitofp %330 : vector<2x1xi32> to vector<2x1xf32>
    %332 = vector.broadcast %327 : i32 to vector<2x1xi32>
    %333 = arith.cmpi slt, %332, %3 : vector<2x1xi32>
    %334 = arith.extui %333 : vector<2x1xi1> to vector<2x1xi32>
    %335 = arith.sitofp %334 : vector<2x1xi32> to vector<2x1xf32>
    %336 = arith.index_cast %c3_i32_78 : i32 to index
    %c0_81 = arith.constant 0 : index
    %c0_82 = arith.constant 0 : index
    %337 = vector.load %arg1[%336, %c0_81, %c0_82] : memref<4x2x96xf32, #tpu.memory_space<vmem>>, vector<1x2x96xf32>
    %338 = vector.shape_cast %337 : vector<1x2x96xf32> to vector<2x96xf32>
    %339 = arith.truncf %304 : vector<2x32xf32> to vector<2x32xbf16>
    %cst_83 = arith.constant dense<0.000000e+00> : vector<2x96xf32>
    %340 = tpu.matmul %339, %4, %cst_83 {dimension_numbers = #tpu.dot_dimension_numbers<[1], [0], [0], [1], [0, 0, 1, 1], [], []>} : vector<2x32xbf16>, vector<32x96xbf16>, vector<2x96xf32> -> vector<2x96xf32>
    %341 = vector.broadcast %6 : vector<1x96xf32> to vector<2x96xf32>
    %342 = arith.addf %340, %341 : vector<2x96xf32>
    %343 = vector.extract_strided_slice %338 {offsets = [0, 0], sizes = [2, 32], strides = [1, 1]} : vector<2x96xf32> to vector<2x32xf32>
    %344 = vector.extract_strided_slice %342 {offsets = [0, 0], sizes = [2, 32], strides = [1, 1]} : vector<2x96xf32> to vector<2x32xf32>
    %345 = arith.addf %343, %344 : vector<2x32xf32>
    %346 = arith.negf %345 : vector<2x32xf32>
    %347 = math.exp %346 : vector<2x32xf32>
    %cst_84 = arith.constant 1.000000e+00 : f32
    %348 = vector.broadcast %cst_84 : f32 to vector<2x32xf32>
    %349 = arith.addf %348, %347 : vector<2x32xf32>
    %350 = arith.divf %348, %349 : vector<2x32xf32>
    %351 = vector.extract_strided_slice %338 {offsets = [0, 32], sizes = [2, 32], strides = [1, 1]} : vector<2x96xf32> to vector<2x32xf32>
    %352 = vector.extract_strided_slice %342 {offsets = [0, 32], sizes = [2, 32], strides = [1, 1]} : vector<2x96xf32> to vector<2x32xf32>
    %353 = arith.addf %351, %352 : vector<2x32xf32>
    %354 = arith.negf %353 : vector<2x32xf32>
    %355 = math.exp %354 : vector<2x32xf32>
    %cst_85 = arith.constant 1.000000e+00 : f32
    %356 = vector.broadcast %cst_85 : f32 to vector<2x32xf32>
    %357 = arith.addf %356, %355 : vector<2x32xf32>
    %358 = arith.divf %356, %357 : vector<2x32xf32>
    %359 = vector.extract_strided_slice %338 {offsets = [0, 64], sizes = [2, 32], strides = [1, 1]} : vector<2x96xf32> to vector<2x32xf32>
    %360 = vector.extract_strided_slice %342 {offsets = [0, 64], sizes = [2, 32], strides = [1, 1]} : vector<2x96xf32> to vector<2x32xf32>
    %361 = arith.mulf %350, %360 : vector<2x32xf32>
    %362 = arith.addf %359, %361 : vector<2x32xf32>
    %363 = math.tanh %362 : vector<2x32xf32>
    %cst_86 = arith.constant 1.000000e+00 : f32
    %364 = vector.broadcast %cst_86 : f32 to vector<2x32xf32>
    %365 = arith.subf %364, %358 : vector<2x32xf32>
    %366 = arith.mulf %365, %363 : vector<2x32xf32>
    %367 = arith.mulf %358, %304 : vector<2x32xf32>
    %368 = arith.addf %366, %367 : vector<2x32xf32>
    %c3_i32_87 = arith.constant 3 : i32
    %369 = arith.subi %c3_i32_87, %c3_i32_78 : i32
    %370 = arith.index_cast %369 : i32 to index
    %c0_88 = arith.constant 0 : index
    %c0_89 = arith.constant 0 : index
    %371 = vector.load %arg2[%370, %c0_88, %c0_89] : memref<4x2x96xf32, #tpu.memory_space<vmem>>, vector<1x2x96xf32>
    %372 = vector.shape_cast %371 : vector<1x2x96xf32> to vector<2x96xf32>
    %373 = arith.truncf %311 : vector<2x32xf32> to vector<2x32xbf16>
    %cst_90 = arith.constant dense<0.000000e+00> : vector<2x96xf32>
    %374 = tpu.matmul %373, %5, %cst_90 {dimension_numbers = #tpu.dot_dimension_numbers<[1], [0], [0], [1], [0, 0, 1, 1], [], []>} : vector<2x32xbf16>, vector<32x96xbf16>, vector<2x96xf32> -> vector<2x96xf32>
    %375 = vector.broadcast %7 : vector<1x96xf32> to vector<2x96xf32>
    %376 = arith.addf %374, %375 : vector<2x96xf32>
    %377 = vector.extract_strided_slice %372 {offsets = [0, 0], sizes = [2, 32], strides = [1, 1]} : vector<2x96xf32> to vector<2x32xf32>
    %378 = vector.extract_strided_slice %376 {offsets = [0, 0], sizes = [2, 32], strides = [1, 1]} : vector<2x96xf32> to vector<2x32xf32>
    %379 = arith.addf %377, %378 : vector<2x32xf32>
    %380 = arith.negf %379 : vector<2x32xf32>
    %381 = math.exp %380 : vector<2x32xf32>
    %cst_91 = arith.constant 1.000000e+00 : f32
    %382 = vector.broadcast %cst_91 : f32 to vector<2x32xf32>
    %383 = arith.addf %382, %381 : vector<2x32xf32>
    %384 = arith.divf %382, %383 : vector<2x32xf32>
    %385 = vector.extract_strided_slice %372 {offsets = [0, 32], sizes = [2, 32], strides = [1, 1]} : vector<2x96xf32> to vector<2x32xf32>
    %386 = vector.extract_strided_slice %376 {offsets = [0, 32], sizes = [2, 32], strides = [1, 1]} : vector<2x96xf32> to vector<2x32xf32>
    %387 = arith.addf %385, %386 : vector<2x32xf32>
    %388 = arith.negf %387 : vector<2x32xf32>
    %389 = math.exp %388 : vector<2x32xf32>
    %cst_92 = arith.constant 1.000000e+00 : f32
    %390 = vector.broadcast %cst_92 : f32 to vector<2x32xf32>
    %391 = arith.addf %390, %389 : vector<2x32xf32>
    %392 = arith.divf %390, %391 : vector<2x32xf32>
    %393 = vector.extract_strided_slice %372 {offsets = [0, 64], sizes = [2, 32], strides = [1, 1]} : vector<2x96xf32> to vector<2x32xf32>
    %394 = vector.extract_strided_slice %376 {offsets = [0, 64], sizes = [2, 32], strides = [1, 1]} : vector<2x96xf32> to vector<2x32xf32>
    %395 = arith.mulf %384, %394 : vector<2x32xf32>
    %396 = arith.addf %393, %395 : vector<2x32xf32>
    %397 = math.tanh %396 : vector<2x32xf32>
    %cst_93 = arith.constant 1.000000e+00 : f32
    %398 = vector.broadcast %cst_93 : f32 to vector<2x32xf32>
    %399 = arith.subf %398, %392 : vector<2x32xf32>
    %400 = arith.mulf %399, %397 : vector<2x32xf32>
    %401 = arith.mulf %392, %311 : vector<2x32xf32>
    %402 = arith.addf %400, %401 : vector<2x32xf32>
    %403 = vector.broadcast %331 : vector<2x1xf32> to vector<2x32xf32>
    %404 = arith.mulf %403, %368 : vector<2x32xf32>
    %cst_94 = arith.constant 1.000000e+00 : f32
    %405 = vector.broadcast %cst_94 : f32 to vector<2x1xf32>
    %406 = arith.subf %405, %331 : vector<2x1xf32>
    %407 = vector.broadcast %406 : vector<2x1xf32> to vector<2x32xf32>
    %408 = arith.mulf %407, %304 : vector<2x32xf32>
    %409 = arith.addf %404, %408 : vector<2x32xf32>
    %410 = vector.broadcast %335 : vector<2x1xf32> to vector<2x32xf32>
    %411 = arith.mulf %410, %402 : vector<2x32xf32>
    %cst_95 = arith.constant 1.000000e+00 : f32
    %412 = vector.broadcast %cst_95 : f32 to vector<2x1xf32>
    %413 = arith.subf %412, %335 : vector<2x1xf32>
    %414 = vector.broadcast %413 : vector<2x1xf32> to vector<2x32xf32>
    %415 = arith.mulf %414, %311 : vector<2x32xf32>
    %416 = arith.addf %411, %415 : vector<2x32xf32>
    %417 = vector.broadcast %331 : vector<2x1xf32> to vector<2x32xf32>
    %418 = arith.mulf %417, %368 : vector<2x32xf32>
    %419 = arith.index_cast %c3_i32_78 : i32 to index
    %c0_96 = arith.constant 0 : index
    %c0_97 = arith.constant 0 : index
    %420 = vector.load %arg8[%419, %c0_96, %c0_97] : memref<4x2x32xf32, #tpu.memory_space<vmem>>, vector<1x2x32xf32>
    %421 = vector.shape_cast %420 : vector<1x2x32xf32> to vector<2x32xf32>
    %422 = vector.shape_cast %418 : vector<2x32xf32> to vector<1x2x32xf32>
    tpu.vector_store %arg8[%419, %c0_96, %c0_97], %422 {strides = array<i32>} : memref<4x2x32xf32, #tpu.memory_space<vmem>>, vector<1x2x32xf32>,
    %423 = vector.broadcast %335 : vector<2x1xf32> to vector<2x32xf32>
    %424 = arith.mulf %423, %402 : vector<2x32xf32>
    %c3_i32_98 = arith.constant 3 : i32
    %425 = arith.subi %c3_i32_98, %c3_i32_78 : i32
    %426 = arith.index_cast %425 : i32 to index
    %c0_99 = arith.constant 0 : index
    %c0_100 = arith.constant 0 : index
    %427 = vector.load %arg9[%426, %c0_99, %c0_100] : memref<4x2x32xf32, #tpu.memory_space<vmem>>, vector<1x2x32xf32>
    %428 = vector.shape_cast %427 : vector<1x2x32xf32> to vector<2x32xf32>
    %429 = vector.shape_cast %424 : vector<2x32xf32> to vector<1x2x32xf32>
    tpu.vector_store %arg9[%426, %c0_99, %c0_100], %429 {strides = array<i32>} : memref<4x2x32xf32, #tpu.memory_space<vmem>>, vector<1x2x32xf32>,
    %c4_i32_101 = arith.constant 4 : i32
    %c0_102 = arith.constant 0 : index
    %c0_103 = arith.constant 0 : index
    %430 = vector.load %arg10[%c0_102, %c0_103] : memref<2x32xf32, #tpu.memory_space<vmem>>, vector<2x32xf32>
    tpu.vector_store %arg10[%c0_102, %c0_103], %409 {strides = array<i32>} : memref<2x32xf32, #tpu.memory_space<vmem>>, vector<2x32xf32>,
    %c0_104 = arith.constant 0 : index
    %c0_105 = arith.constant 0 : index
    %431 = vector.load %arg11[%c0_104, %c0_105] : memref<2x32xf32, #tpu.memory_space<vmem>>, vector<2x32xf32>
    tpu.vector_store %arg11[%c0_104, %c0_105], %416 {strides = array<i32>} : memref<2x32xf32, #tpu.memory_space<vmem>>, vector<2x32xf32>,
    return
  }
  func.func @transform_0(%arg0: i32) -> (i32, i32, i32) {
    %c0_i32 = arith.constant 0 : i32
    %c0_i32_0 = arith.constant 0 : i32
    %c0_i32_1 = arith.constant 0 : i32
    return %arg0, %c0_i32, %c0_i32_0 : i32, i32, i32
  }
  func.func @transform_1(%arg0: i32) -> (i32, i32, i32) {
    %c0_i32 = arith.constant 0 : i32
    %0 = arith.subi %c0_i32, %arg0 : i32
    %c0_i32_0 = arith.constant 0 : i32
    %c0_i32_1 = arith.constant 0 : i32
    %c0_i32_2 = arith.constant 0 : i32
    return %0, %c0_i32_0, %c0_i32_1 : i32, i32, i32
  }
  func.func @transform_2(%arg0: i32) -> (i32, i32) {
    %c0_i32 = arith.constant 0 : i32
    %c0_i32_0 = arith.constant 0 : i32
    %c0_i32_1 = arith.constant 0 : i32
    return %c0_i32, %c0_i32_0 : i32, i32
  }
  func.func @transform_3(%arg0: i32) -> (i32, i32) {
    %c0_i32 = arith.constant 0 : i32
    %c0_i32_0 = arith.constant 0 : i32
    %c0_i32_1 = arith.constant 0 : i32
    return %c0_i32, %c0_i32_0 : i32, i32
  }
  func.func @transform_4(%arg0: i32) -> (i32, i32) {
    %c0_i32 = arith.constant 0 : i32
    %c0_i32_0 = arith.constant 0 : i32
    %c0_i32_1 = arith.constant 0 : i32
    return %c0_i32, %c0_i32_0 : i32, i32
  }
  func.func @transform_5(%arg0: i32) -> (i32, i32) {
    %c0_i32 = arith.constant 0 : i32
    %c0_i32_0 = arith.constant 0 : i32
    %c0_i32_1 = arith.constant 0 : i32
    return %c0_i32, %c0_i32_0 : i32, i32
  }
  func.func @transform_6(%arg0: i32) -> (i32, i32) {
    %c0_i32 = arith.constant 0 : i32
    %c0_i32_0 = arith.constant 0 : i32
    %c0_i32_1 = arith.constant 0 : i32
    return %c0_i32, %c0_i32_0 : i32, i32
  }
  func.func @transform_7(%arg0: i32) -> (i32, i32, i32) {
    %c0_i32 = arith.constant 0 : i32
    %c0_i32_0 = arith.constant 0 : i32
    %c0_i32_1 = arith.constant 0 : i32
    return %arg0, %c0_i32, %c0_i32_0 : i32, i32, i32
  }
  func.func @transform_8(%arg0: i32) -> (i32, i32, i32) {
    %c0_i32 = arith.constant 0 : i32
    %0 = arith.subi %c0_i32, %arg0 : i32
    %c0_i32_0 = arith.constant 0 : i32
    %c0_i32_1 = arith.constant 0 : i32
    %c0_i32_2 = arith.constant 0 : i32
    return %0, %c0_i32_0, %c0_i32_1 : i32, i32, i32
  }
}

module attributes {stable_mosaic.version = 11 : i64} {
  func.func @_bn_relu_proj_kernel(%arg0: i32, %arg1: memref<8x64xf32, #tpu.memory_space<vmem>>, %arg2: memref<1x64xf32, #tpu.memory_space<vmem>>, %arg3: memref<1x64xf32, #tpu.memory_space<vmem>>, %arg4: memref<64x96xbf16, #tpu.memory_space<vmem>>, %arg5: memref<1x96xf32, #tpu.memory_space<vmem>>, %arg6: memref<64x96xbf16, #tpu.memory_space<vmem>>, %arg7: memref<1x96xf32, #tpu.memory_space<vmem>>, %arg8: memref<8x96xf32, #tpu.memory_space<vmem>>, %arg9: memref<8x96xf32, #tpu.memory_space<vmem>>) attributes {dimension_semantics = [#tpu.dimension_semantics<parallel>], iteration_bounds = array<i64: 1>, scalar_prefetch = 0 : i64, scratch_operands = 0 : i64, tpu.core_type = #tpu.core_type<tc>, window_params = [{transform_indices = @transform_0, window_bounds = array<i64: 8, 64>}, {pipeline_mode = #tpu.pipeline_mode<synchronous>, transform_indices = @transform_1, window_bounds = array<i64: 1, 64>}, {pipeline_mode = #tpu.pipeline_mode<synchronous>, transform_indices = @transform_2, window_bounds = array<i64: 1, 64>}, {pipeline_mode = #tpu.pipeline_mode<synchronous>, transform_indices = @transform_3, window_bounds = array<i64: 64, 96>}, {pipeline_mode = #tpu.pipeline_mode<synchronous>, transform_indices = @transform_4, window_bounds = array<i64: 1, 96>}, {pipeline_mode = #tpu.pipeline_mode<synchronous>, transform_indices = @transform_5, window_bounds = array<i64: 64, 96>}, {pipeline_mode = #tpu.pipeline_mode<synchronous>, transform_indices = @transform_6, window_bounds = array<i64: 1, 96>}, {transform_indices = @transform_7, window_bounds = array<i64: 8, 96>}, {transform_indices = @transform_8, window_bounds = array<i64: 8, 96>}]} {
    %c0 = arith.constant 0 : index
    %c0_0 = arith.constant 0 : index
    %0 = vector.load %arg1[%c0, %c0_0] : memref<8x64xf32, #tpu.memory_space<vmem>>, vector<8x64xf32>
    %c0_1 = arith.constant 0 : index
    %c0_2 = arith.constant 0 : index
    %1 = vector.load %arg2[%c0_1, %c0_2] : memref<1x64xf32, #tpu.memory_space<vmem>>, vector<1x64xf32>
    %2 = vector.broadcast %1 : vector<1x64xf32> to vector<8x64xf32>
    %3 = arith.mulf %0, %2 : vector<8x64xf32>
    %c0_3 = arith.constant 0 : index
    %c0_4 = arith.constant 0 : index
    %4 = vector.load %arg3[%c0_3, %c0_4] : memref<1x64xf32, #tpu.memory_space<vmem>>, vector<1x64xf32>
    %5 = vector.broadcast %4 : vector<1x64xf32> to vector<8x64xf32>
    %6 = arith.addf %3, %5 : vector<8x64xf32>
    %cst = arith.constant 0.000000e+00 : f32
    %7 = vector.broadcast %cst : f32 to vector<8x64xf32>
    %8 = arith.maximumf %6, %7 : vector<8x64xf32>
    %9 = arith.truncf %8 : vector<8x64xf32> to vector<8x64xbf16>
    %c0_5 = arith.constant 0 : index
    %c0_6 = arith.constant 0 : index
    %10 = vector.load %arg4[%c0_5, %c0_6] : memref<64x96xbf16, #tpu.memory_space<vmem>>, vector<64x96xbf16>
    %cst_7 = arith.constant dense<0.000000e+00> : vector<8x96xf32>
    %11 = tpu.matmul %9, %10, %cst_7 {dimension_numbers = #tpu.dot_dimension_numbers<[1], [0], [0], [1], [0, 0, 1, 1], [], []>} : vector<8x64xbf16>, vector<64x96xbf16>, vector<8x96xf32> -> vector<8x96xf32>
    %c0_8 = arith.constant 0 : index
    %c0_9 = arith.constant 0 : index
    %12 = vector.load %arg5[%c0_8, %c0_9] : memref<1x96xf32, #tpu.memory_space<vmem>>, vector<1x96xf32>
    %13 = vector.broadcast %12 : vector<1x96xf32> to vector<8x96xf32>
    %14 = arith.addf %11, %13 : vector<8x96xf32>
    %c0_10 = arith.constant 0 : index
    %c0_11 = arith.constant 0 : index
    %15 = vector.load %arg8[%c0_10, %c0_11] : memref<8x96xf32, #tpu.memory_space<vmem>>, vector<8x96xf32>
    tpu.vector_store %arg8[%c0_10, %c0_11], %14 {strides = array<i32>} : memref<8x96xf32, #tpu.memory_space<vmem>>, vector<8x96xf32>,
    %c0_12 = arith.constant 0 : index
    %c0_13 = arith.constant 0 : index
    %16 = vector.load %arg6[%c0_12, %c0_13] : memref<64x96xbf16, #tpu.memory_space<vmem>>, vector<64x96xbf16>
    %cst_14 = arith.constant dense<0.000000e+00> : vector<8x96xf32>
    %17 = tpu.matmul %9, %16, %cst_14 {dimension_numbers = #tpu.dot_dimension_numbers<[1], [0], [0], [1], [0, 0, 1, 1], [], []>} : vector<8x64xbf16>, vector<64x96xbf16>, vector<8x96xf32> -> vector<8x96xf32>
    %c0_15 = arith.constant 0 : index
    %c0_16 = arith.constant 0 : index
    %18 = vector.load %arg7[%c0_15, %c0_16] : memref<1x96xf32, #tpu.memory_space<vmem>>, vector<1x96xf32>
    %19 = vector.broadcast %18 : vector<1x96xf32> to vector<8x96xf32>
    %20 = arith.addf %17, %19 : vector<8x96xf32>
    %c0_17 = arith.constant 0 : index
    %c0_18 = arith.constant 0 : index
    %21 = vector.load %arg9[%c0_17, %c0_18] : memref<8x96xf32, #tpu.memory_space<vmem>>, vector<8x96xf32>
    tpu.vector_store %arg9[%c0_17, %c0_18], %20 {strides = array<i32>} : memref<8x96xf32, #tpu.memory_space<vmem>>, vector<8x96xf32>,
    return
  }
  func.func @transform_0(%arg0: i32) -> (i32, i32) {
    %c0_i32 = arith.constant 0 : i32
    %c0_i32_0 = arith.constant 0 : i32
    return %arg0, %c0_i32 : i32, i32
  }
  func.func @transform_1(%arg0: i32) -> (i32, i32) {
    %c0_i32 = arith.constant 0 : i32
    %c0_i32_0 = arith.constant 0 : i32
    %c0_i32_1 = arith.constant 0 : i32
    return %c0_i32, %c0_i32_0 : i32, i32
  }
  func.func @transform_2(%arg0: i32) -> (i32, i32) {
    %c0_i32 = arith.constant 0 : i32
    %c0_i32_0 = arith.constant 0 : i32
    %c0_i32_1 = arith.constant 0 : i32
    return %c0_i32, %c0_i32_0 : i32, i32
  }
  func.func @transform_3(%arg0: i32) -> (i32, i32) {
    %c0_i32 = arith.constant 0 : i32
    %c0_i32_0 = arith.constant 0 : i32
    %c0_i32_1 = arith.constant 0 : i32
    return %c0_i32, %c0_i32_0 : i32, i32
  }
  func.func @transform_4(%arg0: i32) -> (i32, i32) {
    %c0_i32 = arith.constant 0 : i32
    %c0_i32_0 = arith.constant 0 : i32
    %c0_i32_1 = arith.constant 0 : i32
    return %c0_i32, %c0_i32_0 : i32, i32
  }
  func.func @transform_5(%arg0: i32) -> (i32, i32) {
    %c0_i32 = arith.constant 0 : i32
    %c0_i32_0 = arith.constant 0 : i32
    %c0_i32_1 = arith.constant 0 : i32
    return %c0_i32, %c0_i32_0 : i32, i32
  }
  func.func @transform_6(%arg0: i32) -> (i32, i32) {
    %c0_i32 = arith.constant 0 : i32
    %c0_i32_0 = arith.constant 0 : i32
    %c0_i32_1 = arith.constant 0 : i32
    return %c0_i32, %c0_i32_0 : i32, i32
  }
  func.func @transform_7(%arg0: i32) -> (i32, i32) {
    %c0_i32 = arith.constant 0 : i32
    %c0_i32_0 = arith.constant 0 : i32
    return %arg0, %c0_i32 : i32, i32
  }
  func.func @transform_8(%arg0: i32) -> (i32, i32) {
    %c0_i32 = arith.constant 0 : i32
    %c0_i32_0 = arith.constant 0 : i32
    return %arg0, %c0_i32 : i32, i32
  }
}

module attributes {stable_mosaic.version = 11 : i64} {
  func.func @_fc_head_kernel(%arg0: i32, %arg1: memref<8x64xf32, #tpu.memory_space<vmem>>, %arg2: memref<64x32xbf16, #tpu.memory_space<vmem>>, %arg3: memref<1x32xf32, #tpu.memory_space<vmem>>, %arg4: memref<32x128xbf16, #tpu.memory_space<vmem>>, %arg5: memref<8x128xf32, #tpu.memory_space<vmem>>) attributes {dimension_semantics = [#tpu.dimension_semantics<parallel>], iteration_bounds = array<i64: 1>, scalar_prefetch = 0 : i64, scratch_operands = 0 : i64, tpu.core_type = #tpu.core_type<tc>, window_params = [{transform_indices = @transform_0, window_bounds = array<i64: 8, 64>}, {pipeline_mode = #tpu.pipeline_mode<synchronous>, transform_indices = @transform_1, window_bounds = array<i64: 64, 32>}, {pipeline_mode = #tpu.pipeline_mode<synchronous>, transform_indices = @transform_2, window_bounds = array<i64: 1, 32>}, {pipeline_mode = #tpu.pipeline_mode<synchronous>, transform_indices = @transform_3, window_bounds = array<i64: 32, 128>}, {transform_indices = @transform_4, window_bounds = array<i64: 8, 128>}]} {
    %c0 = arith.constant 0 : index
    %c0_0 = arith.constant 0 : index
    %0 = vector.load %arg1[%c0, %c0_0] : memref<8x64xf32, #tpu.memory_space<vmem>>, vector<8x64xf32>
    %1 = arith.truncf %0 : vector<8x64xf32> to vector<8x64xbf16>
    %c0_1 = arith.constant 0 : index
    %c0_2 = arith.constant 0 : index
    %2 = vector.load %arg2[%c0_1, %c0_2] : memref<64x32xbf16, #tpu.memory_space<vmem>>, vector<64x32xbf16>
    %cst = arith.constant dense<0.000000e+00> : vector<8x32xf32>
    %3 = tpu.matmul %1, %2, %cst {dimension_numbers = #tpu.dot_dimension_numbers<[1], [0], [0], [1], [0, 0, 1, 1], [], []>} : vector<8x64xbf16>, vector<64x32xbf16>, vector<8x32xf32> -> vector<8x32xf32>
    %c0_3 = arith.constant 0 : index
    %c0_4 = arith.constant 0 : index
    %4 = vector.load %arg3[%c0_3, %c0_4] : memref<1x32xf32, #tpu.memory_space<vmem>>, vector<1x32xf32>
    %5 = vector.broadcast %4 : vector<1x32xf32> to vector<8x32xf32>
    %6 = arith.addf %3, %5 : vector<8x32xf32>
    %cst_5 = arith.constant 0.000000e+00 : f32
    %7 = vector.broadcast %cst_5 : f32 to vector<8x32xf32>
    %8 = arith.maximumf %6, %7 : vector<8x32xf32>
    %9 = arith.truncf %8 : vector<8x32xf32> to vector<8x32xbf16>
    %c0_6 = arith.constant 0 : index
    %c0_7 = arith.constant 0 : index
    %10 = vector.load %arg4[%c0_6, %c0_7] : memref<32x128xbf16, #tpu.memory_space<vmem>>, vector<32x128xbf16>
    %cst_8 = arith.constant dense<0.000000e+00> : vector<8x128xf32>
    %11 = tpu.matmul %9, %10, %cst_8 {dimension_numbers = #tpu.dot_dimension_numbers<[1], [0], [0], [1], [0, 0, 1, 1], [], []>} : vector<8x32xbf16>, vector<32x128xbf16>, vector<8x128xf32> -> vector<8x128xf32>
    %12 = tpu.iota {dimensions = array<i32: 1>} : vector<8x128xi32>
    %c10_i32 = arith.constant 10 : i32
    %13 = vector.broadcast %c10_i32 : i32 to vector<8x128xi32>
    %14 = arith.cmpi slt, %12, %13 : vector<8x128xi32>
    %cst_9 = arith.constant -1.000000e+30 : f32
    %15 = vector.broadcast %cst_9 : f32 to vector<8x128xf32>
    %16 = arith.select %14, %11, %15 : vector<8x128xi1>, vector<8x128xf32>
    %cst_10 = arith.constant dense<0xFF800000> : vector<8xf32>
    %17 = vector.multi_reduction <maximumf>, %16, %cst_10 [1] : vector<8x128xf32> to vector<8xf32>
    %18 = vector.shape_cast %17 : vector<8xf32> to vector<8x1xf32>
    %19 = vector.broadcast %18 : vector<8x1xf32> to vector<8x128xf32>
    %20 = arith.subf %16, %19 : vector<8x128xf32>
    %21 = math.exp %20 : vector<8x128xf32>
    %cst_11 = arith.constant dense<0.000000e+00> : vector<8xf32>
    %22 = vector.multi_reduction <add>, %21, %cst_11 [1] : vector<8x128xf32> to vector<8xf32>
    %23 = vector.shape_cast %22 : vector<8xf32> to vector<8x1xf32>
    %24 = math.log %23 : vector<8x1xf32>
    %25 = arith.addf %18, %24 : vector<8x1xf32>
    %26 = vector.broadcast %25 : vector<8x1xf32> to vector<8x128xf32>
    %27 = arith.subf %16, %26 : vector<8x128xf32>
    %c0_12 = arith.constant 0 : index
    %c0_13 = arith.constant 0 : index
    %28 = vector.load %arg5[%c0_12, %c0_13] : memref<8x128xf32, #tpu.memory_space<vmem>>, vector<8x128xf32>
    tpu.vector_store %arg5[%c0_12, %c0_13], %27 {strides = array<i32>} : memref<8x128xf32, #tpu.memory_space<vmem>>, vector<8x128xf32>,
    return
  }
  func.func @transform_0(%arg0: i32) -> (i32, i32) {
    %c0_i32 = arith.constant 0 : i32
    %c0_i32_0 = arith.constant 0 : i32
    return %arg0, %c0_i32 : i32, i32
  }
  func.func @transform_1(%arg0: i32) -> (i32, i32) {
    %c0_i32 = arith.constant 0 : i32
    %c0_i32_0 = arith.constant 0 : i32
    %c0_i32_1 = arith.constant 0 : i32
    return %c0_i32, %c0_i32_0 : i32, i32
  }
  func.func @transform_2(%arg0: i32) -> (i32, i32) {
    %c0_i32 = arith.constant 0 : i32
    %c0_i32_0 = arith.constant 0 : i32
    %c0_i32_1 = arith.constant 0 : i32
    return %c0_i32, %c0_i32_0 : i32, i32
  }
  func.func @transform_3(%arg0: i32) -> (i32, i32) {
    %c0_i32 = arith.constant 0 : i32
    %c0_i32_0 = arith.constant 0 : i32
    %c0_i32_1 = arith.constant 0 : i32
    return %c0_i32, %c0_i32_0 : i32, i32
  }
  func.func @transform_4(%arg0: i32) -> (i32, i32) {
    %c0_i32 = arith.constant 0 : i32
    %c0_i32_0 = arith.constant 0 : i32
    return %arg0, %c0_i32 : i32, i32
  }
}

</mosaic_0001>

<bundles_post_ra>
// kernel: reverse
= control target key start
LH: loop header
LB: loop body
LE: loop exit
PB: predicated region body
PF: predicated region fallthrough
CT: control target
= control target key end

     0   :  { %v2_v0 = vlaneseq  ;;  %s7987_s0 = inlined_call_operand.vmem [shape: bf16[32,1,41,11], index: 0, kind: input, shape index: {}]   ;;  %s7988_s1 = inlined_call_operand.vmem [shape: bf16[32,1,41,11], index: 1, kind: output, shape index: {}]  }
   0x2   :  { %v6444_v1 = vsub.s32 40, %v2_v0 }
   0x4   :  { %4 = vset.pattern.permute.xlu0 %v6444_v1 }
   0x5   :  { %s6447_s6 = smov 0   ;;  %s6449_s7 = smov 0  }
   0x6   :  { %s6451_s8 = smov 0  }
   0x7 LB: > { %s5606_s9 = sadd.s32 4294967295, %s6363_s8   ;;  %s32_s10 = sadd.s32 1, %s6359_s7  ;;  %s6363_s8 = sphi %s6451_s8, %s10_s8   ;;  %s6359_s7 = sphi %s6449_s7, %s8012_s7   ;;  %s6355_s6 = sphi %s6447_s6, %s8011_s6  }
   0x8   : > { %p34_p0 = scmp.ge.s32.totalorder %s32_s10, 3  ;;  %p5608_p1 = scmp.ge.s32.totalorder %s6363_s8, 3 }
   0x9   : > { %s52_s11 = sand.u32 (!%p5608_p1), 1, %s6363_s8   ;;  %s55_s12 = ssub.s32 (!%p5608_p1), 2, %s6359_s7 }
   0xa   : > { %s8014_s10 = smov (%p34_p0, %s32_s10), 0  ;;  %50 = sbr.rel (%p5608_p1) target bundleno = 110 (0x6e), region = 16 }
   0xb   : > { %s5610_s13 = sshll.u32 (!%p5608_p1), %s55_s12, 2  ;;  %s5609_s15 = sshll.u32 (!%p5608_p1), %s52_s11, 7 }
   0xc   : > { %s59_s14 = ssub.s32 (!%p5608_p1), 1, %s5610_s13  ;;  %s54_s23 = scalar_lea.vmem (!%p5608_p1), [#allocation1], %s5609_s15 }
   0xd   : > { %p60_p2 = scmp.gt.s32.totalorder (!%p5608_p1), %s59_s14, 0 }
  0x11   : > { %s8016_s14 = smov (!%p60_p2, %s59_s14), 0 }
  0x12   : > { %s6469_s16 = ssub.s32 4, %s8016_s14  ;;  %s65_s17 = sadd.s32 %s5610_s13, %s8016_s14 }
  0x13   : > { %s5611_s18 = sshll.u32 %s6469_s16, 9  ;;  %s5613_s19 = sadd.s32 4294967295, %s65_s17 }
  0x14   : > { %s6475_s22 = scalar_lea.vmem %s7987_s0, %s5613_s19   ;;  %s6477_s24 = scalar_lea.vmem %s54_s23, %s8016_s14 [#allocation1]  }
  0x15   : > { %p5614_p3 = scmp.eq.s32.totalorder %s5611_s18, 0 }
  0x16   : > { %p77_p4 = scmp.lt.u32.totalorder (!%p5614_p3), %s6469_s16, 8 }
  0x17   : > { %76 = sbr.rel (%p5614_p3) target bundleno = 110 (0x6e), region = 20 }
  0x1e   : > { %80 = sbr.rel (%p77_p4) target bundleno = 74 (0x4a), region = 24  ;;  %s157_s25 = sand.u32 (!%p77_p4), 7, %s6469_s16  }
  0x1f   : > { %p158_p5 = scmp.eq.s32.totalorder (!%p77_p4), %s157_s25, 0 }
  0x25   : > { %403 = sbr.rel (%p158_p5) target bundleno = 74 (0x4a), region = 57  ;;  %s405_s26 = ssub.s32 (!%p158_p5), %s6469_s16, %s157_s25 }
  0x26   : > { %s6483_s27 = scalar_lea.vmem (!%p158_p5), %s6475_s22, %s405_s26  ;;  %s6486_s28 = scalar_lea.vmem (!%p158_p5), %s6477_s24, %s405_s26 [#allocation1] }
  0x27   : > { %s6429_s29 = smov (!%p158_p5), 0  }
  0x28   : > { %s6488_s30 = sshllo.u32 (!%p158_p5), %s6429_s29, %s157_s25 }
  0x29   : > { %v657_v2 = vld [vmem:[%s6483_s27] sm:%s6488_s30] (!%p158_p5)  ;;  %v659_v3 = vld [vmem:[%s6483_s27 + $0xb] sm:%s6488_s30] (!%p158_p5) }
  0x2a   : > { %658 = vst [vmem:[%s6486_s28] sm:%s6488_s30] (!%p158_p5), %v657_v2  ;;  %v661_v4 = vld [vmem:[%s6483_s27 + $0x16] sm:%s6488_s30] (!%p158_p5) }
  0x2b   : > { %v663_v5 = vld [vmem:[%s6483_s27 + $0x21] sm:%s6488_s30] (!%p158_p5)  ;;  %660 = vst [vmem:[%s6486_s28 + $0x4] sm:%s6488_s30] (!%p158_p5), %v659_v3 }
  0x2c   : > { %v665_v6 = vld [vmem:[%s6483_s27 + $0x2c] sm:%s6488_s30]  ;;  %662 = vst [vmem:[%s6486_s28 + $0x8] sm:%s6488_s30] %v661_v4 }
  0x2d   : > { %v667_v7 = vld [vmem:[%s6483_s27 + $0x37] sm:%s6488_s30]  ;;  %664 = vst [vmem:[%s6486_s28 + $0xc] sm:%s6488_s30] %v663_v5 }
  0x2e   : > { %v669_v8 = vld [vmem:[%s6483_s27 + $0x42] sm:%s6488_s30]  ;;  %666 = vst [vmem:[%s6486_s28 + $0x10] sm:%s6488_s30] %v665_v6 }
  0x2f   : > { %v671_v9 = vld [vmem:[%s6483_s27 + $0x4d] sm:%s6488_s30]  ;;  %668 = vst [vmem:[%s6486_s28 + $0x14] sm:%s6488_s30] %v667_v7 }
  0x30   : > { %v673_v10 = vld [vmem:[%s6483_s27 + $0x58] sm:%s6488_s30]  ;;  %670 = vst [vmem:[%s6486_s28 + $0x18] sm:%s6488_s30] %v669_v8 }
  0x31   : > { %v675_v11 = vld [vmem:[%s6483_s27 + $0x63] sm:%s6488_s30]  ;;  %672 = vst [vmem:[%s6486_s28 + $0x1c] sm:%s6488_s30] %v671_v9 }
  0x32   : > { %v677_v12 = vld [vmem:[%s6483_s27 + $0x6e] sm:%s6488_s30]  ;;  %674 = vst [vmem:[%s6486_s28 + $0x20] sm:%s6488_s30] %v673_v10 }
  0x33   : > { %v679_v13 = vld [vmem:[%s6483_s27 + $0x79] sm:%s6488_s30]  ;;  %676 = vst [vmem:[%s6486_s28 + $0x24] sm:%s6488_s30] %v675_v11 }
  0x34   : > { %v681_v14 = vld [vmem:[%s6483_s27 + $0x84] sm:%s6488_s30]  ;;  %678 = vst [vmem:[%s6486_s28 + $0x28] sm:%s6488_s30] %v677_v12 }
  0x35   : > { %v683_v15 = vld [vmem:[%s6483_s27 + $0x8f] sm:%s6488_s30]  ;;  %680 = vst [vmem:[%s6486_s28 + $0x2c] sm:%s6488_s30] %v679_v13 }
  0x36   : > { %v685_v16 = vld [vmem:[%s6483_s27 + $0x9a] sm:%s6488_s30]  ;;  %682 = vst [vmem:[%s6486_s28 + $0x30] sm:%s6488_s30] %v681_v14 }
  0x37   : > { %v687_v17 = vld [vmem:[%s6483_s27 + $0xa5] sm:%s6488_s30]  ;;  %684 = vst [vmem:[%s6486_s28 + $0x34] sm:%s6488_s30] %v683_v15 }
  0x38   : > { %v689_v18 = vld [vmem:[%s6483_s27 + $0xb0] sm:%s6488_s30]  ;;  %686 = vst [vmem:[%s6486_s28 + $0x38] sm:%s6488_s30] %v685_v16 }
  0x39   : > { %v691_v19 = vld [vmem:[%s6483_s27 + $0xbb] sm:%s6488_s30]  ;;  %688 = vst [vmem:[%s6486_s28 + $0x3c] sm:%s6488_s30] %v687_v17 }
  0x3a   : > { %v693_v20 = vld [vmem:[%s6483_s27 + $0xc6] sm:%s6488_s30]  ;;  %690 = vst [vmem:[%s6486_s28 + $0x40] sm:%s6488_s30] %v689_v18 }
  0x3b   : > { %v695_v21 = vld [vmem:[%s6483_s27 + $0xd1] sm:%s6488_s30]  ;;  %692 = vst [vmem:[%s6486_s28 + $0x44] sm:%s6488_s30] %v691_v19 }
  0x3c   : > { %v697_v22 = vld [vmem:[%s6483_s27 + $0xdc] sm:%s6488_s30]  ;;  %694 = vst [vmem:[%s6486_s28 + $0x48] sm:%s6488_s30] %v693_v20 }
  0x3d   : > { %v699_v23 = vld [vmem:[%s6483_s27 + $0xe7] sm:%s6488_s30]  ;;  %696 = vst [vmem:[%s6486_s28 + $0x4c] sm:%s6488_s30] %v695_v21 }
  0x3e   : > { %v701_v24 = vld [vmem:[%s6483_s27 + $0xf2] sm:%s6488_s30]  ;;  %698 = vst [vmem:[%s6486_s28 + $0x50] sm:%s6488_s30] %v697_v22 }
  0x3f   : > { %v703_v25 = vld [vmem:[%s6483_s27 + $0xfd] sm:%s6488_s30]  ;;  %700 = vst [vmem:[%s6486_s28 + $0x54] sm:%s6488_s30] %v699_v23 }
  0x40   : > { %v705_v26 = vld [vmem:[%s6483_s27 + $0x108] sm:%s6488_s30]  ;;  %702 = vst [vmem:[%s6486_s28 + $0x58] sm:%s6488_s30] %v701_v24 }
  0x41   : > { %v707_v27 = vld [vmem:[%s6483_s27 + $0x113] sm:%s6488_s30]  ;;  %704 = vst [vmem:[%s6486_s28 + $0x5c] sm:%s6488_s30] %v703_v25 }
  0x42   : > { %v709_v28 = vld [vmem:[%s6483_s27 + $0x11e] sm:%s6488_s30]  ;;  %706 = vst [vmem:[%s6486_s28 + $0x60] sm:%s6488_s30] %v705_v26 }
  0x43   : > { %v711_v29 = vld [vmem:[%s6483_s27 + $0x129] sm:%s6488_s30]  ;;  %708 = vst [vmem:[%s6486_s28 + $0x64] sm:%s6488_s30] %v707_v27 }
  0x44   : > { %v713_v30 = vld [vmem:[%s6483_s27 + $0x134] sm:%s6488_s30]  ;;  %710 = vst [vmem:[%s6486_s28 + $0x68] sm:%s6488_s30] %v709_v28 }
  0x45   : > { %v715_v31 = vld [vmem:[%s6483_s27 + $0x13f] sm:%s6488_s30]  ;;  %712 = vst [vmem:[%s6486_s28 + $0x6c] sm:%s6488_s30] %v711_v29 }
  0x46   : > { %v717_v32 = vld [vmem:[%s6483_s27 + $0x14a] sm:%s6488_s30]  ;;  %714 = vst [vmem:[%s6486_s28 + $0x70] sm:%s6488_s30] %v713_v30 }
  0x47   : > { %v719_v33 = vld [vmem:[%s6483_s27 + $0x155] sm:%s6488_s30]  ;;  %716 = vst [vmem:[%s6486_s28 + $0x74] sm:%s6488_s30] %v715_v31 }
  0x48   : > { %718 = vst [vmem:[%s6486_s28 + $0x78] sm:%s6488_s30] %v717_v32 }
  0x49   : > { %720 = vst [vmem:[%s6486_s28 + $0x7c] sm:%s6488_s30] %v719_v33 }
  0x4a PF: > { %p5634_p6 = scmp.ge.u32.totalorder %s6469_s16, 8 }
  0x4b   : > { %s6430_s2 = smov (!%p5634_p6), 0  }
  0x4c   : > { %83 = sbr.rel (%p5634_p6) target bundleno = 110 (0x6e), region = 28  ;;  %s6620_s3 = sshllo.u32 (!%p5634_p6), %s6430_s2, %s6469_s16 }
  0x4d   : > { %v93_v34 = vld [vmem:[%s6475_s22] sm:%s6620_s3] (!%p5634_p6)  ;;  %v95_v35 = vld [vmem:[%s6475_s22 + $0xb] sm:%s6620_s3] (!%p5634_p6) }
  0x4e   : > { %94 = vst [vmem:[%s6477_s24] sm:%s6620_s3] (!%p5634_p6), %v93_v34  ;;  %v97_v36 = vld [vmem:[%s6475_s22 + $0x16] sm:%s6620_s3] (!%p5634_p6) }
  0x4f   : > { %v99_v37 = vld [vmem:[%s6475_s22 + $0x21] sm:%s6620_s3] (!%p5634_p6)  ;;  %96 = vst [vmem:[%s6477_s24 + $0x4] sm:%s6620_s3] (!%p5634_p6), %v95_v35 }
  0x50   : > { %v101_v38 = vld [vmem:[%s6475_s22 + $0x2c] sm:%s6620_s3] (!%p5634_p6)  ;;  %98 = vst [vmem:[%s6477_s24 + $0x8] sm:%s6620_s3] (!%p5634_p6), %v97_v36 }
  0x51   : > { %v103_v39 = vld [vmem:[%s6475_s22 + $0x37] sm:%s6620_s3] (!%p5634_p6)  ;;  %100 = vst [vmem:[%s6477_s24 + $0xc] sm:%s6620_s3] (!%p5634_p6), %v99_v37 }
  0x52   : > { %v105_v40 = vld [vmem:[%s6475_s22 + $0x42] sm:%s6620_s3] (!%p5634_p6)  ;;  %102 = vst [vmem:[%s6477_s24 + $0x10] sm:%s6620_s3] (!%p5634_p6), %v101_v38 }
  0x53   : > { %v107_v41 = vld [vmem:[%s6475_s22 + $0x4d] sm:%s6620_s3]  ;;  %104 = vst [vmem:[%s6477_s24 + $0x14] sm:%s6620_s3] %v103_v39 }
  0x54   : > { %v109_v42 = vld [vmem:[%s6475_s22 + $0x58] sm:%s6620_s3]  ;;  %106 = vst [vmem:[%s6477_s24 + $0x18] sm:%s6620_s3] %v105_v40 }
  0x55   : > { %v111_v43 = vld [vmem:[%s6475_s22 + $0x63] sm:%s6620_s3]  ;;  %108 = vst [vmem:[%s6477_s24 + $0x1c] sm:%s6620_s3] %v107_v41 }
  0x56   : > { %v113_v44 = vld [vmem:[%s6475_s22 + $0x6e] sm:%s6620_s3]  ;;  %110 = vst [vmem:[%s6477_s24 + $0x20] sm:%s6620_s3] %v109_v42 }
  0x57   : > { %v115_v45 = vld [vmem:[%s6475_s22 + $0x79] sm:%s6620_s3]  ;;  %112 = vst [vmem:[%s6477_s24 + $0x24] sm:%s6620_s3] %v111_v43 }
  0x58   : > { %v117_v46 = vld [vmem:[%s6475_s22 + $0x84] sm:%s6620_s3]  ;;  %114 = vst [vmem:[%s6477_s24 + $0x28] sm:%s6620_s3] %v113_v44 }
  0x59   : > { %v119_v47 = vld [vmem:[%s6475_s22 + $0x8f] sm:%s6620_s3]  ;;  %116 = vst [vmem:[%s6477_s24 + $0x2c] sm:%s6620_s3] %v115_v45 }
  0x5a   : > { %v121_v48 = vld [vmem:[%s6475_s22 + $0x9a] sm:%s6620_s3]  ;;  %118 = vst [vmem:[%s6477_s24 + $0x30] sm:%s6620_s3] %v117_v46 }
  0x5b   : > { %v123_v49 = vld [vmem:[%s6475_s22 + $0xa5] sm:%s6620_s3]  ;;  %120 = vst [vmem:[%s6477_s24 + $0x34] sm:%s6620_s3] %v119_v47 }
  0x5c   : > { %v125_v50 = vld [vmem:[%s6475_s22 + $0xb0] sm:%s6620_s3]  ;;  %122 = vst [vmem:[%s6477_s24 + $0x38] sm:%s6620_s3] %v121_v48 }
  0x5d   : > { %v127_v51 = vld [vmem:[%s6475_s22 + $0xbb] sm:%s6620_s3]  ;;  %124 = vst [vmem:[%s6477_s24 + $0x3c] sm:%s6620_s3] %v123_v49 }
  0x5e   : > { %v129_v52 = vld [vmem:[%s6475_s22 + $0xc6] sm:%s6620_s3]  ;;  %126 = vst [vmem:[%s6477_s24 + $0x40] sm:%s6620_s3] %v125_v50 }
  0x5f   : > { %v131_v53 = vld [vmem:[%s6475_s22 + $0xd1] sm:%s6620_s3]  ;;  %128 = vst [vmem:[%s6477_s24 + $0x44] sm:%s6620_s3] %v127_v51 }
  0x60   : > { %v133_v54 = vld [vmem:[%s6475_s22 + $0xdc] sm:%s6620_s3]  ;;  %130 = vst [vmem:[%s6477_s24 + $0x48] sm:%s6620_s3] %v129_v52 }
  0x61   : > { %v135_v55 = vld [vmem:[%s6475_s22 + $0xe7] sm:%s6620_s3]  ;;  %132 = vst [vmem:[%s6477_s24 + $0x4c] sm:%s6620_s3] %v131_v53 }
  0x62   : > { %v137_v56 = vld [vmem:[%s6475_s22 + $0xf2] sm:%s6620_s3]  ;;  %134 = vst [vmem:[%s6477_s24 + $0x50] sm:%s6620_s3] %v133_v54 }
  0x63   : > { %v139_v57 = vld [vmem:[%s6475_s22 + $0xfd] sm:%s6620_s3]  ;;  %136 = vst [vmem:[%s6477_s24 + $0x54] sm:%s6620_s3] %v135_v55 }
  0x64   : > { %v141_v58 = vld [vmem:[%s6475_s22 + $0x108] sm:%s6620_s3]  ;;  %138 = vst [vmem:[%s6477_s24 + $0x58] sm:%s6620_s3] %v137_v56 }
  0x65   : > { %v143_v59 = vld [vmem:[%s6475_s22 + $0x113] sm:%s6620_s3]  ;;  %140 = vst [vmem:[%s6477_s24 + $0x5c] sm:%s6620_s3] %v139_v57 }
  0x66   : > { %v145_v60 = vld [vmem:[%s6475_s22 + $0x11e] sm:%s6620_s3]  ;;  %142 = vst [vmem:[%s6477_s24 + $0x60] sm:%s6620_s3] %v141_v58 }
  0x67   : > { %v147_v61 = vld [vmem:[%s6475_s22 + $0x129] sm:%s6620_s3]  ;;  %144 = vst [vmem:[%s6477_s24 + $0x64] sm:%s6620_s3] %v143_v59 }
  0x68   : > { %v149_v62 = vld [vmem:[%s6475_s22 + $0x134] sm:%s6620_s3]  ;;  %146 = vst [vmem:[%s6477_s24 + $0x68] sm:%s6620_s3] %v145_v60 }
  0x69   : > { %v151_v63 = vld [vmem:[%s6475_s22 + $0x13f] sm:%s6620_s3]  ;;  %148 = vst [vmem:[%s6477_s24 + $0x6c] sm:%s6620_s3] %v147_v61 }
  0x6a   : > { %v153_v0 = vld [vmem:[%s6475_s22 + $0x14a] sm:%s6620_s3]  ;;  %150 = vst [vmem:[%s6477_s24 + $0x70] sm:%s6620_s3] %v149_v62 }
  0x6b   : > { %v155_v2 = vld [vmem:[%s6475_s22 + $0x155] sm:%s6620_s3]  ;;  %152 = vst [vmem:[%s6477_s24 + $0x74] sm:%s6620_s3] %v151_v63 }
  0x6c   : > { %154 = vst [vmem:[%s6477_s24 + $0x78] sm:%s6620_s3] %v153_v0 }
  0x6d   : > { %156 = vst [vmem:[%s6477_s24 + $0x7c] sm:%s6620_s3] %v155_v2 }
  0x6e PF: > { %p5635_p7 = scmp.ge.s32.totalorder %s6363_s8, 1  ;;  %p723_p8 = scmp.lt.s32.totalorder %s6363_s8, 4 }
  0x70   : > { %p724_p9 = pnand %p5635_p7, %p723_p8 }
  0x71   : > { %6212 = vset.pattern.permute.xlu1 (!%p724_p9), %v6444_v1  ;;  %s6755_s4 = sand.u32 (!%p724_p9), 1, %s5606_s9   ;;  %s5893_s6 = sshll.u32 (!%p724_p9), %s6355_s6, 2 }
  0x72   : > { %727 = sbr.rel (%p724_p9) target bundleno = 750 (0x2ee), region = 82  ;;  %s5636_s5 = sshll.u32 (!%p724_p9), %s6755_s4, 7 }
  0x73   : > { %s6760_s9 = scalar_lea.vmem (!%p724_p9), [#allocation1], %s5636_s5  ;;  %s6894_s11 = scalar_lea.vmem (!%p724_p9), [#allocation3], %s5636_s5  }
  0x74   : > { %v5764_v3 = vld [vmem:[%s6760_s9 + $0x1] sm:$0x1] (!%p724_p9)  ;;  %v5762_v4 = vld [vmem:[%s6760_s9 + $0x3] sm:$0x1] (!%p724_p9)  ;;  %v2784_v5 = vld [vmem:[%s6760_s9] sm:$0x1] (!%p724_p9)  ;;  %s7029_s16 = scalar_lea.vmem (!%p724_p9), %s7988_s1, %s5893_s6  }
  0x75   : > { %v2771_v6 = vunpack.c.l.bf16 (!%p724_p9), %v5764_v3  ;;  %v2740_v7 = vunpack.c.l.bf16 (!%p724_p9), %v5762_v4  ;;  %v2785_v8 = vunpack.c.l.bf16 (!%p724_p9), %v2784_v5  ;;  %v5763_v9 = vld [vmem:[%s6760_s9 + $0x2] sm:$0x1] (!%p724_p9)  ;;  %v5759_v10 = vld [vmem:[%s6760_s9 + $0x6] sm:$0x1] (!%p724_p9)  ;;  %v5758_v11 = vld [vmem:[%s6760_s9 + $0x7] sm:$0x1] (!%p724_p9) }
  0x76   : > { %v2756_v12 = vunpack.c.l.bf16 (!%p724_p9), %v5763_v9  ;;  %v2692_v13 = vunpack.c.l.bf16 (!%p724_p9), %v5759_v10  ;;  %v2676_v14 = vunpack.c.l.bf16 (!%p724_p9), %v5758_v11  ;;  %v5761_v15 = vld [vmem:[%s6760_s9 + $0x4] sm:$0x1] (!%p724_p9)  ;;  %v5760_v16 = vld [vmem:[%s6760_s9 + $0x5] sm:$0x1] (!%p724_p9)  ;;  %v5755_v17 = vld [vmem:[%s6760_s9 + $0xa] sm:$0x1] (!%p724_p9) }
  0x77   : > { %2774 = vst [vmem:[#allocation0 + $0x8] sm:$0x3] (!%p724_p9), %v2771_v6  ;;  %2743 = vst [vmem:[#allocation0 + $0x18] sm:$0x3] (!%p724_p9), %v2740_v7  ;;  %v2724_v18 = vunpack.c.l.bf16 (!%p724_p9), %v5761_v15  ;;  %v2708_v19 = vunpack.c.l.bf16 (!%p724_p9), %v5760_v16  ;;  %v2628_v20 = vunpack.c.l.bf16 (!%p724_p9), %v5755_v17  ;;  %v5754_v21 = vld [vmem:[%s6760_s9 + $0xb] sm:$0x1] (!%p724_p9) }
  0x78   : > { %2787 = vst [vmem:[#allocation0] sm:$0x3] (!%p724_p9), %v2785_v8  ;;  %v5757_v22 = vld [vmem:[%s6760_s9 + $0x8] sm:$0x1] (!%p724_p9)  ;;  %v5756_v23 = vld [vmem:[%s6760_s9 + $0x9] sm:$0x1] (!%p724_p9)  ;;  %v2612_v24 = vunpack.c.l.bf16 (!%p724_p9), %v5754_v21 }
  0x79   : > { %2759 = vst [vmem:[#allocation0 + $0x10] sm:$0x3] %v2756_v12  ;;  %2695 = vst [vmem:[#allocation0 + $0x30] sm:$0x3] %v2692_v13  ;;  %v2660_v25 = vunpack.c.l.bf16 %v5757_v22  ;;  %v2644_v26 = vunpack.c.l.bf16 %v5756_v23  ;;  %v5751_v27 = vld [vmem:[%s6760_s9 + $0xe] sm:$0x1] }
  0x7a   : > { %2679 = vst [vmem:[#allocation0 + $0x38] sm:$0x3] %v2676_v14  ;;  %v5750_v28 = vld [vmem:[%s6760_s9 + $0xf] sm:$0x1]  ;;  %v5753_v29 = vld [vmem:[%s6760_s9 + $0xc] sm:$0x1]  ;;  %v2564_v30 = vunpack.c.l.bf16 %v5751_v27 }
  0x7b   : > { %2727 = vst [vmem:[#allocation0 + $0x20] sm:$0x3] %v2724_v18  ;;  %2711 = vst [vmem:[#allocation0 + $0x28] sm:$0x3] %v2708_v19  ;;  %v2548_v31 = vunpack.c.l.bf16 %v5750_v28  ;;  %v2596_v32 = vunpack.c.l.bf16 %v5753_v29  ;;  %v5752_v33 = vld [vmem:[%s6760_s9 + $0xd] sm:$0x1] }
  0x7c   : > { %2631 = vst [vmem:[#allocation0 + $0x50] sm:$0x3] %v2628_v20  ;;  %v5747_v34 = vld [vmem:[%s6760_s9 + $0x12] sm:$0x1]  ;;  %v5746_v35 = vld [vmem:[%s6760_s9 + $0x13] sm:$0x1]  ;;  %v2580_v36 = vunpack.c.l.bf16 %v5752_v33 }
  0x7d   : > { %2615 = vst [vmem:[#allocation0 + $0x58] sm:$0x3] %v2612_v24  ;;  %2663 = vst [vmem:[#allocation0 + $0x40] sm:$0x3] %v2660_v25  ;;  %v2500_v37 = vunpack.c.l.bf16 %v5747_v34  ;;  %v2484_v38 = vunpack.c.l.bf16 %v5746_v35  ;;  %v5749_v39 = vld [vmem:[%s6760_s9 + $0x10] sm:$0x1] }
  0x7e   : > { %2647 = vst [vmem:[#allocation0 + $0x48] sm:$0x3] %v2644_v26  ;;  %v5748_v40 = vld [vmem:[%s6760_s9 + $0x11] sm:$0x1]  ;;  %v5743_v41 = vld [vmem:[%s6760_s9 + $0x16] sm:$0x1]  ;;  %v2532_v42 = vunpack.c.l.bf16 %v5749_v39 }
  0x7f   : > { %2567 = vst [vmem:[#allocation0 + $0x70] sm:$0x3] %v2564_v30  ;;  %2551 = vst [vmem:[#allocation0 + $0x78] sm:$0x3] %v2548_v31  ;;  %v2516_v43 = vunpack.c.l.bf16 %v5748_v40  ;;  %v2436_v44 = vunpack.c.l.bf16 %v5743_v41  ;;  %v5742_v45 = vld [vmem:[%s6760_s9 + $0x17] sm:$0x1] }
  0x80   : > { %2599 = vst [vmem:[#allocation0 + $0x60] sm:$0x3] %v2596_v32  ;;  %v5745_v46 = vld [vmem:[%s6760_s9 + $0x14] sm:$0x1]  ;;  %v5744_v47 = vld [vmem:[%s6760_s9 + $0x15] sm:$0x1]  ;;  %v2420_v48 = vunpack.c.l.bf16 %v5742_v45 }
  0x81   : > { %2583 = vst [vmem:[#allocation0 + $0x68] sm:$0x3] %v2580_v36  ;;  %2503 = vst [vmem:[#allocation0 + $0x90] sm:$0x3] %v2500_v37  ;;  %v2468_v49 = vunpack.c.l.bf16 %v5745_v46  ;;  %v2452_v50 = vunpack.c.l.bf16 %v5744_v47  ;;  %v5739_v51 = vld [vmem:[%s6760_s9 + $0x1a] sm:$0x1] }
  0x82   : > { %2487 = vst [vmem:[#allocation0 + $0x98] sm:$0x3] %v2484_v38  ;;  %v5738_v52 = vld [vmem:[%s6760_s9 + $0x1b] sm:$0x1]  ;;  %v5741_v53 = vld [vmem:[%s6760_s9 + $0x18] sm:$0x1]  ;;  %v2372_v54 = vunpack.c.l.bf16 %v5739_v51 }
  0x83   : > { %2535 = vst [vmem:[#allocation0 + $0x80] sm:$0x3] %v2532_v42  ;;  %2519 = vst [vmem:[#allocation0 + $0x88] sm:$0x3] %v2516_v43  ;;  %v2356_v55 = vunpack.c.l.bf16 %v5738_v52  ;;  %v2404_v56 = vunpack.c.l.bf16 %v5741_v53  ;;  %v5740_v57 = vld [vmem:[%s6760_s9 + $0x19] sm:$0x1] }
  0x84   : > { %2439 = vst [vmem:[#allocation0 + $0xb0] sm:$0x3] %v2436_v44  ;;  %v5735_v58 = vld [vmem:[%s6760_s9 + $0x1e] sm:$0x1]  ;;  %v5734_v59 = vld [vmem:[%s6760_s9 + $0x1f] sm:$0x1]  ;;  %v2388_v62 = vunpack.c.l.bf16 %v5740_v57 }
  0x85   : > { %v2816_v60 = vld [vmem:[#allocation0 + $0x8] sm:$0xff]  ;;  %v2804_v61 = vld [vmem:[#allocation0 + $0x18] sm:$0xff]  ;;  %2423 = vst [vmem:[#allocation0 + $0xb8] sm:$0x3] %v2420_v48  ;;  %2471 = vst [vmem:[#allocation0 + $0xa0] sm:$0x3] %v2468_v49  ;;  %v2308_v63 = vunpack.c.l.bf16 %v5735_v58  ;;  %v2292_v0 = vunpack.c.l.bf16 %v5734_v59 }
  0x86   : > { %2455 = vst [vmem:[#allocation0 + $0xa8] sm:$0x3] %v2452_v50  ;;  %2817 = vperm.xlu1 %6212, %v2816_v60   ;;  %2805 = vperm.xlu0 %4, %v2804_v61   ;;  %2375 = vst [vmem:[#allocation0 + $0xd0] sm:$0x3] %v2372_v54  ;;  %v2821_v2 = vld [vmem:[#allocation0] sm:$0xff]  ;;  %v2810_v3 = vld [vmem:[#allocation0 + $0x10] sm:$0xff] }
  0x87   : > { %2359 = vst [vmem:[#allocation0 + $0xd8] sm:$0x3] %v2356_v55  ;;  %2407 = vst [vmem:[#allocation0 + $0xc0] sm:$0x3] %v2404_v56  ;;  %v2833_v4 = vld [vmem:[#allocation0 + $0x30] sm:$0xff]  ;;  %v2827_v5 = vld [vmem:[#allocation0 + $0x38] sm:$0xff] }
  0x88   : > { %2391 = vst [vmem:[#allocation0 + $0xc8] sm:$0x3] %v2388_v62  ;;  %2311 = vst [vmem:[#allocation0 + $0xf0] sm:$0x3] %v2308_v63  ;;  %v2845_v6 = vld [vmem:[#allocation0 + $0x20] sm:$0xff]  ;;  %v2839_v7 = vld [vmem:[#allocation0 + $0x28] sm:$0xff] }
  0x89   : > { %2295 = vst [vmem:[#allocation0 + $0xf8] sm:$0x3] %v2292_v0  ;;  %v5737_v8 = vld [vmem:[%s6760_s9 + $0x1c] sm:$0x1]  ;;  %v5736_v9 = vld [vmem:[%s6760_s9 + $0x1d] sm:$0x1] }
  0x8a   : > { %2822 = vperm.xlu1 %6212, %v2821_v2   ;;  %2811 = vperm.xlu0 %4, %v2810_v3   ;;  %v5731_v10 = vld [vmem:[%s6760_s9 + $0x22] sm:$0x1]  ;;  %v2340_v11 = vunpack.c.l.bf16 %v5737_v8  ;;  %v2324_v12 = vunpack.c.l.bf16 %v5736_v9  ;;  %v5730_v14 = vld [vmem:[%s6760_s9 + $0x23] sm:$0x1]  ;;  %v5733_v15 = vld [vmem:[%s6760_s9 + $0x20] sm:$0x1] }
  0x8b   : > { %v2244_v13 = vunpack.c.l.bf16 %v5731_v10  ;;  %v5732_v16 = vld [vmem:[%s6760_s9 + $0x21] sm:$0x1]  ;;  %v2857_v17 = vld [vmem:[#allocation0 + $0x50] sm:$0xff]  ;;  %v2851_v18 = vld [vmem:[#allocation0 + $0x58] sm:$0xff]  ;;  %v2228_v19 = vunpack.c.l.bf16 %v5730_v14  ;;  %v2276_v20 = vunpack.c.l.bf16 %v5733_v15  ;;  %s4471_s12 = ssub.s32 11, %s5893_s6 }
  0x8c   : > { %v2260_v21 = vunpack.c.l.bf16 %v5732_v16  ;;  %v5727_v22 = vld [vmem:[%s6760_s9 + $0x26] sm:$0x1]  ;;  %v5726_v23 = vld [vmem:[%s6760_s9 + $0x27] sm:$0x1]  ;;  %v5729_v24 = vld [vmem:[%s6760_s9 + $0x24] sm:$0x1] }
  0x8d   : > { %2343 = vst [vmem:[#allocation0 + $0xe0] sm:$0x3] %v2340_v11  ;;  %2327 = vst [vmem:[#allocation0 + $0xe8] sm:$0x3] %v2324_v12  ;;  %v2180_v25 = vunpack.c.l.bf16 %v5727_v22  ;;  %v2164_v26 = vunpack.c.l.bf16 %v5726_v23  ;;  %v2212_v27 = vunpack.c.l.bf16 %v5729_v24  ;;  %v5728_v28 = vld [vmem:[%s6760_s9 + $0x25] sm:$0x1] }
  0x8e   : > { %2834 = vperm.xlu1 %6212, %v2833_v4   ;;  %2828 = vperm.xlu0 %4, %v2827_v5   ;;  %2247 = vst [vmem:[#allocation0 + $0x110] sm:$0x3] %v2244_v13  ;;  %v5723_v29 = vld [vmem:[%s6760_s9 + $0x2a] sm:$0x1]  ;;  %v5722_v30 = vld [vmem:[%s6760_s9 + $0x2b] sm:$0x1]  ;;  %v2196_v31 = vunpack.c.l.bf16 %v5728_v28 }
  0x8f   : > { %2231 = vst [vmem:[#allocation0 + $0x118] sm:$0x3] %v2228_v19  ;;  %2279 = vst [vmem:[#allocation0 + $0x100] sm:$0x3] %v2276_v20  ;;  %v2116_v32 = vunpack.c.l.bf16 %v5723_v29  ;;  %v2100_v33 = vunpack.c.l.bf16 %v5722_v30  ;;  %v5725_v34 = vld [vmem:[%s6760_s9 + $0x28] sm:$0x1] }
  0x90   : > { %2263 = vst [vmem:[#allocation0 + $0x108] sm:$0x3] %v2260_v21  ;;  %v5724_v35 = vld [vmem:[%s6760_s9 + $0x29] sm:$0x1]  ;;  %v5719_v36 = vld [vmem:[%s6760_s9 + $0x2e] sm:$0x1]  ;;  %v2148_v37 = vunpack.c.l.bf16 %v5725_v34 }
  0x91   : > { %2183 = vst [vmem:[#allocation0 + $0x130] sm:$0x3] %v2180_v25  ;;  %2167 = vst [vmem:[#allocation0 + $0x138] sm:$0x3] %v2164_v26  ;;  %v2132_v38 = vunpack.c.l.bf16 %v5724_v35  ;;  %v2052_v39 = vunpack.c.l.bf16 %v5719_v36  ;;  %v5718_v40 = vld [vmem:[%s6760_s9 + $0x2f] sm:$0x1] }
  0x92   : > { %2846 = vperm.xlu1 %6212, %v2845_v6   ;;  %2840 = vperm.xlu0 %4, %v2839_v7   ;;  %2215 = vst [vmem:[#allocation0 + $0x120] sm:$0x3] %v2212_v27  ;;  %v5721_v41 = vld [vmem:[%s6760_s9 + $0x2c] sm:$0x1]  ;;  %v5720_v42 = vld [vmem:[%s6760_s9 + $0x2d] sm:$0x1]  ;;  %v2036_v45 = vunpack.c.l.bf16 %v5718_v40 }
  0x93   : > { %v2869_v43 = vld [vmem:[#allocation0 + $0x40] sm:$0xff]  ;;  %v2863_v44 = vld [vmem:[#allocation0 + $0x48] sm:$0xff]  ;;  %2199 = vst [vmem:[#allocation0 + $0x128] sm:$0x3] %v2196_v31  ;;  %2119 = vst [vmem:[#allocation0 + $0x150] sm:$0x3] %v2116_v32  ;;  %v2084_v46 = vunpack.c.l.bf16 %v5721_v41  ;;  %v2068_v47 = vunpack.c.l.bf16 %v5720_v42 }
  0x94   : > { %2103 = vst [vmem:[#allocation0 + $0x158] sm:$0x3] %v2100_v33  ;;  %v5715_v48 = vld [vmem:[%s6760_s9 + $0x32] sm:$0x1]  ;;  %v5714_v49 = vld [vmem:[%s6760_s9 + $0x33] sm:$0x1] }
  0x95   : > { %v5717_v50 = vld [vmem:[%s6760_s9 + $0x30] sm:$0x1]  ;;  %2151 = vst [vmem:[#allocation0 + $0x140] sm:$0x3] %v2148_v37  ;;  %2135 = vst [vmem:[#allocation0 + $0x148] sm:$0x3] %v2132_v38  ;;  %v1988_v51 = vunpack.c.l.bf16 %v5715_v48  ;;  %v1972_v52 = vunpack.c.l.bf16 %v5714_v49 }
  0x96   : > { %2858 = vperm.xlu1 %6212, %v2857_v17   ;;  %2852 = vperm.xlu0 %4, %v2851_v18   ;;  %2055 = vst [vmem:[#allocation0 + $0x170] sm:$0x3] %v2052_v39  ;;  %v2020_v53 = vunpack.c.l.bf16 %v5717_v50  ;;  %v5716_v54 = vld [vmem:[%s6760_s9 + $0x31] sm:$0x1]  ;;  %v5711_v55 = vld [vmem:[%s6760_s9 + $0x36] sm:$0x1] }
  0x97   : > { %v5710_v56 = vld [vmem:[%s6760_s9 + $0x37] sm:$0x1]  ;;  %2039 = vst [vmem:[#allocation0 + $0x178] sm:$0x3] %v2036_v45  ;;  %2087 = vst [vmem:[#allocation0 + $0x160] sm:$0x3] %v2084_v46  ;;  %v2004_v57 = vunpack.c.l.bf16 %v5716_v54  ;;  %v1924_v58 = vunpack.c.l.bf16 %v5711_v55 }
  0x98   : > { %2071 = vst [vmem:[#allocation0 + $0x168] sm:$0x3] %v2068_v47  ;;  %v1908_v59 = vunpack.c.l.bf16 %v5710_v56  ;;  %v5713_v60 = vld [vmem:[%s6760_s9 + $0x34] sm:$0x1]  ;;  %v5712_v61 = vld [vmem:[%s6760_s9 + $0x35] sm:$0x1] }
  0x99   : > { %v5707_v62 = vld [vmem:[%s6760_s9 + $0x3a] sm:$0x1]  ;;  %1991 = vst [vmem:[#allocation0 + $0x190] sm:$0x3] %v1988_v51  ;;  %1975 = vst [vmem:[#allocation0 + $0x198] sm:$0x3] %v1972_v52  ;;  %v1956_v63 = vunpack.c.l.bf16 %v5713_v60  ;;  %v1940_v0 = vunpack.c.l.bf16 %v5712_v61 }
  0x9a   : > { %2023 = vst [vmem:[#allocation0 + $0x180] sm:$0x3] %v2020_v53  ;;  %v1860_v2 = vunpack.c.l.bf16 %v5707_v62  ;;  %v5706_v3 = vld [vmem:[%s6760_s9 + $0x3b] sm:$0x1]  ;;  %v5709_v4 = vld [vmem:[%s6760_s9 + $0x38] sm:$0x1]  ;;  %2870 = vperm.xlu1 %6212, %v2869_v43   ;;  %2864 = vperm.xlu0 %4, %v2863_v44  }
  0x9b   : > { %v5708_v5 = vld [vmem:[%s6760_s9 + $0x39] sm:$0x1]  ;;  %2007 = vst [vmem:[#allocation0 + $0x188] sm:$0x3] %v2004_v57  ;;  %1927 = vst [vmem:[#allocation0 + $0x1b0] sm:$0x3] %v1924_v58  ;;  %v1844_v6 = vunpack.c.l.bf16 %v5706_v3  ;;  %v1892_v7 = vunpack.c.l.bf16 %v5709_v4 }
  0x9c   : > { %1911 = vst [vmem:[#allocation0 + $0x1b8] sm:$0x3] %v1908_v59  ;;  %v1876_v8 = vunpack.c.l.bf16 %v5708_v5  ;;  %1959 = vst [vmem:[#allocation0 + $0x1a0] sm:$0x3] %v1956_v63  ;;  %v2881_v9 = vld [vmem:[#allocation0 + $0x70] sm:$0xff]  ;;  %v2875_v10 = vld [vmem:[#allocation0 + $0x78] sm:$0xff] }
  0x9d   : > { %1943 = vst [vmem:[#allocation0 + $0x1a8] sm:$0x3] %v1940_v0  ;;  %1863 = vst [vmem:[#allocation0 + $0x1d0] sm:$0x3] %v1860_v2  ;;  %v2893_v11 = vld [vmem:[#allocation0 + $0x60] sm:$0xff]  ;;  %v2887_v12 = vld [vmem:[#allocation0 + $0x68] sm:$0xff] }
  0x9e   : > { %1847 = vst [vmem:[#allocation0 + $0x1d8] sm:$0x3] %v1844_v6  ;;  %1895 = vst [vmem:[#allocation0 + $0x1c0] sm:$0x3] %v1892_v7  ;;  %2882 = vperm.xlu1 %6212, %v2881_v9   ;;  %2876 = vperm.xlu0 %4, %v2875_v10   ;;  %v2905_v13 = vld [vmem:[#allocation0 + $0x90] sm:$0xff]  ;;  %v2899_v14 = vld [vmem:[#allocation0 + $0x98] sm:$0xff] }
  0x9f   : > { %1879 = vst [vmem:[#allocation0 + $0x1c8] sm:$0x3] %v1876_v8  ;;  %v5703_v15 = vld [vmem:[%s6760_s9 + $0x3e] sm:$0x1]  ;;  %v5702_v16 = vld [vmem:[%s6760_s9 + $0x3f] sm:$0x1] }
  0xa0   : > { %v5705_v17 = vld [vmem:[%s6760_s9 + $0x3c] sm:$0x1]  ;;  %v1796_v18 = vunpack.c.l.bf16 %v5703_v15  ;;  %v1780_v19 = vunpack.c.l.bf16 %v5702_v16  ;;  %v5704_v21 = vld [vmem:[%s6760_s9 + $0x3d] sm:$0x1]  ;;  %v5699_v22 = vld [vmem:[%s6760_s9 + $0x42] sm:$0x1] }
  0xa1   : > { %v1828_v20 = vunpack.c.l.bf16 %v5705_v17  ;;  %v5698_v23 = vld [vmem:[%s6760_s9 + $0x43] sm:$0x1]  ;;  %v2911_v25 = vld [vmem:[#allocation0 + $0x88] sm:$0xff]  ;;  %v1812_v26 = vunpack.c.l.bf16 %v5704_v21  ;;  %v1732_v27 = vunpack.c.l.bf16 %v5699_v22  ;;  %v5701_v29 = vld [vmem:[%s6760_s9 + $0x40] sm:$0x1]  ;;  %p4472_p10 = scmp.lt.s32.totalorder %s4471_s12, 4 }
  0xa2   : > { %2894 = vperm.xlu1 %6212, %v2893_v11   ;;  %2888 = vperm.xlu0 %4, %v2887_v12   ;;  %v2917_v24 = vld [vmem:[#allocation0 + $0x80] sm:$0xff]  ;;  %v1716_v28 = vunpack.c.l.bf16 %v5698_v23  ;;  %1799 = vst [vmem:[#allocation0 + $0x1f0] sm:$0x3] %v1796_v18  ;;  %1783 = vst [vmem:[#allocation0 + $0x1f8] sm:$0x3] %v1780_v19  ;;  %v1764_v32 = vunpack.c.l.bf16 %v5701_v29  ;;  %v2929_v50 = vld [vmem:[#allocation0 + $0xb0] sm:$0xff] }
  0xa3   : > { %v5700_v30 = vld [vmem:[%s6760_s9 + $0x41] sm:$0x1]  ;;  %v5695_v31 = vld [vmem:[%s6760_s9 + $0x46] sm:$0x1]  ;;  %1831 = vst [vmem:[#allocation0 + $0x1e0] sm:$0x3] %v1828_v20 }
  0xa4   : > { %v1748_v33 = vunpack.c.l.bf16 %v5700_v30  ;;  %v1668_v34 = vunpack.c.l.bf16 %v5695_v31  ;;  %v5694_v35 = vld [vmem:[%s6760_s9 + $0x47] sm:$0x1]  ;;  %v5697_v36 = vld [vmem:[%s6760_s9 + $0x44] sm:$0x1]  ;;  %v5696_v37 = vld [vmem:[%s6760_s9 + $0x45] sm:$0x1] }
  0xa5   : > { %1815 = vst [vmem:[#allocation0 + $0x1e8] sm:$0x3] %v1812_v26  ;;  %1735 = vst [vmem:[#allocation0 + $0x210] sm:$0x3] %v1732_v27  ;;  %v1652_v38 = vunpack.c.l.bf16 %v5694_v35  ;;  %v1700_v39 = vunpack.c.l.bf16 %v5697_v36  ;;  %v1684_v40 = vunpack.c.l.bf16 %v5696_v37  ;;  %v5691_v41 = vld [vmem:[%s6760_s9 + $0x4a] sm:$0x1] }
  0xa6   : > { %2906 = vperm.xlu1 %6212, %v2905_v13   ;;  %2900 = vperm.xlu0 %4, %v2899_v14   ;;  %1719 = vst [vmem:[#allocation0 + $0x218] sm:$0x3] %v1716_v28  ;;  %v5690_v42 = vld [vmem:[%s6760_s9 + $0x4b] sm:$0x1]  ;;  %v5693_v43 = vld [vmem:[%s6760_s9 + $0x48] sm:$0x1]  ;;  %v1604_v44 = vunpack.c.l.bf16 %v5691_v41 }
  0xa7   : > { %1767 = vst [vmem:[#allocation0 + $0x200] sm:$0x3] %v1764_v32  ;;  %1751 = vst [vmem:[#allocation0 + $0x208] sm:$0x3] %v1748_v33  ;;  %v1588_v45 = vunpack.c.l.bf16 %v5690_v42  ;;  %v1636_v46 = vunpack.c.l.bf16 %v5693_v43  ;;  %v5692_v47 = vld [vmem:[%s6760_s9 + $0x49] sm:$0x1] }
  0xa8   : > { %1671 = vst [vmem:[#allocation0 + $0x230] sm:$0x3] %v1668_v34  ;;  %v5687_v48 = vld [vmem:[%s6760_s9 + $0x4e] sm:$0x1]  ;;  %v5686_v49 = vld [vmem:[%s6760_s9 + $0x4f] sm:$0x1]  ;;  %v1620_v52 = vunpack.c.l.bf16 %v5692_v47 }
  0xa9   : > { %v2923_v51 = vld [vmem:[#allocation0 + $0xb8] sm:$0xff]  ;;  %1655 = vst [vmem:[#allocation0 + $0x238] sm:$0x3] %v1652_v38  ;;  %1703 = vst [vmem:[#allocation0 + $0x220] sm:$0x3] %v1700_v39  ;;  %v1540_v53 = vunpack.c.l.bf16 %v5687_v48  ;;  %v1524_v54 = vunpack.c.l.bf16 %v5686_v49  ;;  %v2941_v16 = vld [vmem:[#allocation0 + $0xa0] sm:$0xff] }
  0xaa   : > { %1687 = vst [vmem:[#allocation0 + $0x228] sm:$0x3] %v1684_v40  ;;  %v5689_v55 = vld [vmem:[%s6760_s9 + $0x4c] sm:$0x1]  ;;  %v5688_v56 = vld [vmem:[%s6760_s9 + $0x4d] sm:$0x1]  ;;  %2918 = vperm.xlu1 %6212, %v2917_v24   ;;  %2912 = vperm.xlu0 %4, %v2911_v25  }
  0xab   : > { %v5683_v57 = vld [vmem:[%s6760_s9 + $0x52] sm:$0x1]  ;;  %1607 = vst [vmem:[#allocation0 + $0x250] sm:$0x3] %v1604_v44  ;;  %1591 = vst [vmem:[#allocation0 + $0x258] sm:$0x3] %v1588_v45  ;;  %v1572_v58 = vunpack.c.l.bf16 %v5689_v55  ;;  %v1556_v59 = vunpack.c.l.bf16 %v5688_v56 }
  0xac   : > { %1639 = vst [vmem:[#allocation0 + $0x240] sm:$0x3] %v1636_v46  ;;  %v1476_v60 = vunpack.c.l.bf16 %v5683_v57  ;;  %v5682_v61 = vld [vmem:[%s6760_s9 + $0x53] sm:$0x1]  ;;  %v5685_v62 = vld [vmem:[%s6760_s9 + $0x50] sm:$0x1] }
  0xad   : > { %v5684_v63 = vld [vmem:[%s6760_s9 + $0x51] sm:$0x1]  ;;  %1623 = vst [vmem:[#allocation0 + $0x248] sm:$0x3] %v1620_v52  ;;  %1543 = vst [vmem:[#allocation0 + $0x270] sm:$0x3] %v1540_v53  ;;  %v1460_v0 = vunpack.c.l.bf16 %v5682_v61  ;;  %v1508_v2 = vunpack.c.l.bf16 %v5685_v62 }
  0xae   : > { %1527 = vst [vmem:[#allocation0 + $0x278] sm:$0x3] %v1524_v54  ;;  %v1492_v3 = vunpack.c.l.bf16 %v5684_v63  ;;  %v5679_v4 = vld [vmem:[%s6760_s9 + $0x56] sm:$0x1]  ;;  %v5678_v5 = vld [vmem:[%s6760_s9 + $0x57] sm:$0x1]  ;;  %2930 = vperm.xlu1 %6212, %v2929_v50   ;;  %2924 = vperm.xlu0 %4, %v2923_v51  }
  0xaf   : > { %v5681_v6 = vld [vmem:[%s6760_s9 + $0x54] sm:$0x1]  ;;  %1575 = vst [vmem:[#allocation0 + $0x260] sm:$0x3] %v1572_v58  ;;  %1559 = vst [vmem:[#allocation0 + $0x268] sm:$0x3] %v1556_v59  ;;  %v1412_v7 = vunpack.c.l.bf16 %v5679_v4  ;;  %v1396_v8 = vunpack.c.l.bf16 %v5678_v5 }
  0xb0   : > { %1479 = vst [vmem:[#allocation0 + $0x290] sm:$0x3] %v1476_v60  ;;  %v1444_v9 = vunpack.c.l.bf16 %v5681_v6  ;;  %v5680_v10 = vld [vmem:[%s6760_s9 + $0x55] sm:$0x1]  ;;  %v5675_v11 = vld [vmem:[%s6760_s9 + $0x5a] sm:$0x1] }
  0xb1   : > { %v5674_v12 = vld [vmem:[%s6760_s9 + $0x5b] sm:$0x1]  ;;  %1463 = vst [vmem:[#allocation0 + $0x298] sm:$0x3] %v1460_v0  ;;  %1511 = vst [vmem:[#allocation0 + $0x280] sm:$0x3] %v1508_v2  ;;  %v1428_v13 = vunpack.c.l.bf16 %v5680_v10  ;;  %v1348_v14 = vunpack.c.l.bf16 %v5675_v11 }
  0xb2   : > { %1495 = vst [vmem:[#allocation0 + $0x288] sm:$0x3] %v1492_v3  ;;  %v1332_v15 = vunpack.c.l.bf16 %v5674_v12  ;;  %1415 = vst [vmem:[#allocation0 + $0x2b0] sm:$0x3] %v1412_v7  ;;  %v2935_v17 = vld [vmem:[#allocation0 + $0xa8] sm:$0xff]  ;;  %2942 = vperm.xlu1 %6212, %v2941_v16   ;;  %v2953_v18 = vld [vmem:[#allocation0 + $0xd0] sm:$0xff] }
  0xb3   : > { %1399 = vst [vmem:[#allocation0 + $0x2b8] sm:$0x3] %v1396_v8  ;;  %1447 = vst [vmem:[#allocation0 + $0x2a0] sm:$0x3] %v1444_v9  ;;  %2936 = vperm.xlu0 %4, %v2935_v17   ;;  %v2947_v19 = vld [vmem:[#allocation0 + $0xd8] sm:$0xff]  ;;  %v2965_v20 = vld [vmem:[#allocation0 + $0xc0] sm:$0xff] }
  0xb4   : > { %1431 = vst [vmem:[#allocation0 + $0x2a8] sm:$0x3] %v1428_v13  ;;  %1351 = vst [vmem:[#allocation0 + $0x2d0] sm:$0x3] %v1348_v14  ;;  %v2959_v21 = vld [vmem:[#allocation0 + $0xc8] sm:$0xff]  ;;  %v2977_v34 = vld [vmem:[#allocation0 + $0xf0] sm:$0xff] }
  0xb5   : > { %1335 = vst [vmem:[#allocation0 + $0x2d8] sm:$0x3] %v1332_v15  ;;  %v5677_v22 = vld [vmem:[%s6760_s9 + $0x58] sm:$0x1]  ;;  %v5676_v23 = vld [vmem:[%s6760_s9 + $0x59] sm:$0x1] }
  0xb6   : > { %2954 = vperm.xlu1 %6212, %v2953_v18   ;;  %v5671_v24 = vld [vmem:[%s6760_s9 + $0x5e] sm:$0x1]  ;;  %v1380_v25 = vunpack.c.l.bf16 %v5677_v22  ;;  %v1364_v26 = vunpack.c.l.bf16 %v5676_v23  ;;  %v5670_v28 = vld [vmem:[%s6760_s9 + $0x5f] sm:$0x1]  ;;  %v5673_v29 = vld [vmem:[%s6760_s9 + $0x5c] sm:$0x1] }
  0xb7   : > { %2948 = vperm.xlu0 %4, %v2947_v19   ;;  %v1284_v27 = vunpack.c.l.bf16 %v5671_v24  ;;  %v5672_v30 = vld [vmem:[%s6760_s9 + $0x5d] sm:$0x1]  ;;  %v1268_v31 = vunpack.c.l.bf16 %v5670_v28  ;;  %v1316_v32 = vunpack.c.l.bf16 %v5673_v29  ;;  %v5667_v36 = vld [vmem:[%s6760_s9 + $0x62] sm:$0x1]  ;;  %v5666_v37 = vld [vmem:[%s6760_s9 + $0x63] sm:$0x1] }
  0xb8   : > { %v1300_v33 = vunpack.c.l.bf16 %v5672_v30  ;;  %1383 = vst [vmem:[#allocation0 + $0x2c0] sm:$0x3] %v1380_v25  ;;  %1367 = vst [vmem:[#allocation0 + $0x2c8] sm:$0x3] %v1364_v26  ;;  %v2971_v35 = vld [vmem:[#allocation0 + $0xf8] sm:$0xff]  ;;  %v1220_v38 = vunpack.c.l.bf16 %v5667_v36  ;;  %v1204_v39 = vunpack.c.l.bf16 %v5666_v37  ;;  %v2989_v40 = vld [vmem:[#allocation0 + $0xe0] sm:$0xff] }
  0xb9   : > { %1287 = vst [vmem:[#allocation0 + $0x2f0] sm:$0x3] %v1284_v27  ;;  %1271 = vst [vmem:[#allocation0 + $0x2f8] sm:$0x3] %v1268_v31  ;;  %v2983_v41 = vld [vmem:[#allocation0 + $0xe8] sm:$0xff]  ;;  %v3001_v46 = vld [vmem:[#allocation0 + $0x110] sm:$0xff] }
  0xba   : > { %2966 = vperm.xlu1 %6212, %v2965_v20   ;;  %1319 = vst [vmem:[#allocation0 + $0x2e0] sm:$0x3] %v1316_v32  ;;  %1303 = vst [vmem:[#allocation0 + $0x2e8] sm:$0x3] %v1300_v33  ;;  %v5669_v42 = vld [vmem:[%s6760_s9 + $0x60] sm:$0x1] }
  0xbb   : > { %2960 = vperm.xlu0 %4, %v2959_v21   ;;  %1223 = vst [vmem:[#allocation0 + $0x310] sm:$0x3] %v1220_v38  ;;  %1207 = vst [vmem:[#allocation0 + $0x318] sm:$0x3] %v1204_v39  ;;  %v5668_v43 = vld [vmem:[%s6760_s9 + $0x61] sm:$0x1]  ;;  %v1252_v44 = vunpack.c.l.bf16 %v5669_v42 }
  0xbc   : > { %v1236_v45 = vunpack.c.l.bf16 %v5668_v43  ;;  %v2995_v47 = vld [vmem:[#allocation0 + $0x118] sm:$0xff]  ;;  %v5663_v48 = vld [vmem:[%s6760_s9 + $0x66] sm:$0x1]  ;;  %v5662_v49 = vld [vmem:[%s6760_s9 + $0x67] sm:$0x1]  ;;  %s8018_s12 = smov (!%p4472_p10, %s4471_s12), 4 }
  0xbd   : > { %1255 = vst [vmem:[#allocation0 + $0x300] sm:$0x3] %v1252_v44  ;;  %v1156_v50 = vunpack.c.l.bf16 %v5663_v48  ;;  %v1140_v51 = vunpack.c.l.bf16 %v5662_v49  ;;  %v3013_v52 = vld [vmem:[#allocation0 + $0x100] sm:$0xff]  ;;  %v3007_v53 = vld [vmem:[#allocation0 + $0x108] sm:$0xff]  ;;  %v3025_v58 = vld [vmem:[#allocation0 + $0x130] sm:$0xff]  ;;  %s5894_s13 = sshll.u32 %s8018_s12, 9 }
  0xbe   : > { %2978 = vperm.xlu1 %6212, %v2977_v34   ;;  %1239 = vst [vmem:[#allocation0 + $0x308] sm:$0x3] %v1236_v45  ;;  %v5665_v54 = vld [vmem:[%s6760_s9 + $0x64] sm:$0x1]  ;;  %v5664_v55 = vld [vmem:[%s6760_s9 + $0x65] sm:$0x1] }
  0xbf   : > { %2972 = vperm.xlu0 %4, %v2971_v35   ;;  %1159 = vst [vmem:[#allocation0 + $0x330] sm:$0x3] %v1156_v50  ;;  %1143 = vst [vmem:[#allocation0 + $0x338] sm:$0x3] %v1140_v51  ;;  %v1188_v56 = vunpack.c.l.bf16 %v5665_v54  ;;  %v1172_v57 = vunpack.c.l.bf16 %v5664_v55  ;;  %v3019_v59 = vld [vmem:[#allocation0 + $0x138] sm:$0xff]  ;;  %v3037_v0 = vld [vmem:[#allocation0 + $0x120] sm:$0xff] }
  0xc0   : > { %v5659_v60 = vld [vmem:[%s6760_s9 + $0x6a] sm:$0x1]  ;;  %v5658_v61 = vld [vmem:[%s6760_s9 + $0x6b] sm:$0x1]  ;;  %v5661_v3 = vld [vmem:[%s6760_s9 + $0x68] sm:$0x1] }
  0xc1   : > { %1191 = vst [vmem:[#allocation0 + $0x320] sm:$0x3] %v1188_v56  ;;  %1175 = vst [vmem:[#allocation0 + $0x328] sm:$0x3] %v1172_v57  ;;  %v1092_v62 = vunpack.c.l.bf16 %v5659_v60  ;;  %v1076_v63 = vunpack.c.l.bf16 %v5658_v61  ;;  %v3031_v2 = vld [vmem:[#allocation0 + $0x128] sm:$0xff]  ;;  %v1124_v5 = vunpack.c.l.bf16 %v5661_v3  ;;  %v3049_v7 = vld [vmem:[#allocation0 + $0x150] sm:$0xff] }
  0xc2   : > { %2990 = vperm.xlu1 %6212, %v2989_v40   ;;  %v5660_v4 = vld [vmem:[%s6760_s9 + $0x69] sm:$0x1]  ;;  %v3043_v8 = vld [vmem:[#allocation0 + $0x158] sm:$0xff]  ;;  %v5655_v9 = vld [vmem:[%s6760_s9 + $0x6e] sm:$0x1]  ;;  %p5896_p11 = scmp.eq.s32.totalorder %s5894_s13, 0 }
  0xc3   : > { %2984 = vperm.xlu0 %4, %v2983_v41   ;;  %1095 = vst [vmem:[#allocation0 + $0x350] sm:$0x3] %v1092_v62  ;;  %1079 = vst [vmem:[#allocation0 + $0x358] sm:$0x3] %v1076_v63  ;;  %v1108_v6 = vunpack.c.l.bf16 %v5660_v4  ;;  %v5654_v10 = vld [vmem:[%s6760_s9 + $0x6f] sm:$0x1]  ;;  %v1028_v11 = vunpack.c.l.bf16 %v5655_v9 }
  0xc4   : > { %1127 = vst [vmem:[#allocation0 + $0x340] sm:$0x3] %v1124_v5  ;;  %v1012_v12 = vunpack.c.l.bf16 %v5654_v10  ;;  %v3061_v13 = vld [vmem:[#allocation0 + $0x140] sm:$0xff]  ;;  %v3055_v14 = vld [vmem:[#allocation0 + $0x148] sm:$0xff]  ;;  %v3073_v19 = vld [vmem:[#allocation0 + $0x170] sm:$0xff]  ;;  %p4484_p12 = scmp.lt.u32.totalorder (!%p5896_p11), %s8018_s12, 8 }
  0xc5   : > { %1111 = vst [vmem:[#allocation0 + $0x348] sm:$0x3] %v1108_v6  ;;  %1031 = vst [vmem:[#allocation0 + $0x370] sm:$0x3] %v1028_v11  ;;  %v5657_v15 = vld [vmem:[%s6760_s9 + $0x6c] sm:$0x1] }
  0xc6   : > { %3002 = vperm.xlu1 %6212, %v3001_v46   ;;  %1015 = vst [vmem:[#allocation0 + $0x378] sm:$0x3] %v1012_v12  ;;  %v5656_v16 = vld [vmem:[%s6760_s9 + $0x6d] sm:$0x1]  ;;  %v1060_v17 = vunpack.c.l.bf16 %v5657_v15  ;;  %v3067_v20 = vld [vmem:[#allocation0 + $0x178] sm:$0xff]  ;;  %v3085_v25 = vld [vmem:[#allocation0 + $0x160] sm:$0xff] }
  0xc7   : > { %2996 = vperm.xlu0 %4, %v2995_v47   ;;  %v1044_v18 = vunpack.c.l.bf16 %v5656_v16  ;;  %v5651_v21 = vld [vmem:[%s6760_s9 + $0x72] sm:$0x1]  ;;  %v5650_v22 = vld [vmem:[%s6760_s9 + $0x73] sm:$0x1]  ;;  %v3079_v26 = vld [vmem:[#allocation0 + $0x168] sm:$0xff] }
  0xc8   : > { %1063 = vst [vmem:[#allocation0 + $0x360] sm:$0x3] %v1060_v17  ;;  %v964_v23 = vunpack.c.l.bf16 %v5651_v21  ;;  %v948_v24 = vunpack.c.l.bf16 %v5650_v22  ;;  %v5653_v27 = vld [vmem:[%s6760_s9 + $0x70] sm:$0x1]  ;;  %v5652_v28 = vld [vmem:[%s6760_s9 + $0x71] sm:$0x1] }
  0xc9   : > { %1047 = vst [vmem:[#allocation0 + $0x368] sm:$0x3] %v1044_v18  ;;  %v996_v29 = vunpack.c.l.bf16 %v5653_v27  ;;  %v980_v30 = vunpack.c.l.bf16 %v5652_v28  ;;  %v3097_v31 = vld [vmem:[#allocation0 + $0x190] sm:$0xff]  ;;  %v3091_v32 = vld [vmem:[#allocation0 + $0x198] sm:$0xff]  ;;  %v3109_v37 = vld [vmem:[#allocation0 + $0x180] sm:$0xff]  ;;  %v6431_v22 = vmov 0.0  }
  0xca   : > { %3014 = vperm.xlu1 %6212, %v3013_v52   ;;  %967 = vst [vmem:[#allocation0 + $0x390] sm:$0x3] %v964_v23  ;;  %951 = vst [vmem:[#allocation0 + $0x398] sm:$0x3] %v948_v24  ;;  %v5647_v33 = vld [vmem:[%s6760_s9 + $0x76] sm:$0x1] }
  0xcb   : > { %3008 = vperm.xlu0 %4, %v3007_v53   ;;  %999 = vst [vmem:[#allocation0 + $0x380] sm:$0x3] %v996_v29  ;;  %983 = vst [vmem:[#allocation0 + $0x388] sm:$0x3] %v980_v30  ;;  %v5646_v34 = vld [vmem:[%s6760_s9 + $0x77] sm:$0x1]  ;;  %v900_v35 = vunpack.c.l.bf16 %v5647_v33 }
  0xcc   : > { %v884_v36 = vunpack.c.l.bf16 %v5646_v34  ;;  %v3103_v38 = vld [vmem:[#allocation0 + $0x188] sm:$0xff]  ;;  %v5649_v39 = vld [vmem:[%s6760_s9 + $0x74] sm:$0x1]  ;;  %v5648_v40 = vld [vmem:[%s6760_s9 + $0x75] sm:$0x1] }
  0xcd   : > { %903 = vst [vmem:[#allocation0 + $0x3b0] sm:$0x3] %v900_v35  ;;  %v932_v41 = vunpack.c.l.bf16 %v5649_v39  ;;  %v916_v42 = vunpack.c.l.bf16 %v5648_v40  ;;  %v3121_v43 = vld [vmem:[#allocation0 + $0x1b0] sm:$0xff]  ;;  %v3115_v44 = vld [vmem:[#allocation0 + $0x1b8] sm:$0xff]  ;;  %v3133_v49 = vld [vmem:[#allocation0 + $0x1a0] sm:$0xff] }
  0xce   : > { %3026 = vperm.xlu1 %6212, %v3025_v58   ;;  %887 = vst [vmem:[#allocation0 + $0x3b8] sm:$0x3] %v884_v36  ;;  %v5643_v45 = vld [vmem:[%s6760_s9 + $0x7a] sm:$0x1]  ;;  %v5642_v46 = vld [vmem:[%s6760_s9 + $0x7b] sm:$0x1] }
  0xcf   : > { %3020 = vperm.xlu0 %4, %v3019_v59   ;;  %935 = vst [vmem:[#allocation0 + $0x3a0] sm:$0x3] %v932_v41  ;;  %919 = vst [vmem:[#allocation0 + $0x3a8] sm:$0x3] %v916_v42  ;;  %v836_v47 = vunpack.c.l.bf16 %v5643_v45  ;;  %v820_v48 = vunpack.c.l.bf16 %v5642_v46  ;;  %v3127_v50 = vld [vmem:[#allocation0 + $0x1a8] sm:$0xff]  ;;  %v3145_v55 = vld [vmem:[#allocation0 + $0x1d0] sm:$0xff] }
  0xd0   : > { %v5645_v51 = vld [vmem:[%s6760_s9 + $0x78] sm:$0x1]  ;;  %v5644_v52 = vld [vmem:[%s6760_s9 + $0x79] sm:$0x1]  ;;  %v5639_v57 = vld [vmem:[%s6760_s9 + $0x7e] sm:$0x1] }
  0xd1   : > { %839 = vst [vmem:[#allocation0 + $0x3d0] sm:$0x3] %v836_v47  ;;  %823 = vst [vmem:[#allocation0 + $0x3d8] sm:$0x3] %v820_v48  ;;  %v868_v53 = vunpack.c.l.bf16 %v5645_v51  ;;  %v852_v54 = vunpack.c.l.bf16 %v5644_v52  ;;  %v3139_v56 = vld [vmem:[#allocation0 + $0x1d8] sm:$0xff]  ;;  %v772_v59 = vunpack.c.l.bf16 %v5639_v57  ;;  %v3157_v61 = vld [vmem:[#allocation0 + $0x1c0] sm:$0xff] }
  0xd2   : > { %3038 = vperm.xlu1 %6212, %v3037_v0   ;;  %v5638_v58 = vld [vmem:[%s6760_s9 + $0x7f] sm:$0x1]  ;;  %v3151_v62 = vld [vmem:[#allocation0 + $0x1c8] sm:$0xff]  ;;  %v5641_v63 = vld [vmem:[%s6760_s9 + $0x7c] sm:$0x1] }
  0xd3   : > { %3032 = vperm.xlu0 %4, %v3031_v2   ;;  %871 = vst [vmem:[#allocation0 + $0x3c0] sm:$0x3] %v868_v53  ;;  %855 = vst [vmem:[#allocation0 + $0x3c8] sm:$0x3] %v852_v54  ;;  %v756_v60 = vunpack.c.l.bf16 %v5638_v58  ;;  %v5640_v0 = vld [vmem:[%s6760_s9 + $0x7d] sm:$0x1]  ;;  %v804_v2 = vunpack.c.l.bf16 %v5641_v63 }
  0xd4   : > { %775 = vst [vmem:[#allocation0 + $0x3f0] sm:$0x3] %v772_v59  ;;  %v788_v3 = vunpack.c.l.bf16 %v5640_v0  ;;  %v3169_v4 = vld [vmem:[#allocation0 + $0x1f0] sm:$0xff]  ;;  %v3163_v5 = vld [vmem:[#allocation0 + $0x1f8] sm:$0xff]  ;;  %v3181_v6 = vld [vmem:[#allocation0 + $0x1e0] sm:$0xff] }
  0xd5   : > { %759 = vst [vmem:[#allocation0 + $0x3f8] sm:$0x3] %v756_v60  ;;  %807 = vst [vmem:[#allocation0 + $0x3e0] sm:$0x3] %v804_v2  ;;  %v3187_v9 = vld [vmem:[#allocation0 + $0x218] sm:$0xff]  ;;  %v3205_v12 = vld [vmem:[#allocation0 + $0x200] sm:$0xff] }
  0xd6   : > { %3050 = vperm.xlu1 %6212, %v3049_v7   ;;  %791 = vst [vmem:[#allocation0 + $0x3e8] sm:$0x3] %v788_v3  ;;  %v3175_v7 = vld [vmem:[#allocation0 + $0x1e8] sm:$0xff]  ;;  %v3217_v16 = vld [vmem:[#allocation0 + $0x230] sm:$0xff]  ;;  %v3211_v17 = vld [vmem:[#allocation0 + $0x238] sm:$0xff] }
  0xd7   : > { %3044 = vperm.xlu0 %4, %v3043_v8   ;;  %v3193_v8 = vld [vmem:[#allocation0 + $0x210] sm:$0xff]  ;;  %v3235_v34 = vld [vmem:[#allocation0 + $0x258] sm:$0xff]  ;;  %v3253_v41 = vld [vmem:[#allocation0 + $0x240] sm:$0xff] }
  0xd8   : > { %v3241_v33 = vld [vmem:[#allocation0 + $0x250] sm:$0xff]  ;;  %v3247_v42 = vld [vmem:[#allocation0 + $0x248] sm:$0xff]  ;;  %v3277_v57 = vld [vmem:[#allocation0 + $0x260] sm:$0xff] }
  0xd9   : > { %v3271_v58 = vld [vmem:[#allocation0 + $0x268] sm:$0xff]  ;;  %v3289_v2 = vld [vmem:[#allocation0 + $0x290] sm:$0xff]  ;;  %v3283_v3 = vld [vmem:[#allocation0 + $0x298] sm:$0xff] }
  0xda   : > { %3062 = vperm.xlu1 %6212, %v3061_v13   ;;  %v3199_v13 = vld [vmem:[#allocation0 + $0x208] sm:$0xff] }
  0xdb   : > { %3056 = vperm.xlu0 %4, %v3055_v14  }
  0xde   : > { %3074 = vperm.xlu1 %6212, %v3073_v19  }
  0xdf   : > { %3068 = vperm.xlu0 %4, %v3067_v20  }
  0xe2   : > { %3086 = vperm.xlu1 %6212, %v3085_v25   ;;  %v3229_v25 = vld [vmem:[#allocation0 + $0x220] sm:$0xff] }
  0xe3   : > { %3080 = vperm.xlu0 %4, %v3079_v26   ;;  %v3223_v26 = vld [vmem:[#allocation0 + $0x228] sm:$0xff] }
  0xe6   : > { %3098 = vperm.xlu1 %6212, %v3097_v31  }
  0xe7   : > { %3092 = vperm.xlu0 %4, %v3091_v32  }
  0xea   : > { %3110 = vperm.xlu1 %6212, %v3109_v37  }
  0xeb   : > { %3104 = vperm.xlu0 %4, %v3103_v38  }
  0xee   : > { %3122 = vperm.xlu1 %6212, %v3121_v43  }
  0xef   : > { %3116 = vperm.xlu0 %4, %v3115_v44  }
  0xf2   : > { %3134 = vperm.xlu1 %6212, %v3133_v49   ;;  %v3265_v49 = vld [vmem:[#allocation0 + $0x270] sm:$0xff] }
  0xf3   : > { %3128 = vperm.xlu0 %4, %v3127_v50   ;;  %v3259_v50 = vld [vmem:[#allocation0 + $0x278] sm:$0xff] }
  0xf6   : > { %3146 = vperm.xlu1 %6212, %v3145_v55  }
  0xf7   : > { %3140 = vperm.xlu0 %4, %v3139_v56  }
  0xfa   : > { %3158 = vperm.xlu1 %6212, %v3157_v61  }
  0xfb   : > { %3152 = vperm.xlu0 %4, %v3151_v62  }
  0xfe   : > { %3170 = vperm.xlu1 %6212, %v3169_v4  }
  0xff   : > { %3164 = vperm.xlu0 %4, %v3163_v5  }
 0x102   : > { %3182 = vperm.xlu1 %6212, %v3181_v6  }
 0x103   : > { %3176 = vperm.xlu0 %4, %v3175_v7  }
 0x105   : > { %v2818_v10 = vpop.permute.xlu1 %2817  ;;  %v2806_v11 = vpop.permute.xlu0 %2805 }
 0x106   : > { %2819 = vst [vmem:[#allocation2 + $0x10] sm:$0xff] %v2818_v10  ;;  %2807 = vst [vmem:[#allocation2] sm:$0xff] %v2806_v11  ;;  %3194 = vperm.xlu1 %6212, %v3193_v8   ;;  %v3301_v10 = vld [vmem:[#allocation0 + $0x280] sm:$0xff]  ;;  %v3295_v11 = vld [vmem:[#allocation0 + $0x288] sm:$0xff] }
 0x107   : > { %3188 = vperm.xlu0 %4, %v3187_v9  }
 0x109   : > { %v2823_v14 = vpop.permute.xlu1 %2822  ;;  %v2812_v15 = vpop.permute.xlu0 %2811 }
 0x10a   : > { %2824 = vst [vmem:[#allocation2 + $0x18] sm:$0xff] %v2823_v14  ;;  %2813 = vst [vmem:[#allocation2 + $0x8] sm:$0xff] %v2812_v15  ;;  %3206 = vperm.xlu1 %6212, %v3205_v12  }
 0x10b   : > { %3200 = vperm.xlu0 %4, %v3199_v13  }
 0x10d   : > { %v3584_v18 = vld [vmem:[#allocation2 + $0x10] sm:$0x3]  ;;  %v3573_v19 = vld [vmem:[#allocation2] sm:$0x3]  ;;  %v2835_v20 = vpop.permute.xlu1 %2834  ;;  %v2829_v21 = vpop.permute.xlu0 %2828 }
 0x10e   : > { %v3585_v23 = vpack.c.bf16 %v6431_v22, %v3584_v18  ;;  %v3574_v24 = vpack.c.bf16 %v6431_v22, %v3573_v19  ;;  %2836 = vst [vmem:[#allocation2 + $0x28] sm:$0xff] %v2835_v20  ;;  %2830 = vst [vmem:[#allocation2 + $0x20] sm:$0xff] %v2829_v21  ;;  %3218 = vperm.xlu1 %6212, %v3217_v16   ;;  %v3313_v18 = vld [vmem:[#allocation0 + $0x2b0] sm:$0xff]  ;;  %v3307_v19 = vld [vmem:[#allocation0 + $0x2b8] sm:$0xff] }
 0x10f   : > { %3212 = vperm.xlu0 %4, %v3211_v17  }
 0x110   : > { %5766 = vst [vmem:[%s6894_s11 + $0x2] sm:$0x1] %v3585_v23  ;;  %3576 = vst [vmem:[%s6894_s11] sm:$0x1] %v3574_v24 }
 0x111   : > { %v3591_v27 = vld [vmem:[#allocation2 + $0x18] sm:$0x3]  ;;  %v3578_v28 = vld [vmem:[#allocation2 + $0x8] sm:$0x3]  ;;  %v2847_v29 = vpop.permute.xlu1 %2846  ;;  %v2841_v30 = vpop.permute.xlu0 %2840 }
 0x112   : > { %v3592_v31 = vpack.c.bf16 %v6431_v22, %v3591_v27  ;;  %v3579_v32 = vpack.c.bf16 %v6431_v22, %v3578_v28  ;;  %2848 = vst [vmem:[#allocation2 + $0x38] sm:$0xff] %v2847_v29  ;;  %2842 = vst [vmem:[#allocation2 + $0x30] sm:$0xff] %v2841_v30  ;;  %3230 = vperm.xlu1 %6212, %v3229_v25   ;;  %v3325_v27 = vld [vmem:[#allocation0 + $0x2a0] sm:$0xff]  ;;  %v3319_v28 = vld [vmem:[#allocation0 + $0x2a8] sm:$0xff] }
 0x113   : > { %3224 = vperm.xlu0 %4, %v3223_v26  }
 0x114   : > { %5767 = vst [vmem:[%s6894_s11 + $0x3] sm:$0x1] %v3592_v31  ;;  %5765 = vst [vmem:[%s6894_s11 + $0x1] sm:$0x1] %v3579_v32 }
 0x115   : > { %v3605_v35 = vld [vmem:[#allocation2 + $0x28] sm:$0x3]  ;;  %v3598_v36 = vld [vmem:[#allocation2 + $0x20] sm:$0x3]  ;;  %v2859_v37 = vpop.permute.xlu1 %2858  ;;  %v2853_v38 = vpop.permute.xlu0 %2852 }
 0x116   : > { %v3606_v39 = vpack.c.bf16 %v6431_v22, %v3605_v35  ;;  %v3599_v40 = vpack.c.bf16 %v6431_v22, %v3598_v36  ;;  %2860 = vst [vmem:[#allocation2 + $0x48] sm:$0xff] %v2859_v37  ;;  %2854 = vst [vmem:[#allocation2 + $0x40] sm:$0xff] %v2853_v38  ;;  %3242 = vperm.xlu1 %6212, %v3241_v33   ;;  %v3337_v35 = vld [vmem:[#allocation0 + $0x2d0] sm:$0xff]  ;;  %v3331_v36 = vld [vmem:[#allocation0 + $0x2d8] sm:$0xff] }
 0x117   : > { %3236 = vperm.xlu0 %4, %v3235_v34  }
 0x118   : > { %5769 = vst [vmem:[%s6894_s11 + $0x5] sm:$0x1] %v3606_v39  ;;  %5768 = vst [vmem:[%s6894_s11 + $0x4] sm:$0x1] %v3599_v40 }
 0x119   : > { %v3619_v43 = vld [vmem:[#allocation2 + $0x38] sm:$0x3]  ;;  %v3612_v44 = vld [vmem:[#allocation2 + $0x30] sm:$0x3]  ;;  %v2871_v45 = vpop.permute.xlu1 %2870  ;;  %v2865_v46 = vpop.permute.xlu0 %2864 }
 0x11a   : > { %v3620_v47 = vpack.c.bf16 %v6431_v22, %v3619_v43  ;;  %v3613_v48 = vpack.c.bf16 %v6431_v22, %v3612_v44  ;;  %2872 = vst [vmem:[#allocation2 + $0x58] sm:$0xff] %v2871_v45  ;;  %2866 = vst [vmem:[#allocation2 + $0x50] sm:$0xff] %v2865_v46  ;;  %3254 = vperm.xlu1 %6212, %v3253_v41   ;;  %v3349_v43 = vld [vmem:[#allocation0 + $0x2c0] sm:$0xff]  ;;  %v3343_v44 = vld [vmem:[#allocation0 + $0x2c8] sm:$0xff] }
 0x11b   : > { %3248 = vperm.xlu0 %4, %v3247_v42  }
 0x11c   : > { %5771 = vst [vmem:[%s6894_s11 + $0x7] sm:$0x1] %v3620_v47  ;;  %5770 = vst [vmem:[%s6894_s11 + $0x6] sm:$0x1] %v3613_v48 }
 0x11d   : > { %v3633_v51 = vld [vmem:[#allocation2 + $0x48] sm:$0x3]  ;;  %v3626_v52 = vld [vmem:[#allocation2 + $0x40] sm:$0x3]  ;;  %v2883_v53 = vpop.permute.xlu1 %2882  ;;  %v2877_v54 = vpop.permute.xlu0 %2876 }
 0x11e   : > { %v3634_v55 = vpack.c.bf16 %v6431_v22, %v3633_v51  ;;  %v3627_v56 = vpack.c.bf16 %v6431_v22, %v3626_v52  ;;  %2884 = vst [vmem:[#allocation2 + $0x68] sm:$0xff] %v2883_v53  ;;  %2878 = vst [vmem:[#allocation2 + $0x60] sm:$0xff] %v2877_v54  ;;  %3266 = vperm.xlu1 %6212, %v3265_v49   ;;  %v3361_v51 = vld [vmem:[#allocation0 + $0x2f0] sm:$0xff]  ;;  %v3355_v52 = vld [vmem:[#allocation0 + $0x2f8] sm:$0xff] }
 0x11f   : > { %3260 = vperm.xlu0 %4, %v3259_v50  }
 0x120   : > { %5773 = vst [vmem:[%s6894_s11 + $0x9] sm:$0x1] %v3634_v55  ;;  %5772 = vst [vmem:[%s6894_s11 + $0x8] sm:$0x1] %v3627_v56 }
 0x121   : > { %v3647_v59 = vld [vmem:[#allocation2 + $0x58] sm:$0x3]  ;;  %v3640_v60 = vld [vmem:[#allocation2 + $0x50] sm:$0x3]  ;;  %v2895_v61 = vpop.permute.xlu1 %2894  ;;  %v2889_v62 = vpop.permute.xlu0 %2888 }
 0x122   : > { %v3648_v63 = vpack.c.bf16 %v6431_v22, %v3647_v59  ;;  %v3641_v0 = vpack.c.bf16 %v6431_v22, %v3640_v60  ;;  %2896 = vst [vmem:[#allocation2 + $0x78] sm:$0xff] %v2895_v61  ;;  %2890 = vst [vmem:[#allocation2 + $0x70] sm:$0xff] %v2889_v62  ;;  %3278 = vperm.xlu1 %6212, %v3277_v57   ;;  %v3373_v59 = vld [vmem:[#allocation0 + $0x2e0] sm:$0xff]  ;;  %v3367_v60 = vld [vmem:[#allocation0 + $0x2e8] sm:$0xff] }
 0x123   : > { %3272 = vperm.xlu0 %4, %v3271_v58  }
 0x124   : > { %5775 = vst [vmem:[%s6894_s11 + $0xb] sm:$0x1] %v3648_v63  ;;  %5774 = vst [vmem:[%s6894_s11 + $0xa] sm:$0x1] %v3641_v0 }
 0x125   : > { %v3661_v4 = vld [vmem:[#allocation2 + $0x68] sm:$0x3]  ;;  %v3654_v5 = vld [vmem:[#allocation2 + $0x60] sm:$0x3]  ;;  %v2907_v6 = vpop.permute.xlu1 %2906  ;;  %v2901_v7 = vpop.permute.xlu0 %2900 }
 0x126   : > { %v3662_v8 = vpack.c.bf16 %v6431_v22, %v3661_v4  ;;  %v3655_v9 = vpack.c.bf16 %v6431_v22, %v3654_v5  ;;  %2908 = vst [vmem:[#allocation2 + $0x88] sm:$0xff] %v2907_v6  ;;  %2902 = vst [vmem:[#allocation2 + $0x80] sm:$0xff] %v2901_v7  ;;  %3290 = vperm.xlu1 %6212, %v3289_v2   ;;  %v3385_v4 = vld [vmem:[#allocation0 + $0x310] sm:$0xff]  ;;  %v3379_v5 = vld [vmem:[#allocation0 + $0x318] sm:$0xff] }
 0x127   : > { %3284 = vperm.xlu0 %4, %v3283_v3  }
 0x128   : > { %5777 = vst [vmem:[%s6894_s11 + $0xd] sm:$0x1] %v3662_v8  ;;  %5776 = vst [vmem:[%s6894_s11 + $0xc] sm:$0x1] %v3655_v9 }
 0x129   : > { %v3675_v12 = vld [vmem:[#allocation2 + $0x78] sm:$0x3]  ;;  %v3668_v13 = vld [vmem:[#allocation2 + $0x70] sm:$0x3]  ;;  %v2919_v14 = vpop.permute.xlu1 %2918  ;;  %v2913_v15 = vpop.permute.xlu0 %2912 }
 0x12a   : > { %v3676_v16 = vpack.c.bf16 %v6431_v22, %v3675_v12  ;;  %v3669_v17 = vpack.c.bf16 %v6431_v22, %v3668_v13  ;;  %2920 = vst [vmem:[#allocation2 + $0x98] sm:$0xff] %v2919_v14  ;;  %2914 = vst [vmem:[#allocation2 + $0x90] sm:$0xff] %v2913_v15  ;;  %3302 = vperm.xlu1 %6212, %v3301_v10   ;;  %v3397_v12 = vld [vmem:[#allocation0 + $0x300] sm:$0xff]  ;;  %v3391_v13 = vld [vmem:[#allocation0 + $0x308] sm:$0xff] }
 0x12b   : > { %3296 = vperm.xlu0 %4, %v3295_v11  }
 0x12c   : > { %5779 = vst [vmem:[%s6894_s11 + $0xf] sm:$0x1] %v3676_v16  ;;  %5778 = vst [vmem:[%s6894_s11 + $0xe] sm:$0x1] %v3669_v17 }
 0x12d   : > { %v3689_v20 = vld [vmem:[#allocation2 + $0x88] sm:$0x3]  ;;  %v3682_v21 = vld [vmem:[#allocation2 + $0x80] sm:$0x3]  ;;  %v2931_v23 = vpop.permute.xlu1 %2930  ;;  %v2925_v24 = vpop.permute.xlu0 %2924 }
 0x12e   : > { %v3690_v25 = vpack.c.bf16 %v6431_v22, %v3689_v20  ;;  %v3683_v26 = vpack.c.bf16 %v6431_v22, %v3682_v21  ;;  %2932 = vst [vmem:[#allocation2 + $0xa8] sm:$0xff] %v2931_v23  ;;  %2926 = vst [vmem:[#allocation2 + $0xa0] sm:$0xff] %v2925_v24  ;;  %3314 = vperm.xlu1 %6212, %v3313_v18   ;;  %v3409_v20 = vld [vmem:[#allocation0 + $0x330] sm:$0xff]  ;;  %v3403_v21 = vld [vmem:[#allocation0 + $0x338] sm:$0xff] }
 0x12f   : > { %3308 = vperm.xlu0 %4, %v3307_v19  }
 0x130   : > { %5781 = vst [vmem:[%s6894_s11 + $0x11] sm:$0x1] %v3690_v25  ;;  %5780 = vst [vmem:[%s6894_s11 + $0x10] sm:$0x1] %v3683_v26 }
 0x131   : > { %v3703_v29 = vld [vmem:[#allocation2 + $0x98] sm:$0x3]  ;;  %v3696_v30 = vld [vmem:[#allocation2 + $0x90] sm:$0x3]  ;;  %v2943_v31 = vpop.permute.xlu1 %2942 }
 0x132   : > { %v2937_v32 = vpop.permute.xlu0 %2936  ;;  %v3704_v33 = vpack.c.bf16 %v6431_v22, %v3703_v29  ;;  %v3697_v34 = vpack.c.bf16 %v6431_v22, %v3696_v30  ;;  %2944 = vst [vmem:[#allocation2 + $0xb8] sm:$0xff] %v2943_v31  ;;  %3326 = vperm.xlu1 %6212, %v3325_v27   ;;  %v3421_v29 = vld [vmem:[#allocation0 + $0x320] sm:$0xff]  ;;  %v3415_v30 = vld [vmem:[#allocation0 + $0x328] sm:$0xff] }
 0x133   : > { %2938 = vst [vmem:[#allocation2 + $0xb0] sm:$0xff] %v2937_v32  ;;  %3320 = vperm.xlu0 %4, %v3319_v28  }
 0x134   : > { %5783 = vst [vmem:[%s6894_s11 + $0x13] sm:$0x1] %v3704_v33  ;;  %5782 = vst [vmem:[%s6894_s11 + $0x12] sm:$0x1] %v3697_v34 }
 0x135   : > { %v3717_v37 = vld [vmem:[#allocation2 + $0xa8] sm:$0x3]  ;;  %v3710_v38 = vld [vmem:[#allocation2 + $0xa0] sm:$0x3]  ;;  %v2955_v39 = vpop.permute.xlu1 %2954 }
 0x136   : > { %v2949_v40 = vpop.permute.xlu0 %2948  ;;  %v3718_v41 = vpack.c.bf16 %v6431_v22, %v3717_v37  ;;  %v3711_v42 = vpack.c.bf16 %v6431_v22, %v3710_v38  ;;  %2956 = vst [vmem:[#allocation2 + $0xc8] sm:$0xff] %v2955_v39  ;;  %3338 = vperm.xlu1 %6212, %v3337_v35   ;;  %v3433_v37 = vld [vmem:[#allocation0 + $0x350] sm:$0xff]  ;;  %v3427_v38 = vld [vmem:[#allocation0 + $0x358] sm:$0xff] }
 0x137   : > { %2950 = vst [vmem:[#allocation2 + $0xc0] sm:$0xff] %v2949_v40  ;;  %3332 = vperm.xlu0 %4, %v3331_v36  }
 0x138   : > { %5785 = vst [vmem:[%s6894_s11 + $0x15] sm:$0x1] %v3718_v41  ;;  %5784 = vst [vmem:[%s6894_s11 + $0x14] sm:$0x1] %v3711_v42 }
 0x139   : > { %v3731_v45 = vld [vmem:[#allocation2 + $0xb8] sm:$0x3]  ;;  %v2967_v47 = vpop.permute.xlu1 %2966 }
 0x13a   : > { %v3724_v46 = vld [vmem:[#allocation2 + $0xb0] sm:$0x3]  ;;  %v2961_v48 = vpop.permute.xlu0 %2960  ;;  %v3732_v49 = vpack.c.bf16 %v6431_v22, %v3731_v45  ;;  %2968 = vst [vmem:[#allocation2 + $0xd8] sm:$0xff] %v2967_v47  ;;  %3350 = vperm.xlu1 %6212, %v3349_v43   ;;  %v3445_v45 = vld [vmem:[#allocation0 + $0x340] sm:$0xff] }
 0x13b   : > { %v3725_v50 = vpack.c.bf16 %v6431_v22, %v3724_v46  ;;  %2962 = vst [vmem:[#allocation2 + $0xd0] sm:$0xff] %v2961_v48  ;;  %3344 = vperm.xlu0 %4, %v3343_v44   ;;  %v3439_v46 = vld [vmem:[#allocation0 + $0x348] sm:$0xff] }
 0x13c   : > { %5787 = vst [vmem:[%s6894_s11 + $0x17] sm:$0x1] %v3732_v49 }
 0x13d   : > { %5786 = vst [vmem:[%s6894_s11 + $0x16] sm:$0x1] %v3725_v50  ;;  %v3745_v53 = vld [vmem:[#allocation2 + $0xc8] sm:$0x3]  ;;  %v2979_v55 = vpop.permute.xlu1 %2978 }
 0x13e   : > { %v3738_v54 = vld [vmem:[#allocation2 + $0xc0] sm:$0x3]  ;;  %v2973_v56 = vpop.permute.xlu0 %2972  ;;  %v3746_v57 = vpack.c.bf16 %v6431_v22, %v3745_v53  ;;  %2980 = vst [vmem:[#allocation2 + $0xe8] sm:$0xff] %v2979_v55  ;;  %3362 = vperm.xlu1 %6212, %v3361_v51   ;;  %v3457_v53 = vld [vmem:[#allocation0 + $0x370] sm:$0xff] }
 0x13f   : > { %v3739_v58 = vpack.c.bf16 %v6431_v22, %v3738_v54  ;;  %2974 = vst [vmem:[#allocation2 + $0xe0] sm:$0xff] %v2973_v56  ;;  %3356 = vperm.xlu0 %4, %v3355_v52   ;;  %v3451_v54 = vld [vmem:[#allocation0 + $0x378] sm:$0xff] }
 0x140   : > { %5789 = vst [vmem:[%s6894_s11 + $0x19] sm:$0x1] %v3746_v57 }
 0x141   : > { %5788 = vst [vmem:[%s6894_s11 + $0x18] sm:$0x1] %v3739_v58  ;;  %v3759_v61 = vld [vmem:[#allocation2 + $0xd8] sm:$0x3]  ;;  %v2991_v63 = vpop.permute.xlu1 %2990 }
 0x142   : > { %v3752_v62 = vld [vmem:[#allocation2 + $0xd0] sm:$0x3]  ;;  %v2985_v0 = vpop.permute.xlu0 %2984  ;;  %v3760_v2 = vpack.c.bf16 %v6431_v22, %v3759_v61  ;;  %2992 = vst [vmem:[#allocation2 + $0xf8] sm:$0xff] %v2991_v63  ;;  %3374 = vperm.xlu1 %6212, %v3373_v59   ;;  %v3469_v61 = vld [vmem:[#allocation0 + $0x360] sm:$0xff] }
 0x143   : > { %v3753_v3 = vpack.c.bf16 %v6431_v22, %v3752_v62  ;;  %2986 = vst [vmem:[#allocation2 + $0xf0] sm:$0xff] %v2985_v0  ;;  %3368 = vperm.xlu0 %4, %v3367_v60   ;;  %v3463_v62 = vld [vmem:[#allocation0 + $0x368] sm:$0xff] }
 0x144   : > { %5791 = vst [vmem:[%s6894_s11 + $0x1b] sm:$0x1] %v3760_v2 }
 0x145   : > { %5790 = vst [vmem:[%s6894_s11 + $0x1a] sm:$0x1] %v3753_v3  ;;  %v3773_v6 = vld [vmem:[#allocation2 + $0xe8] sm:$0x3]  ;;  %v3003_v8 = vpop.permute.xlu1 %3002 }
 0x146   : > { %v3766_v7 = vld [vmem:[#allocation2 + $0xe0] sm:$0x3]  ;;  %v2997_v9 = vpop.permute.xlu0 %2996  ;;  %v3774_v10 = vpack.c.bf16 %v6431_v22, %v3773_v6  ;;  %3004 = vst [vmem:[#allocation2 + $0x108] sm:$0xff] %v3003_v8  ;;  %3386 = vperm.xlu1 %6212, %v3385_v4   ;;  %v3481_v6 = vld [vmem:[#allocation0 + $0x390] sm:$0xff] }
 0x147   : > { %v3767_v11 = vpack.c.bf16 %v6431_v22, %v3766_v7  ;;  %2998 = vst [vmem:[#allocation2 + $0x100] sm:$0xff] %v2997_v9  ;;  %3380 = vperm.xlu0 %4, %v3379_v5   ;;  %v3475_v7 = vld [vmem:[#allocation0 + $0x398] sm:$0xff] }
 0x148   : > { %5793 = vst [vmem:[%s6894_s11 + $0x1d] sm:$0x1] %v3774_v10 }
 0x149   : > { %5792 = vst [vmem:[%s6894_s11 + $0x1c] sm:$0x1] %v3767_v11  ;;  %v3787_v14 = vld [vmem:[#allocation2 + $0xf8] sm:$0x3]  ;;  %v3015_v16 = vpop.permute.xlu1 %3014 }
 0x14a   : > { %v3780_v15 = vld [vmem:[#allocation2 + $0xf0] sm:$0x3]  ;;  %v3009_v17 = vpop.permute.xlu0 %3008  ;;  %v3788_v18 = vpack.c.bf16 %v6431_v22, %v3787_v14  ;;  %3016 = vst [vmem:[#allocation2 + $0x118] sm:$0xff] %v3015_v16  ;;  %3398 = vperm.xlu1 %6212, %v3397_v12   ;;  %v3493_v14 = vld [vmem:[#allocation0 + $0x380] sm:$0xff] }
 0x14b   : > { %v3781_v19 = vpack.c.bf16 %v6431_v22, %v3780_v15  ;;  %3010 = vst [vmem:[#allocation2 + $0x110] sm:$0xff] %v3009_v17  ;;  %3392 = vperm.xlu0 %4, %v3391_v13   ;;  %v3487_v15 = vld [vmem:[#allocation0 + $0x388] sm:$0xff] }
 0x14c   : > { %5795 = vst [vmem:[%s6894_s11 + $0x1f] sm:$0x1] %v3788_v18 }
 0x14d   : > { %5794 = vst [vmem:[%s6894_s11 + $0x1e] sm:$0x1] %v3781_v19  ;;  %v3801_v23 = vld [vmem:[#allocation2 + $0x108] sm:$0x3]  ;;  %v3027_v25 = vpop.permute.xlu1 %3026 }
 0x14e   : > { %v3794_v24 = vld [vmem:[#allocation2 + $0x100] sm:$0x3]  ;;  %v3021_v26 = vpop.permute.xlu0 %3020  ;;  %v3802_v27 = vpack.c.bf16 %v6431_v22, %v3801_v23  ;;  %3028 = vst [vmem:[#allocation2 + $0x128] sm:$0xff] %v3027_v25  ;;  %3410 = vperm.xlu1 %6212, %v3409_v20   ;;  %v3505_v23 = vld [vmem:[#allocation0 + $0x3b0] sm:$0xff] }
 0x14f   : > { %v3795_v28 = vpack.c.bf16 %v6431_v22, %v3794_v24  ;;  %3022 = vst [vmem:[#allocation2 + $0x120] sm:$0xff] %v3021_v26  ;;  %3404 = vperm.xlu0 %4, %v3403_v21   ;;  %v3499_v24 = vld [vmem:[#allocation0 + $0x3b8] sm:$0xff] }
 0x150   : > { %5797 = vst [vmem:[%s6894_s11 + $0x21] sm:$0x1] %v3802_v27 }
 0x151   : > { %5796 = vst [vmem:[%s6894_s11 + $0x20] sm:$0x1] %v3795_v28  ;;  %v3815_v31 = vld [vmem:[#allocation2 + $0x118] sm:$0x3]  ;;  %v3039_v33 = vpop.permute.xlu1 %3038 }
 0x152   : > { %v3808_v32 = vld [vmem:[#allocation2 + $0x110] sm:$0x3]  ;;  %v3033_v34 = vpop.permute.xlu0 %3032  ;;  %v3816_v35 = vpack.c.bf16 %v6431_v22, %v3815_v31  ;;  %3040 = vst [vmem:[#allocation2 + $0x138] sm:$0xff] %v3039_v33  ;;  %3422 = vperm.xlu1 %6212, %v3421_v29   ;;  %v3517_v31 = vld [vmem:[#allocation0 + $0x3a0] sm:$0xff] }
 0x153   : > { %v3809_v36 = vpack.c.bf16 %v6431_v22, %v3808_v32  ;;  %3034 = vst [vmem:[#allocation2 + $0x130] sm:$0xff] %v3033_v34  ;;  %3416 = vperm.xlu0 %4, %v3415_v30   ;;  %v3511_v32 = vld [vmem:[#allocation0 + $0x3a8] sm:$0xff] }
 0x154   : > { %5799 = vst [vmem:[%s6894_s11 + $0x23] sm:$0x1] %v3816_v35 }
 0x155   : > { %5798 = vst [vmem:[%s6894_s11 + $0x22] sm:$0x1] %v3809_v36  ;;  %v3829_v39 = vld [vmem:[#allocation2 + $0x128] sm:$0x3]  ;;  %v3051_v41 = vpop.permute.xlu1 %3050 }
 0x156   : > { %v3822_v40 = vld [vmem:[#allocation2 + $0x120] sm:$0x3]  ;;  %v3045_v42 = vpop.permute.xlu0 %3044  ;;  %v3830_v43 = vpack.c.bf16 %v6431_v22, %v3829_v39  ;;  %3052 = vst [vmem:[#allocation2 + $0x148] sm:$0xff] %v3051_v41  ;;  %3434 = vperm.xlu1 %6212, %v3433_v37   ;;  %v3529_v39 = vld [vmem:[#allocation0 + $0x3d0] sm:$0xff] }
 0x157   : > { %v3823_v44 = vpack.c.bf16 %v6431_v22, %v3822_v40  ;;  %3046 = vst [vmem:[#allocation2 + $0x140] sm:$0xff] %v3045_v42  ;;  %3428 = vperm.xlu0 %4, %v3427_v38   ;;  %v3523_v40 = vld [vmem:[#allocation0 + $0x3d8] sm:$0xff] }
 0x158   : > { %5801 = vst [vmem:[%s6894_s11 + $0x25] sm:$0x1] %v3830_v43 }
 0x159   : > { %5800 = vst [vmem:[%s6894_s11 + $0x24] sm:$0x1] %v3823_v44  ;;  %v3843_v47 = vld [vmem:[#allocation2 + $0x138] sm:$0x3]  ;;  %v3063_v49 = vpop.permute.xlu1 %3062 }
 0x15a   : > { %v3836_v48 = vld [vmem:[#allocation2 + $0x130] sm:$0x3]  ;;  %v3057_v50 = vpop.permute.xlu0 %3056  ;;  %v3844_v51 = vpack.c.bf16 %v6431_v22, %v3843_v47  ;;  %3064 = vst [vmem:[#allocation2 + $0x158] sm:$0xff] %v3063_v49  ;;  %3446 = vperm.xlu1 %6212, %v3445_v45   ;;  %v3541_v47 = vld [vmem:[#allocation0 + $0x3c0] sm:$0xff] }
 0x15b   : > { %v3837_v52 = vpack.c.bf16 %v6431_v22, %v3836_v48  ;;  %3058 = vst [vmem:[#allocation2 + $0x150] sm:$0xff] %v3057_v50  ;;  %3440 = vperm.xlu0 %4, %v3439_v46   ;;  %v3535_v48 = vld [vmem:[#allocation0 + $0x3c8] sm:$0xff] }
 0x15c   : > { %5803 = vst [vmem:[%s6894_s11 + $0x27] sm:$0x1] %v3844_v51 }
 0x15d   : > { %5802 = vst [vmem:[%s6894_s11 + $0x26] sm:$0x1] %v3837_v52  ;;  %v3857_v55 = vld [vmem:[#allocation2 + $0x148] sm:$0x3]  ;;  %v3075_v57 = vpop.permute.xlu1 %3074 }
 0x15e   : > { %v3850_v56 = vld [vmem:[#allocation2 + $0x140] sm:$0x3]  ;;  %v3069_v58 = vpop.permute.xlu0 %3068  ;;  %v3858_v59 = vpack.c.bf16 %v6431_v22, %v3857_v55  ;;  %3076 = vst [vmem:[#allocation2 + $0x168] sm:$0xff] %v3075_v57  ;;  %3458 = vperm.xlu1 %6212, %v3457_v53   ;;  %v3553_v55 = vld [vmem:[#allocation0 + $0x3f0] sm:$0xff] }
 0x15f   : > { %v3851_v60 = vpack.c.bf16 %v6431_v22, %v3850_v56  ;;  %3070 = vst [vmem:[#allocation2 + $0x160] sm:$0xff] %v3069_v58  ;;  %3452 = vperm.xlu0 %4, %v3451_v54   ;;  %v3547_v56 = vld [vmem:[#allocation0 + $0x3f8] sm:$0xff] }
 0x160   : > { %5805 = vst [vmem:[%s6894_s11 + $0x29] sm:$0x1] %v3858_v59 }
 0x161   : > { %5804 = vst [vmem:[%s6894_s11 + $0x28] sm:$0x1] %v3851_v60  ;;  %v3871_v63 = vld [vmem:[#allocation2 + $0x158] sm:$0x3]  ;;  %v3087_v2 = vpop.permute.xlu1 %3086 }
 0x162   : > { %v3864_v0 = vld [vmem:[#allocation2 + $0x150] sm:$0x3]  ;;  %v3081_v3 = vpop.permute.xlu0 %3080  ;;  %v3872_v4 = vpack.c.bf16 %v6431_v22, %v3871_v63  ;;  %3088 = vst [vmem:[#allocation2 + $0x178] sm:$0xff] %v3087_v2  ;;  %3470 = vperm.xlu1 %6212, %v3469_v61   ;;  %v3565_v63 = vld [vmem:[#allocation0 + $0x3e0] sm:$0xff] }
 0x163   : > { %v3865_v5 = vpack.c.bf16 %v6431_v22, %v3864_v0  ;;  %3082 = vst [vmem:[#allocation2 + $0x170] sm:$0xff] %v3081_v3  ;;  %3464 = vperm.xlu0 %4, %v3463_v62   ;;  %v3559_v0 = vld [vmem:[#allocation0 + $0x3e8] sm:$0xff] }
 0x164   : > { %5807 = vst [vmem:[%s6894_s11 + $0x2b] sm:$0x1] %v3872_v4 }
 0x165   : > { %5806 = vst [vmem:[%s6894_s11 + $0x2a] sm:$0x1] %v3865_v5  ;;  %v3885_v8 = vld [vmem:[#allocation2 + $0x168] sm:$0x3]  ;;  %v3099_v10 = vpop.permute.xlu1 %3098 }
 0x166   : > { %v3878_v9 = vld [vmem:[#allocation2 + $0x160] sm:$0x3]  ;;  %v3093_v11 = vpop.permute.xlu0 %3092  ;;  %v3886_v12 = vpack.c.bf16 %v6431_v22, %v3885_v8  ;;  %3100 = vst [vmem:[#allocation2 + $0x188] sm:$0xff] %v3099_v10  ;;  %3482 = vperm.xlu1 %6212, %v3481_v6  }
 0x167   : > { %v3879_v13 = vpack.c.bf16 %v6431_v22, %v3878_v9  ;;  %3094 = vst [vmem:[#allocation2 + $0x180] sm:$0xff] %v3093_v11  ;;  %3476 = vperm.xlu0 %4, %v3475_v7  }
 0x168   : > { %5809 = vst [vmem:[%s6894_s11 + $0x2d] sm:$0x1] %v3886_v12 }
 0x169   : > { %5808 = vst [vmem:[%s6894_s11 + $0x2c] sm:$0x1] %v3879_v13  ;;  %v3899_v16 = vld [vmem:[#allocation2 + $0x178] sm:$0x3]  ;;  %v3111_v18 = vpop.permute.xlu1 %3110 }
 0x16a   : > { %v3892_v17 = vld [vmem:[#allocation2 + $0x170] sm:$0x3]  ;;  %v3105_v19 = vpop.permute.xlu0 %3104  ;;  %v3900_v20 = vpack.c.bf16 %v6431_v22, %v3899_v16  ;;  %3112 = vst [vmem:[#allocation2 + $0x198] sm:$0xff] %v3111_v18  ;;  %3494 = vperm.xlu1 %6212, %v3493_v14  }
 0x16b   : > { %v3893_v21 = vpack.c.bf16 %v6431_v22, %v3892_v17  ;;  %3106 = vst [vmem:[#allocation2 + $0x190] sm:$0xff] %v3105_v19  ;;  %3488 = vperm.xlu0 %4, %v3487_v15  }
 0x16c   : > { %5811 = vst [vmem:[%s6894_s11 + $0x2f] sm:$0x1] %v3900_v20 }
 0x16d   : > { %5810 = vst [vmem:[%s6894_s11 + $0x2e] sm:$0x1] %v3893_v21  ;;  %v3913_v25 = vld [vmem:[#allocation2 + $0x188] sm:$0x3]  ;;  %v3123_v27 = vpop.permute.xlu1 %3122 }
 0x16e   : > { %v3906_v26 = vld [vmem:[#allocation2 + $0x180] sm:$0x3]  ;;  %v3117_v28 = vpop.permute.xlu0 %3116  ;;  %v3914_v29 = vpack.c.bf16 %v6431_v22, %v3913_v25  ;;  %3124 = vst [vmem:[#allocation2 + $0x1a8] sm:$0xff] %v3123_v27  ;;  %3506 = vperm.xlu1 %6212, %v3505_v23  }
 0x16f   : > { %v3907_v30 = vpack.c.bf16 %v6431_v22, %v3906_v26  ;;  %3118 = vst [vmem:[#allocation2 + $0x1a0] sm:$0xff] %v3117_v28  ;;  %3500 = vperm.xlu0 %4, %v3499_v24  }
 0x170   : > { %5813 = vst [vmem:[%s6894_s11 + $0x31] sm:$0x1] %v3914_v29 }
 0x171   : > { %5812 = vst [vmem:[%s6894_s11 + $0x30] sm:$0x1] %v3907_v30  ;;  %v3927_v33 = vld [vmem:[#allocation2 + $0x198] sm:$0x3]  ;;  %v3135_v35 = vpop.permute.xlu1 %3134 }
 0x172   : > { %v3920_v34 = vld [vmem:[#allocation2 + $0x190] sm:$0x3]  ;;  %v3129_v36 = vpop.permute.xlu0 %3128  ;;  %v3928_v37 = vpack.c.bf16 %v6431_v22, %v3927_v33  ;;  %3136 = vst [vmem:[#allocation2 + $0x1b8] sm:$0xff] %v3135_v35  ;;  %3518 = vperm.xlu1 %6212, %v3517_v31  }
 0x173   : > { %v3921_v38 = vpack.c.bf16 %v6431_v22, %v3920_v34  ;;  %3130 = vst [vmem:[#allocation2 + $0x1b0] sm:$0xff] %v3129_v36  ;;  %3512 = vperm.xlu0 %4, %v3511_v32  }
 0x174   : > { %5815 = vst [vmem:[%s6894_s11 + $0x33] sm:$0x1] %v3928_v37 }
 0x175   : > { %5814 = vst [vmem:[%s6894_s11 + $0x32] sm:$0x1] %v3921_v38  ;;  %v3941_v41 = vld [vmem:[#allocation2 + $0x1a8] sm:$0x3]  ;;  %v3147_v43 = vpop.permute.xlu1 %3146 }
 0x176   : > { %v3934_v42 = vld [vmem:[#allocation2 + $0x1a0] sm:$0x3]  ;;  %v3141_v44 = vpop.permute.xlu0 %3140  ;;  %v3942_v45 = vpack.c.bf16 %v6431_v22, %v3941_v41  ;;  %3148 = vst [vmem:[#allocation2 + $0x1c8] sm:$0xff] %v3147_v43  ;;  %3530 = vperm.xlu1 %6212, %v3529_v39  }
 0x177   : > { %v3935_v46 = vpack.c.bf16 %v6431_v22, %v3934_v42  ;;  %3142 = vst [vmem:[#allocation2 + $0x1c0] sm:$0xff] %v3141_v44  ;;  %3524 = vperm.xlu0 %4, %v3523_v40  }
 0x178   : > { %5817 = vst [vmem:[%s6894_s11 + $0x35] sm:$0x1] %v3942_v45 }
 0x179   : > { %5816 = vst [vmem:[%s6894_s11 + $0x34] sm:$0x1] %v3935_v46  ;;  %v3955_v49 = vld [vmem:[#allocation2 + $0x1b8] sm:$0x3]  ;;  %v3159_v51 = vpop.permute.xlu1 %3158 }
 0x17a   : > { %v3948_v50 = vld [vmem:[#allocation2 + $0x1b0] sm:$0x3]  ;;  %v3153_v52 = vpop.permute.xlu0 %3152  ;;  %v3956_v53 = vpack.c.bf16 %v6431_v22, %v3955_v49  ;;  %3160 = vst [vmem:[#allocation2 + $0x1d8] sm:$0xff] %v3159_v51  ;;  %3542 = vperm.xlu1 %6212, %v3541_v47  }
 0x17b   : > { %v3949_v54 = vpack.c.bf16 %v6431_v22, %v3948_v50  ;;  %3154 = vst [vmem:[#allocation2 + $0x1d0] sm:$0xff] %v3153_v52  ;;  %3536 = vperm.xlu0 %4, %v3535_v48  }
 0x17c   : > { %5819 = vst [vmem:[%s6894_s11 + $0x37] sm:$0x1] %v3956_v53 }
 0x17d   : > { %5818 = vst [vmem:[%s6894_s11 + $0x36] sm:$0x1] %v3949_v54  ;;  %v3969_v57 = vld [vmem:[#allocation2 + $0x1c8] sm:$0x3]  ;;  %v3171_v59 = vpop.permute.xlu1 %3170 }
 0x17e   : > { %v3962_v58 = vld [vmem:[#allocation2 + $0x1c0] sm:$0x3]  ;;  %v3165_v60 = vpop.permute.xlu0 %3164  ;;  %v3970_v61 = vpack.c.bf16 %v6431_v22, %v3969_v57  ;;  %3172 = vst [vmem:[#allocation2 + $0x1e8] sm:$0xff] %v3171_v59  ;;  %3554 = vperm.xlu1 %6212, %v3553_v55  }
 0x17f   : > { %v3963_v62 = vpack.c.bf16 %v6431_v22, %v3962_v58  ;;  %3166 = vst [vmem:[#allocation2 + $0x1e0] sm:$0xff] %v3165_v60  ;;  %3548 = vperm.xlu0 %4, %v3547_v56  }
 0x180   : > { %5821 = vst [vmem:[%s6894_s11 + $0x39] sm:$0x1] %v3970_v61 }
 0x181   : > { %5820 = vst [vmem:[%s6894_s11 + $0x38] sm:$0x1] %v3963_v62  ;;  %v3983_v2 = vld [vmem:[#allocation2 + $0x1d8] sm:$0x3]  ;;  %v3183_v4 = vpop.permute.xlu1 %3182 }
 0x182   : > { %v3976_v3 = vld [vmem:[#allocation2 + $0x1d0] sm:$0x3]  ;;  %v3177_v5 = vpop.permute.xlu0 %3176  ;;  %v3984_v6 = vpack.c.bf16 %v6431_v22, %v3983_v2  ;;  %3184 = vst [vmem:[#allocation2 + $0x1f8] sm:$0xff] %v3183_v4  ;;  %3566 = vperm.xlu1 %6212, %v3565_v63  }
 0x183   : > { %v3977_v7 = vpack.c.bf16 %v6431_v22, %v3976_v3  ;;  %3178 = vst [vmem:[#allocation2 + $0x1f0] sm:$0xff] %v3177_v5  ;;  %3560 = vperm.xlu0 %4, %v3559_v0  }
 0x184   : > { %5823 = vst [vmem:[%s6894_s11 + $0x3b] sm:$0x1] %v3984_v6 }
 0x185   : > { %5822 = vst [vmem:[%s6894_s11 + $0x3a] sm:$0x1] %v3977_v7  ;;  %v3997_v8 = vld [vmem:[#allocation2 + $0x1e8] sm:$0x3]  ;;  %v3195_v10 = vpop.permute.xlu1 %3194 }
 0x186   : > { %v3990_v9 = vld [vmem:[#allocation2 + $0x1e0] sm:$0x3]  ;;  %v3189_v11 = vpop.permute.xlu0 %3188  ;;  %v3998_v12 = vpack.c.bf16 %v6431_v22, %v3997_v8  ;;  %3196 = vst [vmem:[#allocation2 + $0x208] sm:$0xff] %v3195_v10 }
 0x187   : > { %v3991_v13 = vpack.c.bf16 %v6431_v22, %v3990_v9  ;;  %3190 = vst [vmem:[#allocation2 + $0x200] sm:$0xff] %v3189_v11 }
 0x188   : > { %5825 = vst [vmem:[%s6894_s11 + $0x3d] sm:$0x1] %v3998_v12 }
 0x189   : > { %5824 = vst [vmem:[%s6894_s11 + $0x3c] sm:$0x1] %v3991_v13  ;;  %v4011_v14 = vld [vmem:[#allocation2 + $0x1f8] sm:$0x3]  ;;  %v3207_v16 = vpop.permute.xlu1 %3206 }
 0x18a   : > { %v4004_v15 = vld [vmem:[#allocation2 + $0x1f0] sm:$0x3]  ;;  %v3201_v17 = vpop.permute.xlu0 %3200  ;;  %v4012_v18 = vpack.c.bf16 %v6431_v22, %v4011_v14  ;;  %3208 = vst [vmem:[#allocation2 + $0x218] sm:$0xff] %v3207_v16 }
 0x18b   : > { %v4005_v19 = vpack.c.bf16 %v6431_v22, %v4004_v15  ;;  %3202 = vst [vmem:[#allocation2 + $0x210] sm:$0xff] %v3201_v17 }
 0x18c   : > { %5827 = vst [vmem:[%s6894_s11 + $0x3f] sm:$0x1] %v4012_v18 }
 0x18d   : > { %5826 = vst [vmem:[%s6894_s11 + $0x3e] sm:$0x1] %v4005_v19  ;;  %v4025_v20 = vld [vmem:[#allocation2 + $0x208] sm:$0x3]  ;;  %v3219_v23 = vpop.permute.xlu1 %3218 }
 0x18e   : > { %v4018_v21 = vld [vmem:[#allocation2 + $0x200] sm:$0x3]  ;;  %v3213_v24 = vpop.permute.xlu0 %3212  ;;  %v4026_v25 = vpack.c.bf16 %v6431_v22, %v4025_v20  ;;  %3220 = vst [vmem:[#allocation2 + $0x228] sm:$0xff] %v3219_v23 }
 0x18f   : > { %v4019_v26 = vpack.c.bf16 %v6431_v22, %v4018_v21  ;;  %3214 = vst [vmem:[#allocation2 + $0x220] sm:$0xff] %v3213_v24 }
 0x190   : > { %5829 = vst [vmem:[%s6894_s11 + $0x41] sm:$0x1] %v4026_v25 }
 0x191   : > { %5828 = vst [vmem:[%s6894_s11 + $0x40] sm:$0x1] %v4019_v26  ;;  %v4039_v27 = vld [vmem:[#allocation2 + $0x218] sm:$0x3]  ;;  %v3231_v29 = vpop.permute.xlu1 %3230 }
 0x192   : > { %v4032_v28 = vld [vmem:[#allocation2 + $0x210] sm:$0x3]  ;;  %v3225_v30 = vpop.permute.xlu0 %3224  ;;  %v4040_v31 = vpack.c.bf16 %v6431_v22, %v4039_v27  ;;  %3232 = vst [vmem:[#allocation2 + $0x238] sm:$0xff] %v3231_v29 }
 0x193   : > { %v4033_v32 = vpack.c.bf16 %v6431_v22, %v4032_v28  ;;  %3226 = vst [vmem:[#allocation2 + $0x230] sm:$0xff] %v3225_v30 }
 0x194   : > { %5831 = vst [vmem:[%s6894_s11 + $0x43] sm:$0x1] %v4040_v31 }
 0x195   : > { %5830 = vst [vmem:[%s6894_s11 + $0x42] sm:$0x1] %v4033_v32  ;;  %v4053_v33 = vld [vmem:[#allocation2 + $0x228] sm:$0x3]  ;;  %v3243_v35 = vpop.permute.xlu1 %3242 }
 0x196   : > { %v4046_v34 = vld [vmem:[#allocation2 + $0x220] sm:$0x3]  ;;  %v3237_v36 = vpop.permute.xlu0 %3236  ;;  %v4054_v37 = vpack.c.bf16 %v6431_v22, %v4053_v33  ;;  %3244 = vst [vmem:[#allocation2 + $0x248] sm:$0xff] %v3243_v35 }
 0x197   : > { %v4047_v38 = vpack.c.bf16 %v6431_v22, %v4046_v34  ;;  %3238 = vst [vmem:[#allocation2 + $0x240] sm:$0xff] %v3237_v36 }
 0x198   : > { %5833 = vst [vmem:[%s6894_s11 + $0x45] sm:$0x1] %v4054_v37 }
 0x199   : > { %5832 = vst [vmem:[%s6894_s11 + $0x44] sm:$0x1] %v4047_v38  ;;  %v4067_v39 = vld [vmem:[#allocation2 + $0x238] sm:$0x3]  ;;  %v3255_v41 = vpop.permute.xlu1 %3254 }
 0x19a   : > { %v4060_v40 = vld [vmem:[#allocation2 + $0x230] sm:$0x3]  ;;  %v3249_v42 = vpop.permute.xlu0 %3248  ;;  %v4068_v43 = vpack.c.bf16 %v6431_v22, %v4067_v39  ;;  %3256 = vst [vmem:[#allocation2 + $0x258] sm:$0xff] %v3255_v41 }
 0x19b   : > { %v4061_v44 = vpack.c.bf16 %v6431_v22, %v4060_v40  ;;  %3250 = vst [vmem:[#allocation2 + $0x250] sm:$0xff] %v3249_v42 }
 0x19c   : > { %5835 = vst [vmem:[%s6894_s11 + $0x47] sm:$0x1] %v4068_v43 }
 0x19d   : > { %5834 = vst [vmem:[%s6894_s11 + $0x46] sm:$0x1] %v4061_v44  ;;  %v4081_v45 = vld [vmem:[#allocation2 + $0x248] sm:$0x3]  ;;  %v3267_v47 = vpop.permute.xlu1 %3266 }
 0x19e   : > { %v4074_v46 = vld [vmem:[#allocation2 + $0x240] sm:$0x3]  ;;  %v3261_v48 = vpop.permute.xlu0 %3260  ;;  %v4082_v49 = vpack.c.bf16 %v6431_v22, %v4081_v45  ;;  %3268 = vst [vmem:[#allocation2 + $0x268] sm:$0xff] %v3267_v47 }
 0x19f   : > { %v4075_v50 = vpack.c.bf16 %v6431_v22, %v4074_v46  ;;  %3262 = vst [vmem:[#allocation2 + $0x260] sm:$0xff] %v3261_v48 }
 0x1a0   : > { %5837 = vst [vmem:[%s6894_s11 + $0x49] sm:$0x1] %v4082_v49 }
 0x1a1   : > { %5836 = vst [vmem:[%s6894_s11 + $0x48] sm:$0x1] %v4075_v50  ;;  %v4095_v51 = vld [vmem:[#allocation2 + $0x258] sm:$0x3]  ;;  %v3279_v53 = vpop.permute.xlu1 %3278 }
 0x1a2   : > { %v4088_v52 = vld [vmem:[#allocation2 + $0x250] sm:$0x3]  ;;  %v3273_v54 = vpop.permute.xlu0 %3272  ;;  %v4096_v55 = vpack.c.bf16 %v6431_v22, %v4095_v51  ;;  %3280 = vst [vmem:[#allocation2 + $0x278] sm:$0xff] %v3279_v53 }
 0x1a3   : > { %v4089_v56 = vpack.c.bf16 %v6431_v22, %v4088_v52  ;;  %3274 = vst [vmem:[#allocation2 + $0x270] sm:$0xff] %v3273_v54 }
 0x1a4   : > { %5839 = vst [vmem:[%s6894_s11 + $0x4b] sm:$0x1] %v4096_v55 }
 0x1a5   : > { %5838 = vst [vmem:[%s6894_s11 + $0x4a] sm:$0x1] %v4089_v56  ;;  %v4109_v57 = vld [vmem:[#allocation2 + $0x268] sm:$0x3]  ;;  %v3291_v59 = vpop.permute.xlu1 %3290 }
 0x1a6   : > { %v4102_v58 = vld [vmem:[#allocation2 + $0x260] sm:$0x3]  ;;  %v3285_v60 = vpop.permute.xlu0 %3284  ;;  %v4110_v61 = vpack.c.bf16 %v6431_v22, %v4109_v57  ;;  %3292 = vst [vmem:[#allocation2 + $0x288] sm:$0xff] %v3291_v59 }
 0x1a7   : > { %v4103_v62 = vpack.c.bf16 %v6431_v22, %v4102_v58  ;;  %3286 = vst [vmem:[#allocation2 + $0x280] sm:$0xff] %v3285_v60 }
 0x1a8   : > { %5841 = vst [vmem:[%s6894_s11 + $0x4d] sm:$0x1] %v4110_v61 }
 0x1a9   : > { %5840 = vst [vmem:[%s6894_s11 + $0x4c] sm:$0x1] %v4103_v62  ;;  %v4123_v63 = vld [vmem:[#allocation2 + $0x278] sm:$0x3]  ;;  %v3303_v2 = vpop.permute.xlu1 %3302 }
 0x1aa   : > { %v4116_v0 = vld [vmem:[#allocation2 + $0x270] sm:$0x3]  ;;  %v3297_v3 = vpop.permute.xlu0 %3296  ;;  %v4124_v4 = vpack.c.bf16 %v6431_v22, %v4123_v63  ;;  %3304 = vst [vmem:[#allocation2 + $0x298] sm:$0xff] %v3303_v2 }
 0x1ab   : > { %v4117_v5 = vpack.c.bf16 %v6431_v22, %v4116_v0  ;;  %3298 = vst [vmem:[#allocation2 + $0x290] sm:$0xff] %v3297_v3 }
 0x1ac   : > { %5843 = vst [vmem:[%s6894_s11 + $0x4f] sm:$0x1] %v4124_v4 }
 0x1ad   : > { %5842 = vst [vmem:[%s6894_s11 + $0x4e] sm:$0x1] %v4117_v5  ;;  %v4137_v6 = vld [vmem:[#allocation2 + $0x288] sm:$0x3]  ;;  %v3315_v8 = vpop.permute.xlu1 %3314 }
 0x1ae   : > { %v4130_v7 = vld [vmem:[#allocation2 + $0x280] sm:$0x3]  ;;  %v3309_v9 = vpop.permute.xlu0 %3308  ;;  %v4138_v10 = vpack.c.bf16 %v6431_v22, %v4137_v6  ;;  %3316 = vst [vmem:[#allocation2 + $0x2a8] sm:$0xff] %v3315_v8 }
 0x1af   : > { %v4131_v11 = vpack.c.bf16 %v6431_v22, %v4130_v7  ;;  %3310 = vst [vmem:[#allocation2 + $0x2a0] sm:$0xff] %v3309_v9 }
 0x1b0   : > { %5845 = vst [vmem:[%s6894_s11 + $0x51] sm:$0x1] %v4138_v10 }
 0x1b1   : > { %5844 = vst [vmem:[%s6894_s11 + $0x50] sm:$0x1] %v4131_v11  ;;  %v4151_v12 = vld [vmem:[#allocation2 + $0x298] sm:$0x3]  ;;  %v3327_v14 = vpop.permute.xlu1 %3326 }
 0x1b2   : > { %v4144_v13 = vld [vmem:[#allocation2 + $0x290] sm:$0x3]  ;;  %v3321_v15 = vpop.permute.xlu0 %3320  ;;  %v4152_v16 = vpack.c.bf16 %v6431_v22, %v4151_v12  ;;  %3328 = vst [vmem:[#allocation2 + $0x2b8] sm:$0xff] %v3327_v14 }
 0x1b3   : > { %v4145_v17 = vpack.c.bf16 %v6431_v22, %v4144_v13  ;;  %3322 = vst [vmem:[#allocation2 + $0x2b0] sm:$0xff] %v3321_v15 }
 0x1b4   : > { %5847 = vst [vmem:[%s6894_s11 + $0x53] sm:$0x1] %v4152_v16 }
 0x1b5   : > { %5846 = vst [vmem:[%s6894_s11 + $0x52] sm:$0x1] %v4145_v17  ;;  %v4165_v18 = vld [vmem:[#allocation2 + $0x2a8] sm:$0x3]  ;;  %v3339_v20 = vpop.permute.xlu1 %3338 }
 0x1b6   : > { %v4158_v19 = vld [vmem:[#allocation2 + $0x2a0] sm:$0x3]  ;;  %v3333_v21 = vpop.permute.xlu0 %3332  ;;  %v4166_v23 = vpack.c.bf16 %v6431_v22, %v4165_v18  ;;  %3340 = vst [vmem:[#allocation2 + $0x2c8] sm:$0xff] %v3339_v20 }
 0x1b7   : > { %v4159_v24 = vpack.c.bf16 %v6431_v22, %v4158_v19  ;;  %3334 = vst [vmem:[#allocation2 + $0x2c0] sm:$0xff] %v3333_v21 }
 0x1b8   : > { %5849 = vst [vmem:[%s6894_s11 + $0x55] sm:$0x1] %v4166_v23 }
 0x1b9   : > { %5848 = vst [vmem:[%s6894_s11 + $0x54] sm:$0x1] %v4159_v24  ;;  %v4179_v25 = vld [vmem:[#allocation2 + $0x2b8] sm:$0x3]  ;;  %v3351_v27 = vpop.permute.xlu1 %3350 }
 0x1ba   : > { %v4172_v26 = vld [vmem:[#allocation2 + $0x2b0] sm:$0x3]  ;;  %v3345_v28 = vpop.permute.xlu0 %3344  ;;  %v4180_v29 = vpack.c.bf16 %v6431_v22, %v4179_v25  ;;  %3352 = vst [vmem:[#allocation2 + $0x2d8] sm:$0xff] %v3351_v27 }
 0x1bb   : > { %v4173_v30 = vpack.c.bf16 %v6431_v22, %v4172_v26  ;;  %3346 = vst [vmem:[#allocation2 + $0x2d0] sm:$0xff] %v3345_v28 }
 0x1bc   : > { %5851 = vst [vmem:[%s6894_s11 + $0x57] sm:$0x1] %v4180_v29 }
 0x1bd   : > { %5850 = vst [vmem:[%s6894_s11 + $0x56] sm:$0x1] %v4173_v30  ;;  %v4193_v31 = vld [vmem:[#allocation2 + $0x2c8] sm:$0x3]  ;;  %v3363_v33 = vpop.permute.xlu1 %3362 }
 0x1be   : > { %v4186_v32 = vld [vmem:[#allocation2 + $0x2c0] sm:$0x3]  ;;  %v3357_v34 = vpop.permute.xlu0 %3356  ;;  %v4194_v35 = vpack.c.bf16 %v6431_v22, %v4193_v31  ;;  %3364 = vst [vmem:[#allocation2 + $0x2e8] sm:$0xff] %v3363_v33 }
 0x1bf   : > { %v4187_v36 = vpack.c.bf16 %v6431_v22, %v4186_v32  ;;  %3358 = vst [vmem:[#allocation2 + $0x2e0] sm:$0xff] %v3357_v34 }
 0x1c0   : > { %5853 = vst [vmem:[%s6894_s11 + $0x59] sm:$0x1] %v4194_v35 }
 0x1c1   : > { %5852 = vst [vmem:[%s6894_s11 + $0x58] sm:$0x1] %v4187_v36  ;;  %v4207_v37 = vld [vmem:[#allocation2 + $0x2d8] sm:$0x3]  ;;  %v3375_v39 = vpop.permute.xlu1 %3374 }
 0x1c2   : > { %v4200_v38 = vld [vmem:[#allocation2 + $0x2d0] sm:$0x3]  ;;  %v3369_v40 = vpop.permute.xlu0 %3368  ;;  %v4208_v41 = vpack.c.bf16 %v6431_v22, %v4207_v37  ;;  %3376 = vst [vmem:[#allocation2 + $0x2f8] sm:$0xff] %v3375_v39 }
 0x1c3   : > { %v4201_v42 = vpack.c.bf16 %v6431_v22, %v4200_v38  ;;  %3370 = vst [vmem:[#allocation2 + $0x2f0] sm:$0xff] %v3369_v40 }
 0x1c4   : > { %5855 = vst [vmem:[%s6894_s11 + $0x5b] sm:$0x1] %v4208_v41 }
 0x1c5   : > { %5854 = vst [vmem:[%s6894_s11 + $0x5a] sm:$0x1] %v4201_v42  ;;  %v4221_v43 = vld [vmem:[#allocation2 + $0x2e8] sm:$0x3]  ;;  %v3387_v45 = vpop.permute.xlu1 %3386 }
 0x1c6   : > { %v4214_v44 = vld [vmem:[#allocation2 + $0x2e0] sm:$0x3]  ;;  %v3381_v46 = vpop.permute.xlu0 %3380  ;;  %v4222_v47 = vpack.c.bf16 %v6431_v22, %v4221_v43  ;;  %3388 = vst [vmem:[#allocation2 + $0x308] sm:$0xff] %v3387_v45 }
 0x1c7   : > { %v4215_v48 = vpack.c.bf16 %v6431_v22, %v4214_v44  ;;  %3382 = vst [vmem:[#allocation2 + $0x300] sm:$0xff] %v3381_v46 }
 0x1c8   : > { %5857 = vst [vmem:[%s6894_s11 + $0x5d] sm:$0x1] %v4222_v47 }
 0x1c9   : > { %5856 = vst [vmem:[%s6894_s11 + $0x5c] sm:$0x1] %v4215_v48  ;;  %v4235_v49 = vld [vmem:[#allocation2 + $0x2f8] sm:$0x3]  ;;  %v3399_v51 = vpop.permute.xlu1 %3398 }
 0x1ca   : > { %v4228_v50 = vld [vmem:[#allocation2 + $0x2f0] sm:$0x3]  ;;  %v3393_v52 = vpop.permute.xlu0 %3392  ;;  %v4236_v53 = vpack.c.bf16 %v6431_v22, %v4235_v49  ;;  %3400 = vst [vmem:[#allocation2 + $0x318] sm:$0xff] %v3399_v51 }
 0x1cb   : > { %v4229_v54 = vpack.c.bf16 %v6431_v22, %v4228_v50  ;;  %3394 = vst [vmem:[#allocation2 + $0x310] sm:$0xff] %v3393_v52 }
 0x1cc   : > { %5859 = vst [vmem:[%s6894_s11 + $0x5f] sm:$0x1] %v4236_v53 }
 0x1cd   : > { %5858 = vst [vmem:[%s6894_s11 + $0x5e] sm:$0x1] %v4229_v54  ;;  %v4249_v55 = vld [vmem:[#allocation2 + $0x308] sm:$0x3]  ;;  %v3411_v57 = vpop.permute.xlu1 %3410 }
 0x1ce   : > { %v4242_v56 = vld [vmem:[#allocation2 + $0x300] sm:$0x3]  ;;  %v3405_v58 = vpop.permute.xlu0 %3404  ;;  %v4250_v59 = vpack.c.bf16 %v6431_v22, %v4249_v55  ;;  %3412 = vst [vmem:[#allocation2 + $0x328] sm:$0xff] %v3411_v57 }
 0x1cf   : > { %v4243_v60 = vpack.c.bf16 %v6431_v22, %v4242_v56  ;;  %3406 = vst [vmem:[#allocation2 + $0x320] sm:$0xff] %v3405_v58 }
 0x1d0   : > { %5861 = vst [vmem:[%s6894_s11 + $0x61] sm:$0x1] %v4250_v59 }
 0x1d1   : > { %5860 = vst [vmem:[%s6894_s11 + $0x60] sm:$0x1] %v4243_v60  ;;  %v4263_v61 = vld [vmem:[#allocation2 + $0x318] sm:$0x3]  ;;  %v3423_v63 = vpop.permute.xlu1 %3422 }
 0x1d2   : > { %v4256_v62 = vld [vmem:[#allocation2 + $0x310] sm:$0x3]  ;;  %v3417_v0 = vpop.permute.xlu0 %3416  ;;  %v4264_v2 = vpack.c.bf16 %v6431_v22, %v4263_v61  ;;  %3424 = vst [vmem:[#allocation2 + $0x338] sm:$0xff] %v3423_v63 }
 0x1d3   : > { %v4257_v3 = vpack.c.bf16 %v6431_v22, %v4256_v62  ;;  %3418 = vst [vmem:[#allocation2 + $0x330] sm:$0xff] %v3417_v0 }
 0x1d4   : > { %5863 = vst [vmem:[%s6894_s11 + $0x63] sm:$0x1] %v4264_v2 }
 0x1d5   : > { %5862 = vst [vmem:[%s6894_s11 + $0x62] sm:$0x1] %v4257_v3  ;;  %v4277_v4 = vld [vmem:[#allocation2 + $0x328] sm:$0x3]  ;;  %v3435_v6 = vpop.permute.xlu1 %3434 }
 0x1d6   : > { %v4270_v5 = vld [vmem:[#allocation2 + $0x320] sm:$0x3]  ;;  %v3429_v7 = vpop.permute.xlu0 %3428  ;;  %v4278_v8 = vpack.c.bf16 %v6431_v22, %v4277_v4  ;;  %3436 = vst [vmem:[#allocation2 + $0x348] sm:$0xff] %v3435_v6 }
 0x1d7   : > { %v4271_v9 = vpack.c.bf16 %v6431_v22, %v4270_v5  ;;  %3430 = vst [vmem:[#allocation2 + $0x340] sm:$0xff] %v3429_v7 }
 0x1d8   : > { %5865 = vst [vmem:[%s6894_s11 + $0x65] sm:$0x1] %v4278_v8 }
 0x1d9   : > { %5864 = vst [vmem:[%s6894_s11 + $0x64] sm:$0x1] %v4271_v9  ;;  %v4291_v10 = vld [vmem:[#allocation2 + $0x338] sm:$0x3]  ;;  %v3447_v12 = vpop.permute.xlu1 %3446 }
 0x1da   : > { %v4284_v11 = vld [vmem:[#allocation2 + $0x330] sm:$0x3]  ;;  %v3441_v13 = vpop.permute.xlu0 %3440  ;;  %v4292_v14 = vpack.c.bf16 %v6431_v22, %v4291_v10  ;;  %3448 = vst [vmem:[#allocation2 + $0x358] sm:$0xff] %v3447_v12 }
 0x1db   : > { %v4285_v15 = vpack.c.bf16 %v6431_v22, %v4284_v11  ;;  %3442 = vst [vmem:[#allocation2 + $0x350] sm:$0xff] %v3441_v13 }
 0x1dc   : > { %5867 = vst [vmem:[%s6894_s11 + $0x67] sm:$0x1] %v4292_v14 }
 0x1dd   : > { %5866 = vst [vmem:[%s6894_s11 + $0x66] sm:$0x1] %v4285_v15  ;;  %v4305_v16 = vld [vmem:[#allocation2 + $0x348] sm:$0x3]  ;;  %v3459_v18 = vpop.permute.xlu1 %3458 }
 0x1de   : > { %v4298_v17 = vld [vmem:[#allocation2 + $0x340] sm:$0x3]  ;;  %v3453_v19 = vpop.permute.xlu0 %3452  ;;  %v4306_v20 = vpack.c.bf16 %v6431_v22, %v4305_v16  ;;  %3460 = vst [vmem:[#allocation2 + $0x368] sm:$0xff] %v3459_v18 }
 0x1df   : > { %v4299_v21 = vpack.c.bf16 %v6431_v22, %v4298_v17  ;;  %3454 = vst [vmem:[#allocation2 + $0x360] sm:$0xff] %v3453_v19 }
 0x1e0   : > { %5869 = vst [vmem:[%s6894_s11 + $0x69] sm:$0x1] %v4306_v20 }
 0x1e1   : > { %5868 = vst [vmem:[%s6894_s11 + $0x68] sm:$0x1] %v4299_v21  ;;  %v4319_v23 = vld [vmem:[#allocation2 + $0x358] sm:$0x3]  ;;  %v3471_v25 = vpop.permute.xlu1 %3470 }
 0x1e2   : > { %v4312_v24 = vld [vmem:[#allocation2 + $0x350] sm:$0x3]  ;;  %v3465_v26 = vpop.permute.xlu0 %3464  ;;  %v4320_v27 = vpack.c.bf16 %v6431_v22, %v4319_v23  ;;  %3472 = vst [vmem:[#allocation2 + $0x378] sm:$0xff] %v3471_v25 }
 0x1e3   : > { %v4313_v28 = vpack.c.bf16 %v6431_v22, %v4312_v24  ;;  %3466 = vst [vmem:[#allocation2 + $0x370] sm:$0xff] %v3465_v26 }
 0x1e4   : > { %5871 = vst [vmem:[%s6894_s11 + $0x6b] sm:$0x1] %v4320_v27 }
 0x1e5   : > { %5870 = vst [vmem:[%s6894_s11 + $0x6a] sm:$0x1] %v4313_v28  ;;  %v4333_v29 = vld [vmem:[#allocation2 + $0x368] sm:$0x3]  ;;  %v3483_v31 = vpop.permute.xlu1 %3482 }
 0x1e6   : > { %v4326_v30 = vld [vmem:[#allocation2 + $0x360] sm:$0x3]  ;;  %v3477_v32 = vpop.permute.xlu0 %3476  ;;  %v4334_v33 = vpack.c.bf16 %v6431_v22, %v4333_v29  ;;  %3484 = vst [vmem:[#allocation2 + $0x388] sm:$0xff] %v3483_v31 }
 0x1e7   : > { %v4327_v34 = vpack.c.bf16 %v6431_v22, %v4326_v30  ;;  %3478 = vst [vmem:[#allocation2 + $0x380] sm:$0xff] %v3477_v32 }
 0x1e8   : > { %5873 = vst [vmem:[%s6894_s11 + $0x6d] sm:$0x1] %v4334_v33 }
 0x1e9   : > { %5872 = vst [vmem:[%s6894_s11 + $0x6c] sm:$0x1] %v4327_v34  ;;  %v4347_v35 = vld [vmem:[#allocation2 + $0x378] sm:$0x3]  ;;  %v3495_v37 = vpop.permute.xlu1 %3494 }
 0x1ea   : > { %v4340_v36 = vld [vmem:[#allocation2 + $0x370] sm:$0x3]  ;;  %v3489_v38 = vpop.permute.xlu0 %3488  ;;  %v4348_v39 = vpack.c.bf16 %v6431_v22, %v4347_v35  ;;  %3496 = vst [vmem:[#allocation2 + $0x398] sm:$0xff] %v3495_v37 }
 0x1eb   : > { %v4341_v40 = vpack.c.bf16 %v6431_v22, %v4340_v36  ;;  %3490 = vst [vmem:[#allocation2 + $0x390] sm:$0xff] %v3489_v38 }
 0x1ec   : > { %5875 = vst [vmem:[%s6894_s11 + $0x6f] sm:$0x1] %v4348_v39 }
 0x1ed   : > { %5874 = vst [vmem:[%s6894_s11 + $0x6e] sm:$0x1] %v4341_v40  ;;  %v4361_v41 = vld [vmem:[#allocation2 + $0x388] sm:$0x3]  ;;  %v3507_v43 = vpop.permute.xlu1 %3506 }
 0x1ee   : > { %v4354_v42 = vld [vmem:[#allocation2 + $0x380] sm:$0x3]  ;;  %v3501_v44 = vpop.permute.xlu0 %3500  ;;  %v4362_v45 = vpack.c.bf16 %v6431_v22, %v4361_v41  ;;  %3508 = vst [vmem:[#allocation2 + $0x3a8] sm:$0xff] %v3507_v43 }
 0x1ef   : > { %v4355_v46 = vpack.c.bf16 %v6431_v22, %v4354_v42  ;;  %3502 = vst [vmem:[#allocation2 + $0x3a0] sm:$0xff] %v3501_v44 }
 0x1f0   : > { %5877 = vst [vmem:[%s6894_s11 + $0x71] sm:$0x1] %v4362_v45 }
 0x1f1   : > { %5876 = vst [vmem:[%s6894_s11 + $0x70] sm:$0x1] %v4355_v46  ;;  %v4375_v47 = vld [vmem:[#allocation2 + $0x398] sm:$0x3]  ;;  %v3519_v49 = vpop.permute.xlu1 %3518 }
 0x1f2   : > { %v4368_v48 = vld [vmem:[#allocation2 + $0x390] sm:$0x3]  ;;  %v3513_v50 = vpop.permute.xlu0 %3512  ;;  %v4376_v51 = vpack.c.bf16 %v6431_v22, %v4375_v47  ;;  %3520 = vst [vmem:[#allocation2 + $0x3b8] sm:$0xff] %v3519_v49 }
 0x1f3   : > { %v4369_v52 = vpack.c.bf16 %v6431_v22, %v4368_v48  ;;  %3514 = vst [vmem:[#allocation2 + $0x3b0] sm:$0xff] %v3513_v50 }
 0x1f4   : > { %5879 = vst [vmem:[%s6894_s11 + $0x73] sm:$0x1] %v4376_v51 }
 0x1f5   : > { %5878 = vst [vmem:[%s6894_s11 + $0x72] sm:$0x1] %v4369_v52  ;;  %v4389_v53 = vld [vmem:[#allocation2 + $0x3a8] sm:$0x3]  ;;  %v3531_v55 = vpop.permute.xlu1 %3530 }
 0x1f6   : > { %v4382_v54 = vld [vmem:[#allocation2 + $0x3a0] sm:$0x3]  ;;  %v3525_v56 = vpop.permute.xlu0 %3524  ;;  %v4390_v57 = vpack.c.bf16 %v6431_v22, %v4389_v53  ;;  %3532 = vst [vmem:[#allocation2 + $0x3c8] sm:$0xff] %v3531_v55 }
 0x1f7   : > { %v4383_v58 = vpack.c.bf16 %v6431_v22, %v4382_v54  ;;  %3526 = vst [vmem:[#allocation2 + $0x3c0] sm:$0xff] %v3525_v56 }
 0x1f8   : > { %5881 = vst [vmem:[%s6894_s11 + $0x75] sm:$0x1] %v4390_v57 }
 0x1f9   : > { %5880 = vst [vmem:[%s6894_s11 + $0x74] sm:$0x1] %v4383_v58  ;;  %v4403_v59 = vld [vmem:[#allocation2 + $0x3b8] sm:$0x3]  ;;  %v3543_v61 = vpop.permute.xlu1 %3542 }
 0x1fa   : > { %v4396_v60 = vld [vmem:[#allocation2 + $0x3b0] sm:$0x3]  ;;  %v3537_v62 = vpop.permute.xlu0 %3536  ;;  %v4404_v63 = vpack.c.bf16 %v6431_v22, %v4403_v59  ;;  %3544 = vst [vmem:[#allocation2 + $0x3d8] sm:$0xff] %v3543_v61 }
 0x1fb   : > { %v4397_v0 = vpack.c.bf16 %v6431_v22, %v4396_v60  ;;  %3538 = vst [vmem:[#allocation2 + $0x3d0] sm:$0xff] %v3537_v62 }
 0x1fc   : > { %5883 = vst [vmem:[%s6894_s11 + $0x77] sm:$0x1] %v4404_v63 }
 0x1fd   : > { %5882 = vst [vmem:[%s6894_s11 + $0x76] sm:$0x1] %v4397_v0  ;;  %v4417_v2 = vld [vmem:[#allocation2 + $0x3c8] sm:$0x3]  ;;  %v3555_v4 = vpop.permute.xlu1 %3554 }
 0x1fe   : > { %v4410_v3 = vld [vmem:[#allocation2 + $0x3c0] sm:$0x3]  ;;  %v3549_v5 = vpop.permute.xlu0 %3548  ;;  %v4418_v6 = vpack.c.bf16 %v6431_v22, %v4417_v2  ;;  %3556 = vst [vmem:[#allocation2 + $0x3e8] sm:$0xff] %v3555_v4 }
 0x1ff   : > { %v4411_v7 = vpack.c.bf16 %v6431_v22, %v4410_v3  ;;  %3550 = vst [vmem:[#allocation2 + $0x3e0] sm:$0xff] %v3549_v5 }
 0x200   : > { %5885 = vst [vmem:[%s6894_s11 + $0x79] sm:$0x1] %v4418_v6 }
 0x201   : > { %5884 = vst [vmem:[%s6894_s11 + $0x78] sm:$0x1] %v4411_v7  ;;  %v4431_v8 = vld [vmem:[#allocation2 + $0x3d8] sm:$0x3]  ;;  %v3567_v10 = vpop.permute.xlu1 %3566 }
 0x202   : > { %v4424_v9 = vld [vmem:[#allocation2 + $0x3d0] sm:$0x3]  ;;  %v3561_v11 = vpop.permute.xlu0 %3560  ;;  %v4432_v12 = vpack.c.bf16 %v6431_v22, %v4431_v8  ;;  %3568 = vst [vmem:[#allocation2 + $0x3f8] sm:$0xff] %v3567_v10 }
 0x203   : > { %v4425_v13 = vpack.c.bf16 %v6431_v22, %v4424_v9  ;;  %3562 = vst [vmem:[#allocation2 + $0x3f0] sm:$0xff] %v3561_v11 }
 0x204   : > { %5887 = vst [vmem:[%s6894_s11 + $0x7b] sm:$0x1] %v4432_v12 }
 0x205   : > { %5886 = vst [vmem:[%s6894_s11 + $0x7a] sm:$0x1] %v4425_v13  ;;  %v4445_v14 = vld [vmem:[#allocation2 + $0x3e8] sm:$0x3] }
 0x206   : > { %v4438_v15 = vld [vmem:[#allocation2 + $0x3e0] sm:$0x3]  ;;  %v4446_v16 = vpack.c.bf16 %v6431_v22, %v4445_v14 }
 0x207   : > { %v4439_v17 = vpack.c.bf16 %v6431_v22, %v4438_v15  ;;  %4483 = sbr.rel (%p5896_p11) target bundleno = 750 (0x2ee), region = 86 }
 0x208   : > { %5889 = vst [vmem:[%s6894_s11 + $0x7d] sm:$0x1] %v4446_v16 }
 0x209   : > { %5888 = vst [vmem:[%s6894_s11 + $0x7c] sm:$0x1] %v4439_v17  ;;  %v4459_v18 = vld [vmem:[#allocation2 + $0x3f8] sm:$0x3] }
 0x20a   : > { %v4452_v19 = vld [vmem:[#allocation2 + $0x3f0] sm:$0x3]  ;;  %v4460_v20 = vpack.c.bf16 %v6431_v22, %v4459_v18 }
 0x20b   : > { %v4453_v22 = vpack.c.bf16 %v6431_v22, %v4452_v19 }
 0x20c   : > { %5891 = vst [vmem:[%s6894_s11 + $0x7f] sm:$0x1] %v4460_v20 }
 0x20d   : > { %5890 = vst [vmem:[%s6894_s11 + $0x7e] sm:$0x1] %v4453_v22 }
 0x20e   : > { %4487 = sbr.rel (%p4484_p12) target bundleno = 715 (0x2cb), region = 90  ;;  %s7163_s17 = sand.u32 (!%p4484_p12), 7, %s8018_s12  }
 0x20f   : > { %p4565_p13 = scmp.eq.s32.totalorder (!%p4484_p12), %s7163_s17, 0  ;;  %p5897_p0 = scmp.ne.s32.totalorder (!%p4484_p12), %s7163_s17, 0 }
 0x215   : > { %4568 = sbr.rel (%p5897_p0) target bundleno = 607 (0x25f), region = 105  ;;  %s4569_s18 = sshrl.u32 (!%p5897_p0), %s8018_s12, 3 }
 0x216   : > { %s7170_s19 = sshrl.u32 (!%p5897_p0), %s4569_s18, 1 }
 0x217   : > { %p5898_p1 = scmp.le.s32.totalorder (!%p5897_p0), %s7170_s19, 0 }
 0x21c   : > { %5535 = sbr.rel (%p5898_p1) target bundleno = 580 (0x244), region = 1011  ;;  %s7989_s20 = smov (!%p5898_p1), %s7029_s16 }
 0x21d   : > { %s7990_s21 = smov (!%p5898_p1), %s6894_s11  ;;  %s7179_s22 = smov (!%p5898_p1), 0  }
 0x21e   : > { %s7181_s23 = smov (!%p5898_p1), 0  }
 0x223 LB: >> { %v4582_v21 = vld [vmem:[%s6371_s21] sm:$0xff]  ;;  %v4584_v23 = vld [vmem:[%s6371_s21 + $0x8] sm:$0xff]  ;;  %s4710_s24 = sadd.s32 1, %s6375_s22  ;;  %v4592_v26 = vld [vmem:[%s6371_s21 + $0x10] sm:$0xff]  ;;  %s4576_s23 = sadd.s32 1, %s6379_s23   ;;  %s6379_s23 = sphi %s7181_s23, %s4576_s23   ;;  %s6375_s22 = sphi %s7179_s22, %s7994_s22   ;;  %s6371_s21 = sphi %s7990_s21, %s7993_s21   ;;  %s6367_s20 = sphi %s7989_s20, %s7992_s20  }
 0x224   : >> { %v4586_v24 = vld [vmem:[%s6371_s21 + $0x4] sm:$0xff]  ;;  %4583 = vst [vmem:[%s6367_s20] sm:$0xff] %v4582_v21  ;;  %4585 = vst [vmem:[%s6367_s20 + $0x8] sm:$0xff] %v4584_v23  ;;  %v4588_v25 = vld [vmem:[%s6371_s21 + $0xc] sm:$0xff]  ;;  %p7202_p2 = scmp.ge.s32.totalorder %s4710_s24, %s7170_s19  ;;  %p4575_p3 = scmp.ge.s32.totalorder %s4576_s23, %s7170_s19 }
 0x225   : >> { %v4596_v27 = vld [vmem:[%s6371_s21 + $0x14] sm:$0xff]  ;;  %4587 = vst [vmem:[%s6367_s20 + $0xb] sm:$0xff] %v4586_v24  ;;  %4589 = vst [vmem:[%s6367_s20 + $0x13] sm:$0xff] %v4588_v25  ;;  %v4604_v29 = vld [vmem:[%s6371_s21 + $0x1c] sm:$0xff] }
 0x226   : >> { %4593 = vst [vmem:[%s6367_s20 + $0x1e] sm:$0xff] %v4592_v26  ;;  %4597 = vst [vmem:[%s6367_s20 + $0x29] sm:$0xff] %v4596_v27  ;;  %v4600_v28 = vld [vmem:[%s6371_s21 + $0x18] sm:$0xff]  ;;  %v4608_v30 = vld [vmem:[%s6371_s21 + $0x20] sm:$0xff]  ;;  %s8020_s24 = smov (%p7202_p2, %s4710_s24), 0 }
 0x227   : >> { %4591 = vst [vmem:[%s6367_s20 + $0x16] sm:$0xff] %v4584_v23  ;;  %4595 = vst [vmem:[%s6367_s20 + $0x21] sm:$0xff] %v4588_v25  ;;  %v4612_v31 = vld [vmem:[%s6371_s21 + $0x24] sm:$0xff]  ;;  %v4620_v33 = vld [vmem:[%s6371_s21 + $0x2c] sm:$0xff]  ;;  %s5899_s26 = sshll.u32 %s8020_s24, 4  ;;  %s7994_s22 = smov %s8020_s24 }
 0x228   : >> { %4599 = vst [vmem:[%s6367_s20 + $0x2c] sm:$0xff] %v4592_v26  ;;  %4601 = vst [vmem:[%s6367_s20 + $0x34] sm:$0xff] %v4600_v28  ;;  %v4616_v32 = vld [vmem:[%s6371_s21 + $0x28] sm:$0xff]  ;;  %v4624_v34 = vld [vmem:[%s6371_s21 + $0x30] sm:$0xff]  ;;  %s7255_s27 = scalar_lea.vmem %s6894_s11, %s5899_s26 [#allocation3]   ;;  %s7258_s28 = scalar_lea.vmem %s7029_s16, %s5899_s26  }
 0x229   : >> { %4605 = vst [vmem:[%s6367_s20 + $0x3f] sm:$0xff] %v4604_v29  ;;  %4609 = vst [vmem:[%s6367_s20 + $0x4a] sm:$0xff] %v4608_v30  ;;  %v4628_v35 = vld [vmem:[%s6371_s21 + $0x34] sm:$0xff]  ;;  %v4636_v37 = vld [vmem:[%s6371_s21 + $0x3c] sm:$0xff] }
 0x22a   : >> { %4603 = vst [vmem:[%s6367_s20 + $0x37] sm:$0xff] %v4596_v27  ;;  %4607 = vst [vmem:[%s6367_s20 + $0x42] sm:$0xff] %v4600_v28  ;;  %v4632_v36 = vld [vmem:[%s6371_s21 + $0x38] sm:$0xff]  ;;  %v4640_v38 = vld [vmem:[%s6371_s21 + $0x40] sm:$0xff] }
 0x22b   : >> { %4611 = vst [vmem:[%s6367_s20 + $0x4d] sm:$0xff] %v4604_v29  ;;  %4613 = vst [vmem:[%s6367_s20 + $0x55] sm:$0xff] %v4612_v31  ;;  %v4644_v39 = vld [vmem:[%s6371_s21 + $0x44] sm:$0xff]  ;;  %v4652_v41 = vld [vmem:[%s6371_s21 + $0x4c] sm:$0xff] }
 0x22c   : >> { %4617 = vst [vmem:[%s6367_s20 + $0x60] sm:$0xff] %v4616_v32  ;;  %4621 = vst [vmem:[%s6367_s20 + $0x6b] sm:$0xff] %v4620_v33  ;;  %v4648_v40 = vld [vmem:[%s6371_s21 + $0x48] sm:$0xff]  ;;  %v4656_v42 = vld [vmem:[%s6371_s21 + $0x50] sm:$0xff] }
 0x22d   : >> { %4615 = vst [vmem:[%s6367_s20 + $0x58] sm:$0xff] %v4608_v30  ;;  %4619 = vst [vmem:[%s6367_s20 + $0x63] sm:$0xff] %v4612_v31  ;;  %v4660_v43 = vld [vmem:[%s6371_s21 + $0x54] sm:$0xff]  ;;  %v4668_v45 = vld [vmem:[%s6371_s21 + $0x5c] sm:$0xff] }
 0x22e   : >> { %4623 = vst [vmem:[%s6367_s20 + $0x6e] sm:$0xff] %v4616_v32  ;;  %4625 = vst [vmem:[%s6367_s20 + $0x76] sm:$0xff] %v4624_v34  ;;  %v4664_v44 = vld [vmem:[%s6371_s21 + $0x58] sm:$0xff]  ;;  %v4672_v46 = vld [vmem:[%s6371_s21 + $0x60] sm:$0xff] }
 0x22f   : >> { %4629 = vst [vmem:[%s6367_s20 + $0x81] sm:$0xff] %v4628_v35  ;;  %4633 = vst [vmem:[%s6367_s20 + $0x8c] sm:$0xff] %v4632_v36  ;;  %v4676_v47 = vld [vmem:[%s6371_s21 + $0x64] sm:$0xff]  ;;  %v4684_v49 = vld [vmem:[%s6371_s21 + $0x6c] sm:$0xff] }
 0x230   : >> { %4627 = vst [vmem:[%s6367_s20 + $0x79] sm:$0xff] %v4620_v33  ;;  %4631 = vst [vmem:[%s6367_s20 + $0x84] sm:$0xff] %v4624_v34  ;;  %v4680_v48 = vld [vmem:[%s6371_s21 + $0x68] sm:$0xff]  ;;  %v4688_v50 = vld [vmem:[%s6371_s21 + $0x70] sm:$0xff] }
 0x231   : >> { %4635 = vst [vmem:[%s6367_s20 + $0x8f] sm:$0xff] %v4628_v35  ;;  %4637 = vst [vmem:[%s6367_s20 + $0x97] sm:$0xff] %v4636_v37  ;;  %v4692_v51 = vld [vmem:[%s6371_s21 + $0x74] sm:$0xff]  ;;  %v4700_v53 = vld [vmem:[%s6371_s21 + $0x7c] sm:$0xff] }
 0x232   : >> { %4641 = vst [vmem:[%s6367_s20 + $0xa2] sm:$0xff] %v4640_v38  ;;  %4645 = vst [vmem:[%s6367_s20 + $0xad] sm:$0xff] %v4644_v39  ;;  %v4696_v52 = vld [vmem:[%s6371_s21 + $0x78] sm:$0xff]  ;;  %v4704_v54 = vld [vmem:[%s6371_s21 + $0x80] sm:$0xff] }
 0x233   : >> { %4639 = vst [vmem:[%s6367_s20 + $0x9a] sm:$0xff] %v4632_v36  ;;  %4643 = vst [vmem:[%s6367_s20 + $0xa5] sm:$0xff] %v4636_v37  ;;  %v4708_v55 = vld [vmem:[%s6371_s21 + $0x84] sm:$0xff]  ;;  %s7993_s21 = smov %s7255_s27 }
 0x234   : >> { %4647 = vst [vmem:[%s6367_s20 + $0xb0] sm:$0xff] %v4640_v38  ;;  %4649 = vst [vmem:[%s6367_s20 + $0xb8] sm:$0xff] %v4648_v40 }
 0x235   : >> { %4653 = vst [vmem:[%s6367_s20 + $0xc3] sm:$0xff] %v4652_v41  ;;  %4657 = vst [vmem:[%s6367_s20 + $0xce] sm:$0xff] %v4656_v42 }
 0x236   : >> { %4651 = vst [vmem:[%s6367_s20 + $0xbb] sm:$0xff] %v4644_v39  ;;  %4655 = vst [vmem:[%s6367_s20 + $0xc6] sm:$0xff] %v4648_v40 }
 0x237   : >> { %4659 = vst [vmem:[%s6367_s20 + $0xd1] sm:$0xff] %v4652_v41  ;;  %4661 = vst [vmem:[%s6367_s20 + $0xd9] sm:$0xff] %v4660_v43 }
 0x238   : >> { %4665 = vst [vmem:[%s6367_s20 + $0xe4] sm:$0xff] %v4664_v44  ;;  %4669 = vst [vmem:[%s6367_s20 + $0xef] sm:$0xff] %v4668_v45 }
 0x239   : >> { %4663 = vst [vmem:[%s6367_s20 + $0xdc] sm:$0xff] %v4656_v42  ;;  %4667 = vst [vmem:[%s6367_s20 + $0xe7] sm:$0xff] %v4660_v43 }
 0x23a   : >> { %4671 = vst [vmem:[%s6367_s20 + $0xf2] sm:$0xff] %v4664_v44  ;;  %4673 = vst [vmem:[%s6367_s20 + $0xfa] sm:$0xff] %v4672_v46 }
 0x23b   : >> { %4677 = vst [vmem:[%s6367_s20 + $0x105] sm:$0xff] %v4676_v47  ;;  %4681 = vst [vmem:[%s6367_s20 + $0x110] sm:$0xff] %v4680_v48 }
 0x23c   : >> { %4675 = vst [vmem:[%s6367_s20 + $0xfd] sm:$0xff] %v4668_v45  ;;  %4679 = vst [vmem:[%s6367_s20 + $0x108] sm:$0xff] %v4672_v46 }
 0x23d   : >> { %4683 = vst [vmem:[%s6367_s20 + $0x113] sm:$0xff] %v4676_v47  ;;  %4685 = vst [vmem:[%s6367_s20 + $0x11b] sm:$0xff] %v4684_v49  ;;  %4578 = sbr.rel (!%p4575_p3) target bundleno = 547 (0x223), region = 1017 }
 0x23e   : >> { %4689 = vst [vmem:[%s6367_s20 + $0x126] sm:$0xff] %v4688_v50  ;;  %4693 = vst [vmem:[%s6367_s20 + $0x131] sm:$0xff] %v4692_v51 }
 0x23f   : >> { %4687 = vst [vmem:[%s6367_s20 + $0x11e] sm:$0xff] %v4680_v48  ;;  %4691 = vst [vmem:[%s6367_s20 + $0x129] sm:$0xff] %v4684_v49 }
 0x240   : >> { %4695 = vst [vmem:[%s6367_s20 + $0x134] sm:$0xff] %v4688_v50  ;;  %4697 = vst [vmem:[%s6367_s20 + $0x13c] sm:$0xff] %v4696_v52 }
 0x241   : >> { %4701 = vst [vmem:[%s6367_s20 + $0x147] sm:$0xff] %v4700_v53  ;;  %4705 = vst [vmem:[%s6367_s20 + $0x152] sm:$0xff] %v4704_v54 }
 0x242   : >> { %4699 = vst [vmem:[%s6367_s20 + $0x13f] sm:$0xff] %v4692_v51  ;;  %4703 = vst [vmem:[%s6367_s20 + $0x14a] sm:$0xff] %v4696_v52 }
 0x243   : >> { %4707 = vst [vmem:[%s6367_s20 + $0x155] sm:$0xff] %v4700_v53  ;;  %4709 = vst [vmem:[%s6367_s20 + $0x15d] sm:$0xff] %v4708_v55  ;;  %s7992_s20 = smov %s7258_s28 }
 0x244 PF: > { %s7322_s29 = sand.u32 1, %s4569_s18   ;;  %s5923_s30 = sshll.u32 %s7170_s19, 8 }
 0x245   : > { %s4721_s2 = sshra.s32 %s5923_s30, 4  ;;  %p5904_p4 = scmp.le.s32.totalorder %s7322_s29, 0 }
 0x246   : > { %s7326_s3 = scalar_lea.vmem %s6894_s11, %s4721_s2 [#allocation3]   ;;  %s7329_s4 = scalar_lea.vmem %s7029_s16, %s4721_s2  }
 0x247   : > { %5549 = sbr.rel (%p5904_p4) target bundleno = 607 (0x25f), region = 1022  ;;  %s7995_s5 = smov (!%p5904_p4), %s7329_s4 }
 0x248   : > { %s7996_s9 = smov (!%p5904_p4), %s7326_s3  ;;  %s7338_s6 = smov (!%p5904_p4), 0  }
 0x249   : > { %s7340_s13 = smov (!%p5904_p4), 0  }
 0x24e LB: >> { %v4737_v56 = vld [vmem:[%s6387_s9] sm:$0xff]  ;;  %v4741_v58 = vld [vmem:[%s6387_s9 + $0x8] sm:$0xff]  ;;  %s4801_s14 = sadd.s32 1, %s6391_s6  ;;  %v4745_v60 = vld [vmem:[%s6387_s9 + $0x10] sm:$0xff]  ;;  %s4731_s13 = sadd.s32 1, %s6395_s13   ;;  %s6395_s13 = sphi %s7340_s13, %s4731_s13   ;;  %s6391_s6 = sphi %s7338_s6, %s7999_s6   ;;  %s6387_s9 = sphi %s7996_s9, %s7998_s9   ;;  %s6383_s5 = sphi %s7995_s5, %s7997_s5  }
 0x24f   : >> { %v4739_v57 = vld [vmem:[%s6387_s9 + $0x4] sm:$0xff]  ;;  %4738 = vst [vmem:[%s6383_s5] sm:$0xff] %v4737_v56  ;;  %4742 = vst [vmem:[%s6383_s5 + $0x16] sm:$0xff] %v4741_v58  ;;  %v4743_v59 = vld [vmem:[%s6387_s9 + $0xc] sm:$0xff]  ;;  %p4802_p5 = scmp.ge.s32.totalorder %s4801_s14, %s7322_s29  ;;  %p4730_p6 = scmp.ge.s32.totalorder %s4731_s13, %s7322_s29 }
 0x250   : >> { %4740 = vst [vmem:[%s6383_s5 + $0xb] sm:$0xff] %v4739_v57  ;;  %v4747_v61 = vld [vmem:[%s6387_s9 + $0x14] sm:$0xff]  ;;  %4744 = vst [vmem:[%s6383_s5 + $0x21] sm:$0xff] %v4743_v59  ;;  %v4751_v63 = vld [vmem:[%s6387_s9 + $0x1c] sm:$0xff] }
 0x251   : >> { %4746 = vst [vmem:[%s6383_s5 + $0x2c] sm:$0xff] %v4745_v60  ;;  %4748 = vst [vmem:[%s6383_s5 + $0x37] sm:$0xff] %v4747_v61  ;;  %v4749_v62 = vld [vmem:[%s6387_s9 + $0x18] sm:$0xff]  ;;  %v4753_v0 = vld [vmem:[%s6387_s9 + $0x20] sm:$0xff]  ;;  %s8022_s14 = smov (%p4802_p5, %s4801_s14), 0 }
 0x252   : >> { %4750 = vst [vmem:[%s6383_s5 + $0x42] sm:$0xff] %v4749_v62  ;;  %4752 = vst [vmem:[%s6383_s5 + $0x4d] sm:$0xff] %v4751_v63  ;;  %v4755_v2 = vld [vmem:[%s6387_s9 + $0x24] sm:$0xff]  ;;  %v4759_v4 = vld [vmem:[%s6387_s9 + $0x2c] sm:$0xff]  ;;  %s5905_s15 = sshll.u32 %s8022_s14, 3  ;;  %s7999_s6 = smov %s8022_s14 }
 0x253   : >> { %4754 = vst [vmem:[%s6383_s5 + $0x58] sm:$0xff] %v4753_v0  ;;  %v4757_v3 = vld [vmem:[%s6387_s9 + $0x28] sm:$0xff]  ;;  %4756 = vst [vmem:[%s6383_s5 + $0x63] sm:$0xff] %v4755_v2  ;;  %v4761_v5 = vld [vmem:[%s6387_s9 + $0x30] sm:$0xff]  ;;  %s7396_s18 = scalar_lea.vmem %s7326_s3, %s5905_s15 [#allocation3]   ;;  %s4807_s19 = scalar_lea.vmem %s7329_s4, %s5905_s15  }
 0x254   : >> { %4758 = vst [vmem:[%s6383_s5 + $0x6e] sm:$0xff] %v4757_v3  ;;  %4760 = vst [vmem:[%s6383_s5 + $0x79] sm:$0xff] %v4759_v4  ;;  %v4763_v6 = vld [vmem:[%s6387_s9 + $0x34] sm:$0xff]  ;;  %v4767_v8 = vld [vmem:[%s6387_s9 + $0x3c] sm:$0xff] }
 0x255   : >> { %v4765_v7 = vld [vmem:[%s6387_s9 + $0x38] sm:$0xff]  ;;  %4762 = vst [vmem:[%s6383_s5 + $0x84] sm:$0xff] %v4761_v5  ;;  %4764 = vst [vmem:[%s6383_s5 + $0x8f] sm:$0xff] %v4763_v6  ;;  %v4769_v9 = vld [vmem:[%s6387_s9 + $0x40] sm:$0xff] }
 0x256   : >> { %4766 = vst [vmem:[%s6383_s5 + $0x9a] sm:$0xff] %v4765_v7  ;;  %v4771_v10 = vld [vmem:[%s6387_s9 + $0x44] sm:$0xff]  ;;  %4768 = vst [vmem:[%s6383_s5 + $0xa5] sm:$0xff] %v4767_v8  ;;  %v4775_v12 = vld [vmem:[%s6387_s9 + $0x4c] sm:$0xff] }
 0x257   : >> { %4770 = vst [vmem:[%s6383_s5 + $0xb0] sm:$0xff] %v4769_v9  ;;  %4772 = vst [vmem:[%s6383_s5 + $0xbb] sm:$0xff] %v4771_v10  ;;  %v4773_v11 = vld [vmem:[%s6387_s9 + $0x48] sm:$0xff]  ;;  %v4777_v13 = vld [vmem:[%s6387_s9 + $0x50] sm:$0xff] }
 0x258   : >> { %4774 = vst [vmem:[%s6383_s5 + $0xc6] sm:$0xff] %v4773_v11  ;;  %4776 = vst [vmem:[%s6383_s5 + $0xd1] sm:$0xff] %v4775_v12  ;;  %v4779_v14 = vld [vmem:[%s6387_s9 + $0x54] sm:$0xff]  ;;  %v4783_v16 = vld [vmem:[%s6387_s9 + $0x5c] sm:$0xff]  ;;  %4733 = sbr.rel (!%p4730_p6) target bundleno = 590 (0x24e), region = 1028 }
 0x259   : >> { %4778 = vst [vmem:[%s6383_s5 + $0xdc] sm:$0xff] %v4777_v13  ;;  %v4781_v15 = vld [vmem:[%s6387_s9 + $0x58] sm:$0xff]  ;;  %4780 = vst [vmem:[%s6383_s5 + $0xe7] sm:$0xff] %v4779_v14  ;;  %v4785_v17 = vld [vmem:[%s6387_s9 + $0x60] sm:$0xff] }
 0x25a   : >> { %4782 = vst [vmem:[%s6383_s5 + $0xf2] sm:$0xff] %v4781_v15  ;;  %4784 = vst [vmem:[%s6383_s5 + $0xfd] sm:$0xff] %v4783_v16  ;;  %v4787_v18 = vld [vmem:[%s6387_s9 + $0x64] sm:$0xff]  ;;  %v4791_v20 = vld [vmem:[%s6387_s9 + $0x6c] sm:$0xff] }
 0x25b   : >> { %v4789_v19 = vld [vmem:[%s6387_s9 + $0x68] sm:$0xff]  ;;  %4786 = vst [vmem:[%s6383_s5 + $0x108] sm:$0xff] %v4785_v17  ;;  %4788 = vst [vmem:[%s6383_s5 + $0x113] sm:$0xff] %v4787_v18  ;;  %v4793_v22 = vld [vmem:[%s6387_s9 + $0x70] sm:$0xff] }
 0x25c   : >> { %4790 = vst [vmem:[%s6383_s5 + $0x11e] sm:$0xff] %v4789_v19  ;;  %v4795_v21 = vld [vmem:[%s6387_s9 + $0x74] sm:$0xff]  ;;  %4792 = vst [vmem:[%s6383_s5 + $0x129] sm:$0xff] %v4791_v20  ;;  %v4799_v24 = vld [vmem:[%s6387_s9 + $0x7c] sm:$0xff] }
 0x25d   : >> { %4794 = vst [vmem:[%s6383_s5 + $0x134] sm:$0xff] %v4793_v22  ;;  %4796 = vst [vmem:[%s6383_s5 + $0x13f] sm:$0xff] %v4795_v21  ;;  %v4797_v23 = vld [vmem:[%s6387_s9 + $0x78] sm:$0xff]  ;;  %s7998_s9 = smov %s7396_s18 }
 0x25e   : >> { %4798 = vst [vmem:[%s6383_s5 + $0x14a] sm:$0xff] %v4797_v23  ;;  %4800 = vst [vmem:[%s6383_s5 + $0x155] sm:$0xff] %v4799_v24  ;;  %s7997_s5 = smov %s4807_s19 }
 0x25f PF: > { %4810 = sbr.rel (%p4565_p13) target bundleno = 715 (0x2cb), region = 123  ;;  %s4812_s20 = ssub.s32 (!%p4565_p13), %s8018_s12, %s7163_s17 }
 0x260   : > { %s4816_s21 = sshrl.u32 (!%p4565_p13), %s8018_s12, 3  ;;  %s7442_s22 = scalar_lea.vmem (!%p4565_p13), %s6894_s11, %s4812_s20 [#allocation3] }
 0x261   : > { %s7445_s23 = scalar_lea.vmem (!%p4565_p13), %s7029_s16, %s4812_s20  ;;  %s7449_s24 = sshrl.u32 (!%p4565_p13), %s4816_s21, 1 }
 0x262   : > { %p5907_p7 = scmp.le.s32.totalorder (!%p4565_p13), %s7449_s24, 0 }
 0x266   : > { %5563 = sbr.rel (%p5907_p7) target bundleno = 654 (0x28e), region = 1033  ;;  %s8000_s25 = smov (!%p5907_p7), %s7029_s16 }
 0x267   : > { %s8001_s26 = smov (!%p5907_p7), %s6894_s11  ;;  %s7458_s27 = smov (!%p5907_p7), 0  }
 0x268   : > { %s7460_s28 = smov (!%p5907_p7), 0  }
 0x26d LB: >> { %v4829_v25 = vld [vmem:[%s6403_s26] sm:$0xff]  ;;  %v4831_v26 = vld [vmem:[%s6403_s26 + $0x8] sm:$0xff]  ;;  %s4957_s29 = sadd.s32 1, %s6407_s27  ;;  %v4839_v29 = vld [vmem:[%s6403_s26 + $0x10] sm:$0xff]  ;;  %s4823_s28 = sadd.s32 1, %s6411_s28   ;;  %s6411_s28 = sphi %s7460_s28, %s4823_s28   ;;  %s6407_s27 = sphi %s7458_s27, %s8005_s27   ;;  %s6403_s26 = sphi %s8001_s26, %s8004_s26   ;;  %s6399_s25 = sphi %s8000_s25, %s8003_s25  }
 0x26e   : >> { %v4833_v27 = vld [vmem:[%s6403_s26 + $0x4] sm:$0xff]  ;;  %4830 = vst [vmem:[%s6399_s25] sm:$0xff] %v4829_v25  ;;  %4832 = vst [vmem:[%s6399_s25 + $0x8] sm:$0xff] %v4831_v26  ;;  %v4835_v28 = vld [vmem:[%s6403_s26 + $0xc] sm:$0xff]  ;;  %p7481_p8 = scmp.ge.s32.totalorder %s4957_s29, %s7449_s24  ;;  %p4822_p9 = scmp.ge.s32.totalorder %s4823_s28, %s7449_s24 }
 0x26f   : >> { %v4843_v30 = vld [vmem:[%s6403_s26 + $0x14] sm:$0xff]  ;;  %4834 = vst [vmem:[%s6399_s25 + $0xb] sm:$0xff] %v4833_v27  ;;  %4836 = vst [vmem:[%s6399_s25 + $0x13] sm:$0xff] %v4835_v28  ;;  %v4851_v32 = vld [vmem:[%s6403_s26 + $0x1c] sm:$0xff] }
 0x270   : >> { %4840 = vst [vmem:[%s6399_s25 + $0x1e] sm:$0xff] %v4839_v29  ;;  %4844 = vst [vmem:[%s6399_s25 + $0x29] sm:$0xff] %v4843_v30  ;;  %v4847_v31 = vld [vmem:[%s6403_s26 + $0x18] sm:$0xff]  ;;  %v4855_v33 = vld [vmem:[%s6403_s26 + $0x20] sm:$0xff]  ;;  %s8024_s29 = smov (%p7481_p8, %s4957_s29), 0 }
 0x271   : >> { %4838 = vst [vmem:[%s6399_s25 + $0x16] sm:$0xff] %v4831_v26  ;;  %4842 = vst [vmem:[%s6399_s25 + $0x21] sm:$0xff] %v4835_v28  ;;  %v4859_v34 = vld [vmem:[%s6403_s26 + $0x24] sm:$0xff]  ;;  %v4867_v36 = vld [vmem:[%s6403_s26 + $0x2c] sm:$0xff]  ;;  %s5908_s2 = sshll.u32 %s8024_s29, 4  ;;  %s8005_s27 = smov %s8024_s29 }
 0x272   : >> { %4846 = vst [vmem:[%s6399_s25 + $0x2c] sm:$0xff] %v4839_v29  ;;  %4848 = vst [vmem:[%s6399_s25 + $0x34] sm:$0xff] %v4847_v31  ;;  %v4863_v35 = vld [vmem:[%s6403_s26 + $0x28] sm:$0xff]  ;;  %v4871_v37 = vld [vmem:[%s6403_s26 + $0x30] sm:$0xff]  ;;  %s7534_s3 = scalar_lea.vmem %s6894_s11, %s5908_s2 [#allocation3]   ;;  %s7537_s4 = scalar_lea.vmem %s7029_s16, %s5908_s2  }
 0x273   : >> { %4852 = vst [vmem:[%s6399_s25 + $0x3f] sm:$0xff] %v4851_v32  ;;  %4856 = vst [vmem:[%s6399_s25 + $0x4a] sm:$0xff] %v4855_v33  ;;  %v4875_v38 = vld [vmem:[%s6403_s26 + $0x34] sm:$0xff]  ;;  %v4883_v40 = vld [vmem:[%s6403_s26 + $0x3c] sm:$0xff] }
 0x274   : >> { %4850 = vst [vmem:[%s6399_s25 + $0x37] sm:$0xff] %v4843_v30  ;;  %4854 = vst [vmem:[%s6399_s25 + $0x42] sm:$0xff] %v4847_v31  ;;  %v4879_v39 = vld [vmem:[%s6403_s26 + $0x38] sm:$0xff]  ;;  %v4887_v41 = vld [vmem:[%s6403_s26 + $0x40] sm:$0xff] }
 0x275   : >> { %4858 = vst [vmem:[%s6399_s25 + $0x4d] sm:$0xff] %v4851_v32  ;;  %4860 = vst [vmem:[%s6399_s25 + $0x55] sm:$0xff] %v4859_v34  ;;  %v4891_v42 = vld [vmem:[%s6403_s26 + $0x44] sm:$0xff]  ;;  %v4899_v44 = vld [vmem:[%s6403_s26 + $0x4c] sm:$0xff] }
 0x276   : >> { %4864 = vst [vmem:[%s6399_s25 + $0x60] sm:$0xff] %v4863_v35  ;;  %4868 = vst [vmem:[%s6399_s25 + $0x6b] sm:$0xff] %v4867_v36  ;;  %v4895_v43 = vld [vmem:[%s6403_s26 + $0x48] sm:$0xff]  ;;  %v4903_v45 = vld [vmem:[%s6403_s26 + $0x50] sm:$0xff] }
 0x277   : >> { %4862 = vst [vmem:[%s6399_s25 + $0x58] sm:$0xff] %v4855_v33  ;;  %4866 = vst [vmem:[%s6399_s25 + $0x63] sm:$0xff] %v4859_v34  ;;  %v4907_v46 = vld [vmem:[%s6403_s26 + $0x54] sm:$0xff]  ;;  %v4915_v48 = vld [vmem:[%s6403_s26 + $0x5c] sm:$0xff] }
 0x278   : >> { %4870 = vst [vmem:[%s6399_s25 + $0x6e] sm:$0xff] %v4863_v35  ;;  %4872 = vst [vmem:[%s6399_s25 + $0x76] sm:$0xff] %v4871_v37  ;;  %v4911_v47 = vld [vmem:[%s6403_s26 + $0x58] sm:$0xff]  ;;  %v4919_v49 = vld [vmem:[%s6403_s26 + $0x60] sm:$0xff] }
 0x279   : >> { %4876 = vst [vmem:[%s6399_s25 + $0x81] sm:$0xff] %v4875_v38  ;;  %4880 = vst [vmem:[%s6399_s25 + $0x8c] sm:$0xff] %v4879_v39  ;;  %v4923_v50 = vld [vmem:[%s6403_s26 + $0x64] sm:$0xff]  ;;  %v4931_v52 = vld [vmem:[%s6403_s26 + $0x6c] sm:$0xff] }
 0x27a   : >> { %4874 = vst [vmem:[%s6399_s25 + $0x79] sm:$0xff] %v4867_v36  ;;  %4878 = vst [vmem:[%s6399_s25 + $0x84] sm:$0xff] %v4871_v37  ;;  %v4927_v51 = vld [vmem:[%s6403_s26 + $0x68] sm:$0xff]  ;;  %v4935_v53 = vld [vmem:[%s6403_s26 + $0x70] sm:$0xff] }
 0x27b   : >> { %4882 = vst [vmem:[%s6399_s25 + $0x8f] sm:$0xff] %v4875_v38  ;;  %4884 = vst [vmem:[%s6399_s25 + $0x97] sm:$0xff] %v4883_v40  ;;  %v4939_v54 = vld [vmem:[%s6403_s26 + $0x74] sm:$0xff]  ;;  %v4947_v56 = vld [vmem:[%s6403_s26 + $0x7c] sm:$0xff] }
 0x27c   : >> { %4888 = vst [vmem:[%s6399_s25 + $0xa2] sm:$0xff] %v4887_v41  ;;  %4892 = vst [vmem:[%s6399_s25 + $0xad] sm:$0xff] %v4891_v42  ;;  %v4943_v55 = vld [vmem:[%s6403_s26 + $0x78] sm:$0xff]  ;;  %v4951_v57 = vld [vmem:[%s6403_s26 + $0x80] sm:$0xff] }
 0x27d   : >> { %4886 = vst [vmem:[%s6399_s25 + $0x9a] sm:$0xff] %v4879_v39  ;;  %4890 = vst [vmem:[%s6399_s25 + $0xa5] sm:$0xff] %v4883_v40  ;;  %v4955_v58 = vld [vmem:[%s6403_s26 + $0x84] sm:$0xff]  ;;  %s8004_s26 = smov %s7534_s3 }
 0x27e   : >> { %4894 = vst [vmem:[%s6399_s25 + $0xb0] sm:$0xff] %v4887_v41  ;;  %4896 = vst [vmem:[%s6399_s25 + $0xb8] sm:$0xff] %v4895_v43 }
 0x27f   : >> { %4900 = vst [vmem:[%s6399_s25 + $0xc3] sm:$0xff] %v4899_v44  ;;  %4904 = vst [vmem:[%s6399_s25 + $0xce] sm:$0xff] %v4903_v45 }
 0x280   : >> { %4898 = vst [vmem:[%s6399_s25 + $0xbb] sm:$0xff] %v4891_v42  ;;  %4902 = vst [vmem:[%s6399_s25 + $0xc6] sm:$0xff] %v4895_v43 }
 0x281   : >> { %4906 = vst [vmem:[%s6399_s25 + $0xd1] sm:$0xff] %v4899_v44  ;;  %4908 = vst [vmem:[%s6399_s25 + $0xd9] sm:$0xff] %v4907_v46 }
 0x282   : >> { %4912 = vst [vmem:[%s6399_s25 + $0xe4] sm:$0xff] %v4911_v47  ;;  %4916 = vst [vmem:[%s6399_s25 + $0xef] sm:$0xff] %v4915_v48 }
 0x283   : >> { %4910 = vst [vmem:[%s6399_s25 + $0xdc] sm:$0xff] %v4903_v45  ;;  %4914 = vst [vmem:[%s6399_s25 + $0xe7] sm:$0xff] %v4907_v46 }
 0x284   : >> { %4918 = vst [vmem:[%s6399_s25 + $0xf2] sm:$0xff] %v4911_v47  ;;  %4920 = vst [vmem:[%s6399_s25 + $0xfa] sm:$0xff] %v4919_v49 }
 0x285   : >> { %4924 = vst [vmem:[%s6399_s25 + $0x105] sm:$0xff] %v4923_v50  ;;  %4928 = vst [vmem:[%s6399_s25 + $0x110] sm:$0xff] %v4927_v51 }
 0x286   : >> { %4922 = vst [vmem:[%s6399_s25 + $0xfd] sm:$0xff] %v4915_v48  ;;  %4926 = vst [vmem:[%s6399_s25 + $0x108] sm:$0xff] %v4919_v49 }
 0x287   : >> { %4930 = vst [vmem:[%s6399_s25 + $0x113] sm:$0xff] %v4923_v50  ;;  %4932 = vst [vmem:[%s6399_s25 + $0x11b] sm:$0xff] %v4931_v52  ;;  %4825 = sbr.rel (!%p4822_p9) target bundleno = 621 (0x26d), region = 1039 }
 0x288   : >> { %4936 = vst [vmem:[%s6399_s25 + $0x126] sm:$0xff] %v4935_v53  ;;  %4940 = vst [vmem:[%s6399_s25 + $0x131] sm:$0xff] %v4939_v54 }
 0x289   : >> { %4934 = vst [vmem:[%s6399_s25 + $0x11e] sm:$0xff] %v4927_v51  ;;  %4938 = vst [vmem:[%s6399_s25 + $0x129] sm:$0xff] %v4931_v52 }
 0x28a   : >> { %4942 = vst [vmem:[%s6399_s25 + $0x134] sm:$0xff] %v4935_v53  ;;  %4944 = vst [vmem:[%s6399_s25 + $0x13c] sm:$0xff] %v4943_v55 }
 0x28b   : >> { %4948 = vst [vmem:[%s6399_s25 + $0x147] sm:$0xff] %v4947_v56  ;;  %4952 = vst [vmem:[%s6399_s25 + $0x152] sm:$0xff] %v4951_v57 }
 0x28c   : >> { %4946 = vst [vmem:[%s6399_s25 + $0x13f] sm:$0xff] %v4939_v54  ;;  %4950 = vst [vmem:[%s6399_s25 + $0x14a] sm:$0xff] %v4943_v55 }
 0x28d   : >> { %4954 = vst [vmem:[%s6399_s25 + $0x155] sm:$0xff] %v4947_v56  ;;  %4956 = vst [vmem:[%s6399_s25 + $0x15d] sm:$0xff] %v4955_v58  ;;  %s8003_s25 = smov %s7537_s4 }
 0x28e PF: > { %s7601_s5 = sand.u32 1, %s4816_s21   ;;  %s5925_s9 = sshll.u32 %s7449_s24, 8 }
 0x28f   : > { %s4968_s6 = sshra.s32 %s5925_s9, 4  ;;  %p5913_p10 = scmp.le.s32.totalorder %s7601_s5, 0 }
 0x290   : > { %s7605_s13 = scalar_lea.vmem %s6894_s11, %s4968_s6 [#allocation3]   ;;  %s7608_s14 = scalar_lea.vmem %s7029_s16, %s4968_s6  }
 0x291   : > { %5577 = sbr.rel (%p5913_p10) target bundleno = 681 (0x2a9), region = 1044  ;;  %s8006_s15 = smov (!%p5913_p10), %s7608_s14 }
 0x292   : > { %s8007_s18 = smov (!%p5913_p10), %s7605_s13  ;;  %s7617_s19 = smov (!%p5913_p10), 0  }
 0x293   : > { %s7619_s20 = smov (!%p5913_p10), 0  }
 0x298 LB: >> { %v4984_v59 = vld [vmem:[%s6419_s18] sm:$0xff]  ;;  %v4988_v61 = vld [vmem:[%s6419_s18 + $0x8] sm:$0xff]  ;;  %s5048_s21 = sadd.s32 1, %s6423_s19  ;;  %v4992_v63 = vld [vmem:[%s6419_s18 + $0x10] sm:$0xff]  ;;  %s4978_s20 = sadd.s32 1, %s6427_s20   ;;  %s6427_s20 = sphi %s7619_s20, %s4978_s20   ;;  %s6423_s19 = sphi %s7617_s19, %s8010_s19   ;;  %s6419_s18 = sphi %s8007_s18, %s8009_s18   ;;  %s6415_s15 = sphi %s8006_s15, %s8008_s15  }
 0x299   : >> { %v4986_v60 = vld [vmem:[%s6419_s18 + $0x4] sm:$0xff]  ;;  %4985 = vst [vmem:[%s6415_s15] sm:$0xff] %v4984_v59  ;;  %4989 = vst [vmem:[%s6415_s15 + $0x16] sm:$0xff] %v4988_v61  ;;  %v4990_v62 = vld [vmem:[%s6419_s18 + $0xc] sm:$0xff]  ;;  %p5049_p11 = scmp.ge.s32.totalorder %s5048_s21, %s7601_s5  ;;  %p4977_p12 = scmp.ge.s32.totalorder %s4978_s20, %s7601_s5 }
 0x29a   : >> { %4987 = vst [vmem:[%s6415_s15 + $0xb] sm:$0xff] %v4986_v60  ;;  %v4994_v0 = vld [vmem:[%s6419_s18 + $0x14] sm:$0xff]  ;;  %4991 = vst [vmem:[%s6415_s15 + $0x21] sm:$0xff] %v4990_v62  ;;  %v4998_v3 = vld [vmem:[%s6419_s18 + $0x1c] sm:$0xff] }
 0x29b   : >> { %4993 = vst [vmem:[%s6415_s15 + $0x2c] sm:$0xff] %v4992_v63  ;;  %4995 = vst [vmem:[%s6415_s15 + $0x37] sm:$0xff] %v4994_v0  ;;  %v4996_v2 = vld [vmem:[%s6419_s18 + $0x18] sm:$0xff]  ;;  %v5000_v4 = vld [vmem:[%s6419_s18 + $0x20] sm:$0xff]  ;;  %s8026_s21 = smov (%p5049_p11, %s5048_s21), 0 }
 0x29c   : >> { %4997 = vst [vmem:[%s6415_s15 + $0x42] sm:$0xff] %v4996_v2  ;;  %4999 = vst [vmem:[%s6415_s15 + $0x4d] sm:$0xff] %v4998_v3  ;;  %v5002_v5 = vld [vmem:[%s6419_s18 + $0x24] sm:$0xff]  ;;  %v5006_v7 = vld [vmem:[%s6419_s18 + $0x2c] sm:$0xff]  ;;  %s5914_s24 = sshll.u32 %s8026_s21, 3  ;;  %s8010_s19 = smov %s8026_s21 }
 0x29d   : >> { %5001 = vst [vmem:[%s6415_s15 + $0x58] sm:$0xff] %v5000_v4  ;;  %v5004_v6 = vld [vmem:[%s6419_s18 + $0x28] sm:$0xff]  ;;  %5003 = vst [vmem:[%s6415_s15 + $0x63] sm:$0xff] %v5002_v5  ;;  %v5008_v8 = vld [vmem:[%s6419_s18 + $0x30] sm:$0xff]  ;;  %s7675_s25 = scalar_lea.vmem %s7605_s13, %s5914_s24 [#allocation3]   ;;  %s5054_s26 = scalar_lea.vmem %s7608_s14, %s5914_s24  }
 0x29e   : >> { %5005 = vst [vmem:[%s6415_s15 + $0x6e] sm:$0xff] %v5004_v6  ;;  %5007 = vst [vmem:[%s6415_s15 + $0x79] sm:$0xff] %v5006_v7  ;;  %v5010_v9 = vld [vmem:[%s6419_s18 + $0x34] sm:$0xff]  ;;  %v5014_v11 = vld [vmem:[%s6419_s18 + $0x3c] sm:$0xff] }
 0x29f   : >> { %v5012_v10 = vld [vmem:[%s6419_s18 + $0x38] sm:$0xff]  ;;  %5009 = vst [vmem:[%s6415_s15 + $0x84] sm:$0xff] %v5008_v8  ;;  %5011 = vst [vmem:[%s6415_s15 + $0x8f] sm:$0xff] %v5010_v9  ;;  %v5016_v12 = vld [vmem:[%s6419_s18 + $0x40] sm:$0xff] }
 0x2a0   : >> { %5013 = vst [vmem:[%s6415_s15 + $0x9a] sm:$0xff] %v5012_v10  ;;  %v5018_v13 = vld [vmem:[%s6419_s18 + $0x44] sm:$0xff]  ;;  %5015 = vst [vmem:[%s6415_s15 + $0xa5] sm:$0xff] %v5014_v11  ;;  %v5022_v15 = vld [vmem:[%s6419_s18 + $0x4c] sm:$0xff] }
 0x2a1   : >> { %5017 = vst [vmem:[%s6415_s15 + $0xb0] sm:$0xff] %v5016_v12  ;;  %5019 = vst [vmem:[%s6415_s15 + $0xbb] sm:$0xff] %v5018_v13  ;;  %v5020_v14 = vld [vmem:[%s6419_s18 + $0x48] sm:$0xff]  ;;  %v5024_v16 = vld [vmem:[%s6419_s18 + $0x50] sm:$0xff] }
 0x2a2   : >> { %5021 = vst [vmem:[%s6415_s15 + $0xc6] sm:$0xff] %v5020_v14  ;;  %5023 = vst [vmem:[%s6415_s15 + $0xd1] sm:$0xff] %v5022_v15  ;;  %v5026_v17 = vld [vmem:[%s6419_s18 + $0x54] sm:$0xff]  ;;  %v5030_v19 = vld [vmem:[%s6419_s18 + $0x5c] sm:$0xff]  ;;  %4980 = sbr.rel (!%p4977_p12) target bundleno = 664 (0x298), region = 1050 }
 0x2a3   : >> { %5025 = vst [vmem:[%s6415_s15 + $0xdc] sm:$0xff] %v5024_v16  ;;  %v5028_v18 = vld [vmem:[%s6419_s18 + $0x58] sm:$0xff]  ;;  %5027 = vst [vmem:[%s6415_s15 + $0xe7] sm:$0xff] %v5026_v17  ;;  %v5032_v20 = vld [vmem:[%s6419_s18 + $0x60] sm:$0xff] }
 0x2a4   : >> { %5029 = vst [vmem:[%s6415_s15 + $0xf2] sm:$0xff] %v5028_v18  ;;  %5031 = vst [vmem:[%s6415_s15 + $0xfd] sm:$0xff] %v5030_v19  ;;  %v5034_v22 = vld [vmem:[%s6419_s18 + $0x64] sm:$0xff]  ;;  %v5038_v23 = vld [vmem:[%s6419_s18 + $0x6c] sm:$0xff] }
 0x2a5   : >> { %v5036_v21 = vld [vmem:[%s6419_s18 + $0x68] sm:$0xff]  ;;  %5033 = vst [vmem:[%s6415_s15 + $0x108] sm:$0xff] %v5032_v20  ;;  %5035 = vst [vmem:[%s6415_s15 + $0x113] sm:$0xff] %v5034_v22  ;;  %v5040_v24 = vld [vmem:[%s6419_s18 + $0x70] sm:$0xff] }
 0x2a6   : >> { %5037 = vst [vmem:[%s6415_s15 + $0x11e] sm:$0xff] %v5036_v21  ;;  %v5042_v25 = vld [vmem:[%s6419_s18 + $0x74] sm:$0xff]  ;;  %5039 = vst [vmem:[%s6415_s15 + $0x129] sm:$0xff] %v5038_v23  ;;  %v5046_v27 = vld [vmem:[%s6419_s18 + $0x7c] sm:$0xff] }
 0x2a7   : >> { %5041 = vst [vmem:[%s6415_s15 + $0x134] sm:$0xff] %v5040_v24  ;;  %5043 = vst [vmem:[%s6415_s15 + $0x13f] sm:$0xff] %v5042_v25  ;;  %v5044_v26 = vld [vmem:[%s6419_s18 + $0x78] sm:$0xff]  ;;  %s8009_s18 = smov %s7675_s25 }
 0x2a8   : >> { %5045 = vst [vmem:[%s6415_s15 + $0x14a] sm:$0xff] %v5044_v26  ;;  %5047 = vst [vmem:[%s6415_s15 + $0x155] sm:$0xff] %v5046_v27  ;;  %s8008_s15 = smov %s5054_s26 }
 0x2a9 PF: > { %s6432_s27 = smov 0  }
 0x2aa   : > { %s7716_s17 = sshllo.u32 %s6432_s27, %s7163_s17 }
 0x2ab   : > { %v5064_v28 = vld [vmem:[%s7442_s22] sm:%s7716_s17]  ;;  %v5068_v30 = vld [vmem:[%s7442_s22 + $0x8] sm:%s7716_s17] }
 0x2ac   : > { %v5066_v29 = vld [vmem:[%s7442_s22 + $0x4] sm:%s7716_s17]  ;;  %5065 = vst [vmem:[%s7445_s23] sm:%s7716_s17] %v5064_v28 }
 0x2ad   : > { %5067 = vst [vmem:[%s7445_s23 + $0xb] sm:%s7716_s17] %v5066_v29  ;;  %v5070_v31 = vld [vmem:[%s7442_s22 + $0xc] sm:%s7716_s17] }
 0x2ae   : > { %5069 = vst [vmem:[%s7445_s23 + $0x16] sm:%s7716_s17] %v5068_v30  ;;  %5071 = vst [vmem:[%s7445_s23 + $0x21] sm:%s7716_s17] %v5070_v31 }
 0x2af   : > { %v5072_v32 = vld [vmem:[%s7442_s22 + $0x10] sm:%s7716_s17]  ;;  %v5076_v34 = vld [vmem:[%s7442_s22 + $0x18] sm:%s7716_s17] }
 0x2b0   : > { %v5074_v33 = vld [vmem:[%s7442_s22 + $0x14] sm:%s7716_s17]  ;;  %5073 = vst [vmem:[%s7445_s23 + $0x2c] sm:%s7716_s17] %v5072_v32 }
 0x2b1   : > { %5075 = vst [vmem:[%s7445_s23 + $0x37] sm:%s7716_s17] %v5074_v33  ;;  %v5078_v35 = vld [vmem:[%s7442_s22 + $0x1c] sm:%s7716_s17] }
 0x2b2   : > { %5077 = vst [vmem:[%s7445_s23 + $0x42] sm:%s7716_s17] %v5076_v34  ;;  %5079 = vst [vmem:[%s7445_s23 + $0x4d] sm:%s7716_s17] %v5078_v35 }
 0x2b3   : > { %v5080_v36 = vld [vmem:[%s7442_s22 + $0x20] sm:%s7716_s17]  ;;  %v5084_v38 = vld [vmem:[%s7442_s22 + $0x28] sm:%s7716_s17] }
 0x2b4   : > { %v5082_v37 = vld [vmem:[%s7442_s22 + $0x24] sm:%s7716_s17]  ;;  %5081 = vst [vmem:[%s7445_s23 + $0x58] sm:%s7716_s17] %v5080_v36 }
 0x2b5   : > { %5083 = vst [vmem:[%s7445_s23 + $0x63] sm:%s7716_s17] %v5082_v37  ;;  %v5086_v39 = vld [vmem:[%s7442_s22 + $0x2c] sm:%s7716_s17] }
 0x2b6   : > { %5085 = vst [vmem:[%s7445_s23 + $0x6e] sm:%s7716_s17] %v5084_v38  ;;  %5087 = vst [vmem:[%s7445_s23 + $0x79] sm:%s7716_s17] %v5086_v39 }
 0x2b7   : > { %v5088_v40 = vld [vmem:[%s7442_s22 + $0x30] sm:%s7716_s17]  ;;  %v5092_v42 = vld [vmem:[%s7442_s22 + $0x38] sm:%s7716_s17] }
 0x2b8   : > { %v5090_v41 = vld [vmem:[%s7442_s22 + $0x34] sm:%s7716_s17]  ;;  %5089 = vst [vmem:[%s7445_s23 + $0x84] sm:%s7716_s17] %v5088_v40 }
 0x2b9   : > { %5091 = vst [vmem:[%s7445_s23 + $0x8f] sm:%s7716_s17] %v5090_v41  ;;  %v5094_v43 = vld [vmem:[%s7442_s22 + $0x3c] sm:%s7716_s17] }
 0x2ba   : > { %5093 = vst [vmem:[%s7445_s23 + $0x9a] sm:%s7716_s17] %v5092_v42  ;;  %5095 = vst [vmem:[%s7445_s23 + $0xa5] sm:%s7716_s17] %v5094_v43 }
 0x2bb   : > { %v5096_v44 = vld [vmem:[%s7442_s22 + $0x40] sm:%s7716_s17]  ;;  %v5100_v46 = vld [vmem:[%s7442_s22 + $0x48] sm:%s7716_s17] }
 0x2bc   : > { %v5098_v45 = vld [vmem:[%s7442_s22 + $0x44] sm:%s7716_s17]  ;;  %5097 = vst [vmem:[%s7445_s23 + $0xb0] sm:%s7716_s17] %v5096_v44 }
 0x2bd   : > { %5099 = vst [vmem:[%s7445_s23 + $0xbb] sm:%s7716_s17] %v5098_v45  ;;  %v5102_v47 = vld [vmem:[%s7442_s22 + $0x4c] sm:%s7716_s17] }
 0x2be   : > { %5101 = vst [vmem:[%s7445_s23 + $0xc6] sm:%s7716_s17] %v5100_v46  ;;  %5103 = vst [vmem:[%s7445_s23 + $0xd1] sm:%s7716_s17] %v5102_v47 }
 0x2bf   : > { %v5104_v48 = vld [vmem:[%s7442_s22 + $0x50] sm:%s7716_s17]  ;;  %v5108_v50 = vld [vmem:[%s7442_s22 + $0x58] sm:%s7716_s17] }
 0x2c0   : > { %v5106_v49 = vld [vmem:[%s7442_s22 + $0x54] sm:%s7716_s17]  ;;  %5105 = vst [vmem:[%s7445_s23 + $0xdc] sm:%s7716_s17] %v5104_v48 }
 0x2c1   : > { %5107 = vst [vmem:[%s7445_s23 + $0xe7] sm:%s7716_s17] %v5106_v49  ;;  %v5110_v51 = vld [vmem:[%s7442_s22 + $0x5c] sm:%s7716_s17] }
 0x2c2   : > { %5109 = vst [vmem:[%s7445_s23 + $0xf2] sm:%s7716_s17] %v5108_v50  ;;  %5111 = vst [vmem:[%s7445_s23 + $0xfd] sm:%s7716_s17] %v5110_v51 }
 0x2c3   : > { %v5112_v52 = vld [vmem:[%s7442_s22 + $0x60] sm:%s7716_s17]  ;;  %v5116_v54 = vld [vmem:[%s7442_s22 + $0x68] sm:%s7716_s17] }
 0x2c4   : > { %v5114_v53 = vld [vmem:[%s7442_s22 + $0x64] sm:%s7716_s17]  ;;  %5113 = vst [vmem:[%s7445_s23 + $0x108] sm:%s7716_s17] %v5112_v52 }
 0x2c5   : > { %5115 = vst [vmem:[%s7445_s23 + $0x113] sm:%s7716_s17] %v5114_v53  ;;  %v5118_v55 = vld [vmem:[%s7442_s22 + $0x6c] sm:%s7716_s17] }
 0x2c6   : > { %5117 = vst [vmem:[%s7445_s23 + $0x11e] sm:%s7716_s17] %v5116_v54  ;;  %5119 = vst [vmem:[%s7445_s23 + $0x129] sm:%s7716_s17] %v5118_v55 }
 0x2c7   : > { %v5120_v56 = vld [vmem:[%s7442_s22 + $0x70] sm:%s7716_s17]  ;;  %v5124_v58 = vld [vmem:[%s7442_s22 + $0x78] sm:%s7716_s17] }
 0x2c8   : > { %v5122_v57 = vld [vmem:[%s7442_s22 + $0x74] sm:%s7716_s17]  ;;  %5121 = vst [vmem:[%s7445_s23 + $0x134] sm:%s7716_s17] %v5120_v56 }
 0x2c9   : > { %5123 = vst [vmem:[%s7445_s23 + $0x13f] sm:%s7716_s17] %v5122_v57  ;;  %v5126_v59 = vld [vmem:[%s7442_s22 + $0x7c] sm:%s7716_s17] }
 0x2ca   : > { %5125 = vst [vmem:[%s7445_s23 + $0x14a] sm:%s7716_s17] %v5124_v58  ;;  %5127 = vst [vmem:[%s7445_s23 + $0x155] sm:%s7716_s17] %v5126_v59 }
 0x2cb PF: > { %p5916_p13 = scmp.ge.u32.totalorder %s8018_s12, 8 }
 0x2cc   : > { %s6433_s22 = smov (!%p5916_p13), 0  }
 0x2cd   : > { %4490 = sbr.rel (%p5916_p13) target bundleno = 750 (0x2ee), region = 94  ;;  %s7848_s12 = sshllo.u32 (!%p5916_p13), %s6433_s22, %s8018_s12 }
 0x2ce   : > { %v4500_v60 = vld [vmem:[%s6894_s11] sm:%s7848_s12] (!%p5916_p13)  ;;  %v4504_v62 = vld [vmem:[%s6894_s11 + $0x8] sm:%s7848_s12] (!%p5916_p13) }
 0x2cf   : > { %v4502_v61 = vld [vmem:[%s6894_s11 + $0x4] sm:%s7848_s12] (!%p5916_p13)  ;;  %4501 = vst [vmem:[%s7029_s16] sm:%s7848_s12] (!%p5916_p13), %v4500_v60 }
 0x2d0   : > { %4503 = vst [vmem:[%s7029_s16 + $0xb] sm:%s7848_s12] (!%p5916_p13), %v4502_v61  ;;  %v4506_v63 = vld [vmem:[%s6894_s11 + $0xc] sm:%s7848_s12] (!%p5916_p13) }
 0x2d1   : > { %4505 = vst [vmem:[%s7029_s16 + $0x16] sm:%s7848_s12] (!%p5916_p13), %v4504_v62  ;;  %4507 = vst [vmem:[%s7029_s16 + $0x21] sm:%s7848_s12] (!%p5916_p13), %v4506_v63 }
 0x2d2   : > { %v4508_v0 = vld [vmem:[%s6894_s11 + $0x10] sm:%s7848_s12] (!%p5916_p13)  ;;  %v4512_v3 = vld [vmem:[%s6894_s11 + $0x18] sm:%s7848_s12] (!%p5916_p13) }
 0x2d3   : > { %v4510_v2 = vld [vmem:[%s6894_s11 + $0x14] sm:%s7848_s12] (!%p5916_p13)  ;;  %4509 = vst [vmem:[%s7029_s16 + $0x2c] sm:%s7848_s12] (!%p5916_p13), %v4508_v0 }
 0x2d4   : > { %4511 = vst [vmem:[%s7029_s16 + $0x37] sm:%s7848_s12] %v4510_v2  ;;  %v4514_v4 = vld [vmem:[%s6894_s11 + $0x1c] sm:%s7848_s12] }
 0x2d5   : > { %4513 = vst [vmem:[%s7029_s16 + $0x42] sm:%s7848_s12] %v4512_v3  ;;  %4515 = vst [vmem:[%s7029_s16 + $0x4d] sm:%s7848_s12] %v4514_v4 }
 0x2d6   : > { %v4516_v5 = vld [vmem:[%s6894_s11 + $0x20] sm:%s7848_s12]  ;;  %v4520_v7 = vld [vmem:[%s6894_s11 + $0x28] sm:%s7848_s12] }
 0x2d7   : > { %v4518_v6 = vld [vmem:[%s6894_s11 + $0x24] sm:%s7848_s12]  ;;  %4517 = vst [vmem:[%s7029_s16 + $0x58] sm:%s7848_s12] %v4516_v5 }
 0x2d8   : > { %4519 = vst [vmem:[%s7029_s16 + $0x63] sm:%s7848_s12] %v4518_v6  ;;  %v4522_v8 = vld [vmem:[%s6894_s11 + $0x2c] sm:%s7848_s12] }
 0x2d9   : > { %4521 = vst [vmem:[%s7029_s16 + $0x6e] sm:%s7848_s12] %v4520_v7  ;;  %4523 = vst [vmem:[%s7029_s16 + $0x79] sm:%s7848_s12] %v4522_v8 }
 0x2da   : > { %v4524_v9 = vld [vmem:[%s6894_s11 + $0x30] sm:%s7848_s12]  ;;  %v4528_v11 = vld [vmem:[%s6894_s11 + $0x38] sm:%s7848_s12] }
 0x2db   : > { %v4526_v10 = vld [vmem:[%s6894_s11 + $0x34] sm:%s7848_s12]  ;;  %4525 = vst [vmem:[%s7029_s16 + $0x84] sm:%s7848_s12] %v4524_v9 }
 0x2dc   : > { %4527 = vst [vmem:[%s7029_s16 + $0x8f] sm:%s7848_s12] %v4526_v10  ;;  %v4530_v12 = vld [vmem:[%s6894_s11 + $0x3c] sm:%s7848_s12] }
 0x2dd   : > { %4529 = vst [vmem:[%s7029_s16 + $0x9a] sm:%s7848_s12] %v4528_v11  ;;  %4531 = vst [vmem:[%s7029_s16 + $0xa5] sm:%s7848_s12] %v4530_v12 }
 0x2de   : > { %v4532_v13 = vld [vmem:[%s6894_s11 + $0x40] sm:%s7848_s12]  ;;  %v4536_v15 = vld [vmem:[%s6894_s11 + $0x48] sm:%s7848_s12] }
 0x2df   : > { %v4534_v14 = vld [vmem:[%s6894_s11 + $0x44] sm:%s7848_s12]  ;;  %4533 = vst [vmem:[%s7029_s16 + $0xb0] sm:%s7848_s12] %v4532_v13 }
 0x2e0   : > { %4535 = vst [vmem:[%s7029_s16 + $0xbb] sm:%s7848_s12] %v4534_v14  ;;  %v4538_v16 = vld [vmem:[%s6894_s11 + $0x4c] sm:%s7848_s12] }
 0x2e1   : > { %4537 = vst [vmem:[%s7029_s16 + $0xc6] sm:%s7848_s12] %v4536_v15  ;;  %4539 = vst [vmem:[%s7029_s16 + $0xd1] sm:%s7848_s12] %v4538_v16 }
 0x2e2   : > { %v4540_v17 = vld [vmem:[%s6894_s11 + $0x50] sm:%s7848_s12]  ;;  %v4544_v19 = vld [vmem:[%s6894_s11 + $0x58] sm:%s7848_s12] }
 0x2e3   : > { %v4542_v18 = vld [vmem:[%s6894_s11 + $0x54] sm:%s7848_s12]  ;;  %4541 = vst [vmem:[%s7029_s16 + $0xdc] sm:%s7848_s12] %v4540_v17 }
 0x2e4   : > { %4543 = vst [vmem:[%s7029_s16 + $0xe7] sm:%s7848_s12] %v4542_v18  ;;  %v4546_v20 = vld [vmem:[%s6894_s11 + $0x5c] sm:%s7848_s12] }
 0x2e5   : > { %4545 = vst [vmem:[%s7029_s16 + $0xf2] sm:%s7848_s12] %v4544_v19  ;;  %4547 = vst [vmem:[%s7029_s16 + $0xfd] sm:%s7848_s12] %v4546_v20 }
 0x2e6   : > { %v4548_v22 = vld [vmem:[%s6894_s11 + $0x60] sm:%s7848_s12]  ;;  %v4552_v23 = vld [vmem:[%s6894_s11 + $0x68] sm:%s7848_s12] }
 0x2e7   : > { %v4550_v21 = vld [vmem:[%s6894_s11 + $0x64] sm:%s7848_s12]  ;;  %4549 = vst [vmem:[%s7029_s16 + $0x108] sm:%s7848_s12] %v4548_v22 }
 0x2e8   : > { %4551 = vst [vmem:[%s7029_s16 + $0x113] sm:%s7848_s12] %v4550_v21  ;;  %v4554_v24 = vld [vmem:[%s6894_s11 + $0x6c] sm:%s7848_s12] }
 0x2e9   : > { %4553 = vst [vmem:[%s7029_s16 + $0x11e] sm:%s7848_s12] %v4552_v23  ;;  %4555 = vst [vmem:[%s7029_s16 + $0x129] sm:%s7848_s12] %v4554_v24 }
 0x2ea   : > { %v4556_v25 = vld [vmem:[%s6894_s11 + $0x70] sm:%s7848_s12]  ;;  %v4560_v27 = vld [vmem:[%s6894_s11 + $0x78] sm:%s7848_s12] }
 0x2eb   : > { %v4558_v26 = vld [vmem:[%s6894_s11 + $0x74] sm:%s7848_s12]  ;;  %4557 = vst [vmem:[%s7029_s16 + $0x134] sm:%s7848_s12] %v4556_v25 }
 0x2ec   : > { %4559 = vst [vmem:[%s7029_s16 + $0x13f] sm:%s7848_s12] %v4558_v26  ;;  %v4562_v28 = vld [vmem:[%s6894_s11 + $0x7c] sm:%s7848_s12] }
 0x2ed   : > { %4561 = vst [vmem:[%s7029_s16 + $0x14a] sm:%s7848_s12] %v4560_v27  ;;  %4563 = vst [vmem:[%s7029_s16 + $0x155] sm:%s7848_s12] %v4562_v28 }
 0x2ee PF: > { %s10_s8 = sadd.s32 1, %s6363_s8   ;;  %s8011_s6 = smov %s6359_s7 }
 0x2ef   : > { %p7_p0 = scmp.ge.s32.totalorder %s10_s8, 5   ;;  %s8012_s7 = smov %s8014_s10 }
 0x2f1   :  { %9 = sbr.rel (!%p7_p0) target bundleno = 7 (0x7), region = 1061 }

// kernel: reverse.1
= control target key start
LH: loop header
LB: loop body
LE: loop exit
PB: predicated region body
PF: predicated region fallthrough
CT: control target
= control target key end

     0   :  { %s13868_s0 = inlined_call_operand.vmem [shape: bf16[32,32,21,11], index: 0, kind: input, shape index: {}]   ;;  %s13869_s1 = inlined_call_operand.vmem [shape: bf16[32,32,21,11], index: 1, kind: output, shape index: {}]  }
   0x1   :  { %v6468_v0 = vld [vmem:[%s13868_s0 + $0xe60] sm:$0xf]  ;;  %v6469_v1 = vld [vmem:[%s13868_s0 + $0xdb0] sm:$0xf] }
   0x2   :  { %v6471_v2 = vld [vmem:[%s13868_s0 + $0xd00] sm:$0xf]  ;;  %7 = vst [vmem:[%s13869_s1] sm:$0xf] %v6468_v0  ;;  %6470 = vst [vmem:[%s13869_s1 + $0xb0] sm:$0xf] %v6469_v1 }
   0x3   :  { %6472 = vst [vmem:[%s13869_s1 + $0x160] sm:$0xf] %v6471_v2  ;;  %v6473_v3 = vld [vmem:[%s13868_s0 + $0xc50] sm:$0xf]  ;;  %v6475_v4 = vld [vmem:[%s13868_s0 + $0xba0] sm:$0xf] }
   0x4   :  { %v6477_v5 = vld [vmem:[%s13868_s0 + $0xaf0] sm:$0xf]  ;;  %6474 = vst [vmem:[%s13869_s1 + $0x210] sm:$0xf] %v6473_v3  ;;  %6476 = vst [vmem:[%s13869_s1 + $0x2c0] sm:$0xf] %v6475_v4 }
   0x5   :  { %6478 = vst [vmem:[%s13869_s1 + $0x370] sm:$0xf] %v6477_v5  ;;  %v6479_v6 = vld [vmem:[%s13868_s0 + $0xa40] sm:$0xf]  ;;  %v6481_v7 = vld [vmem:[%s13868_s0 + $0x990] sm:$0xf] }
   0x6   :  { %v6483_v8 = vld [vmem:[%s13868_s0 + $0x8e0] sm:$0xf]  ;;  %6480 = vst [vmem:[%s13869_s1 + $0x420] sm:$0xf] %v6479_v6  ;;  %6482 = vst [vmem:[%s13869_s1 + $0x4d0] sm:$0xf] %v6481_v7 }
   0x7   :  { %6484 = vst [vmem:[%s13869_s1 + $0x580] sm:$0xf] %v6483_v8  ;;  %v6485_v9 = vld [vmem:[%s13868_s0 + $0x830] sm:$0xf]  ;;  %v6487_v10 = vld [vmem:[%s13868_s0 + $0x780] sm:$0xf] }
   0x8   :  { %v6489_v11 = vld [vmem:[%s13868_s0 + $0x6d0] sm:$0xf]  ;;  %6486 = vst [vmem:[%s13869_s1 + $0x630] sm:$0xf] %v6485_v9  ;;  %6488 = vst [vmem:[%s13869_s1 + $0x6e0] sm:$0xf] %v6487_v10 }
   0x9   :  { %6490 = vst [vmem:[%s13869_s1 + $0x790] sm:$0xf] %v6489_v11  ;;  %v6491_v12 = vld [vmem:[%s13868_s0 + $0x620] sm:$0xf]  ;;  %v6493_v13 = vld [vmem:[%s13868_s0 + $0x570] sm:$0xf] }
   0xa   :  { %v6495_v14 = vld [vmem:[%s13868_s0 + $0x4c0] sm:$0xf]  ;;  %6492 = vst [vmem:[%s13869_s1 + $0x840] sm:$0xf] %v6491_v12  ;;  %6494 = vst [vmem:[%s13869_s1 + $0x8f0] sm:$0xf] %v6493_v13 }
   0xb   :  { %6496 = vst [vmem:[%s13869_s1 + $0x9a0] sm:$0xf] %v6495_v14  ;;  %v6497_v15 = vld [vmem:[%s13868_s0 + $0x410] sm:$0xf]  ;;  %v6499_v16 = vld [vmem:[%s13868_s0 + $0x360] sm:$0xf] }
   0xc   :  { %v6501_v17 = vld [vmem:[%s13868_s0 + $0x2b0] sm:$0xf]  ;;  %6498 = vst [vmem:[%s13869_s1 + $0xa50] sm:$0xf] %v6497_v15  ;;  %6500 = vst [vmem:[%s13869_s1 + $0xb00] sm:$0xf] %v6499_v16 }
   0xd   :  { %6502 = vst [vmem:[%s13869_s1 + $0xbb0] sm:$0xf] %v6501_v17  ;;  %v6503_v18 = vld [vmem:[%s13868_s0 + $0x200] sm:$0xf]  ;;  %v6505_v19 = vld [vmem:[%s13868_s0 + $0x150] sm:$0xf] }
   0xe   :  { %v6507_v20 = vld [vmem:[%s13868_s0 + $0xa0] sm:$0xf]  ;;  %6504 = vst [vmem:[%s13869_s1 + $0xc60] sm:$0xf] %v6503_v18  ;;  %6506 = vst [vmem:[%s13869_s1 + $0xd10] sm:$0xf] %v6505_v19 }
   0xf   :  { %6508 = vst [vmem:[%s13869_s1 + $0xdc0] sm:$0xf] %v6507_v20  ;;  %v6509_v21 = vld [vmem:[%s13868_s0 + $0xe50] sm:$0xf]  ;;  %v6511_v22 = vld [vmem:[%s13868_s0 + $0xda0] sm:$0xf] }
  0x10   :  { %v6513_v23 = vld [vmem:[%s13868_s0 + $0xcf0] sm:$0xf]  ;;  %6510 = vst [vmem:[%s13869_s1 + $0x10] sm:$0xf] %v6509_v21  ;;  %6512 = vst [vmem:[%s13869_s1 + $0xc0] sm:$0xf] %v6511_v22 }
  0x11   :  { %6514 = vst [vmem:[%s13869_s1 + $0x170] sm:$0xf] %v6513_v23  ;;  %v6515_v24 = vld [vmem:[%s13868_s0 + $0xc40] sm:$0xf]  ;;  %v6517_v25 = vld [vmem:[%s13868_s0 + $0xb90] sm:$0xf] }
  0x12   :  { %v6519_v26 = vld [vmem:[%s13868_s0 + $0xae0] sm:$0xf]  ;;  %6516 = vst [vmem:[%s13869_s1 + $0x220] sm:$0xf] %v6515_v24  ;;  %6518 = vst [vmem:[%s13869_s1 + $0x2d0] sm:$0xf] %v6517_v25 }
  0x13   :  { %6520 = vst [vmem:[%s13869_s1 + $0x380] sm:$0xf] %v6519_v26  ;;  %v6521_v27 = vld [vmem:[%s13868_s0 + $0xa30] sm:$0xf]  ;;  %v6523_v28 = vld [vmem:[%s13868_s0 + $0x980] sm:$0xf] }
  0x14   :  { %v6525_v29 = vld [vmem:[%s13868_s0 + $0x8d0] sm:$0xf]  ;;  %6522 = vst [vmem:[%s13869_s1 + $0x430] sm:$0xf] %v6521_v27  ;;  %6524 = vst [vmem:[%s13869_s1 + $0x4e0] sm:$0xf] %v6523_v28 }
  0x15   :  { %6526 = vst [vmem:[%s13869_s1 + $0x590] sm:$0xf] %v6525_v29  ;;  %v6527_v30 = vld [vmem:[%s13868_s0 + $0x820] sm:$0xf]  ;;  %v6529_v31 = vld [vmem:[%s13868_s0 + $0x770] sm:$0xf] }
  0x16   :  { %v6531_v32 = vld [vmem:[%s13868_s0 + $0x6c0] sm:$0xf]  ;;  %6528 = vst [vmem:[%s13869_s1 + $0x640] sm:$0xf] %v6527_v30  ;;  %6530 = vst [vmem:[%s13869_s1 + $0x6f0] sm:$0xf] %v6529_v31 }
  0x17   :  { %6532 = vst [vmem:[%s13869_s1 + $0x7a0] sm:$0xf] %v6531_v32  ;;  %v6533_v33 = vld [vmem:[%s13868_s0 + $0x610] sm:$0xf]  ;;  %v6535_v34 = vld [vmem:[%s13868_s0 + $0x560] sm:$0xf] }
  0x18   :  { %v6537_v35 = vld [vmem:[%s13868_s0 + $0x4b0] sm:$0xf]  ;;  %6534 = vst [vmem:[%s13869_s1 + $0x850] sm:$0xf] %v6533_v33  ;;  %6536 = vst [vmem:[%s13869_s1 + $0x900] sm:$0xf] %v6535_v34 }
  0x19   :  { %6538 = vst [vmem:[%s13869_s1 + $0x9b0] sm:$0xf] %v6537_v35  ;;  %v6539_v36 = vld [vmem:[%s13868_s0 + $0x400] sm:$0xf]  ;;  %v6541_v37 = vld [vmem:[%s13868_s0 + $0x350] sm:$0xf] }
  0x1a   :  { %v6543_v38 = vld [vmem:[%s13868_s0 + $0x2a0] sm:$0xf]  ;;  %6540 = vst [vmem:[%s13869_s1 + $0xa60] sm:$0xf] %v6539_v36  ;;  %6542 = vst [vmem:[%s13869_s1 + $0xb10] sm:$0xf] %v6541_v37 }
  0x1b   :  { %6544 = vst [vmem:[%s13869_s1 + $0xbc0] sm:$0xf] %v6543_v38  ;;  %v6545_v39 = vld [vmem:[%s13868_s0 + $0x1f0] sm:$0xf]  ;;  %v6547_v40 = vld [vmem:[%s13868_s0 + $0x140] sm:$0xf] }
  0x1c   :  { %v6549_v41 = vld [vmem:[%s13868_s0 + $0x90] sm:$0xf]  ;;  %6546 = vst [vmem:[%s13869_s1 + $0xc70] sm:$0xf] %v6545_v39  ;;  %6548 = vst [vmem:[%s13869_s1 + $0xd20] sm:$0xf] %v6547_v40 }
  0x1d   :  { %6550 = vst [vmem:[%s13869_s1 + $0xdd0] sm:$0xf] %v6549_v41  ;;  %v6551_v42 = vld [vmem:[%s13868_s0 + $0xe40] sm:$0xf]  ;;  %v6553_v43 = vld [vmem:[%s13868_s0 + $0xd90] sm:$0xf] }
  0x1e   :  { %v6555_v44 = vld [vmem:[%s13868_s0 + $0xce0] sm:$0xf]  ;;  %6552 = vst [vmem:[%s13869_s1 + $0x20] sm:$0xf] %v6551_v42  ;;  %6554 = vst [vmem:[%s13869_s1 + $0xd0] sm:$0xf] %v6553_v43 }
  0x1f   :  { %6556 = vst [vmem:[%s13869_s1 + $0x180] sm:$0xf] %v6555_v44  ;;  %v6557_v45 = vld [vmem:[%s13868_s0 + $0xc30] sm:$0xf]  ;;  %v6559_v46 = vld [vmem:[%s13868_s0 + $0xb80] sm:$0xf] }
  0x20   :  { %v6561_v47 = vld [vmem:[%s13868_s0 + $0xad0] sm:$0xf]  ;;  %6558 = vst [vmem:[%s13869_s1 + $0x230] sm:$0xf] %v6557_v45  ;;  %6560 = vst [vmem:[%s13869_s1 + $0x2e0] sm:$0xf] %v6559_v46 }
  0x21   :  { %6562 = vst [vmem:[%s13869_s1 + $0x390] sm:$0xf] %v6561_v47  ;;  %v6563_v48 = vld [vmem:[%s13868_s0 + $0xa20] sm:$0xf]  ;;  %v6565_v49 = vld [vmem:[%s13868_s0 + $0x970] sm:$0xf] }
  0x22   :  { %v6567_v50 = vld [vmem:[%s13868_s0 + $0x8c0] sm:$0xf]  ;;  %6564 = vst [vmem:[%s13869_s1 + $0x440] sm:$0xf] %v6563_v48  ;;  %6566 = vst [vmem:[%s13869_s1 + $0x4f0] sm:$0xf] %v6565_v49 }
  0x23   :  { %6568 = vst [vmem:[%s13869_s1 + $0x5a0] sm:$0xf] %v6567_v50  ;;  %v6569_v51 = vld [vmem:[%s13868_s0 + $0x810] sm:$0xf]  ;;  %v6571_v52 = vld [vmem:[%s13868_s0 + $0x760] sm:$0xf] }
  0x24   :  { %v6573_v53 = vld [vmem:[%s13868_s0 + $0x6b0] sm:$0xf]  ;;  %6570 = vst [vmem:[%s13869_s1 + $0x650] sm:$0xf] %v6569_v51  ;;  %6572 = vst [vmem:[%s13869_s1 + $0x700] sm:$0xf] %v6571_v52 }
  0x25   :  { %6574 = vst [vmem:[%s13869_s1 + $0x7b0] sm:$0xf] %v6573_v53  ;;  %v6575_v54 = vld [vmem:[%s13868_s0 + $0x600] sm:$0xf]  ;;  %v6577_v55 = vld [vmem:[%s13868_s0 + $0x550] sm:$0xf] }
  0x26   :  { %v6579_v56 = vld [vmem:[%s13868_s0 + $0x4a0] sm:$0xf]  ;;  %6576 = vst [vmem:[%s13869_s1 + $0x860] sm:$0xf] %v6575_v54  ;;  %6578 = vst [vmem:[%s13869_s1 + $0x910] sm:$0xf] %v6577_v55 }
  0x27   :  { %6580 = vst [vmem:[%s13869_s1 + $0x9c0] sm:$0xf] %v6579_v56  ;;  %v6581_v57 = vld [vmem:[%s13868_s0 + $0x3f0] sm:$0xf]  ;;  %v6583_v58 = vld [vmem:[%s13868_s0 + $0x340] sm:$0xf] }
  0x28   :  { %v6585_v59 = vld [vmem:[%s13868_s0 + $0x290] sm:$0xf]  ;;  %6582 = vst [vmem:[%s13869_s1 + $0xa70] sm:$0xf] %v6581_v57  ;;  %6584 = vst [vmem:[%s13869_s1 + $0xb20] sm:$0xf] %v6583_v58 }
  0x29   :  { %6586 = vst [vmem:[%s13869_s1 + $0xbd0] sm:$0xf] %v6585_v59  ;;  %v6587_v60 = vld [vmem:[%s13868_s0 + $0x1e0] sm:$0xf]  ;;  %v6589_v61 = vld [vmem:[%s13868_s0 + $0x130] sm:$0xf] }
  0x2a   :  { %v6591_v62 = vld [vmem:[%s13868_s0 + $0x80] sm:$0xf]  ;;  %6588 = vst [vmem:[%s13869_s1 + $0xc80] sm:$0xf] %v6587_v60  ;;  %6590 = vst [vmem:[%s13869_s1 + $0xd30] sm:$0xf] %v6589_v61 }
  0x2b   :  { %6592 = vst [vmem:[%s13869_s1 + $0xde0] sm:$0xf] %v6591_v62  ;;  %v6593_v63 = vld [vmem:[%s13868_s0 + $0xe30] sm:$0xf]  ;;  %v6595_v0 = vld [vmem:[%s13868_s0 + $0xd80] sm:$0xf] }
  0x2c   :  { %v6597_v1 = vld [vmem:[%s13868_s0 + $0xcd0] sm:$0xf]  ;;  %6594 = vst [vmem:[%s13869_s1 + $0x30] sm:$0xf] %v6593_v63  ;;  %6596 = vst [vmem:[%s13869_s1 + $0xe0] sm:$0xf] %v6595_v0 }
  0x2d   :  { %6598 = vst [vmem:[%s13869_s1 + $0x190] sm:$0xf] %v6597_v1  ;;  %v6599_v2 = vld [vmem:[%s13868_s0 + $0xc20] sm:$0xf]  ;;  %v6601_v3 = vld [vmem:[%s13868_s0 + $0xb70] sm:$0xf] }
  0x2e   :  { %v6603_v4 = vld [vmem:[%s13868_s0 + $0xac0] sm:$0xf]  ;;  %6600 = vst [vmem:[%s13869_s1 + $0x240] sm:$0xf] %v6599_v2  ;;  %6602 = vst [vmem:[%s13869_s1 + $0x2f0] sm:$0xf] %v6601_v3 }
  0x2f   :  { %6604 = vst [vmem:[%s13869_s1 + $0x3a0] sm:$0xf] %v6603_v4  ;;  %v6605_v5 = vld [vmem:[%s13868_s0 + $0xa10] sm:$0xf]  ;;  %v6607_v6 = vld [vmem:[%s13868_s0 + $0x960] sm:$0xf] }
  0x30   :  { %v6609_v7 = vld [vmem:[%s13868_s0 + $0x8b0] sm:$0xf]  ;;  %6606 = vst [vmem:[%s13869_s1 + $0x450] sm:$0xf] %v6605_v5  ;;  %6608 = vst [vmem:[%s13869_s1 + $0x500] sm:$0xf] %v6607_v6 }
  0x31   :  { %6610 = vst [vmem:[%s13869_s1 + $0x5b0] sm:$0xf] %v6609_v7  ;;  %v6611_v8 = vld [vmem:[%s13868_s0 + $0x800] sm:$0xf]  ;;  %v6613_v9 = vld [vmem:[%s13868_s0 + $0x750] sm:$0xf] }
  0x32   :  { %v6615_v10 = vld [vmem:[%s13868_s0 + $0x6a0] sm:$0xf]  ;;  %6612 = vst [vmem:[%s13869_s1 + $0x660] sm:$0xf] %v6611_v8  ;;  %6614 = vst [vmem:[%s13869_s1 + $0x710] sm:$0xf] %v6613_v9 }
  0x33   :  { %6616 = vst [vmem:[%s13869_s1 + $0x7c0] sm:$0xf] %v6615_v10  ;;  %v6617_v11 = vld [vmem:[%s13868_s0 + $0x5f0] sm:$0xf]  ;;  %v6619_v12 = vld [vmem:[%s13868_s0 + $0x540] sm:$0xf] }
  0x34   :  { %v6621_v13 = vld [vmem:[%s13868_s0 + $0x490] sm:$0xf]  ;;  %6618 = vst [vmem:[%s13869_s1 + $0x870] sm:$0xf] %v6617_v11  ;;  %6620 = vst [vmem:[%s13869_s1 + $0x920] sm:$0xf] %v6619_v12 }
  0x35   :  { %6622 = vst [vmem:[%s13869_s1 + $0x9d0] sm:$0xf] %v6621_v13  ;;  %v6623_v14 = vld [vmem:[%s13868_s0 + $0x3e0] sm:$0xf]  ;;  %v6625_v15 = vld [vmem:[%s13868_s0 + $0x330] sm:$0xf] }
  0x36   :  { %v6627_v16 = vld [vmem:[%s13868_s0 + $0x280] sm:$0xf]  ;;  %6624 = vst [vmem:[%s13869_s1 + $0xa80] sm:$0xf] %v6623_v14  ;;  %6626 = vst [vmem:[%s13869_s1 + $0xb30] sm:$0xf] %v6625_v15 }
  0x37   :  { %6628 = vst [vmem:[%s13869_s1 + $0xbe0] sm:$0xf] %v6627_v16  ;;  %v6629_v17 = vld [vmem:[%s13868_s0 + $0x1d0] sm:$0xf]  ;;  %v6631_v18 = vld [vmem:[%s13868_s0 + $0x120] sm:$0xf] }
  0x38   :  { %v6633_v19 = vld [vmem:[%s13868_s0 + $0x70] sm:$0xf]  ;;  %6630 = vst [vmem:[%s13869_s1 + $0xc90] sm:$0xf] %v6629_v17  ;;  %6632 = vst [vmem:[%s13869_s1 + $0xd40] sm:$0xf] %v6631_v18 }
  0x39   :  { %6634 = vst [vmem:[%s13869_s1 + $0xdf0] sm:$0xf] %v6633_v19  ;;  %v6635_v20 = vld [vmem:[%s13868_s0 + $0xe20] sm:$0xf]  ;;  %v6637_v21 = vld [vmem:[%s13868_s0 + $0xd70] sm:$0xf] }
  0x3a   :  { %v6639_v22 = vld [vmem:[%s13868_s0 + $0xcc0] sm:$0xf]  ;;  %6636 = vst [vmem:[%s13869_s1 + $0x40] sm:$0xf] %v6635_v20  ;;  %6638 = vst [vmem:[%s13869_s1 + $0xf0] sm:$0xf] %v6637_v21 }
  0x3b   :  { %6640 = vst [vmem:[%s13869_s1 + $0x1a0] sm:$0xf] %v6639_v22  ;;  %v6641_v23 = vld [vmem:[%s13868_s0 + $0xc10] sm:$0xf]  ;;  %v6643_v24 = vld [vmem:[%s13868_s0 + $0xb60] sm:$0xf] }
  0x3c   :  { %v6645_v25 = vld [vmem:[%s13868_s0 + $0xab0] sm:$0xf]  ;;  %6642 = vst [vmem:[%s13869_s1 + $0x250] sm:$0xf] %v6641_v23  ;;  %6644 = vst [vmem:[%s13869_s1 + $0x300] sm:$0xf] %v6643_v24 }
  0x3d   :  { %6646 = vst [vmem:[%s13869_s1 + $0x3b0] sm:$0xf] %v6645_v25  ;;  %v6647_v26 = vld [vmem:[%s13868_s0 + $0xa00] sm:$0xf]  ;;  %v6649_v27 = vld [vmem:[%s13868_s0 + $0x950] sm:$0xf] }
  0x3e   :  { %v6651_v28 = vld [vmem:[%s13868_s0 + $0x8a0] sm:$0xf]  ;;  %6648 = vst [vmem:[%s13869_s1 + $0x460] sm:$0xf] %v6647_v26  ;;  %6650 = vst [vmem:[%s13869_s1 + $0x510] sm:$0xf] %v6649_v27 }
  0x3f   :  { %6652 = vst [vmem:[%s13869_s1 + $0x5c0] sm:$0xf] %v6651_v28  ;;  %v6653_v29 = vld [vmem:[%s13868_s0 + $0x7f0] sm:$0xf]  ;;  %v6655_v30 = vld [vmem:[%s13868_s0 + $0x740] sm:$0xf] }
  0x40   :  { %v6657_v31 = vld [vmem:[%s13868_s0 + $0x690] sm:$0xf]  ;;  %6654 = vst [vmem:[%s13869_s1 + $0x670] sm:$0xf] %v6653_v29  ;;  %6656 = vst [vmem:[%s13869_s1 + $0x720] sm:$0xf] %v6655_v30 }
  0x41   :  { %6658 = vst [vmem:[%s13869_s1 + $0x7d0] sm:$0xf] %v6657_v31  ;;  %v6659_v32 = vld [vmem:[%s13868_s0 + $0x5e0] sm:$0xf]  ;;  %v6661_v33 = vld [vmem:[%s13868_s0 + $0x530] sm:$0xf] }
  0x42   :  { %v6663_v34 = vld [vmem:[%s13868_s0 + $0x480] sm:$0xf]  ;;  %6660 = vst [vmem:[%s13869_s1 + $0x880] sm:$0xf] %v6659_v32  ;;  %6662 = vst [vmem:[%s13869_s1 + $0x930] sm:$0xf] %v6661_v33 }
  0x43   :  { %6664 = vst [vmem:[%s13869_s1 + $0x9e0] sm:$0xf] %v6663_v34  ;;  %v6665_v35 = vld [vmem:[%s13868_s0 + $0x3d0] sm:$0xf]  ;;  %v6667_v36 = vld [vmem:[%s13868_s0 + $0x320] sm:$0xf] }
  0x44   :  { %v6669_v37 = vld [vmem:[%s13868_s0 + $0x270] sm:$0xf]  ;;  %6666 = vst [vmem:[%s13869_s1 + $0xa90] sm:$0xf] %v6665_v35  ;;  %6668 = vst [vmem:[%s13869_s1 + $0xb40] sm:$0xf] %v6667_v36 }
  0x45   :  { %6670 = vst [vmem:[%s13869_s1 + $0xbf0] sm:$0xf] %v6669_v37  ;;  %v6671_v38 = vld [vmem:[%s13868_s0 + $0x1c0] sm:$0xf]  ;;  %v6673_v39 = vld [vmem:[%s13868_s0 + $0x110] sm:$0xf] }
  0x46   :  { %v6675_v40 = vld [vmem:[%s13868_s0 + $0x60] sm:$0xf]  ;;  %6672 = vst [vmem:[%s13869_s1 + $0xca0] sm:$0xf] %v6671_v38  ;;  %6674 = vst [vmem:[%s13869_s1 + $0xd50] sm:$0xf] %v6673_v39 }
  0x47   :  { %6676 = vst [vmem:[%s13869_s1 + $0xe00] sm:$0xf] %v6675_v40  ;;  %v6677_v41 = vld [vmem:[%s13868_s0 + $0xe10] sm:$0xf]  ;;  %v6679_v42 = vld [vmem:[%s13868_s0 + $0xd60] sm:$0xf] }
  0x48   :  { %v6681_v43 = vld [vmem:[%s13868_s0 + $0xcb0] sm:$0xf]  ;;  %6678 = vst [vmem:[%s13869_s1 + $0x50] sm:$0xf] %v6677_v41  ;;  %6680 = vst [vmem:[%s13869_s1 + $0x100] sm:$0xf] %v6679_v42 }
  0x49   :  { %6682 = vst [vmem:[%s13869_s1 + $0x1b0] sm:$0xf] %v6681_v43  ;;  %v6683_v44 = vld [vmem:[%s13868_s0 + $0xc00] sm:$0xf]  ;;  %v6685_v45 = vld [vmem:[%s13868_s0 + $0xb50] sm:$0xf] }
  0x4a   :  { %v6687_v46 = vld [vmem:[%s13868_s0 + $0xaa0] sm:$0xf]  ;;  %6684 = vst [vmem:[%s13869_s1 + $0x260] sm:$0xf] %v6683_v44  ;;  %6686 = vst [vmem:[%s13869_s1 + $0x310] sm:$0xf] %v6685_v45 }
  0x4b   :  { %6688 = vst [vmem:[%s13869_s1 + $0x3c0] sm:$0xf] %v6687_v46  ;;  %v6689_v47 = vld [vmem:[%s13868_s0 + $0x9f0] sm:$0xf]  ;;  %v6691_v48 = vld [vmem:[%s13868_s0 + $0x940] sm:$0xf] }
  0x4c   :  { %v6693_v49 = vld [vmem:[%s13868_s0 + $0x890] sm:$0xf]  ;;  %6690 = vst [vmem:[%s13869_s1 + $0x470] sm:$0xf] %v6689_v47  ;;  %6692 = vst [vmem:[%s13869_s1 + $0x520] sm:$0xf] %v6691_v48 }
  0x4d   :  { %6694 = vst [vmem:[%s13869_s1 + $0x5d0] sm:$0xf] %v6693_v49  ;;  %v6695_v50 = vld [vmem:[%s13868_s0 + $0x7e0] sm:$0xf]  ;;  %v6697_v51 = vld [vmem:[%s13868_s0 + $0x730] sm:$0xf] }
  0x4e   :  { %v6699_v52 = vld [vmem:[%s13868_s0 + $0x680] sm:$0xf]  ;;  %6696 = vst [vmem:[%s13869_s1 + $0x680] sm:$0xf] %v6695_v50  ;;  %6698 = vst [vmem:[%s13869_s1 + $0x730] sm:$0xf] %v6697_v51 }
  0x4f   :  { %6700 = vst [vmem:[%s13869_s1 + $0x7e0] sm:$0xf] %v6699_v52  ;;  %v6701_v53 = vld [vmem:[%s13868_s0 + $0x5d0] sm:$0xf]  ;;  %v6703_v54 = vld [vmem:[%s13868_s0 + $0x520] sm:$0xf] }
  0x50   :  { %v6705_v55 = vld [vmem:[%s13868_s0 + $0x470] sm:$0xf]  ;;  %6702 = vst [vmem:[%s13869_s1 + $0x890] sm:$0xf] %v6701_v53  ;;  %6704 = vst [vmem:[%s13869_s1 + $0x940] sm:$0xf] %v6703_v54 }
  0x51   :  { %6706 = vst [vmem:[%s13869_s1 + $0x9f0] sm:$0xf] %v6705_v55  ;;  %v6707_v56 = vld [vmem:[%s13868_s0 + $0x3c0] sm:$0xf]  ;;  %v6709_v57 = vld [vmem:[%s13868_s0 + $0x310] sm:$0xf] }
  0x52   :  { %v6711_v58 = vld [vmem:[%s13868_s0 + $0x260] sm:$0xf]  ;;  %6708 = vst [vmem:[%s13869_s1 + $0xaa0] sm:$0xf] %v6707_v56  ;;  %6710 = vst [vmem:[%s13869_s1 + $0xb50] sm:$0xf] %v6709_v57 }
  0x53   :  { %6712 = vst [vmem:[%s13869_s1 + $0xc00] sm:$0xf] %v6711_v58  ;;  %v6713_v59 = vld [vmem:[%s13868_s0 + $0x1b0] sm:$0xf]  ;;  %v6715_v60 = vld [vmem:[%s13868_s0 + $0x100] sm:$0xf] }
  0x54   :  { %v6717_v61 = vld [vmem:[%s13868_s0 + $0x50] sm:$0xf]  ;;  %6714 = vst [vmem:[%s13869_s1 + $0xcb0] sm:$0xf] %v6713_v59  ;;  %6716 = vst [vmem:[%s13869_s1 + $0xd60] sm:$0xf] %v6715_v60 }
  0x55   :  { %6718 = vst [vmem:[%s13869_s1 + $0xe10] sm:$0xf] %v6717_v61  ;;  %v6719_v62 = vld [vmem:[%s13868_s0 + $0xe00] sm:$0xf]  ;;  %v6721_v63 = vld [vmem:[%s13868_s0 + $0xd50] sm:$0xf] }
  0x56   :  { %v6723_v0 = vld [vmem:[%s13868_s0 + $0xca0] sm:$0xf]  ;;  %6720 = vst [vmem:[%s13869_s1 + $0x60] sm:$0xf] %v6719_v62  ;;  %6722 = vst [vmem:[%s13869_s1 + $0x110] sm:$0xf] %v6721_v63 }
  0x57   :  { %6724 = vst [vmem:[%s13869_s1 + $0x1c0] sm:$0xf] %v6723_v0  ;;  %v6725_v1 = vld [vmem:[%s13868_s0 + $0xbf0] sm:$0xf]  ;;  %v6727_v2 = vld [vmem:[%s13868_s0 + $0xb40] sm:$0xf] }
  0x58   :  { %v6729_v3 = vld [vmem:[%s13868_s0 + $0xa90] sm:$0xf]  ;;  %6726 = vst [vmem:[%s13869_s1 + $0x270] sm:$0xf] %v6725_v1  ;;  %6728 = vst [vmem:[%s13869_s1 + $0x320] sm:$0xf] %v6727_v2 }
  0x59   :  { %6730 = vst [vmem:[%s13869_s1 + $0x3d0] sm:$0xf] %v6729_v3  ;;  %v6731_v4 = vld [vmem:[%s13868_s0 + $0x9e0] sm:$0xf]  ;;  %v6733_v5 = vld [vmem:[%s13868_s0 + $0x930] sm:$0xf] }
  0x5a   :  { %v6735_v6 = vld [vmem:[%s13868_s0 + $0x880] sm:$0xf]  ;;  %6732 = vst [vmem:[%s13869_s1 + $0x480] sm:$0xf] %v6731_v4  ;;  %6734 = vst [vmem:[%s13869_s1 + $0x530] sm:$0xf] %v6733_v5 }
  0x5b   :  { %6736 = vst [vmem:[%s13869_s1 + $0x5e0] sm:$0xf] %v6735_v6  ;;  %v6737_v7 = vld [vmem:[%s13868_s0 + $0x7d0] sm:$0xf]  ;;  %v6739_v8 = vld [vmem:[%s13868_s0 + $0x720] sm:$0xf] }
  0x5c   :  { %v6741_v9 = vld [vmem:[%s13868_s0 + $0x670] sm:$0xf]  ;;  %6738 = vst [vmem:[%s13869_s1 + $0x690] sm:$0xf] %v6737_v7  ;;  %6740 = vst [vmem:[%s13869_s1 + $0x740] sm:$0xf] %v6739_v8 }
  0x5d   :  { %6742 = vst [vmem:[%s13869_s1 + $0x7f0] sm:$0xf] %v6741_v9  ;;  %v6743_v10 = vld [vmem:[%s13868_s0 + $0x5c0] sm:$0xf]  ;;  %v6745_v11 = vld [vmem:[%s13868_s0 + $0x510] sm:$0xf] }
  0x5e   :  { %v6747_v12 = vld [vmem:[%s13868_s0 + $0x460] sm:$0xf]  ;;  %6744 = vst [vmem:[%s13869_s1 + $0x8a0] sm:$0xf] %v6743_v10  ;;  %6746 = vst [vmem:[%s13869_s1 + $0x950] sm:$0xf] %v6745_v11 }
  0x5f   :  { %6748 = vst [vmem:[%s13869_s1 + $0xa00] sm:$0xf] %v6747_v12  ;;  %v6749_v13 = vld [vmem:[%s13868_s0 + $0x3b0] sm:$0xf]  ;;  %v6751_v14 = vld [vmem:[%s13868_s0 + $0x300] sm:$0xf] }
  0x60   :  { %v6753_v15 = vld [vmem:[%s13868_s0 + $0x250] sm:$0xf]  ;;  %6750 = vst [vmem:[%s13869_s1 + $0xab0] sm:$0xf] %v6749_v13  ;;  %6752 = vst [vmem:[%s13869_s1 + $0xb60] sm:$0xf] %v6751_v14 }
  0x61   :  { %6754 = vst [vmem:[%s13869_s1 + $0xc10] sm:$0xf] %v6753_v15  ;;  %v6755_v16 = vld [vmem:[%s13868_s0 + $0x1a0] sm:$0xf]  ;;  %v6757_v17 = vld [vmem:[%s13868_s0 + $0xf0] sm:$0xf] }
  0x62   :  { %v6759_v18 = vld [vmem:[%s13868_s0 + $0x40] sm:$0xf]  ;;  %6756 = vst [vmem:[%s13869_s1 + $0xcc0] sm:$0xf] %v6755_v16  ;;  %6758 = vst [vmem:[%s13869_s1 + $0xd70] sm:$0xf] %v6757_v17 }
  0x63   :  { %6760 = vst [vmem:[%s13869_s1 + $0xe20] sm:$0xf] %v6759_v18  ;;  %v6761_v19 = vld [vmem:[%s13868_s0 + $0xdf0] sm:$0xf]  ;;  %v6763_v20 = vld [vmem:[%s13868_s0 + $0xd40] sm:$0xf] }
  0x64   :  { %v6765_v21 = vld [vmem:[%s13868_s0 + $0xc90] sm:$0xf]  ;;  %6762 = vst [vmem:[%s13869_s1 + $0x70] sm:$0xf] %v6761_v19  ;;  %6764 = vst [vmem:[%s13869_s1 + $0x120] sm:$0xf] %v6763_v20 }
  0x65   :  { %6766 = vst [vmem:[%s13869_s1 + $0x1d0] sm:$0xf] %v6765_v21  ;;  %v6767_v22 = vld [vmem:[%s13868_s0 + $0xbe0] sm:$0xf]  ;;  %v6769_v23 = vld [vmem:[%s13868_s0 + $0xb30] sm:$0xf] }
  0x66   :  { %v6771_v24 = vld [vmem:[%s13868_s0 + $0xa80] sm:$0xf]  ;;  %6768 = vst [vmem:[%s13869_s1 + $0x280] sm:$0xf] %v6767_v22  ;;  %6770 = vst [vmem:[%s13869_s1 + $0x330] sm:$0xf] %v6769_v23 }
  0x67   :  { %6772 = vst [vmem:[%s13869_s1 + $0x3e0] sm:$0xf] %v6771_v24  ;;  %v6773_v25 = vld [vmem:[%s13868_s0 + $0x9d0] sm:$0xf]  ;;  %v6775_v26 = vld [vmem:[%s13868_s0 + $0x920] sm:$0xf] }
  0x68   :  { %v6777_v27 = vld [vmem:[%s13868_s0 + $0x870] sm:$0xf]  ;;  %6774 = vst [vmem:[%s13869_s1 + $0x490] sm:$0xf] %v6773_v25  ;;  %6776 = vst [vmem:[%s13869_s1 + $0x540] sm:$0xf] %v6775_v26 }
  0x69   :  { %6778 = vst [vmem:[%s13869_s1 + $0x5f0] sm:$0xf] %v6777_v27  ;;  %v6779_v28 = vld [vmem:[%s13868_s0 + $0x7c0] sm:$0xf]  ;;  %v6781_v29 = vld [vmem:[%s13868_s0 + $0x710] sm:$0xf] }
  0x6a   :  { %v6783_v30 = vld [vmem:[%s13868_s0 + $0x660] sm:$0xf]  ;;  %6780 = vst [vmem:[%s13869_s1 + $0x6a0] sm:$0xf] %v6779_v28  ;;  %6782 = vst [vmem:[%s13869_s1 + $0x750] sm:$0xf] %v6781_v29 }
  0x6b   :  { %6784 = vst [vmem:[%s13869_s1 + $0x800] sm:$0xf] %v6783_v30  ;;  %v6785_v31 = vld [vmem:[%s13868_s0 + $0x5b0] sm:$0xf]  ;;  %v6787_v32 = vld [vmem:[%s13868_s0 + $0x500] sm:$0xf] }
  0x6c   :  { %v6789_v33 = vld [vmem:[%s13868_s0 + $0x450] sm:$0xf]  ;;  %6786 = vst [vmem:[%s13869_s1 + $0x8b0] sm:$0xf] %v6785_v31  ;;  %6788 = vst [vmem:[%s13869_s1 + $0x960] sm:$0xf] %v6787_v32 }
  0x6d   :  { %6790 = vst [vmem:[%s13869_s1 + $0xa10] sm:$0xf] %v6789_v33  ;;  %v6791_v34 = vld [vmem:[%s13868_s0 + $0x3a0] sm:$0xf]  ;;  %v6793_v35 = vld [vmem:[%s13868_s0 + $0x2f0] sm:$0xf] }
  0x6e   :  { %v6795_v36 = vld [vmem:[%s13868_s0 + $0x240] sm:$0xf]  ;;  %6792 = vst [vmem:[%s13869_s1 + $0xac0] sm:$0xf] %v6791_v34  ;;  %6794 = vst [vmem:[%s13869_s1 + $0xb70] sm:$0xf] %v6793_v35 }
  0x6f   :  { %6796 = vst [vmem:[%s13869_s1 + $0xc20] sm:$0xf] %v6795_v36  ;;  %v6797_v37 = vld [vmem:[%s13868_s0 + $0x190] sm:$0xf]  ;;  %v6799_v38 = vld [vmem:[%s13868_s0 + $0xe0] sm:$0xf] }
  0x70   :  { %v6801_v39 = vld [vmem:[%s13868_s0 + $0x30] sm:$0xf]  ;;  %6798 = vst [vmem:[%s13869_s1 + $0xcd0] sm:$0xf] %v6797_v37  ;;  %6800 = vst [vmem:[%s13869_s1 + $0xd80] sm:$0xf] %v6799_v38 }
  0x71   :  { %6802 = vst [vmem:[%s13869_s1 + $0xe30] sm:$0xf] %v6801_v39  ;;  %v6803_v40 = vld [vmem:[%s13868_s0 + $0xde0] sm:$0xf]  ;;  %v6805_v41 = vld [vmem:[%s13868_s0 + $0xd30] sm:$0xf] }
  0x72   :  { %v6807_v42 = vld [vmem:[%s13868_s0 + $0xc80] sm:$0xf]  ;;  %6804 = vst [vmem:[%s13869_s1 + $0x80] sm:$0xf] %v6803_v40  ;;  %6806 = vst [vmem:[%s13869_s1 + $0x130] sm:$0xf] %v6805_v41 }
  0x73   :  { %6808 = vst [vmem:[%s13869_s1 + $0x1e0] sm:$0xf] %v6807_v42  ;;  %v6809_v43 = vld [vmem:[%s13868_s0 + $0xbd0] sm:$0xf]  ;;  %v6811_v44 = vld [vmem:[%s13868_s0 + $0xb20] sm:$0xf] }
  0x74   :  { %v6813_v45 = vld [vmem:[%s13868_s0 + $0xa70] sm:$0xf]  ;;  %6810 = vst [vmem:[%s13869_s1 + $0x290] sm:$0xf] %v6809_v43  ;;  %6812 = vst [vmem:[%s13869_s1 + $0x340] sm:$0xf] %v6811_v44 }
  0x75   :  { %6814 = vst [vmem:[%s13869_s1 + $0x3f0] sm:$0xf] %v6813_v45  ;;  %v6815_v46 = vld [vmem:[%s13868_s0 + $0x9c0] sm:$0xf]  ;;  %v6817_v47 = vld [vmem:[%s13868_s0 + $0x910] sm:$0xf] }
  0x76   :  { %v6819_v48 = vld [vmem:[%s13868_s0 + $0x860] sm:$0xf]  ;;  %6816 = vst [vmem:[%s13869_s1 + $0x4a0] sm:$0xf] %v6815_v46  ;;  %6818 = vst [vmem:[%s13869_s1 + $0x550] sm:$0xf] %v6817_v47 }
  0x77   :  { %6820 = vst [vmem:[%s13869_s1 + $0x600] sm:$0xf] %v6819_v48  ;;  %v6821_v49 = vld [vmem:[%s13868_s0 + $0x7b0] sm:$0xf]  ;;  %v6823_v50 = vld [vmem:[%s13868_s0 + $0x700] sm:$0xf] }
  0x78   :  { %v6825_v51 = vld [vmem:[%s13868_s0 + $0x650] sm:$0xf]  ;;  %6822 = vst [vmem:[%s13869_s1 + $0x6b0] sm:$0xf] %v6821_v49  ;;  %6824 = vst [vmem:[%s13869_s1 + $0x760] sm:$0xf] %v6823_v50 }
  0x79   :  { %6826 = vst [vmem:[%s13869_s1 + $0x810] sm:$0xf] %v6825_v51  ;;  %v6827_v52 = vld [vmem:[%s13868_s0 + $0x5a0] sm:$0xf]  ;;  %v6829_v53 = vld [vmem:[%s13868_s0 + $0x4f0] sm:$0xf] }
  0x7a   :  { %v6831_v54 = vld [vmem:[%s13868_s0 + $0x440] sm:$0xf]  ;;  %6828 = vst [vmem:[%s13869_s1 + $0x8c0] sm:$0xf] %v6827_v52  ;;  %6830 = vst [vmem:[%s13869_s1 + $0x970] sm:$0xf] %v6829_v53 }
  0x7b   :  { %6832 = vst [vmem:[%s13869_s1 + $0xa20] sm:$0xf] %v6831_v54  ;;  %v6833_v55 = vld [vmem:[%s13868_s0 + $0x390] sm:$0xf]  ;;  %v6835_v56 = vld [vmem:[%s13868_s0 + $0x2e0] sm:$0xf] }
  0x7c   :  { %v6837_v57 = vld [vmem:[%s13868_s0 + $0x230] sm:$0xf]  ;;  %6834 = vst [vmem:[%s13869_s1 + $0xad0] sm:$0xf] %v6833_v55  ;;  %6836 = vst [vmem:[%s13869_s1 + $0xb80] sm:$0xf] %v6835_v56 }
  0x7d   :  { %6838 = vst [vmem:[%s13869_s1 + $0xc30] sm:$0xf] %v6837_v57  ;;  %v6839_v58 = vld [vmem:[%s13868_s0 + $0x180] sm:$0xf]  ;;  %v6841_v59 = vld [vmem:[%s13868_s0 + $0xd0] sm:$0xf] }
  0x7e   :  { %v6843_v60 = vld [vmem:[%s13868_s0 + $0x20] sm:$0xf]  ;;  %6840 = vst [vmem:[%s13869_s1 + $0xce0] sm:$0xf] %v6839_v58  ;;  %6842 = vst [vmem:[%s13869_s1 + $0xd90] sm:$0xf] %v6841_v59 }
  0x7f   :  { %6844 = vst [vmem:[%s13869_s1 + $0xe40] sm:$0xf] %v6843_v60  ;;  %v6845_v61 = vld [vmem:[%s13868_s0 + $0xdd0] sm:$0xf]  ;;  %v6847_v62 = vld [vmem:[%s13868_s0 + $0xd20] sm:$0xf] }
  0x80   :  { %v6849_v63 = vld [vmem:[%s13868_s0 + $0xc70] sm:$0xf]  ;;  %6846 = vst [vmem:[%s13869_s1 + $0x90] sm:$0xf] %v6845_v61  ;;  %6848 = vst [vmem:[%s13869_s1 + $0x140] sm:$0xf] %v6847_v62 }
  0x81   :  { %6850 = vst [vmem:[%s13869_s1 + $0x1f0] sm:$0xf] %v6849_v63  ;;  %v6851_v0 = vld [vmem:[%s13868_s0 + $0xbc0] sm:$0xf]  ;;  %v6853_v1 = vld [vmem:[%s13868_s0 + $0xb10] sm:$0xf] }
  0x82   :  { %v6855_v2 = vld [vmem:[%s13868_s0 + $0xa60] sm:$0xf]  ;;  %6852 = vst [vmem:[%s13869_s1 + $0x2a0] sm:$0xf] %v6851_v0  ;;  %6854 = vst [vmem:[%s13869_s1 + $0x350] sm:$0xf] %v6853_v1 }
  0x83   :  { %6856 = vst [vmem:[%s13869_s1 + $0x400] sm:$0xf] %v6855_v2  ;;  %v6857_v3 = vld [vmem:[%s13868_s0 + $0x9b0] sm:$0xf]  ;;  %v6859_v4 = vld [vmem:[%s13868_s0 + $0x900] sm:$0xf] }
  0x84   :  { %v6861_v5 = vld [vmem:[%s13868_s0 + $0x850] sm:$0xf]  ;;  %6858 = vst [vmem:[%s13869_s1 + $0x4b0] sm:$0xf] %v6857_v3  ;;  %6860 = vst [vmem:[%s13869_s1 + $0x560] sm:$0xf] %v6859_v4 }
  0x85   :  { %6862 = vst [vmem:[%s13869_s1 + $0x610] sm:$0xf] %v6861_v5  ;;  %v6863_v6 = vld [vmem:[%s13868_s0 + $0x7a0] sm:$0xf]  ;;  %v6865_v7 = vld [vmem:[%s13868_s0 + $0x6f0] sm:$0xf] }
  0x86   :  { %v6867_v8 = vld [vmem:[%s13868_s0 + $0x640] sm:$0xf]  ;;  %6864 = vst [vmem:[%s13869_s1 + $0x6c0] sm:$0xf] %v6863_v6  ;;  %6866 = vst [vmem:[%s13869_s1 + $0x770] sm:$0xf] %v6865_v7 }
  0x87   :  { %6868 = vst [vmem:[%s13869_s1 + $0x820] sm:$0xf] %v6867_v8  ;;  %v6869_v9 = vld [vmem:[%s13868_s0 + $0x590] sm:$0xf]  ;;  %v6871_v10 = vld [vmem:[%s13868_s0 + $0x4e0] sm:$0xf] }
  0x88   :  { %v6873_v11 = vld [vmem:[%s13868_s0 + $0x430] sm:$0xf]  ;;  %6870 = vst [vmem:[%s13869_s1 + $0x8d0] sm:$0xf] %v6869_v9  ;;  %6872 = vst [vmem:[%s13869_s1 + $0x980] sm:$0xf] %v6871_v10 }
  0x89   :  { %6874 = vst [vmem:[%s13869_s1 + $0xa30] sm:$0xf] %v6873_v11  ;;  %v6875_v12 = vld [vmem:[%s13868_s0 + $0x380] sm:$0xf]  ;;  %v6877_v13 = vld [vmem:[%s13868_s0 + $0x2d0] sm:$0xf] }
  0x8a   :  { %v6879_v14 = vld [vmem:[%s13868_s0 + $0x220] sm:$0xf]  ;;  %6876 = vst [vmem:[%s13869_s1 + $0xae0] sm:$0xf] %v6875_v12  ;;  %6878 = vst [vmem:[%s13869_s1 + $0xb90] sm:$0xf] %v6877_v13 }
  0x8b   :  { %6880 = vst [vmem:[%s13869_s1 + $0xc40] sm:$0xf] %v6879_v14  ;;  %v6881_v15 = vld [vmem:[%s13868_s0 + $0x170] sm:$0xf]  ;;  %v6883_v16 = vld [vmem:[%s13868_s0 + $0xc0] sm:$0xf] }
  0x8c   :  { %v6885_v17 = vld [vmem:[%s13868_s0 + $0x10] sm:$0xf]  ;;  %6882 = vst [vmem:[%s13869_s1 + $0xcf0] sm:$0xf] %v6881_v15  ;;  %6884 = vst [vmem:[%s13869_s1 + $0xda0] sm:$0xf] %v6883_v16 }
  0x8d   :  { %6886 = vst [vmem:[%s13869_s1 + $0xe50] sm:$0xf] %v6885_v17  ;;  %v6887_v18 = vld [vmem:[%s13868_s0 + $0xdc0] sm:$0xf]  ;;  %v6889_v19 = vld [vmem:[%s13868_s0 + $0xd10] sm:$0xf] }
  0x8e   :  { %v6891_v20 = vld [vmem:[%s13868_s0 + $0xc60] sm:$0xf]  ;;  %6888 = vst [vmem:[%s13869_s1 + $0xa0] sm:$0xf] %v6887_v18  ;;  %6890 = vst [vmem:[%s13869_s1 + $0x150] sm:$0xf] %v6889_v19 }
  0x8f   :  { %6892 = vst [vmem:[%s13869_s1 + $0x200] sm:$0xf] %v6891_v20  ;;  %v6893_v21 = vld [vmem:[%s13868_s0 + $0xbb0] sm:$0xf]  ;;  %v6895_v22 = vld [vmem:[%s13868_s0 + $0xb00] sm:$0xf] }
  0x90   :  { %v6897_v23 = vld [vmem:[%s13868_s0 + $0xa50] sm:$0xf]  ;;  %6894 = vst [vmem:[%s13869_s1 + $0x2b0] sm:$0xf] %v6893_v21  ;;  %6896 = vst [vmem:[%s13869_s1 + $0x360] sm:$0xf] %v6895_v22 }
  0x91   :  { %6898 = vst [vmem:[%s13869_s1 + $0x410] sm:$0xf] %v6897_v23  ;;  %v6899_v24 = vld [vmem:[%s13868_s0 + $0x9a0] sm:$0xf]  ;;  %v6901_v25 = vld [vmem:[%s13868_s0 + $0x8f0] sm:$0xf] }
  0x92   :  { %v6903_v26 = vld [vmem:[%s13868_s0 + $0x840] sm:$0xf]  ;;  %6900 = vst [vmem:[%s13869_s1 + $0x4c0] sm:$0xf] %v6899_v24  ;;  %6902 = vst [vmem:[%s13869_s1 + $0x570] sm:$0xf] %v6901_v25 }
  0x93   :  { %6904 = vst [vmem:[%s13869_s1 + $0x620] sm:$0xf] %v6903_v26  ;;  %v6905_v27 = vld [vmem:[%s13868_s0 + $0x790] sm:$0xf]  ;;  %v6907_v28 = vld [vmem:[%s13868_s0 + $0x6e0] sm:$0xf] }
  0x94   :  { %v6909_v29 = vld [vmem:[%s13868_s0 + $0x630] sm:$0xf]  ;;  %6906 = vst [vmem:[%s13869_s1 + $0x6d0] sm:$0xf] %v6905_v27  ;;  %6908 = vst [vmem:[%s13869_s1 + $0x780] sm:$0xf] %v6907_v28 }
  0x95   :  { %6910 = vst [vmem:[%s13869_s1 + $0x830] sm:$0xf] %v6909_v29  ;;  %v6911_v30 = vld [vmem:[%s13868_s0 + $0x580] sm:$0xf]  ;;  %v6913_v31 = vld [vmem:[%s13868_s0 + $0x4d0] sm:$0xf] }
  0x96   :  { %v6915_v32 = vld [vmem:[%s13868_s0 + $0x420] sm:$0xf]  ;;  %6912 = vst [vmem:[%s13869_s1 + $0x8e0] sm:$0xf] %v6911_v30  ;;  %6914 = vst [vmem:[%s13869_s1 + $0x990] sm:$0xf] %v6913_v31 }
  0x97   :  { %6916 = vst [vmem:[%s13869_s1 + $0xa40] sm:$0xf] %v6915_v32  ;;  %v6917_v33 = vld [vmem:[%s13868_s0 + $0x370] sm:$0xf]  ;;  %v6919_v34 = vld [vmem:[%s13868_s0 + $0x2c0] sm:$0xf] }
  0x98   :  { %v6921_v35 = vld [vmem:[%s13868_s0 + $0x210] sm:$0xf]  ;;  %6918 = vst [vmem:[%s13869_s1 + $0xaf0] sm:$0xf] %v6917_v33  ;;  %6920 = vst [vmem:[%s13869_s1 + $0xba0] sm:$0xf] %v6919_v34 }
  0x99   :  { %6922 = vst [vmem:[%s13869_s1 + $0xc50] sm:$0xf] %v6921_v35  ;;  %v6923_v36 = vld [vmem:[%s13868_s0 + $0x160] sm:$0xf]  ;;  %v6925_v37 = vld [vmem:[%s13868_s0 + $0xb0] sm:$0xf] }
  0x9a   :  { %v1611_v38 = vld [vmem:[%s13868_s0] sm:$0xf]  ;;  %6924 = vst [vmem:[%s13869_s1 + $0xd00] sm:$0xf] %v6923_v36  ;;  %6926 = vst [vmem:[%s13869_s1 + $0xdb0] sm:$0xf] %v6925_v37 }
  0x9b   :  { %6927 = vst [vmem:[%s13869_s1 + $0xe60] sm:$0xf] %v1611_v38  ;;  %v6928_v39 = vld [vmem:[%s13868_s0 + $0xe64] sm:$0xf]  ;;  %v6930_v40 = vld [vmem:[%s13868_s0 + $0xdb4] sm:$0xf] }
  0x9c   :  { %v6932_v41 = vld [vmem:[%s13868_s0 + $0xd04] sm:$0xf]  ;;  %6929 = vst [vmem:[%s13869_s1 + $0x4] sm:$0xf] %v6928_v39  ;;  %6931 = vst [vmem:[%s13869_s1 + $0xb4] sm:$0xf] %v6930_v40 }
  0x9d   :  { %6933 = vst [vmem:[%s13869_s1 + $0x164] sm:$0xf] %v6932_v41  ;;  %v6934_v42 = vld [vmem:[%s13868_s0 + $0xc54] sm:$0xf]  ;;  %v6936_v43 = vld [vmem:[%s13868_s0 + $0xba4] sm:$0xf] }
  0x9e   :  { %v6938_v44 = vld [vmem:[%s13868_s0 + $0xaf4] sm:$0xf]  ;;  %6935 = vst [vmem:[%s13869_s1 + $0x214] sm:$0xf] %v6934_v42  ;;  %6937 = vst [vmem:[%s13869_s1 + $0x2c4] sm:$0xf] %v6936_v43 }
  0x9f   :  { %6939 = vst [vmem:[%s13869_s1 + $0x374] sm:$0xf] %v6938_v44  ;;  %v6940_v45 = vld [vmem:[%s13868_s0 + $0xa44] sm:$0xf]  ;;  %v6942_v46 = vld [vmem:[%s13868_s0 + $0x994] sm:$0xf] }
  0xa0   :  { %v6944_v47 = vld [vmem:[%s13868_s0 + $0x8e4] sm:$0xf]  ;;  %6941 = vst [vmem:[%s13869_s1 + $0x424] sm:$0xf] %v6940_v45  ;;  %6943 = vst [vmem:[%s13869_s1 + $0x4d4] sm:$0xf] %v6942_v46 }
  0xa1   :  { %6945 = vst [vmem:[%s13869_s1 + $0x584] sm:$0xf] %v6944_v47  ;;  %v6946_v48 = vld [vmem:[%s13868_s0 + $0x834] sm:$0xf]  ;;  %v6948_v49 = vld [vmem:[%s13868_s0 + $0x784] sm:$0xf] }
  0xa2   :  { %v6950_v50 = vld [vmem:[%s13868_s0 + $0x6d4] sm:$0xf]  ;;  %6947 = vst [vmem:[%s13869_s1 + $0x634] sm:$0xf] %v6946_v48  ;;  %6949 = vst [vmem:[%s13869_s1 + $0x6e4] sm:$0xf] %v6948_v49 }
  0xa3   :  { %6951 = vst [vmem:[%s13869_s1 + $0x794] sm:$0xf] %v6950_v50  ;;  %v6952_v51 = vld [vmem:[%s13868_s0 + $0x624] sm:$0xf]  ;;  %v6954_v52 = vld [vmem:[%s13868_s0 + $0x574] sm:$0xf] }
  0xa4   :  { %v6956_v53 = vld [vmem:[%s13868_s0 + $0x4c4] sm:$0xf]  ;;  %6953 = vst [vmem:[%s13869_s1 + $0x844] sm:$0xf] %v6952_v51  ;;  %6955 = vst [vmem:[%s13869_s1 + $0x8f4] sm:$0xf] %v6954_v52 }
  0xa5   :  { %6957 = vst [vmem:[%s13869_s1 + $0x9a4] sm:$0xf] %v6956_v53  ;;  %v6958_v54 = vld [vmem:[%s13868_s0 + $0x414] sm:$0xf]  ;;  %v6960_v55 = vld [vmem:[%s13868_s0 + $0x364] sm:$0xf] }
  0xa6   :  { %v6962_v56 = vld [vmem:[%s13868_s0 + $0x2b4] sm:$0xf]  ;;  %6959 = vst [vmem:[%s13869_s1 + $0xa54] sm:$0xf] %v6958_v54  ;;  %6961 = vst [vmem:[%s13869_s1 + $0xb04] sm:$0xf] %v6960_v55 }
  0xa7   :  { %6963 = vst [vmem:[%s13869_s1 + $0xbb4] sm:$0xf] %v6962_v56  ;;  %v6964_v57 = vld [vmem:[%s13868_s0 + $0x204] sm:$0xf]  ;;  %v6966_v58 = vld [vmem:[%s13868_s0 + $0x154] sm:$0xf] }
  0xa8   :  { %v6968_v59 = vld [vmem:[%s13868_s0 + $0xa4] sm:$0xf]  ;;  %6965 = vst [vmem:[%s13869_s1 + $0xc64] sm:$0xf] %v6964_v57  ;;  %6967 = vst [vmem:[%s13869_s1 + $0xd14] sm:$0xf] %v6966_v58 }
  0xa9   :  { %6969 = vst [vmem:[%s13869_s1 + $0xdc4] sm:$0xf] %v6968_v59  ;;  %v6970_v60 = vld [vmem:[%s13868_s0 + $0xe54] sm:$0xf]  ;;  %v6972_v61 = vld [vmem:[%s13868_s0 + $0xda4] sm:$0xf] }
  0xaa   :  { %v6974_v62 = vld [vmem:[%s13868_s0 + $0xcf4] sm:$0xf]  ;;  %6971 = vst [vmem:[%s13869_s1 + $0x14] sm:$0xf] %v6970_v60  ;;  %6973 = vst [vmem:[%s13869_s1 + $0xc4] sm:$0xf] %v6972_v61 }
  0xab   :  { %6975 = vst [vmem:[%s13869_s1 + $0x174] sm:$0xf] %v6974_v62  ;;  %v6976_v63 = vld [vmem:[%s13868_s0 + $0xc44] sm:$0xf]  ;;  %v6978_v0 = vld [vmem:[%s13868_s0 + $0xb94] sm:$0xf] }
  0xac   :  { %v6980_v1 = vld [vmem:[%s13868_s0 + $0xae4] sm:$0xf]  ;;  %6977 = vst [vmem:[%s13869_s1 + $0x224] sm:$0xf] %v6976_v63  ;;  %6979 = vst [vmem:[%s13869_s1 + $0x2d4] sm:$0xf] %v6978_v0 }
  0xad   :  { %6981 = vst [vmem:[%s13869_s1 + $0x384] sm:$0xf] %v6980_v1  ;;  %v6982_v2 = vld [vmem:[%s13868_s0 + $0xa34] sm:$0xf]  ;;  %v6984_v3 = vld [vmem:[%s13868_s0 + $0x984] sm:$0xf] }
  0xae   :  { %v6986_v4 = vld [vmem:[%s13868_s0 + $0x8d4] sm:$0xf]  ;;  %6983 = vst [vmem:[%s13869_s1 + $0x434] sm:$0xf] %v6982_v2  ;;  %6985 = vst [vmem:[%s13869_s1 + $0x4e4] sm:$0xf] %v6984_v3 }
  0xaf   :  { %6987 = vst [vmem:[%s13869_s1 + $0x594] sm:$0xf] %v6986_v4  ;;  %v6988_v5 = vld [vmem:[%s13868_s0 + $0x824] sm:$0xf]  ;;  %v6990_v6 = vld [vmem:[%s13868_s0 + $0x774] sm:$0xf] }
  0xb0   :  { %v6992_v7 = vld [vmem:[%s13868_s0 + $0x6c4] sm:$0xf]  ;;  %6989 = vst [vmem:[%s13869_s1 + $0x644] sm:$0xf] %v6988_v5  ;;  %6991 = vst [vmem:[%s13869_s1 + $0x6f4] sm:$0xf] %v6990_v6 }
  0xb1   :  { %6993 = vst [vmem:[%s13869_s1 + $0x7a4] sm:$0xf] %v6992_v7  ;;  %v6994_v8 = vld [vmem:[%s13868_s0 + $0x614] sm:$0xf]  ;;  %v6996_v9 = vld [vmem:[%s13868_s0 + $0x564] sm:$0xf] }
  0xb2   :  { %v6998_v10 = vld [vmem:[%s13868_s0 + $0x4b4] sm:$0xf]  ;;  %6995 = vst [vmem:[%s13869_s1 + $0x854] sm:$0xf] %v6994_v8  ;;  %6997 = vst [vmem:[%s13869_s1 + $0x904] sm:$0xf] %v6996_v9 }
  0xb3   :  { %6999 = vst [vmem:[%s13869_s1 + $0x9b4] sm:$0xf] %v6998_v10  ;;  %v7000_v11 = vld [vmem:[%s13868_s0 + $0x404] sm:$0xf]  ;;  %v7002_v12 = vld [vmem:[%s13868_s0 + $0x354] sm:$0xf] }
  0xb4   :  { %v7004_v13 = vld [vmem:[%s13868_s0 + $0x2a4] sm:$0xf]  ;;  %7001 = vst [vmem:[%s13869_s1 + $0xa64] sm:$0xf] %v7000_v11  ;;  %7003 = vst [vmem:[%s13869_s1 + $0xb14] sm:$0xf] %v7002_v12 }
  0xb5   :  { %7005 = vst [vmem:[%s13869_s1 + $0xbc4] sm:$0xf] %v7004_v13  ;;  %v7006_v14 = vld [vmem:[%s13868_s0 + $0x1f4] sm:$0xf]  ;;  %v7008_v15 = vld [vmem:[%s13868_s0 + $0x144] sm:$0xf] }
  0xb6   :  { %v7010_v16 = vld [vmem:[%s13868_s0 + $0x94] sm:$0xf]  ;;  %7007 = vst [vmem:[%s13869_s1 + $0xc74] sm:$0xf] %v7006_v14  ;;  %7009 = vst [vmem:[%s13869_s1 + $0xd24] sm:$0xf] %v7008_v15 }
  0xb7   :  { %7011 = vst [vmem:[%s13869_s1 + $0xdd4] sm:$0xf] %v7010_v16  ;;  %v7012_v17 = vld [vmem:[%s13868_s0 + $0xe44] sm:$0xf]  ;;  %v7014_v18 = vld [vmem:[%s13868_s0 + $0xd94] sm:$0xf] }
  0xb8   :  { %v7016_v19 = vld [vmem:[%s13868_s0 + $0xce4] sm:$0xf]  ;;  %7013 = vst [vmem:[%s13869_s1 + $0x24] sm:$0xf] %v7012_v17  ;;  %7015 = vst [vmem:[%s13869_s1 + $0xd4] sm:$0xf] %v7014_v18 }
  0xb9   :  { %7017 = vst [vmem:[%s13869_s1 + $0x184] sm:$0xf] %v7016_v19  ;;  %v7018_v20 = vld [vmem:[%s13868_s0 + $0xc34] sm:$0xf]  ;;  %v7020_v21 = vld [vmem:[%s13868_s0 + $0xb84] sm:$0xf] }
  0xba   :  { %v7022_v22 = vld [vmem:[%s13868_s0 + $0xad4] sm:$0xf]  ;;  %7019 = vst [vmem:[%s13869_s1 + $0x234] sm:$0xf] %v7018_v20  ;;  %7021 = vst [vmem:[%s13869_s1 + $0x2e4] sm:$0xf] %v7020_v21 }
  0xbb   :  { %7023 = vst [vmem:[%s13869_s1 + $0x394] sm:$0xf] %v7022_v22  ;;  %v7024_v23 = vld [vmem:[%s13868_s0 + $0xa24] sm:$0xf]  ;;  %v7026_v24 = vld [vmem:[%s13868_s0 + $0x974] sm:$0xf] }
  0xbc   :  { %v7028_v25 = vld [vmem:[%s13868_s0 + $0x8c4] sm:$0xf]  ;;  %7025 = vst [vmem:[%s13869_s1 + $0x444] sm:$0xf] %v7024_v23  ;;  %7027 = vst [vmem:[%s13869_s1 + $0x4f4] sm:$0xf] %v7026_v24 }
  0xbd   :  { %7029 = vst [vmem:[%s13869_s1 + $0x5a4] sm:$0xf] %v7028_v25  ;;  %v7030_v26 = vld [vmem:[%s13868_s0 + $0x814] sm:$0xf]  ;;  %v7032_v27 = vld [vmem:[%s13868_s0 + $0x764] sm:$0xf] }
  0xbe   :  { %v7034_v28 = vld [vmem:[%s13868_s0 + $0x6b4] sm:$0xf]  ;;  %7031 = vst [vmem:[%s13869_s1 + $0x654] sm:$0xf] %v7030_v26  ;;  %7033 = vst [vmem:[%s13869_s1 + $0x704] sm:$0xf] %v7032_v27 }
  0xbf   :  { %7035 = vst [vmem:[%s13869_s1 + $0x7b4] sm:$0xf] %v7034_v28  ;;  %v7036_v29 = vld [vmem:[%s13868_s0 + $0x604] sm:$0xf]  ;;  %v7038_v30 = vld [vmem:[%s13868_s0 + $0x554] sm:$0xf] }
  0xc0   :  { %v7040_v31 = vld [vmem:[%s13868_s0 + $0x4a4] sm:$0xf]  ;;  %7037 = vst [vmem:[%s13869_s1 + $0x864] sm:$0xf] %v7036_v29  ;;  %7039 = vst [vmem:[%s13869_s1 + $0x914] sm:$0xf] %v7038_v30 }
  0xc1   :  { %7041 = vst [vmem:[%s13869_s1 + $0x9c4] sm:$0xf] %v7040_v31  ;;  %v7042_v32 = vld [vmem:[%s13868_s0 + $0x3f4] sm:$0xf]  ;;  %v7044_v33 = vld [vmem:[%s13868_s0 + $0x344] sm:$0xf] }
  0xc2   :  { %v7046_v34 = vld [vmem:[%s13868_s0 + $0x294] sm:$0xf]  ;;  %7043 = vst [vmem:[%s13869_s1 + $0xa74] sm:$0xf] %v7042_v32  ;;  %7045 = vst [vmem:[%s13869_s1 + $0xb24] sm:$0xf] %v7044_v33 }
  0xc3   :  { %7047 = vst [vmem:[%s13869_s1 + $0xbd4] sm:$0xf] %v7046_v34  ;;  %v7048_v35 = vld [vmem:[%s13868_s0 + $0x1e4] sm:$0xf]  ;;  %v7050_v36 = vld [vmem:[%s13868_s0 + $0x134] sm:$0xf] }
  0xc4   :  { %v7052_v37 = vld [vmem:[%s13868_s0 + $0x84] sm:$0xf]  ;;  %7049 = vst [vmem:[%s13869_s1 + $0xc84] sm:$0xf] %v7048_v35  ;;  %7051 = vst [vmem:[%s13869_s1 + $0xd34] sm:$0xf] %v7050_v36 }
  0xc5   :  { %7053 = vst [vmem:[%s13869_s1 + $0xde4] sm:$0xf] %v7052_v37  ;;  %v7054_v38 = vld [vmem:[%s13868_s0 + $0xe34] sm:$0xf]  ;;  %v7056_v39 = vld [vmem:[%s13868_s0 + $0xd84] sm:$0xf] }
  0xc6   :  { %v7058_v40 = vld [vmem:[%s13868_s0 + $0xcd4] sm:$0xf]  ;;  %7055 = vst [vmem:[%s13869_s1 + $0x34] sm:$0xf] %v7054_v38  ;;  %7057 = vst [vmem:[%s13869_s1 + $0xe4] sm:$0xf] %v7056_v39 }
  0xc7   :  { %7059 = vst [vmem:[%s13869_s1 + $0x194] sm:$0xf] %v7058_v40  ;;  %v7060_v41 = vld [vmem:[%s13868_s0 + $0xc24] sm:$0xf]  ;;  %v7062_v42 = vld [vmem:[%s13868_s0 + $0xb74] sm:$0xf] }
  0xc8   :  { %v7064_v43 = vld [vmem:[%s13868_s0 + $0xac4] sm:$0xf]  ;;  %7061 = vst [vmem:[%s13869_s1 + $0x244] sm:$0xf] %v7060_v41  ;;  %7063 = vst [vmem:[%s13869_s1 + $0x2f4] sm:$0xf] %v7062_v42 }
  0xc9   :  { %7065 = vst [vmem:[%s13869_s1 + $0x3a4] sm:$0xf] %v7064_v43  ;;  %v7066_v44 = vld [vmem:[%s13868_s0 + $0xa14] sm:$0xf]  ;;  %v7068_v45 = vld [vmem:[%s13868_s0 + $0x964] sm:$0xf] }
  0xca   :  { %v7070_v46 = vld [vmem:[%s13868_s0 + $0x8b4] sm:$0xf]  ;;  %7067 = vst [vmem:[%s13869_s1 + $0x454] sm:$0xf] %v7066_v44  ;;  %7069 = vst [vmem:[%s13869_s1 + $0x504] sm:$0xf] %v7068_v45 }
  0xcb   :  { %7071 = vst [vmem:[%s13869_s1 + $0x5b4] sm:$0xf] %v7070_v46  ;;  %v7072_v47 = vld [vmem:[%s13868_s0 + $0x804] sm:$0xf]  ;;  %v7074_v48 = vld [vmem:[%s13868_s0 + $0x754] sm:$0xf] }
  0xcc   :  { %v7076_v49 = vld [vmem:[%s13868_s0 + $0x6a4] sm:$0xf]  ;;  %7073 = vst [vmem:[%s13869_s1 + $0x664] sm:$0xf] %v7072_v47  ;;  %7075 = vst [vmem:[%s13869_s1 + $0x714] sm:$0xf] %v7074_v48 }
  0xcd   :  { %7077 = vst [vmem:[%s13869_s1 + $0x7c4] sm:$0xf] %v7076_v49  ;;  %v7078_v50 = vld [vmem:[%s13868_s0 + $0x5f4] sm:$0xf]  ;;  %v7080_v51 = vld [vmem:[%s13868_s0 + $0x544] sm:$0xf] }
  0xce   :  { %v7082_v52 = vld [vmem:[%s13868_s0 + $0x494] sm:$0xf]  ;;  %7079 = vst [vmem:[%s13869_s1 + $0x874] sm:$0xf] %v7078_v50  ;;  %7081 = vst [vmem:[%s13869_s1 + $0x924] sm:$0xf] %v7080_v51 }
  0xcf   :  { %7083 = vst [vmem:[%s13869_s1 + $0x9d4] sm:$0xf] %v7082_v52  ;;  %v7084_v53 = vld [vmem:[%s13868_s0 + $0x3e4] sm:$0xf]  ;;  %v7086_v54 = vld [vmem:[%s13868_s0 + $0x334] sm:$0xf] }
  0xd0   :  { %v7088_v55 = vld [vmem:[%s13868_s0 + $0x284] sm:$0xf]  ;;  %7085 = vst [vmem:[%s13869_s1 + $0xa84] sm:$0xf] %v7084_v53  ;;  %7087 = vst [vmem:[%s13869_s1 + $0xb34] sm:$0xf] %v7086_v54 }
  0xd1   :  { %7089 = vst [vmem:[%s13869_s1 + $0xbe4] sm:$0xf] %v7088_v55  ;;  %v7090_v56 = vld [vmem:[%s13868_s0 + $0x1d4] sm:$0xf]  ;;  %v7092_v57 = vld [vmem:[%s13868_s0 + $0x124] sm:$0xf] }
  0xd2   :  { %v7094_v58 = vld [vmem:[%s13868_s0 + $0x74] sm:$0xf]  ;;  %7091 = vst [vmem:[%s13869_s1 + $0xc94] sm:$0xf] %v7090_v56  ;;  %7093 = vst [vmem:[%s13869_s1 + $0xd44] sm:$0xf] %v7092_v57 }
  0xd3   :  { %7095 = vst [vmem:[%s13869_s1 + $0xdf4] sm:$0xf] %v7094_v58  ;;  %v7096_v59 = vld [vmem:[%s13868_s0 + $0xe24] sm:$0xf]  ;;  %v7098_v60 = vld [vmem:[%s13868_s0 + $0xd74] sm:$0xf] }
  0xd4   :  { %v7100_v61 = vld [vmem:[%s13868_s0 + $0xcc4] sm:$0xf]  ;;  %7097 = vst [vmem:[%s13869_s1 + $0x44] sm:$0xf] %v7096_v59  ;;  %7099 = vst [vmem:[%s13869_s1 + $0xf4] sm:$0xf] %v7098_v60 }
  0xd5   :  { %7101 = vst [vmem:[%s13869_s1 + $0x1a4] sm:$0xf] %v7100_v61  ;;  %v7102_v62 = vld [vmem:[%s13868_s0 + $0xc14] sm:$0xf]  ;;  %v7104_v63 = vld [vmem:[%s13868_s0 + $0xb64] sm:$0xf] }
  0xd6   :  { %v7106_v0 = vld [vmem:[%s13868_s0 + $0xab4] sm:$0xf]  ;;  %7103 = vst [vmem:[%s13869_s1 + $0x254] sm:$0xf] %v7102_v62  ;;  %7105 = vst [vmem:[%s13869_s1 + $0x304] sm:$0xf] %v7104_v63 }
  0xd7   :  { %7107 = vst [vmem:[%s13869_s1 + $0x3b4] sm:$0xf] %v7106_v0  ;;  %v7108_v1 = vld [vmem:[%s13868_s0 + $0xa04] sm:$0xf]  ;;  %v7110_v2 = vld [vmem:[%s13868_s0 + $0x954] sm:$0xf] }
  0xd8   :  { %v7112_v3 = vld [vmem:[%s13868_s0 + $0x8a4] sm:$0xf]  ;;  %7109 = vst [vmem:[%s13869_s1 + $0x464] sm:$0xf] %v7108_v1  ;;  %7111 = vst [vmem:[%s13869_s1 + $0x514] sm:$0xf] %v7110_v2 }
  0xd9   :  { %7113 = vst [vmem:[%s13869_s1 + $0x5c4] sm:$0xf] %v7112_v3  ;;  %v7114_v4 = vld [vmem:[%s13868_s0 + $0x7f4] sm:$0xf]  ;;  %v7116_v5 = vld [vmem:[%s13868_s0 + $0x744] sm:$0xf] }
  0xda   :  { %v7118_v6 = vld [vmem:[%s13868_s0 + $0x694] sm:$0xf]  ;;  %7115 = vst [vmem:[%s13869_s1 + $0x674] sm:$0xf] %v7114_v4  ;;  %7117 = vst [vmem:[%s13869_s1 + $0x724] sm:$0xf] %v7116_v5 }
  0xdb   :  { %7119 = vst [vmem:[%s13869_s1 + $0x7d4] sm:$0xf] %v7118_v6  ;;  %v7120_v7 = vld [vmem:[%s13868_s0 + $0x5e4] sm:$0xf]  ;;  %v7122_v8 = vld [vmem:[%s13868_s0 + $0x534] sm:$0xf] }
  0xdc   :  { %v7124_v9 = vld [vmem:[%s13868_s0 + $0x484] sm:$0xf]  ;;  %7121 = vst [vmem:[%s13869_s1 + $0x884] sm:$0xf] %v7120_v7  ;;  %7123 = vst [vmem:[%s13869_s1 + $0x934] sm:$0xf] %v7122_v8 }
  0xdd   :  { %7125 = vst [vmem:[%s13869_s1 + $0x9e4] sm:$0xf] %v7124_v9  ;;  %v7126_v10 = vld [vmem:[%s13868_s0 + $0x3d4] sm:$0xf]  ;;  %v7128_v11 = vld [vmem:[%s13868_s0 + $0x324] sm:$0xf] }
  0xde   :  { %v7130_v12 = vld [vmem:[%s13868_s0 + $0x274] sm:$0xf]  ;;  %7127 = vst [vmem:[%s13869_s1 + $0xa94] sm:$0xf] %v7126_v10  ;;  %7129 = vst [vmem:[%s13869_s1 + $0xb44] sm:$0xf] %v7128_v11 }
  0xdf   :  { %7131 = vst [vmem:[%s13869_s1 + $0xbf4] sm:$0xf] %v7130_v12  ;;  %v7132_v13 = vld [vmem:[%s13868_s0 + $0x1c4] sm:$0xf]  ;;  %v7134_v14 = vld [vmem:[%s13868_s0 + $0x114] sm:$0xf] }
  0xe0   :  { %v7136_v15 = vld [vmem:[%s13868_s0 + $0x64] sm:$0xf]  ;;  %7133 = vst [vmem:[%s13869_s1 + $0xca4] sm:$0xf] %v7132_v13  ;;  %7135 = vst [vmem:[%s13869_s1 + $0xd54] sm:$0xf] %v7134_v14 }
  0xe1   :  { %7137 = vst [vmem:[%s13869_s1 + $0xe04] sm:$0xf] %v7136_v15  ;;  %v7138_v16 = vld [vmem:[%s13868_s0 + $0xe14] sm:$0xf]  ;;  %v7140_v17 = vld [vmem:[%s13868_s0 + $0xd64] sm:$0xf] }
  0xe2   :  { %v7142_v18 = vld [vmem:[%s13868_s0 + $0xcb4] sm:$0xf]  ;;  %7139 = vst [vmem:[%s13869_s1 + $0x54] sm:$0xf] %v7138_v16  ;;  %7141 = vst [vmem:[%s13869_s1 + $0x104] sm:$0xf] %v7140_v17 }
  0xe3   :  { %7143 = vst [vmem:[%s13869_s1 + $0x1b4] sm:$0xf] %v7142_v18  ;;  %v7144_v19 = vld [vmem:[%s13868_s0 + $0xc04] sm:$0xf]  ;;  %v7146_v20 = vld [vmem:[%s13868_s0 + $0xb54] sm:$0xf] }
  0xe4   :  { %v7148_v21 = vld [vmem:[%s13868_s0 + $0xaa4] sm:$0xf]  ;;  %7145 = vst [vmem:[%s13869_s1 + $0x264] sm:$0xf] %v7144_v19  ;;  %7147 = vst [vmem:[%s13869_s1 + $0x314] sm:$0xf] %v7146_v20 }
  0xe5   :  { %7149 = vst [vmem:[%s13869_s1 + $0x3c4] sm:$0xf] %v7148_v21  ;;  %v7150_v22 = vld [vmem:[%s13868_s0 + $0x9f4] sm:$0xf]  ;;  %v7152_v23 = vld [vmem:[%s13868_s0 + $0x944] sm:$0xf] }
  0xe6   :  { %v7154_v24 = vld [vmem:[%s13868_s0 + $0x894] sm:$0xf]  ;;  %7151 = vst [vmem:[%s13869_s1 + $0x474] sm:$0xf] %v7150_v22  ;;  %7153 = vst [vmem:[%s13869_s1 + $0x524] sm:$0xf] %v7152_v23 }
  0xe7   :  { %7155 = vst [vmem:[%s13869_s1 + $0x5d4] sm:$0xf] %v7154_v24  ;;  %v7156_v25 = vld [vmem:[%s13868_s0 + $0x7e4] sm:$0xf]  ;;  %v7158_v26 = vld [vmem:[%s13868_s0 + $0x734] sm:$0xf] }
  0xe8   :  { %v7160_v27 = vld [vmem:[%s13868_s0 + $0x684] sm:$0xf]  ;;  %7157 = vst [vmem:[%s13869_s1 + $0x684] sm:$0xf] %v7156_v25  ;;  %7159 = vst [vmem:[%s13869_s1 + $0x734] sm:$0xf] %v7158_v26 }
  0xe9   :  { %7161 = vst [vmem:[%s13869_s1 + $0x7e4] sm:$0xf] %v7160_v27  ;;  %v7162_v28 = vld [vmem:[%s13868_s0 + $0x5d4] sm:$0xf]  ;;  %v7164_v29 = vld [vmem:[%s13868_s0 + $0x524] sm:$0xf] }
  0xea   :  { %v7166_v30 = vld [vmem:[%s13868_s0 + $0x474] sm:$0xf]  ;;  %7163 = vst [vmem:[%s13869_s1 + $0x894] sm:$0xf] %v7162_v28  ;;  %7165 = vst [vmem:[%s13869_s1 + $0x944] sm:$0xf] %v7164_v29 }
  0xeb   :  { %7167 = vst [vmem:[%s13869_s1 + $0x9f4] sm:$0xf] %v7166_v30  ;;  %v7168_v31 = vld [vmem:[%s13868_s0 + $0x3c4] sm:$0xf]  ;;  %v7170_v32 = vld [vmem:[%s13868_s0 + $0x314] sm:$0xf] }
  0xec   :  { %v7172_v33 = vld [vmem:[%s13868_s0 + $0x264] sm:$0xf]  ;;  %7169 = vst [vmem:[%s13869_s1 + $0xaa4] sm:$0xf] %v7168_v31  ;;  %7171 = vst [vmem:[%s13869_s1 + $0xb54] sm:$0xf] %v7170_v32 }
  0xed   :  { %7173 = vst [vmem:[%s13869_s1 + $0xc04] sm:$0xf] %v7172_v33  ;;  %v7174_v34 = vld [vmem:[%s13868_s0 + $0x1b4] sm:$0xf]  ;;  %v7176_v35 = vld [vmem:[%s13868_s0 + $0x104] sm:$0xf] }
  0xee   :  { %v7178_v36 = vld [vmem:[%s13868_s0 + $0x54] sm:$0xf]  ;;  %7175 = vst [vmem:[%s13869_s1 + $0xcb4] sm:$0xf] %v7174_v34  ;;  %7177 = vst [vmem:[%s13869_s1 + $0xd64] sm:$0xf] %v7176_v35 }
  0xef   :  { %7179 = vst [vmem:[%s13869_s1 + $0xe14] sm:$0xf] %v7178_v36  ;;  %v7180_v37 = vld [vmem:[%s13868_s0 + $0xe04] sm:$0xf]  ;;  %v7182_v38 = vld [vmem:[%s13868_s0 + $0xd54] sm:$0xf] }
  0xf0   :  { %v7184_v39 = vld [vmem:[%s13868_s0 + $0xca4] sm:$0xf]  ;;  %7181 = vst [vmem:[%s13869_s1 + $0x64] sm:$0xf] %v7180_v37  ;;  %7183 = vst [vmem:[%s13869_s1 + $0x114] sm:$0xf] %v7182_v38 }
  0xf1   :  { %7185 = vst [vmem:[%s13869_s1 + $0x1c4] sm:$0xf] %v7184_v39  ;;  %v7186_v40 = vld [vmem:[%s13868_s0 + $0xbf4] sm:$0xf]  ;;  %v7188_v41 = vld [vmem:[%s13868_s0 + $0xb44] sm:$0xf] }
  0xf2   :  { %v7190_v42 = vld [vmem:[%s13868_s0 + $0xa94] sm:$0xf]  ;;  %7187 = vst [vmem:[%s13869_s1 + $0x274] sm:$0xf] %v7186_v40  ;;  %7189 = vst [vmem:[%s13869_s1 + $0x324] sm:$0xf] %v7188_v41 }
  0xf3   :  { %7191 = vst [vmem:[%s13869_s1 + $0x3d4] sm:$0xf] %v7190_v42  ;;  %v7192_v43 = vld [vmem:[%s13868_s0 + $0x9e4] sm:$0xf]  ;;  %v7194_v44 = vld [vmem:[%s13868_s0 + $0x934] sm:$0xf] }
  0xf4   :  { %v7196_v45 = vld [vmem:[%s13868_s0 + $0x884] sm:$0xf]  ;;  %7193 = vst [vmem:[%s13869_s1 + $0x484] sm:$0xf] %v7192_v43  ;;  %7195 = vst [vmem:[%s13869_s1 + $0x534] sm:$0xf] %v7194_v44 }
  0xf5   :  { %7197 = vst [vmem:[%s13869_s1 + $0x5e4] sm:$0xf] %v7196_v45  ;;  %v7198_v46 = vld [vmem:[%s13868_s0 + $0x7d4] sm:$0xf]  ;;  %v7200_v47 = vld [vmem:[%s13868_s0 + $0x724] sm:$0xf] }
  0xf6   :  { %v7202_v48 = vld [vmem:[%s13868_s0 + $0x674] sm:$0xf]  ;;  %7199 = vst [vmem:[%s13869_s1 + $0x694] sm:$0xf] %v7198_v46  ;;  %7201 = vst [vmem:[%s13869_s1 + $0x744] sm:$0xf] %v7200_v47 }
  0xf7   :  { %7203 = vst [vmem:[%s13869_s1 + $0x7f4] sm:$0xf] %v7202_v48  ;;  %v7204_v49 = vld [vmem:[%s13868_s0 + $0x5c4] sm:$0xf]  ;;  %v7206_v50 = vld [vmem:[%s13868_s0 + $0x514] sm:$0xf] }
  0xf8   :  { %v7208_v51 = vld [vmem:[%s13868_s0 + $0x464] sm:$0xf]  ;;  %7205 = vst [vmem:[%s13869_s1 + $0x8a4] sm:$0xf] %v7204_v49  ;;  %7207 = vst [vmem:[%s13869_s1 + $0x954] sm:$0xf] %v7206_v50 }
  0xf9   :  { %7209 = vst [vmem:[%s13869_s1 + $0xa04] sm:$0xf] %v7208_v51  ;;  %v7210_v52 = vld [vmem:[%s13868_s0 + $0x3b4] sm:$0xf]  ;;  %v7212_v53 = vld [vmem:[%s13868_s0 + $0x304] sm:$0xf] }
  0xfa   :  { %v7214_v54 = vld [vmem:[%s13868_s0 + $0x254] sm:$0xf]  ;;  %7211 = vst [vmem:[%s13869_s1 + $0xab4] sm:$0xf] %v7210_v52  ;;  %7213 = vst [vmem:[%s13869_s1 + $0xb64] sm:$0xf] %v7212_v53 }
  0xfb   :  { %7215 = vst [vmem:[%s13869_s1 + $0xc14] sm:$0xf] %v7214_v54  ;;  %v7216_v55 = vld [vmem:[%s13868_s0 + $0x1a4] sm:$0xf]  ;;  %v7218_v56 = vld [vmem:[%s13868_s0 + $0xf4] sm:$0xf] }
  0xfc   :  { %v7220_v57 = vld [vmem:[%s13868_s0 + $0x44] sm:$0xf]  ;;  %7217 = vst [vmem:[%s13869_s1 + $0xcc4] sm:$0xf] %v7216_v55  ;;  %7219 = vst [vmem:[%s13869_s1 + $0xd74] sm:$0xf] %v7218_v56 }
  0xfd   :  { %7221 = vst [vmem:[%s13869_s1 + $0xe24] sm:$0xf] %v7220_v57  ;;  %v7222_v58 = vld [vmem:[%s13868_s0 + $0xdf4] sm:$0xf]  ;;  %v7224_v59 = vld [vmem:[%s13868_s0 + $0xd44] sm:$0xf] }
  0xfe   :  { %v7226_v60 = vld [vmem:[%s13868_s0 + $0xc94] sm:$0xf]  ;;  %7223 = vst [vmem:[%s13869_s1 + $0x74] sm:$0xf] %v7222_v58  ;;  %7225 = vst [vmem:[%s13869_s1 + $0x124] sm:$0xf] %v7224_v59 }
  0xff   :  { %7227 = vst [vmem:[%s13869_s1 + $0x1d4] sm:$0xf] %v7226_v60  ;;  %v7228_v61 = vld [vmem:[%s13868_s0 + $0xbe4] sm:$0xf]  ;;  %v7230_v62 = vld [vmem:[%s13868_s0 + $0xb34] sm:$0xf] }
 0x100   :  { %v7232_v63 = vld [vmem:[%s13868_s0 + $0xa84] sm:$0xf]  ;;  %7229 = vst [vmem:[%s13869_s1 + $0x284] sm:$0xf] %v7228_v61  ;;  %7231 = vst [vmem:[%s13869_s1 + $0x334] sm:$0xf] %v7230_v62 }
 0x101   :  { %7233 = vst [vmem:[%s13869_s1 + $0x3e4] sm:$0xf] %v7232_v63  ;;  %v7234_v0 = vld [vmem:[%s13868_s0 + $0x9d4] sm:$0xf]  ;;  %v7236_v1 = vld [vmem:[%s13868_s0 + $0x924] sm:$0xf] }
 0x102   :  { %v7238_v2 = vld [vmem:[%s13868_s0 + $0x874] sm:$0xf]  ;;  %7235 = vst [vmem:[%s13869_s1 + $0x494] sm:$0xf] %v7234_v0  ;;  %7237 = vst [vmem:[%s13869_s1 + $0x544] sm:$0xf] %v7236_v1 }
 0x103   :  { %7239 = vst [vmem:[%s13869_s1 + $0x5f4] sm:$0xf] %v7238_v2  ;;  %v7240_v3 = vld [vmem:[%s13868_s0 + $0x7c4] sm:$0xf]  ;;  %v7242_v4 = vld [vmem:[%s13868_s0 + $0x714] sm:$0xf] }
 0x104   :  { %v7244_v5 = vld [vmem:[%s13868_s0 + $0x664] sm:$0xf]  ;;  %7241 = vst [vmem:[%s13869_s1 + $0x6a4] sm:$0xf] %v7240_v3  ;;  %7243 = vst [vmem:[%s13869_s1 + $0x754] sm:$0xf] %v7242_v4 }
 0x105   :  { %7245 = vst [vmem:[%s13869_s1 + $0x804] sm:$0xf] %v7244_v5  ;;  %v7246_v6 = vld [vmem:[%s13868_s0 + $0x5b4] sm:$0xf]  ;;  %v7248_v7 = vld [vmem:[%s13868_s0 + $0x504] sm:$0xf] }
 0x106   :  { %v7250_v8 = vld [vmem:[%s13868_s0 + $0x454] sm:$0xf]  ;;  %7247 = vst [vmem:[%s13869_s1 + $0x8b4] sm:$0xf] %v7246_v6  ;;  %7249 = vst [vmem:[%s13869_s1 + $0x964] sm:$0xf] %v7248_v7 }
 0x107   :  { %7251 = vst [vmem:[%s13869_s1 + $0xa14] sm:$0xf] %v7250_v8  ;;  %v7252_v9 = vld [vmem:[%s13868_s0 + $0x3a4] sm:$0xf]  ;;  %v7254_v10 = vld [vmem:[%s13868_s0 + $0x2f4] sm:$0xf] }
 0x108   :  { %v7256_v11 = vld [vmem:[%s13868_s0 + $0x244] sm:$0xf]  ;;  %7253 = vst [vmem:[%s13869_s1 + $0xac4] sm:$0xf] %v7252_v9  ;;  %7255 = vst [vmem:[%s13869_s1 + $0xb74] sm:$0xf] %v7254_v10 }
 0x109   :  { %7257 = vst [vmem:[%s13869_s1 + $0xc24] sm:$0xf] %v7256_v11  ;;  %v7258_v12 = vld [vmem:[%s13868_s0 + $0x194] sm:$0xf]  ;;  %v7260_v13 = vld [vmem:[%s13868_s0 + $0xe4] sm:$0xf] }
 0x10a   :  { %v7262_v14 = vld [vmem:[%s13868_s0 + $0x34] sm:$0xf]  ;;  %7259 = vst [vmem:[%s13869_s1 + $0xcd4] sm:$0xf] %v7258_v12  ;;  %7261 = vst [vmem:[%s13869_s1 + $0xd84] sm:$0xf] %v7260_v13 }
 0x10b   :  { %7263 = vst [vmem:[%s13869_s1 + $0xe34] sm:$0xf] %v7262_v14  ;;  %v7264_v15 = vld [vmem:[%s13868_s0 + $0xde4] sm:$0xf]  ;;  %v7266_v16 = vld [vmem:[%s13868_s0 + $0xd34] sm:$0xf] }
 0x10c   :  { %v7268_v17 = vld [vmem:[%s13868_s0 + $0xc84] sm:$0xf]  ;;  %7265 = vst [vmem:[%s13869_s1 + $0x84] sm:$0xf] %v7264_v15  ;;  %7267 = vst [vmem:[%s13869_s1 + $0x134] sm:$0xf] %v7266_v16 }
 0x10d   :  { %7269 = vst [vmem:[%s13869_s1 + $0x1e4] sm:$0xf] %v7268_v17  ;;  %v7270_v18 = vld [vmem:[%s13868_s0 + $0xbd4] sm:$0xf]  ;;  %v7272_v19 = vld [vmem:[%s13868_s0 + $0xb24] sm:$0xf] }
 0x10e   :  { %v7274_v20 = vld [vmem:[%s13868_s0 + $0xa74] sm:$0xf]  ;;  %7271 = vst [vmem:[%s13869_s1 + $0x294] sm:$0xf] %v7270_v18  ;;  %7273 = vst [vmem:[%s13869_s1 + $0x344] sm:$0xf] %v7272_v19 }
 0x10f   :  { %7275 = vst [vmem:[%s13869_s1 + $0x3f4] sm:$0xf] %v7274_v20  ;;  %v7276_v21 = vld [vmem:[%s13868_s0 + $0x9c4] sm:$0xf]  ;;  %v7278_v22 = vld [vmem:[%s13868_s0 + $0x914] sm:$0xf] }
 0x110   :  { %v7280_v23 = vld [vmem:[%s13868_s0 + $0x864] sm:$0xf]  ;;  %7277 = vst [vmem:[%s13869_s1 + $0x4a4] sm:$0xf] %v7276_v21  ;;  %7279 = vst [vmem:[%s13869_s1 + $0x554] sm:$0xf] %v7278_v22 }
 0x111   :  { %7281 = vst [vmem:[%s13869_s1 + $0x604] sm:$0xf] %v7280_v23  ;;  %v7282_v24 = vld [vmem:[%s13868_s0 + $0x7b4] sm:$0xf]  ;;  %v7284_v25 = vld [vmem:[%s13868_s0 + $0x704] sm:$0xf] }
 0x112   :  { %v7286_v26 = vld [vmem:[%s13868_s0 + $0x654] sm:$0xf]  ;;  %7283 = vst [vmem:[%s13869_s1 + $0x6b4] sm:$0xf] %v7282_v24  ;;  %7285 = vst [vmem:[%s13869_s1 + $0x764] sm:$0xf] %v7284_v25 }
 0x113   :  { %7287 = vst [vmem:[%s13869_s1 + $0x814] sm:$0xf] %v7286_v26  ;;  %v7288_v27 = vld [vmem:[%s13868_s0 + $0x5a4] sm:$0xf]  ;;  %v7290_v28 = vld [vmem:[%s13868_s0 + $0x4f4] sm:$0xf] }
 0x114   :  { %v7292_v29 = vld [vmem:[%s13868_s0 + $0x444] sm:$0xf]  ;;  %7289 = vst [vmem:[%s13869_s1 + $0x8c4] sm:$0xf] %v7288_v27  ;;  %7291 = vst [vmem:[%s13869_s1 + $0x974] sm:$0xf] %v7290_v28 }
 0x115   :  { %7293 = vst [vmem:[%s13869_s1 + $0xa24] sm:$0xf] %v7292_v29  ;;  %v7294_v30 = vld [vmem:[%s13868_s0 + $0x394] sm:$0xf]  ;;  %v7296_v31 = vld [vmem:[%s13868_s0 + $0x2e4] sm:$0xf] }
 0x116   :  { %v7298_v32 = vld [vmem:[%s13868_s0 + $0x234] sm:$0xf]  ;;  %7295 = vst [vmem:[%s13869_s1 + $0xad4] sm:$0xf] %v7294_v30  ;;  %7297 = vst [vmem:[%s13869_s1 + $0xb84] sm:$0xf] %v7296_v31 }
 0x117   :  { %7299 = vst [vmem:[%s13869_s1 + $0xc34] sm:$0xf] %v7298_v32  ;;  %v7300_v33 = vld [vmem:[%s13868_s0 + $0x184] sm:$0xf]  ;;  %v7302_v34 = vld [vmem:[%s13868_s0 + $0xd4] sm:$0xf] }
 0x118   :  { %v7304_v35 = vld [vmem:[%s13868_s0 + $0x24] sm:$0xf]  ;;  %7301 = vst [vmem:[%s13869_s1 + $0xce4] sm:$0xf] %v7300_v33  ;;  %7303 = vst [vmem:[%s13869_s1 + $0xd94] sm:$0xf] %v7302_v34 }
 0x119   :  { %7305 = vst [vmem:[%s13869_s1 + $0xe44] sm:$0xf] %v7304_v35  ;;  %v7306_v36 = vld [vmem:[%s13868_s0 + $0xdd4] sm:$0xf]  ;;  %v7308_v37 = vld [vmem:[%s13868_s0 + $0xd24] sm:$0xf] }
 0x11a   :  { %v7310_v38 = vld [vmem:[%s13868_s0 + $0xc74] sm:$0xf]  ;;  %7307 = vst [vmem:[%s13869_s1 + $0x94] sm:$0xf] %v7306_v36  ;;  %7309 = vst [vmem:[%s13869_s1 + $0x144] sm:$0xf] %v7308_v37 }
 0x11b   :  { %7311 = vst [vmem:[%s13869_s1 + $0x1f4] sm:$0xf] %v7310_v38  ;;  %v7312_v39 = vld [vmem:[%s13868_s0 + $0xbc4] sm:$0xf]  ;;  %v7314_v40 = vld [vmem:[%s13868_s0 + $0xb14] sm:$0xf] }
 0x11c   :  { %v7316_v41 = vld [vmem:[%s13868_s0 + $0xa64] sm:$0xf]  ;;  %7313 = vst [vmem:[%s13869_s1 + $0x2a4] sm:$0xf] %v7312_v39  ;;  %7315 = vst [vmem:[%s13869_s1 + $0x354] sm:$0xf] %v7314_v40 }
 0x11d   :  { %7317 = vst [vmem:[%s13869_s1 + $0x404] sm:$0xf] %v7316_v41  ;;  %v7318_v42 = vld [vmem:[%s13868_s0 + $0x9b4] sm:$0xf]  ;;  %v7320_v43 = vld [vmem:[%s13868_s0 + $0x904] sm:$0xf] }
 0x11e   :  { %v7322_v44 = vld [vmem:[%s13868_s0 + $0x854] sm:$0xf]  ;;  %7319 = vst [vmem:[%s13869_s1 + $0x4b4] sm:$0xf] %v7318_v42  ;;  %7321 = vst [vmem:[%s13869_s1 + $0x564] sm:$0xf] %v7320_v43 }
 0x11f   :  { %7323 = vst [vmem:[%s13869_s1 + $0x614] sm:$0xf] %v7322_v44  ;;  %v7324_v45 = vld [vmem:[%s13868_s0 + $0x7a4] sm:$0xf]  ;;  %v7326_v46 = vld [vmem:[%s13868_s0 + $0x6f4] sm:$0xf] }
 0x120   :  { %v7328_v47 = vld [vmem:[%s13868_s0 + $0x644] sm:$0xf]  ;;  %7325 = vst [vmem:[%s13869_s1 + $0x6c4] sm:$0xf] %v7324_v45  ;;  %7327 = vst [vmem:[%s13869_s1 + $0x774] sm:$0xf] %v7326_v46 }
 0x121   :  { %7329 = vst [vmem:[%s13869_s1 + $0x824] sm:$0xf] %v7328_v47  ;;  %v7330_v48 = vld [vmem:[%s13868_s0 + $0x594] sm:$0xf]  ;;  %v7332_v49 = vld [vmem:[%s13868_s0 + $0x4e4] sm:$0xf] }
 0x122   :  { %v7334_v50 = vld [vmem:[%s13868_s0 + $0x434] sm:$0xf]  ;;  %7331 = vst [vmem:[%s13869_s1 + $0x8d4] sm:$0xf] %v7330_v48  ;;  %7333 = vst [vmem:[%s13869_s1 + $0x984] sm:$0xf] %v7332_v49 }
 0x123   :  { %7335 = vst [vmem:[%s13869_s1 + $0xa34] sm:$0xf] %v7334_v50  ;;  %v7336_v51 = vld [vmem:[%s13868_s0 + $0x384] sm:$0xf]  ;;  %v7338_v52 = vld [vmem:[%s13868_s0 + $0x2d4] sm:$0xf] }
 0x124   :  { %v7340_v53 = vld [vmem:[%s13868_s0 + $0x224] sm:$0xf]  ;;  %7337 = vst [vmem:[%s13869_s1 + $0xae4] sm:$0xf] %v7336_v51  ;;  %7339 = vst [vmem:[%s13869_s1 + $0xb94] sm:$0xf] %v7338_v52 }
 0x125   :  { %7341 = vst [vmem:[%s13869_s1 + $0xc44] sm:$0xf] %v7340_v53  ;;  %v7342_v54 = vld [vmem:[%s13868_s0 + $0x174] sm:$0xf]  ;;  %v7344_v55 = vld [vmem:[%s13868_s0 + $0xc4] sm:$0xf] }
 0x126   :  { %v7346_v56 = vld [vmem:[%s13868_s0 + $0x14] sm:$0xf]  ;;  %7343 = vst [vmem:[%s13869_s1 + $0xcf4] sm:$0xf] %v7342_v54  ;;  %7345 = vst [vmem:[%s13869_s1 + $0xda4] sm:$0xf] %v7344_v55 }
 0x127   :  { %7347 = vst [vmem:[%s13869_s1 + $0xe54] sm:$0xf] %v7346_v56  ;;  %v7348_v57 = vld [vmem:[%s13868_s0 + $0xdc4] sm:$0xf]  ;;  %v7350_v58 = vld [vmem:[%s13868_s0 + $0xd14] sm:$0xf] }
 0x128   :  { %v7352_v59 = vld [vmem:[%s13868_s0 + $0xc64] sm:$0xf]  ;;  %7349 = vst [vmem:[%s13869_s1 + $0xa4] sm:$0xf] %v7348_v57  ;;  %7351 = vst [vmem:[%s13869_s1 + $0x154] sm:$0xf] %v7350_v58 }
 0x129   :  { %7353 = vst [vmem:[%s13869_s1 + $0x204] sm:$0xf] %v7352_v59  ;;  %v7354_v60 = vld [vmem:[%s13868_s0 + $0xbb4] sm:$0xf]  ;;  %v7356_v61 = vld [vmem:[%s13868_s0 + $0xb04] sm:$0xf] }
 0x12a   :  { %v7358_v62 = vld [vmem:[%s13868_s0 + $0xa54] sm:$0xf]  ;;  %7355 = vst [vmem:[%s13869_s1 + $0x2b4] sm:$0xf] %v7354_v60  ;;  %7357 = vst [vmem:[%s13869_s1 + $0x364] sm:$0xf] %v7356_v61 }
 0x12b   :  { %7359 = vst [vmem:[%s13869_s1 + $0x414] sm:$0xf] %v7358_v62  ;;  %v7360_v63 = vld [vmem:[%s13868_s0 + $0x9a4] sm:$0xf]  ;;  %v7362_v0 = vld [vmem:[%s13868_s0 + $0x8f4] sm:$0xf] }
 0x12c   :  { %v7364_v1 = vld [vmem:[%s13868_s0 + $0x844] sm:$0xf]  ;;  %7361 = vst [vmem:[%s13869_s1 + $0x4c4] sm:$0xf] %v7360_v63  ;;  %7363 = vst [vmem:[%s13869_s1 + $0x574] sm:$0xf] %v7362_v0 }
 0x12d   :  { %7365 = vst [vmem:[%s13869_s1 + $0x624] sm:$0xf] %v7364_v1  ;;  %v7366_v2 = vld [vmem:[%s13868_s0 + $0x794] sm:$0xf]  ;;  %v7368_v3 = vld [vmem:[%s13868_s0 + $0x6e4] sm:$0xf] }
 0x12e   :  { %v7370_v4 = vld [vmem:[%s13868_s0 + $0x634] sm:$0xf]  ;;  %7367 = vst [vmem:[%s13869_s1 + $0x6d4] sm:$0xf] %v7366_v2  ;;  %7369 = vst [vmem:[%s13869_s1 + $0x784] sm:$0xf] %v7368_v3 }
 0x12f   :  { %7371 = vst [vmem:[%s13869_s1 + $0x834] sm:$0xf] %v7370_v4  ;;  %v7372_v5 = vld [vmem:[%s13868_s0 + $0x584] sm:$0xf]  ;;  %v7374_v6 = vld [vmem:[%s13868_s0 + $0x4d4] sm:$0xf] }
 0x130   :  { %v7376_v7 = vld [vmem:[%s13868_s0 + $0x424] sm:$0xf]  ;;  %7373 = vst [vmem:[%s13869_s1 + $0x8e4] sm:$0xf] %v7372_v5  ;;  %7375 = vst [vmem:[%s13869_s1 + $0x994] sm:$0xf] %v7374_v6 }
 0x131   :  { %7377 = vst [vmem:[%s13869_s1 + $0xa44] sm:$0xf] %v7376_v7  ;;  %v7378_v8 = vld [vmem:[%s13868_s0 + $0x374] sm:$0xf]  ;;  %v7380_v9 = vld [vmem:[%s13868_s0 + $0x2c4] sm:$0xf] }
 0x132   :  { %v7382_v10 = vld [vmem:[%s13868_s0 + $0x214] sm:$0xf]  ;;  %7379 = vst [vmem:[%s13869_s1 + $0xaf4] sm:$0xf] %v7378_v8  ;;  %7381 = vst [vmem:[%s13869_s1 + $0xba4] sm:$0xf] %v7380_v9 }
 0x133   :  { %7383 = vst [vmem:[%s13869_s1 + $0xc54] sm:$0xf] %v7382_v10  ;;  %v7384_v11 = vld [vmem:[%s13868_s0 + $0x164] sm:$0xf]  ;;  %v7386_v12 = vld [vmem:[%s13868_s0 + $0xb4] sm:$0xf] }
 0x134   :  { %v7388_v13 = vld [vmem:[%s13868_s0 + $0x4] sm:$0xf]  ;;  %7385 = vst [vmem:[%s13869_s1 + $0xd04] sm:$0xf] %v7384_v11  ;;  %7387 = vst [vmem:[%s13869_s1 + $0xdb4] sm:$0xf] %v7386_v12 }
 0x135   :  { %7389 = vst [vmem:[%s13869_s1 + $0xe64] sm:$0xf] %v7388_v13  ;;  %v7390_v14 = vld [vmem:[%s13868_s0 + $0xe68] sm:$0xf]  ;;  %v7392_v15 = vld [vmem:[%s13868_s0 + $0xdb8] sm:$0xf] }
 0x136   :  { %v7394_v16 = vld [vmem:[%s13868_s0 + $0xd08] sm:$0xf]  ;;  %7391 = vst [vmem:[%s13869_s1 + $0x8] sm:$0xf] %v7390_v14  ;;  %7393 = vst [vmem:[%s13869_s1 + $0xb8] sm:$0xf] %v7392_v15 }
 0x137   :  { %7395 = vst [vmem:[%s13869_s1 + $0x168] sm:$0xf] %v7394_v16  ;;  %v7396_v17 = vld [vmem:[%s13868_s0 + $0xc58] sm:$0xf]  ;;  %v7398_v18 = vld [vmem:[%s13868_s0 + $0xba8] sm:$0xf] }
 0x138   :  { %v7400_v19 = vld [vmem:[%s13868_s0 + $0xaf8] sm:$0xf]  ;;  %7397 = vst [vmem:[%s13869_s1 + $0x218] sm:$0xf] %v7396_v17  ;;  %7399 = vst [vmem:[%s13869_s1 + $0x2c8] sm:$0xf] %v7398_v18 }
 0x139   :  { %7401 = vst [vmem:[%s13869_s1 + $0x378] sm:$0xf] %v7400_v19  ;;  %v7402_v20 = vld [vmem:[%s13868_s0 + $0xa48] sm:$0xf]  ;;  %v7404_v21 = vld [vmem:[%s13868_s0 + $0x998] sm:$0xf] }
 0x13a   :  { %v7406_v22 = vld [vmem:[%s13868_s0 + $0x8e8] sm:$0xf]  ;;  %7403 = vst [vmem:[%s13869_s1 + $0x428] sm:$0xf] %v7402_v20  ;;  %7405 = vst [vmem:[%s13869_s1 + $0x4d8] sm:$0xf] %v7404_v21 }
 0x13b   :  { %7407 = vst [vmem:[%s13869_s1 + $0x588] sm:$0xf] %v7406_v22  ;;  %v7408_v23 = vld [vmem:[%s13868_s0 + $0x838] sm:$0xf]  ;;  %v7410_v24 = vld [vmem:[%s13868_s0 + $0x788] sm:$0xf] }
 0x13c   :  { %v7412_v25 = vld [vmem:[%s13868_s0 + $0x6d8] sm:$0xf]  ;;  %7409 = vst [vmem:[%s13869_s1 + $0x638] sm:$0xf] %v7408_v23  ;;  %7411 = vst [vmem:[%s13869_s1 + $0x6e8] sm:$0xf] %v7410_v24 }
 0x13d   :  { %7413 = vst [vmem:[%s13869_s1 + $0x798] sm:$0xf] %v7412_v25  ;;  %v7414_v26 = vld [vmem:[%s13868_s0 + $0x628] sm:$0xf]  ;;  %v7416_v27 = vld [vmem:[%s13868_s0 + $0x578] sm:$0xf] }
 0x13e   :  { %v7418_v28 = vld [vmem:[%s13868_s0 + $0x4c8] sm:$0xf]  ;;  %7415 = vst [vmem:[%s13869_s1 + $0x848] sm:$0xf] %v7414_v26  ;;  %7417 = vst [vmem:[%s13869_s1 + $0x8f8] sm:$0xf] %v7416_v27 }
 0x13f   :  { %7419 = vst [vmem:[%s13869_s1 + $0x9a8] sm:$0xf] %v7418_v28  ;;  %v7420_v29 = vld [vmem:[%s13868_s0 + $0x418] sm:$0xf]  ;;  %v7422_v30 = vld [vmem:[%s13868_s0 + $0x368] sm:$0xf] }
 0x140   :  { %v7424_v31 = vld [vmem:[%s13868_s0 + $0x2b8] sm:$0xf]  ;;  %7421 = vst [vmem:[%s13869_s1 + $0xa58] sm:$0xf] %v7420_v29  ;;  %7423 = vst [vmem:[%s13869_s1 + $0xb08] sm:$0xf] %v7422_v30 }
 0x141   :  { %7425 = vst [vmem:[%s13869_s1 + $0xbb8] sm:$0xf] %v7424_v31  ;;  %v7426_v32 = vld [vmem:[%s13868_s0 + $0x208] sm:$0xf]  ;;  %v7428_v33 = vld [vmem:[%s13868_s0 + $0x158] sm:$0xf] }
 0x142   :  { %v7430_v34 = vld [vmem:[%s13868_s0 + $0xa8] sm:$0xf]  ;;  %7427 = vst [vmem:[%s13869_s1 + $0xc68] sm:$0xf] %v7426_v32  ;;  %7429 = vst [vmem:[%s13869_s1 + $0xd18] sm:$0xf] %v7428_v33 }
 0x143   :  { %7431 = vst [vmem:[%s13869_s1 + $0xdc8] sm:$0xf] %v7430_v34  ;;  %v7432_v35 = vld [vmem:[%s13868_s0 + $0xe58] sm:$0xf]  ;;  %v7434_v36 = vld [vmem:[%s13868_s0 + $0xda8] sm:$0xf] }
 0x144   :  { %v7436_v37 = vld [vmem:[%s13868_s0 + $0xcf8] sm:$0xf]  ;;  %7433 = vst [vmem:[%s13869_s1 + $0x18] sm:$0xf] %v7432_v35  ;;  %7435 = vst [vmem:[%s13869_s1 + $0xc8] sm:$0xf] %v7434_v36 }
 0x145   :  { %7437 = vst [vmem:[%s13869_s1 + $0x178] sm:$0xf] %v7436_v37  ;;  %v7438_v38 = vld [vmem:[%s13868_s0 + $0xc48] sm:$0xf]  ;;  %v7440_v39 = vld [vmem:[%s13868_s0 + $0xb98] sm:$0xf] }
 0x146   :  { %v7442_v40 = vld [vmem:[%s13868_s0 + $0xae8] sm:$0xf]  ;;  %7439 = vst [vmem:[%s13869_s1 + $0x228] sm:$0xf] %v7438_v38  ;;  %7441 = vst [vmem:[%s13869_s1 + $0x2d8] sm:$0xf] %v7440_v39 }
 0x147   :  { %7443 = vst [vmem:[%s13869_s1 + $0x388] sm:$0xf] %v7442_v40  ;;  %v7444_v41 = vld [vmem:[%s13868_s0 + $0xa38] sm:$0xf]  ;;  %v7446_v42 = vld [vmem:[%s13868_s0 + $0x988] sm:$0xf] }
 0x148   :  { %v7448_v43 = vld [vmem:[%s13868_s0 + $0x8d8] sm:$0xf]  ;;  %7445 = vst [vmem:[%s13869_s1 + $0x438] sm:$0xf] %v7444_v41  ;;  %7447 = vst [vmem:[%s13869_s1 + $0x4e8] sm:$0xf] %v7446_v42 }
 0x149   :  { %7449 = vst [vmem:[%s13869_s1 + $0x598] sm:$0xf] %v7448_v43  ;;  %v7450_v44 = vld [vmem:[%s13868_s0 + $0x828] sm:$0xf]  ;;  %v7452_v45 = vld [vmem:[%s13868_s0 + $0x778] sm:$0xf] }
 0x14a   :  { %v7454_v46 = vld [vmem:[%s13868_s0 + $0x6c8] sm:$0xf]  ;;  %7451 = vst [vmem:[%s13869_s1 + $0x648] sm:$0xf] %v7450_v44  ;;  %7453 = vst [vmem:[%s13869_s1 + $0x6f8] sm:$0xf] %v7452_v45 }
 0x14b   :  { %7455 = vst [vmem:[%s13869_s1 + $0x7a8] sm:$0xf] %v7454_v46  ;;  %v7456_v47 = vld [vmem:[%s13868_s0 + $0x618] sm:$0xf]  ;;  %v7458_v48 = vld [vmem:[%s13868_s0 + $0x568] sm:$0xf] }
 0x14c   :  { %v7460_v49 = vld [vmem:[%s13868_s0 + $0x4b8] sm:$0xf]  ;;  %7457 = vst [vmem:[%s13869_s1 + $0x858] sm:$0xf] %v7456_v47  ;;  %7459 = vst [vmem:[%s13869_s1 + $0x908] sm:$0xf] %v7458_v48 }
 0x14d   :  { %7461 = vst [vmem:[%s13869_s1 + $0x9b8] sm:$0xf] %v7460_v49  ;;  %v7462_v50 = vld [vmem:[%s13868_s0 + $0x408] sm:$0xf]  ;;  %v7464_v51 = vld [vmem:[%s13868_s0 + $0x358] sm:$0xf] }
 0x14e   :  { %v7466_v52 = vld [vmem:[%s13868_s0 + $0x2a8] sm:$0xf]  ;;  %7463 = vst [vmem:[%s13869_s1 + $0xa68] sm:$0xf] %v7462_v50  ;;  %7465 = vst [vmem:[%s13869_s1 + $0xb18] sm:$0xf] %v7464_v51 }
 0x14f   :  { %7467 = vst [vmem:[%s13869_s1 + $0xbc8] sm:$0xf] %v7466_v52  ;;  %v7468_v53 = vld [vmem:[%s13868_s0 + $0x1f8] sm:$0xf]  ;;  %v7470_v54 = vld [vmem:[%s13868_s0 + $0x148] sm:$0xf] }
 0x150   :  { %v7472_v55 = vld [vmem:[%s13868_s0 + $0x98] sm:$0xf]  ;;  %7469 = vst [vmem:[%s13869_s1 + $0xc78] sm:$0xf] %v7468_v53  ;;  %7471 = vst [vmem:[%s13869_s1 + $0xd28] sm:$0xf] %v7470_v54 }
 0x151   :  { %7473 = vst [vmem:[%s13869_s1 + $0xdd8] sm:$0xf] %v7472_v55  ;;  %v7474_v56 = vld [vmem:[%s13868_s0 + $0xe48] sm:$0xf]  ;;  %v7476_v57 = vld [vmem:[%s13868_s0 + $0xd98] sm:$0xf] }
 0x152   :  { %v7478_v58 = vld [vmem:[%s13868_s0 + $0xce8] sm:$0xf]  ;;  %7475 = vst [vmem:[%s13869_s1 + $0x28] sm:$0xf] %v7474_v56  ;;  %7477 = vst [vmem:[%s13869_s1 + $0xd8] sm:$0xf] %v7476_v57 }
 0x153   :  { %7479 = vst [vmem:[%s13869_s1 + $0x188] sm:$0xf] %v7478_v58  ;;  %v7480_v59 = vld [vmem:[%s13868_s0 + $0xc38] sm:$0xf]  ;;  %v7482_v60 = vld [vmem:[%s13868_s0 + $0xb88] sm:$0xf] }
 0x154   :  { %v7484_v61 = vld [vmem:[%s13868_s0 + $0xad8] sm:$0xf]  ;;  %7481 = vst [vmem:[%s13869_s1 + $0x238] sm:$0xf] %v7480_v59  ;;  %7483 = vst [vmem:[%s13869_s1 + $0x2e8] sm:$0xf] %v7482_v60 }
 0x155   :  { %7485 = vst [vmem:[%s13869_s1 + $0x398] sm:$0xf] %v7484_v61  ;;  %v7486_v62 = vld [vmem:[%s13868_s0 + $0xa28] sm:$0xf]  ;;  %v7488_v63 = vld [vmem:[%s13868_s0 + $0x978] sm:$0xf] }
 0x156   :  { %v7490_v0 = vld [vmem:[%s13868_s0 + $0x8c8] sm:$0xf]  ;;  %7487 = vst [vmem:[%s13869_s1 + $0x448] sm:$0xf] %v7486_v62  ;;  %7489 = vst [vmem:[%s13869_s1 + $0x4f8] sm:$0xf] %v7488_v63 }
 0x157   :  { %7491 = vst [vmem:[%s13869_s1 + $0x5a8] sm:$0xf] %v7490_v0  ;;  %v7492_v1 = vld [vmem:[%s13868_s0 + $0x818] sm:$0xf]  ;;  %v7494_v2 = vld [vmem:[%s13868_s0 + $0x768] sm:$0xf] }
 0x158   :  { %v7496_v3 = vld [vmem:[%s13868_s0 + $0x6b8] sm:$0xf]  ;;  %7493 = vst [vmem:[%s13869_s1 + $0x658] sm:$0xf] %v7492_v1  ;;  %7495 = vst [vmem:[%s13869_s1 + $0x708] sm:$0xf] %v7494_v2 }
 0x159   :  { %7497 = vst [vmem:[%s13869_s1 + $0x7b8] sm:$0xf] %v7496_v3  ;;  %v7498_v4 = vld [vmem:[%s13868_s0 + $0x608] sm:$0xf]  ;;  %v7500_v5 = vld [vmem:[%s13868_s0 + $0x558] sm:$0xf] }
 0x15a   :  { %v7502_v6 = vld [vmem:[%s13868_s0 + $0x4a8] sm:$0xf]  ;;  %7499 = vst [vmem:[%s13869_s1 + $0x868] sm:$0xf] %v7498_v4  ;;  %7501 = vst [vmem:[%s13869_s1 + $0x918] sm:$0xf] %v7500_v5 }
 0x15b   :  { %7503 = vst [vmem:[%s13869_s1 + $0x9c8] sm:$0xf] %v7502_v6  ;;  %v7504_v7 = vld [vmem:[%s13868_s0 + $0x3f8] sm:$0xf]  ;;  %v7506_v8 = vld [vmem:[%s13868_s0 + $0x348] sm:$0xf] }
 0x15c   :  { %v7508_v9 = vld [vmem:[%s13868_s0 + $0x298] sm:$0xf]  ;;  %7505 = vst [vmem:[%s13869_s1 + $0xa78] sm:$0xf] %v7504_v7  ;;  %7507 = vst [vmem:[%s13869_s1 + $0xb28] sm:$0xf] %v7506_v8 }
 0x15d   :  { %7509 = vst [vmem:[%s13869_s1 + $0xbd8] sm:$0xf] %v7508_v9  ;;  %v7510_v10 = vld [vmem:[%s13868_s0 + $0x1e8] sm:$0xf]  ;;  %v7512_v11 = vld [vmem:[%s13868_s0 + $0x138] sm:$0xf] }
 0x15e   :  { %v7514_v12 = vld [vmem:[%s13868_s0 + $0x88] sm:$0xf]  ;;  %7511 = vst [vmem:[%s13869_s1 + $0xc88] sm:$0xf] %v7510_v10  ;;  %7513 = vst [vmem:[%s13869_s1 + $0xd38] sm:$0xf] %v7512_v11 }
 0x15f   :  { %7515 = vst [vmem:[%s13869_s1 + $0xde8] sm:$0xf] %v7514_v12  ;;  %v7516_v13 = vld [vmem:[%s13868_s0 + $0xe38] sm:$0xf]  ;;  %v7518_v14 = vld [vmem:[%s13868_s0 + $0xd88] sm:$0xf] }
 0x160   :  { %v7520_v15 = vld [vmem:[%s13868_s0 + $0xcd8] sm:$0xf]  ;;  %7517 = vst [vmem:[%s13869_s1 + $0x38] sm:$0xf] %v7516_v13  ;;  %7519 = vst [vmem:[%s13869_s1 + $0xe8] sm:$0xf] %v7518_v14 }
 0x161   :  { %7521 = vst [vmem:[%s13869_s1 + $0x198] sm:$0xf] %v7520_v15  ;;  %v7522_v16 = vld [vmem:[%s13868_s0 + $0xc28] sm:$0xf]  ;;  %v7524_v17 = vld [vmem:[%s13868_s0 + $0xb78] sm:$0xf] }
 0x162   :  { %v7526_v18 = vld [vmem:[%s13868_s0 + $0xac8] sm:$0xf]  ;;  %7523 = vst [vmem:[%s13869_s1 + $0x248] sm:$0xf] %v7522_v16  ;;  %7525 = vst [vmem:[%s13869_s1 + $0x2f8] sm:$0xf] %v7524_v17 }
 0x163   :  { %7527 = vst [vmem:[%s13869_s1 + $0x3a8] sm:$0xf] %v7526_v18  ;;  %v7528_v19 = vld [vmem:[%s13868_s0 + $0xa18] sm:$0xf]  ;;  %v7530_v20 = vld [vmem:[%s13868_s0 + $0x968] sm:$0xf] }
 0x164   :  { %v7532_v21 = vld [vmem:[%s13868_s0 + $0x8b8] sm:$0xf]  ;;  %7529 = vst [vmem:[%s13869_s1 + $0x458] sm:$0xf] %v7528_v19  ;;  %7531 = vst [vmem:[%s13869_s1 + $0x508] sm:$0xf] %v7530_v20 }
 0x165   :  { %7533 = vst [vmem:[%s13869_s1 + $0x5b8] sm:$0xf] %v7532_v21  ;;  %v7534_v22 = vld [vmem:[%s13868_s0 + $0x808] sm:$0xf]  ;;  %v7536_v23 = vld [vmem:[%s13868_s0 + $0x758] sm:$0xf] }
 0x166   :  { %v7538_v24 = vld [vmem:[%s13868_s0 + $0x6a8] sm:$0xf]  ;;  %7535 = vst [vmem:[%s13869_s1 + $0x668] sm:$0xf] %v7534_v22  ;;  %7537 = vst [vmem:[%s13869_s1 + $0x718] sm:$0xf] %v7536_v23 }
 0x167   :  { %7539 = vst [vmem:[%s13869_s1 + $0x7c8] sm:$0xf] %v7538_v24  ;;  %v7540_v25 = vld [vmem:[%s13868_s0 + $0x5f8] sm:$0xf]  ;;  %v7542_v26 = vld [vmem:[%s13868_s0 + $0x548] sm:$0xf] }
 0x168   :  { %v7544_v27 = vld [vmem:[%s13868_s0 + $0x498] sm:$0xf]  ;;  %7541 = vst [vmem:[%s13869_s1 + $0x878] sm:$0xf] %v7540_v25  ;;  %7543 = vst [vmem:[%s13869_s1 + $0x928] sm:$0xf] %v7542_v26 }
 0x169   :  { %7545 = vst [vmem:[%s13869_s1 + $0x9d8] sm:$0xf] %v7544_v27  ;;  %v7546_v28 = vld [vmem:[%s13868_s0 + $0x3e8] sm:$0xf]  ;;  %v7548_v29 = vld [vmem:[%s13868_s0 + $0x338] sm:$0xf] }
 0x16a   :  { %v7550_v30 = vld [vmem:[%s13868_s0 + $0x288] sm:$0xf]  ;;  %7547 = vst [vmem:[%s13869_s1 + $0xa88] sm:$0xf] %v7546_v28  ;;  %7549 = vst [vmem:[%s13869_s1 + $0xb38] sm:$0xf] %v7548_v29 }
 0x16b   :  { %7551 = vst [vmem:[%s13869_s1 + $0xbe8] sm:$0xf] %v7550_v30  ;;  %v7552_v31 = vld [vmem:[%s13868_s0 + $0x1d8] sm:$0xf]  ;;  %v7554_v32 = vld [vmem:[%s13868_s0 + $0x128] sm:$0xf] }
 0x16c   :  { %v7556_v33 = vld [vmem:[%s13868_s0 + $0x78] sm:$0xf]  ;;  %7553 = vst [vmem:[%s13869_s1 + $0xc98] sm:$0xf] %v7552_v31  ;;  %7555 = vst [vmem:[%s13869_s1 + $0xd48] sm:$0xf] %v7554_v32 }
 0x16d   :  { %7557 = vst [vmem:[%s13869_s1 + $0xdf8] sm:$0xf] %v7556_v33  ;;  %v7558_v34 = vld [vmem:[%s13868_s0 + $0xe28] sm:$0xf]  ;;  %v7560_v35 = vld [vmem:[%s13868_s0 + $0xd78] sm:$0xf] }
 0x16e   :  { %v7562_v36 = vld [vmem:[%s13868_s0 + $0xcc8] sm:$0xf]  ;;  %7559 = vst [vmem:[%s13869_s1 + $0x48] sm:$0xf] %v7558_v34  ;;  %7561 = vst [vmem:[%s13869_s1 + $0xf8] sm:$0xf] %v7560_v35 }
 0x16f   :  { %7563 = vst [vmem:[%s13869_s1 + $0x1a8] sm:$0xf] %v7562_v36  ;;  %v7564_v37 = vld [vmem:[%s13868_s0 + $0xc18] sm:$0xf]  ;;  %v7566_v38 = vld [vmem:[%s13868_s0 + $0xb68] sm:$0xf] }
 0x170   :  { %v7568_v39 = vld [vmem:[%s13868_s0 + $0xab8] sm:$0xf]  ;;  %7565 = vst [vmem:[%s13869_s1 + $0x258] sm:$0xf] %v7564_v37  ;;  %7567 = vst [vmem:[%s13869_s1 + $0x308] sm:$0xf] %v7566_v38 }
 0x171   :  { %7569 = vst [vmem:[%s13869_s1 + $0x3b8] sm:$0xf] %v7568_v39  ;;  %v7570_v40 = vld [vmem:[%s13868_s0 + $0xa08] sm:$0xf]  ;;  %v7572_v41 = vld [vmem:[%s13868_s0 + $0x958] sm:$0xf] }
 0x172   :  { %v7574_v42 = vld [vmem:[%s13868_s0 + $0x8a8] sm:$0xf]  ;;  %7571 = vst [vmem:[%s13869_s1 + $0x468] sm:$0xf] %v7570_v40  ;;  %7573 = vst [vmem:[%s13869_s1 + $0x518] sm:$0xf] %v7572_v41 }
 0x173   :  { %7575 = vst [vmem:[%s13869_s1 + $0x5c8] sm:$0xf] %v7574_v42  ;;  %v7576_v43 = vld [vmem:[%s13868_s0 + $0x7f8] sm:$0xf]  ;;  %v7578_v44 = vld [vmem:[%s13868_s0 + $0x748] sm:$0xf] }
 0x174   :  { %v7580_v45 = vld [vmem:[%s13868_s0 + $0x698] sm:$0xf]  ;;  %7577 = vst [vmem:[%s13869_s1 + $0x678] sm:$0xf] %v7576_v43  ;;  %7579 = vst [vmem:[%s13869_s1 + $0x728] sm:$0xf] %v7578_v44 }
 0x175   :  { %7581 = vst [vmem:[%s13869_s1 + $0x7d8] sm:$0xf] %v7580_v45  ;;  %v7582_v46 = vld [vmem:[%s13868_s0 + $0x5e8] sm:$0xf]  ;;  %v7584_v47 = vld [vmem:[%s13868_s0 + $0x538] sm:$0xf] }
 0x176   :  { %v7586_v48 = vld [vmem:[%s13868_s0 + $0x488] sm:$0xf]  ;;  %7583 = vst [vmem:[%s13869_s1 + $0x888] sm:$0xf] %v7582_v46  ;;  %7585 = vst [vmem:[%s13869_s1 + $0x938] sm:$0xf] %v7584_v47 }
 0x177   :  { %7587 = vst [vmem:[%s13869_s1 + $0x9e8] sm:$0xf] %v7586_v48  ;;  %v7588_v49 = vld [vmem:[%s13868_s0 + $0x3d8] sm:$0xf]  ;;  %v7590_v50 = vld [vmem:[%s13868_s0 + $0x328] sm:$0xf] }
 0x178   :  { %v7592_v51 = vld [vmem:[%s13868_s0 + $0x278] sm:$0xf]  ;;  %7589 = vst [vmem:[%s13869_s1 + $0xa98] sm:$0xf] %v7588_v49  ;;  %7591 = vst [vmem:[%s13869_s1 + $0xb48] sm:$0xf] %v7590_v50 }
 0x179   :  { %7593 = vst [vmem:[%s13869_s1 + $0xbf8] sm:$0xf] %v7592_v51  ;;  %v7594_v52 = vld [vmem:[%s13868_s0 + $0x1c8] sm:$0xf]  ;;  %v7596_v53 = vld [vmem:[%s13868_s0 + $0x118] sm:$0xf] }
 0x17a   :  { %v7598_v54 = vld [vmem:[%s13868_s0 + $0x68] sm:$0xf]  ;;  %7595 = vst [vmem:[%s13869_s1 + $0xca8] sm:$0xf] %v7594_v52  ;;  %7597 = vst [vmem:[%s13869_s1 + $0xd58] sm:$0xf] %v7596_v53 }
 0x17b   :  { %7599 = vst [vmem:[%s13869_s1 + $0xe08] sm:$0xf] %v7598_v54  ;;  %v7600_v55 = vld [vmem:[%s13868_s0 + $0xe18] sm:$0xf]  ;;  %v7602_v56 = vld [vmem:[%s13868_s0 + $0xd68] sm:$0xf] }
 0x17c   :  { %v7604_v57 = vld [vmem:[%s13868_s0 + $0xcb8] sm:$0xf]  ;;  %7601 = vst [vmem:[%s13869_s1 + $0x58] sm:$0xf] %v7600_v55  ;;  %7603 = vst [vmem:[%s13869_s1 + $0x108] sm:$0xf] %v7602_v56 }
 0x17d   :  { %7605 = vst [vmem:[%s13869_s1 + $0x1b8] sm:$0xf] %v7604_v57  ;;  %v7606_v58 = vld [vmem:[%s13868_s0 + $0xc08] sm:$0xf]  ;;  %v7608_v59 = vld [vmem:[%s13868_s0 + $0xb58] sm:$0xf] }
 0x17e   :  { %v7610_v60 = vld [vmem:[%s13868_s0 + $0xaa8] sm:$0xf]  ;;  %7607 = vst [vmem:[%s13869_s1 + $0x268] sm:$0xf] %v7606_v58  ;;  %7609 = vst [vmem:[%s13869_s1 + $0x318] sm:$0xf] %v7608_v59 }
 0x17f   :  { %7611 = vst [vmem:[%s13869_s1 + $0x3c8] sm:$0xf] %v7610_v60  ;;  %v7612_v61 = vld [vmem:[%s13868_s0 + $0x9f8] sm:$0xf]  ;;  %v7614_v62 = vld [vmem:[%s13868_s0 + $0x948] sm:$0xf] }
 0x180   :  { %v7616_v63 = vld [vmem:[%s13868_s0 + $0x898] sm:$0xf]  ;;  %7613 = vst [vmem:[%s13869_s1 + $0x478] sm:$0xf] %v7612_v61  ;;  %7615 = vst [vmem:[%s13869_s1 + $0x528] sm:$0xf] %v7614_v62 }
 0x181   :  { %7617 = vst [vmem:[%s13869_s1 + $0x5d8] sm:$0xf] %v7616_v63  ;;  %v7618_v0 = vld [vmem:[%s13868_s0 + $0x7e8] sm:$0xf]  ;;  %v7620_v1 = vld [vmem:[%s13868_s0 + $0x738] sm:$0xf] }
 0x182   :  { %v7622_v2 = vld [vmem:[%s13868_s0 + $0x688] sm:$0xf]  ;;  %7619 = vst [vmem:[%s13869_s1 + $0x688] sm:$0xf] %v7618_v0  ;;  %7621 = vst [vmem:[%s13869_s1 + $0x738] sm:$0xf] %v7620_v1 }
 0x183   :  { %7623 = vst [vmem:[%s13869_s1 + $0x7e8] sm:$0xf] %v7622_v2  ;;  %v7624_v3 = vld [vmem:[%s13868_s0 + $0x5d8] sm:$0xf]  ;;  %v7626_v4 = vld [vmem:[%s13868_s0 + $0x528] sm:$0xf] }
 0x184   :  { %v7628_v5 = vld [vmem:[%s13868_s0 + $0x478] sm:$0xf]  ;;  %7625 = vst [vmem:[%s13869_s1 + $0x898] sm:$0xf] %v7624_v3  ;;  %7627 = vst [vmem:[%s13869_s1 + $0x948] sm:$0xf] %v7626_v4 }
 0x185   :  { %7629 = vst [vmem:[%s13869_s1 + $0x9f8] sm:$0xf] %v7628_v5  ;;  %v7630_v6 = vld [vmem:[%s13868_s0 + $0x3c8] sm:$0xf]  ;;  %v7632_v7 = vld [vmem:[%s13868_s0 + $0x318] sm:$0xf] }
 0x186   :  { %v7634_v8 = vld [vmem:[%s13868_s0 + $0x268] sm:$0xf]  ;;  %7631 = vst [vmem:[%s13869_s1 + $0xaa8] sm:$0xf] %v7630_v6  ;;  %7633 = vst [vmem:[%s13869_s1 + $0xb58] sm:$0xf] %v7632_v7 }
 0x187   :  { %7635 = vst [vmem:[%s13869_s1 + $0xc08] sm:$0xf] %v7634_v8  ;;  %v7636_v9 = vld [vmem:[%s13868_s0 + $0x1b8] sm:$0xf]  ;;  %v7638_v10 = vld [vmem:[%s13868_s0 + $0x108] sm:$0xf] }
 0x188   :  { %v7640_v11 = vld [vmem:[%s13868_s0 + $0x58] sm:$0xf]  ;;  %7637 = vst [vmem:[%s13869_s1 + $0xcb8] sm:$0xf] %v7636_v9  ;;  %7639 = vst [vmem:[%s13869_s1 + $0xd68] sm:$0xf] %v7638_v10 }
 0x189   :  { %7641 = vst [vmem:[%s13869_s1 + $0xe18] sm:$0xf] %v7640_v11  ;;  %v7642_v12 = vld [vmem:[%s13868_s0 + $0xe08] sm:$0xf]  ;;  %v7644_v13 = vld [vmem:[%s13868_s0 + $0xd58] sm:$0xf] }
 0x18a   :  { %v7646_v14 = vld [vmem:[%s13868_s0 + $0xca8] sm:$0xf]  ;;  %7643 = vst [vmem:[%s13869_s1 + $0x68] sm:$0xf] %v7642_v12  ;;  %7645 = vst [vmem:[%s13869_s1 + $0x118] sm:$0xf] %v7644_v13 }
 0x18b   :  { %7647 = vst [vmem:[%s13869_s1 + $0x1c8] sm:$0xf] %v7646_v14  ;;  %v7648_v15 = vld [vmem:[%s13868_s0 + $0xbf8] sm:$0xf]  ;;  %v7650_v16 = vld [vmem:[%s13868_s0 + $0xb48] sm:$0xf] }
 0x18c   :  { %v7652_v17 = vld [vmem:[%s13868_s0 + $0xa98] sm:$0xf]  ;;  %7649 = vst [vmem:[%s13869_s1 + $0x278] sm:$0xf] %v7648_v15  ;;  %7651 = vst [vmem:[%s13869_s1 + $0x328] sm:$0xf] %v7650_v16 }
 0x18d   :  { %7653 = vst [vmem:[%s13869_s1 + $0x3d8] sm:$0xf] %v7652_v17  ;;  %v7654_v18 = vld [vmem:[%s13868_s0 + $0x9e8] sm:$0xf]  ;;  %v7656_v19 = vld [vmem:[%s13868_s0 + $0x938] sm:$0xf] }
 0x18e   :  { %v7658_v20 = vld [vmem:[%s13868_s0 + $0x888] sm:$0xf]  ;;  %7655 = vst [vmem:[%s13869_s1 + $0x488] sm:$0xf] %v7654_v18  ;;  %7657 = vst [vmem:[%s13869_s1 + $0x538] sm:$0xf] %v7656_v19 }
 0x18f   :  { %7659 = vst [vmem:[%s13869_s1 + $0x5e8] sm:$0xf] %v7658_v20  ;;  %v7660_v21 = vld [vmem:[%s13868_s0 + $0x7d8] sm:$0xf]  ;;  %v7662_v22 = vld [vmem:[%s13868_s0 + $0x728] sm:$0xf] }
 0x190   :  { %v7664_v23 = vld [vmem:[%s13868_s0 + $0x678] sm:$0xf]  ;;  %7661 = vst [vmem:[%s13869_s1 + $0x698] sm:$0xf] %v7660_v21  ;;  %7663 = vst [vmem:[%s13869_s1 + $0x748] sm:$0xf] %v7662_v22 }
 0x191   :  { %7665 = vst [vmem:[%s13869_s1 + $0x7f8] sm:$0xf] %v7664_v23  ;;  %v7666_v24 = vld [vmem:[%s13868_s0 + $0x5c8] sm:$0xf]  ;;  %v7668_v25 = vld [vmem:[%s13868_s0 + $0x518] sm:$0xf] }
 0x192   :  { %v7670_v26 = vld [vmem:[%s13868_s0 + $0x468] sm:$0xf]  ;;  %7667 = vst [vmem:[%s13869_s1 + $0x8a8] sm:$0xf] %v7666_v24  ;;  %7669 = vst [vmem:[%s13869_s1 + $0x958] sm:$0xf] %v7668_v25 }
 0x193   :  { %7671 = vst [vmem:[%s13869_s1 + $0xa08] sm:$0xf] %v7670_v26  ;;  %v7672_v27 = vld [vmem:[%s13868_s0 + $0x3b8] sm:$0xf]  ;;  %v7674_v28 = vld [vmem:[%s13868_s0 + $0x308] sm:$0xf] }
 0x194   :  { %v7676_v29 = vld [vmem:[%s13868_s0 + $0x258] sm:$0xf]  ;;  %7673 = vst [vmem:[%s13869_s1 + $0xab8] sm:$0xf] %v7672_v27  ;;  %7675 = vst [vmem:[%s13869_s1 + $0xb68] sm:$0xf] %v7674_v28 }
 0x195   :  { %7677 = vst [vmem:[%s13869_s1 + $0xc18] sm:$0xf] %v7676_v29  ;;  %v7678_v30 = vld [vmem:[%s13868_s0 + $0x1a8] sm:$0xf]  ;;  %v7680_v31 = vld [vmem:[%s13868_s0 + $0xf8] sm:$0xf] }
 0x196   :  { %v7682_v32 = vld [vmem:[%s13868_s0 + $0x48] sm:$0xf]  ;;  %7679 = vst [vmem:[%s13869_s1 + $0xcc8] sm:$0xf] %v7678_v30  ;;  %7681 = vst [vmem:[%s13869_s1 + $0xd78] sm:$0xf] %v7680_v31 }
 0x197   :  { %7683 = vst [vmem:[%s13869_s1 + $0xe28] sm:$0xf] %v7682_v32  ;;  %v7684_v33 = vld [vmem:[%s13868_s0 + $0xdf8] sm:$0xf]  ;;  %v7686_v34 = vld [vmem:[%s13868_s0 + $0xd48] sm:$0xf] }
 0x198   :  { %v7688_v35 = vld [vmem:[%s13868_s0 + $0xc98] sm:$0xf]  ;;  %7685 = vst [vmem:[%s13869_s1 + $0x78] sm:$0xf] %v7684_v33  ;;  %7687 = vst [vmem:[%s13869_s1 + $0x128] sm:$0xf] %v7686_v34 }
 0x199   :  { %7689 = vst [vmem:[%s13869_s1 + $0x1d8] sm:$0xf] %v7688_v35  ;;  %v7690_v36 = vld [vmem:[%s13868_s0 + $0xbe8] sm:$0xf]  ;;  %v7692_v37 = vld [vmem:[%s13868_s0 + $0xb38] sm:$0xf] }
 0x19a   :  { %v7694_v38 = vld [vmem:[%s13868_s0 + $0xa88] sm:$0xf]  ;;  %7691 = vst [vmem:[%s13869_s1 + $0x288] sm:$0xf] %v7690_v36  ;;  %7693 = vst [vmem:[%s13869_s1 + $0x338] sm:$0xf] %v7692_v37 }
 0x19b   :  { %7695 = vst [vmem:[%s13869_s1 + $0x3e8] sm:$0xf] %v7694_v38  ;;  %v7696_v39 = vld [vmem:[%s13868_s0 + $0x9d8] sm:$0xf]  ;;  %v7698_v40 = vld [vmem:[%s13868_s0 + $0x928] sm:$0xf] }
 0x19c   :  { %v7700_v41 = vld [vmem:[%s13868_s0 + $0x878] sm:$0xf]  ;;  %7697 = vst [vmem:[%s13869_s1 + $0x498] sm:$0xf] %v7696_v39  ;;  %7699 = vst [vmem:[%s13869_s1 + $0x548] sm:$0xf] %v7698_v40 }
 0x19d   :  { %7701 = vst [vmem:[%s13869_s1 + $0x5f8] sm:$0xf] %v7700_v41  ;;  %v7702_v42 = vld [vmem:[%s13868_s0 + $0x7c8] sm:$0xf]  ;;  %v7704_v43 = vld [vmem:[%s13868_s0 + $0x718] sm:$0xf] }
 0x19e   :  { %v7706_v44 = vld [vmem:[%s13868_s0 + $0x668] sm:$0xf]  ;;  %7703 = vst [vmem:[%s13869_s1 + $0x6a8] sm:$0xf] %v7702_v42  ;;  %7705 = vst [vmem:[%s13869_s1 + $0x758] sm:$0xf] %v7704_v43 }
 0x19f   :  { %7707 = vst [vmem:[%s13869_s1 + $0x808] sm:$0xf] %v7706_v44  ;;  %v7708_v45 = vld [vmem:[%s13868_s0 + $0x5b8] sm:$0xf]  ;;  %v7710_v46 = vld [vmem:[%s13868_s0 + $0x508] sm:$0xf] }
 0x1a0   :  { %v7712_v47 = vld [vmem:[%s13868_s0 + $0x458] sm:$0xf]  ;;  %7709 = vst [vmem:[%s13869_s1 + $0x8b8] sm:$0xf] %v7708_v45  ;;  %7711 = vst [vmem:[%s13869_s1 + $0x968] sm:$0xf] %v7710_v46 }
 0x1a1   :  { %7713 = vst [vmem:[%s13869_s1 + $0xa18] sm:$0xf] %v7712_v47  ;;  %v7714_v48 = vld [vmem:[%s13868_s0 + $0x3a8] sm:$0xf]  ;;  %v7716_v49 = vld [vmem:[%s13868_s0 + $0x2f8] sm:$0xf] }
 0x1a2   :  { %v7718_v50 = vld [vmem:[%s13868_s0 + $0x248] sm:$0xf]  ;;  %7715 = vst [vmem:[%s13869_s1 + $0xac8] sm:$0xf] %v7714_v48  ;;  %7717 = vst [vmem:[%s13869_s1 + $0xb78] sm:$0xf] %v7716_v49 }
 0x1a3   :  { %7719 = vst [vmem:[%s13869_s1 + $0xc28] sm:$0xf] %v7718_v50  ;;  %v7720_v51 = vld [vmem:[%s13868_s0 + $0x198] sm:$0xf]  ;;  %v7722_v52 = vld [vmem:[%s13868_s0 + $0xe8] sm:$0xf] }
 0x1a4   :  { %v7724_v53 = vld [vmem:[%s13868_s0 + $0x38] sm:$0xf]  ;;  %7721 = vst [vmem:[%s13869_s1 + $0xcd8] sm:$0xf] %v7720_v51  ;;  %7723 = vst [vmem:[%s13869_s1 + $0xd88] sm:$0xf] %v7722_v52 }
 0x1a5   :  { %7725 = vst [vmem:[%s13869_s1 + $0xe38] sm:$0xf] %v7724_v53  ;;  %v7726_v54 = vld [vmem:[%s13868_s0 + $0xde8] sm:$0xf]  ;;  %v7728_v55 = vld [vmem:[%s13868_s0 + $0xd38] sm:$0xf] }
 0x1a6   :  { %v7730_v56 = vld [vmem:[%s13868_s0 + $0xc88] sm:$0xf]  ;;  %7727 = vst [vmem:[%s13869_s1 + $0x88] sm:$0xf] %v7726_v54  ;;  %7729 = vst [vmem:[%s13869_s1 + $0x138] sm:$0xf] %v7728_v55 }
 0x1a7   :  { %7731 = vst [vmem:[%s13869_s1 + $0x1e8] sm:$0xf] %v7730_v56  ;;  %v7732_v57 = vld [vmem:[%s13868_s0 + $0xbd8] sm:$0xf]  ;;  %v7734_v58 = vld [vmem:[%s13868_s0 + $0xb28] sm:$0xf] }
 0x1a8   :  { %v7736_v59 = vld [vmem:[%s13868_s0 + $0xa78] sm:$0xf]  ;;  %7733 = vst [vmem:[%s13869_s1 + $0x298] sm:$0xf] %v7732_v57  ;;  %7735 = vst [vmem:[%s13869_s1 + $0x348] sm:$0xf] %v7734_v58 }
 0x1a9   :  { %7737 = vst [vmem:[%s13869_s1 + $0x3f8] sm:$0xf] %v7736_v59  ;;  %v7738_v60 = vld [vmem:[%s13868_s0 + $0x9c8] sm:$0xf]  ;;  %v7740_v61 = vld [vmem:[%s13868_s0 + $0x918] sm:$0xf] }
 0x1aa   :  { %v7742_v62 = vld [vmem:[%s13868_s0 + $0x868] sm:$0xf]  ;;  %7739 = vst [vmem:[%s13869_s1 + $0x4a8] sm:$0xf] %v7738_v60  ;;  %7741 = vst [vmem:[%s13869_s1 + $0x558] sm:$0xf] %v7740_v61 }
 0x1ab   :  { %7743 = vst [vmem:[%s13869_s1 + $0x608] sm:$0xf] %v7742_v62  ;;  %v7744_v63 = vld [vmem:[%s13868_s0 + $0x7b8] sm:$0xf]  ;;  %v7746_v0 = vld [vmem:[%s13868_s0 + $0x708] sm:$0xf] }
 0x1ac   :  { %v7748_v1 = vld [vmem:[%s13868_s0 + $0x658] sm:$0xf]  ;;  %7745 = vst [vmem:[%s13869_s1 + $0x6b8] sm:$0xf] %v7744_v63  ;;  %7747 = vst [vmem:[%s13869_s1 + $0x768] sm:$0xf] %v7746_v0 }
 0x1ad   :  { %7749 = vst [vmem:[%s13869_s1 + $0x818] sm:$0xf] %v7748_v1  ;;  %v7750_v2 = vld [vmem:[%s13868_s0 + $0x5a8] sm:$0xf]  ;;  %v7752_v3 = vld [vmem:[%s13868_s0 + $0x4f8] sm:$0xf] }
 0x1ae   :  { %v7754_v4 = vld [vmem:[%s13868_s0 + $0x448] sm:$0xf]  ;;  %7751 = vst [vmem:[%s13869_s1 + $0x8c8] sm:$0xf] %v7750_v2  ;;  %7753 = vst [vmem:[%s13869_s1 + $0x978] sm:$0xf] %v7752_v3 }
 0x1af   :  { %7755 = vst [vmem:[%s13869_s1 + $0xa28] sm:$0xf] %v7754_v4  ;;  %v7756_v5 = vld [vmem:[%s13868_s0 + $0x398] sm:$0xf]  ;;  %v7758_v6 = vld [vmem:[%s13868_s0 + $0x2e8] sm:$0xf] }
 0x1b0   :  { %v7760_v7 = vld [vmem:[%s13868_s0 + $0x238] sm:$0xf]  ;;  %7757 = vst [vmem:[%s13869_s1 + $0xad8] sm:$0xf] %v7756_v5  ;;  %7759 = vst [vmem:[%s13869_s1 + $0xb88] sm:$0xf] %v7758_v6 }
 0x1b1   :  { %7761 = vst [vmem:[%s13869_s1 + $0xc38] sm:$0xf] %v7760_v7  ;;  %v7762_v8 = vld [vmem:[%s13868_s0 + $0x188] sm:$0xf]  ;;  %v7764_v9 = vld [vmem:[%s13868_s0 + $0xd8] sm:$0xf] }
 0x1b2   :  { %v7766_v10 = vld [vmem:[%s13868_s0 + $0x28] sm:$0xf]  ;;  %7763 = vst [vmem:[%s13869_s1 + $0xce8] sm:$0xf] %v7762_v8  ;;  %7765 = vst [vmem:[%s13869_s1 + $0xd98] sm:$0xf] %v7764_v9 }
 0x1b3   :  { %7767 = vst [vmem:[%s13869_s1 + $0xe48] sm:$0xf] %v7766_v10  ;;  %v7768_v11 = vld [vmem:[%s13868_s0 + $0xdd8] sm:$0xf]  ;;  %v7770_v12 = vld [vmem:[%s13868_s0 + $0xd28] sm:$0xf] }
 0x1b4   :  { %v7772_v13 = vld [vmem:[%s13868_s0 + $0xc78] sm:$0xf]  ;;  %7769 = vst [vmem:[%s13869_s1 + $0x98] sm:$0xf] %v7768_v11  ;;  %7771 = vst [vmem:[%s13869_s1 + $0x148] sm:$0xf] %v7770_v12 }
 0x1b5   :  { %7773 = vst [vmem:[%s13869_s1 + $0x1f8] sm:$0xf] %v7772_v13  ;;  %v7774_v14 = vld [vmem:[%s13868_s0 + $0xbc8] sm:$0xf]  ;;  %v7776_v15 = vld [vmem:[%s13868_s0 + $0xb18] sm:$0xf] }
 0x1b6   :  { %v7778_v16 = vld [vmem:[%s13868_s0 + $0xa68] sm:$0xf]  ;;  %7775 = vst [vmem:[%s13869_s1 + $0x2a8] sm:$0xf] %v7774_v14  ;;  %7777 = vst [vmem:[%s13869_s1 + $0x358] sm:$0xf] %v7776_v15 }
 0x1b7   :  { %7779 = vst [vmem:[%s13869_s1 + $0x408] sm:$0xf] %v7778_v16  ;;  %v7780_v17 = vld [vmem:[%s13868_s0 + $0x9b8] sm:$0xf]  ;;  %v7782_v18 = vld [vmem:[%s13868_s0 + $0x908] sm:$0xf] }
 0x1b8   :  { %v7784_v19 = vld [vmem:[%s13868_s0 + $0x858] sm:$0xf]  ;;  %7781 = vst [vmem:[%s13869_s1 + $0x4b8] sm:$0xf] %v7780_v17  ;;  %7783 = vst [vmem:[%s13869_s1 + $0x568] sm:$0xf] %v7782_v18 }
 0x1b9   :  { %7785 = vst [vmem:[%s13869_s1 + $0x618] sm:$0xf] %v7784_v19  ;;  %v7786_v20 = vld [vmem:[%s13868_s0 + $0x7a8] sm:$0xf]  ;;  %v7788_v21 = vld [vmem:[%s13868_s0 + $0x6f8] sm:$0xf] }
 0x1ba   :  { %v7790_v22 = vld [vmem:[%s13868_s0 + $0x648] sm:$0xf]  ;;  %7787 = vst [vmem:[%s13869_s1 + $0x6c8] sm:$0xf] %v7786_v20  ;;  %7789 = vst [vmem:[%s13869_s1 + $0x778] sm:$0xf] %v7788_v21 }
 0x1bb   :  { %7791 = vst [vmem:[%s13869_s1 + $0x828] sm:$0xf] %v7790_v22  ;;  %v7792_v23 = vld [vmem:[%s13868_s0 + $0x598] sm:$0xf]  ;;  %v7794_v24 = vld [vmem:[%s13868_s0 + $0x4e8] sm:$0xf] }
 0x1bc   :  { %v7796_v25 = vld [vmem:[%s13868_s0 + $0x438] sm:$0xf]  ;;  %7793 = vst [vmem:[%s13869_s1 + $0x8d8] sm:$0xf] %v7792_v23  ;;  %7795 = vst [vmem:[%s13869_s1 + $0x988] sm:$0xf] %v7794_v24 }
 0x1bd   :  { %7797 = vst [vmem:[%s13869_s1 + $0xa38] sm:$0xf] %v7796_v25  ;;  %v7798_v26 = vld [vmem:[%s13868_s0 + $0x388] sm:$0xf]  ;;  %v7800_v27 = vld [vmem:[%s13868_s0 + $0x2d8] sm:$0xf] }
 0x1be   :  { %v7802_v28 = vld [vmem:[%s13868_s0 + $0x228] sm:$0xf]  ;;  %7799 = vst [vmem:[%s13869_s1 + $0xae8] sm:$0xf] %v7798_v26  ;;  %7801 = vst [vmem:[%s13869_s1 + $0xb98] sm:$0xf] %v7800_v27 }
 0x1bf   :  { %7803 = vst [vmem:[%s13869_s1 + $0xc48] sm:$0xf] %v7802_v28  ;;  %v7804_v29 = vld [vmem:[%s13868_s0 + $0x178] sm:$0xf]  ;;  %v7806_v30 = vld [vmem:[%s13868_s0 + $0xc8] sm:$0xf] }
 0x1c0   :  { %v7808_v31 = vld [vmem:[%s13868_s0 + $0x18] sm:$0xf]  ;;  %7805 = vst [vmem:[%s13869_s1 + $0xcf8] sm:$0xf] %v7804_v29  ;;  %7807 = vst [vmem:[%s13869_s1 + $0xda8] sm:$0xf] %v7806_v30 }
 0x1c1   :  { %7809 = vst [vmem:[%s13869_s1 + $0xe58] sm:$0xf] %v7808_v31  ;;  %v7810_v32 = vld [vmem:[%s13868_s0 + $0xdc8] sm:$0xf]  ;;  %v7812_v33 = vld [vmem:[%s13868_s0 + $0xd18] sm:$0xf] }
 0x1c2   :  { %v7814_v34 = vld [vmem:[%s13868_s0 + $0xc68] sm:$0xf]  ;;  %7811 = vst [vmem:[%s13869_s1 + $0xa8] sm:$0xf] %v7810_v32  ;;  %7813 = vst [vmem:[%s13869_s1 + $0x158] sm:$0xf] %v7812_v33 }
 0x1c3   :  { %7815 = vst [vmem:[%s13869_s1 + $0x208] sm:$0xf] %v7814_v34  ;;  %v7816_v35 = vld [vmem:[%s13868_s0 + $0xbb8] sm:$0xf]  ;;  %v7818_v36 = vld [vmem:[%s13868_s0 + $0xb08] sm:$0xf] }
 0x1c4   :  { %v7820_v37 = vld [vmem:[%s13868_s0 + $0xa58] sm:$0xf]  ;;  %7817 = vst [vmem:[%s13869_s1 + $0x2b8] sm:$0xf] %v7816_v35  ;;  %7819 = vst [vmem:[%s13869_s1 + $0x368] sm:$0xf] %v7818_v36 }
 0x1c5   :  { %7821 = vst [vmem:[%s13869_s1 + $0x418] sm:$0xf] %v7820_v37  ;;  %v7822_v38 = vld [vmem:[%s13868_s0 + $0x9a8] sm:$0xf]  ;;  %v7824_v39 = vld [vmem:[%s13868_s0 + $0x8f8] sm:$0xf] }
 0x1c6   :  { %v7826_v40 = vld [vmem:[%s13868_s0 + $0x848] sm:$0xf]  ;;  %7823 = vst [vmem:[%s13869_s1 + $0x4c8] sm:$0xf] %v7822_v38  ;;  %7825 = vst [vmem:[%s13869_s1 + $0x578] sm:$0xf] %v7824_v39 }
 0x1c7   :  { %7827 = vst [vmem:[%s13869_s1 + $0x628] sm:$0xf] %v7826_v40  ;;  %v7828_v41 = vld [vmem:[%s13868_s0 + $0x798] sm:$0xf]  ;;  %v7830_v42 = vld [vmem:[%s13868_s0 + $0x6e8] sm:$0xf] }
 0x1c8   :  { %v7832_v43 = vld [vmem:[%s13868_s0 + $0x638] sm:$0xf]  ;;  %7829 = vst [vmem:[%s13869_s1 + $0x6d8] sm:$0xf] %v7828_v41  ;;  %7831 = vst [vmem:[%s13869_s1 + $0x788] sm:$0xf] %v7830_v42 }
 0x1c9   :  { %7833 = vst [vmem:[%s13869_s1 + $0x838] sm:$0xf] %v7832_v43  ;;  %v7834_v44 = vld [vmem:[%s13868_s0 + $0x588] sm:$0xf]  ;;  %v7836_v45 = vld [vmem:[%s13868_s0 + $0x4d8] sm:$0xf] }
 0x1ca   :  { %v7838_v46 = vld [vmem:[%s13868_s0 + $0x428] sm:$0xf]  ;;  %7835 = vst [vmem:[%s13869_s1 + $0x8e8] sm:$0xf] %v7834_v44  ;;  %7837 = vst [vmem:[%s13869_s1 + $0x998] sm:$0xf] %v7836_v45 }
 0x1cb   :  { %7839 = vst [vmem:[%s13869_s1 + $0xa48] sm:$0xf] %v7838_v46  ;;  %v7840_v47 = vld [vmem:[%s13868_s0 + $0x378] sm:$0xf]  ;;  %v7842_v48 = vld [vmem:[%s13868_s0 + $0x2c8] sm:$0xf] }
 0x1cc   :  { %v7844_v49 = vld [vmem:[%s13868_s0 + $0x218] sm:$0xf]  ;;  %7841 = vst [vmem:[%s13869_s1 + $0xaf8] sm:$0xf] %v7840_v47  ;;  %7843 = vst [vmem:[%s13869_s1 + $0xba8] sm:$0xf] %v7842_v48 }
 0x1cd   :  { %7845 = vst [vmem:[%s13869_s1 + $0xc58] sm:$0xf] %v7844_v49  ;;  %v7846_v50 = vld [vmem:[%s13868_s0 + $0x168] sm:$0xf]  ;;  %v7848_v51 = vld [vmem:[%s13868_s0 + $0xb8] sm:$0xf] }
 0x1ce   :  { %v7850_v52 = vld [vmem:[%s13868_s0 + $0x8] sm:$0xf]  ;;  %7847 = vst [vmem:[%s13869_s1 + $0xd08] sm:$0xf] %v7846_v50  ;;  %7849 = vst [vmem:[%s13869_s1 + $0xdb8] sm:$0xf] %v7848_v51 }
 0x1cf   :  { %7851 = vst [vmem:[%s13869_s1 + $0xe68] sm:$0xf] %v7850_v52  ;;  %v7852_v53 = vld [vmem:[%s13868_s0 + $0xe6c] sm:$0xf]  ;;  %v7854_v54 = vld [vmem:[%s13868_s0 + $0xdbc] sm:$0xf] }
 0x1d0   :  { %v7856_v55 = vld [vmem:[%s13868_s0 + $0xd0c] sm:$0xf]  ;;  %7853 = vst [vmem:[%s13869_s1 + $0xc] sm:$0xf] %v7852_v53  ;;  %7855 = vst [vmem:[%s13869_s1 + $0xbc] sm:$0xf] %v7854_v54 }
 0x1d1   :  { %7857 = vst [vmem:[%s13869_s1 + $0x16c] sm:$0xf] %v7856_v55  ;;  %v7858_v56 = vld [vmem:[%s13868_s0 + $0xc5c] sm:$0xf]  ;;  %v7860_v57 = vld [vmem:[%s13868_s0 + $0xbac] sm:$0xf] }
 0x1d2   :  { %v7862_v58 = vld [vmem:[%s13868_s0 + $0xafc] sm:$0xf]  ;;  %7859 = vst [vmem:[%s13869_s1 + $0x21c] sm:$0xf] %v7858_v56  ;;  %7861 = vst [vmem:[%s13869_s1 + $0x2cc] sm:$0xf] %v7860_v57 }
 0x1d3   :  { %7863 = vst [vmem:[%s13869_s1 + $0x37c] sm:$0xf] %v7862_v58  ;;  %v7864_v59 = vld [vmem:[%s13868_s0 + $0xa4c] sm:$0xf]  ;;  %v7866_v60 = vld [vmem:[%s13868_s0 + $0x99c] sm:$0xf] }
 0x1d4   :  { %v7868_v61 = vld [vmem:[%s13868_s0 + $0x8ec] sm:$0xf]  ;;  %7865 = vst [vmem:[%s13869_s1 + $0x42c] sm:$0xf] %v7864_v59  ;;  %7867 = vst [vmem:[%s13869_s1 + $0x4dc] sm:$0xf] %v7866_v60 }
 0x1d5   :  { %7869 = vst [vmem:[%s13869_s1 + $0x58c] sm:$0xf] %v7868_v61  ;;  %v7870_v62 = vld [vmem:[%s13868_s0 + $0x83c] sm:$0xf]  ;;  %v7872_v63 = vld [vmem:[%s13868_s0 + $0x78c] sm:$0xf] }
 0x1d6   :  { %v7874_v0 = vld [vmem:[%s13868_s0 + $0x6dc] sm:$0xf]  ;;  %7871 = vst [vmem:[%s13869_s1 + $0x63c] sm:$0xf] %v7870_v62  ;;  %7873 = vst [vmem:[%s13869_s1 + $0x6ec] sm:$0xf] %v7872_v63 }
 0x1d7   :  { %7875 = vst [vmem:[%s13869_s1 + $0x79c] sm:$0xf] %v7874_v0  ;;  %v7876_v1 = vld [vmem:[%s13868_s0 + $0x62c] sm:$0xf]  ;;  %v7878_v2 = vld [vmem:[%s13868_s0 + $0x57c] sm:$0xf] }
 0x1d8   :  { %v7880_v3 = vld [vmem:[%s13868_s0 + $0x4cc] sm:$0xf]  ;;  %7877 = vst [vmem:[%s13869_s1 + $0x84c] sm:$0xf] %v7876_v1  ;;  %7879 = vst [vmem:[%s13869_s1 + $0x8fc] sm:$0xf] %v7878_v2 }
 0x1d9   :  { %7881 = vst [vmem:[%s13869_s1 + $0x9ac] sm:$0xf] %v7880_v3  ;;  %v7882_v4 = vld [vmem:[%s13868_s0 + $0x41c] sm:$0xf]  ;;  %v7884_v5 = vld [vmem:[%s13868_s0 + $0x36c] sm:$0xf] }
 0x1da   :  { %v7886_v6 = vld [vmem:[%s13868_s0 + $0x2bc] sm:$0xf]  ;;  %7883 = vst [vmem:[%s13869_s1 + $0xa5c] sm:$0xf] %v7882_v4  ;;  %7885 = vst [vmem:[%s13869_s1 + $0xb0c] sm:$0xf] %v7884_v5 }
 0x1db   :  { %7887 = vst [vmem:[%s13869_s1 + $0xbbc] sm:$0xf] %v7886_v6  ;;  %v7888_v7 = vld [vmem:[%s13868_s0 + $0x20c] sm:$0xf]  ;;  %v7890_v8 = vld [vmem:[%s13868_s0 + $0x15c] sm:$0xf] }
 0x1dc   :  { %v7892_v9 = vld [vmem:[%s13868_s0 + $0xac] sm:$0xf]  ;;  %7889 = vst [vmem:[%s13869_s1 + $0xc6c] sm:$0xf] %v7888_v7  ;;  %7891 = vst [vmem:[%s13869_s1 + $0xd1c] sm:$0xf] %v7890_v8 }
 0x1dd   :  { %7893 = vst [vmem:[%s13869_s1 + $0xdcc] sm:$0xf] %v7892_v9  ;;  %v7894_v10 = vld [vmem:[%s13868_s0 + $0xe5c] sm:$0xf]  ;;  %v7896_v11 = vld [vmem:[%s13868_s0 + $0xdac] sm:$0xf] }
 0x1de   :  { %v7898_v12 = vld [vmem:[%s13868_s0 + $0xcfc] sm:$0xf]  ;;  %7895 = vst [vmem:[%s13869_s1 + $0x1c] sm:$0xf] %v7894_v10  ;;  %7897 = vst [vmem:[%s13869_s1 + $0xcc] sm:$0xf] %v7896_v11 }
 0x1df   :  { %7899 = vst [vmem:[%s13869_s1 + $0x17c] sm:$0xf] %v7898_v12  ;;  %v7900_v13 = vld [vmem:[%s13868_s0 + $0xc4c] sm:$0xf]  ;;  %v7902_v14 = vld [vmem:[%s13868_s0 + $0xb9c] sm:$0xf] }
 0x1e0   :  { %v7904_v15 = vld [vmem:[%s13868_s0 + $0xaec] sm:$0xf]  ;;  %7901 = vst [vmem:[%s13869_s1 + $0x22c] sm:$0xf] %v7900_v13  ;;  %7903 = vst [vmem:[%s13869_s1 + $0x2dc] sm:$0xf] %v7902_v14 }
 0x1e1   :  { %7905 = vst [vmem:[%s13869_s1 + $0x38c] sm:$0xf] %v7904_v15  ;;  %v7906_v16 = vld [vmem:[%s13868_s0 + $0xa3c] sm:$0xf]  ;;  %v7908_v17 = vld [vmem:[%s13868_s0 + $0x98c] sm:$0xf] }
 0x1e2   :  { %v7910_v18 = vld [vmem:[%s13868_s0 + $0x8dc] sm:$0xf]  ;;  %7907 = vst [vmem:[%s13869_s1 + $0x43c] sm:$0xf] %v7906_v16  ;;  %7909 = vst [vmem:[%s13869_s1 + $0x4ec] sm:$0xf] %v7908_v17 }
 0x1e3   :  { %7911 = vst [vmem:[%s13869_s1 + $0x59c] sm:$0xf] %v7910_v18  ;;  %v7912_v19 = vld [vmem:[%s13868_s0 + $0x82c] sm:$0xf]  ;;  %v7914_v20 = vld [vmem:[%s13868_s0 + $0x77c] sm:$0xf] }
 0x1e4   :  { %v7916_v21 = vld [vmem:[%s13868_s0 + $0x6cc] sm:$0xf]  ;;  %7913 = vst [vmem:[%s13869_s1 + $0x64c] sm:$0xf] %v7912_v19  ;;  %7915 = vst [vmem:[%s13869_s1 + $0x6fc] sm:$0xf] %v7914_v20 }
 0x1e5   :  { %7917 = vst [vmem:[%s13869_s1 + $0x7ac] sm:$0xf] %v7916_v21  ;;  %v7918_v22 = vld [vmem:[%s13868_s0 + $0x61c] sm:$0xf]  ;;  %v7920_v23 = vld [vmem:[%s13868_s0 + $0x56c] sm:$0xf] }
 0x1e6   :  { %v7922_v24 = vld [vmem:[%s13868_s0 + $0x4bc] sm:$0xf]  ;;  %7919 = vst [vmem:[%s13869_s1 + $0x85c] sm:$0xf] %v7918_v22  ;;  %7921 = vst [vmem:[%s13869_s1 + $0x90c] sm:$0xf] %v7920_v23 }
 0x1e7   :  { %7923 = vst [vmem:[%s13869_s1 + $0x9bc] sm:$0xf] %v7922_v24  ;;  %v7924_v25 = vld [vmem:[%s13868_s0 + $0x40c] sm:$0xf]  ;;  %v7926_v26 = vld [vmem:[%s13868_s0 + $0x35c] sm:$0xf] }
 0x1e8   :  { %v7928_v27 = vld [vmem:[%s13868_s0 + $0x2ac] sm:$0xf]  ;;  %7925 = vst [vmem:[%s13869_s1 + $0xa6c] sm:$0xf] %v7924_v25  ;;  %7927 = vst [vmem:[%s13869_s1 + $0xb1c] sm:$0xf] %v7926_v26 }
 0x1e9   :  { %7929 = vst [vmem:[%s13869_s1 + $0xbcc] sm:$0xf] %v7928_v27  ;;  %v7930_v28 = vld [vmem:[%s13868_s0 + $0x1fc] sm:$0xf]  ;;  %v7932_v29 = vld [vmem:[%s13868_s0 + $0x14c] sm:$0xf] }
 0x1ea   :  { %v7934_v30 = vld [vmem:[%s13868_s0 + $0x9c] sm:$0xf]  ;;  %7931 = vst [vmem:[%s13869_s1 + $0xc7c] sm:$0xf] %v7930_v28  ;;  %7933 = vst [vmem:[%s13869_s1 + $0xd2c] sm:$0xf] %v7932_v29 }
 0x1eb   :  { %7935 = vst [vmem:[%s13869_s1 + $0xddc] sm:$0xf] %v7934_v30  ;;  %v7936_v31 = vld [vmem:[%s13868_s0 + $0xe4c] sm:$0xf]  ;;  %v7938_v32 = vld [vmem:[%s13868_s0 + $0xd9c] sm:$0xf] }
 0x1ec   :  { %v7940_v33 = vld [vmem:[%s13868_s0 + $0xcec] sm:$0xf]  ;;  %7937 = vst [vmem:[%s13869_s1 + $0x2c] sm:$0xf] %v7936_v31  ;;  %7939 = vst [vmem:[%s13869_s1 + $0xdc] sm:$0xf] %v7938_v32 }
 0x1ed   :  { %7941 = vst [vmem:[%s13869_s1 + $0x18c] sm:$0xf] %v7940_v33  ;;  %v7942_v34 = vld [vmem:[%s13868_s0 + $0xc3c] sm:$0xf]  ;;  %v7944_v35 = vld [vmem:[%s13868_s0 + $0xb8c] sm:$0xf] }
 0x1ee   :  { %v7946_v36 = vld [vmem:[%s13868_s0 + $0xadc] sm:$0xf]  ;;  %7943 = vst [vmem:[%s13869_s1 + $0x23c] sm:$0xf] %v7942_v34  ;;  %7945 = vst [vmem:[%s13869_s1 + $0x2ec] sm:$0xf] %v7944_v35 }
 0x1ef   :  { %7947 = vst [vmem:[%s13869_s1 + $0x39c] sm:$0xf] %v7946_v36  ;;  %v7948_v37 = vld [vmem:[%s13868_s0 + $0xa2c] sm:$0xf]  ;;  %v7950_v38 = vld [vmem:[%s13868_s0 + $0x97c] sm:$0xf] }
 0x1f0   :  { %v7952_v39 = vld [vmem:[%s13868_s0 + $0x8cc] sm:$0xf]  ;;  %7949 = vst [vmem:[%s13869_s1 + $0x44c] sm:$0xf] %v7948_v37  ;;  %7951 = vst [vmem:[%s13869_s1 + $0x4fc] sm:$0xf] %v7950_v38 }
 0x1f1   :  { %7953 = vst [vmem:[%s13869_s1 + $0x5ac] sm:$0xf] %v7952_v39  ;;  %v7954_v40 = vld [vmem:[%s13868_s0 + $0x81c] sm:$0xf]  ;;  %v7956_v41 = vld [vmem:[%s13868_s0 + $0x76c] sm:$0xf] }
 0x1f2   :  { %v7958_v42 = vld [vmem:[%s13868_s0 + $0x6bc] sm:$0xf]  ;;  %7955 = vst [vmem:[%s13869_s1 + $0x65c] sm:$0xf] %v7954_v40  ;;  %7957 = vst [vmem:[%s13869_s1 + $0x70c] sm:$0xf] %v7956_v41 }
 0x1f3   :  { %7959 = vst [vmem:[%s13869_s1 + $0x7bc] sm:$0xf] %v7958_v42  ;;  %v7960_v43 = vld [vmem:[%s13868_s0 + $0x60c] sm:$0xf]  ;;  %v7962_v44 = vld [vmem:[%s13868_s0 + $0x55c] sm:$0xf] }
 0x1f4   :  { %v7964_v45 = vld [vmem:[%s13868_s0 + $0x4ac] sm:$0xf]  ;;  %7961 = vst [vmem:[%s13869_s1 + $0x86c] sm:$0xf] %v7960_v43  ;;  %7963 = vst [vmem:[%s13869_s1 + $0x91c] sm:$0xf] %v7962_v44 }
 0x1f5   :  { %7965 = vst [vmem:[%s13869_s1 + $0x9cc] sm:$0xf] %v7964_v45  ;;  %v7966_v46 = vld [vmem:[%s13868_s0 + $0x3fc] sm:$0xf]  ;;  %v7968_v47 = vld [vmem:[%s13868_s0 + $0x34c] sm:$0xf] }
 0x1f6   :  { %v7970_v48 = vld [vmem:[%s13868_s0 + $0x29c] sm:$0xf]  ;;  %7967 = vst [vmem:[%s13869_s1 + $0xa7c] sm:$0xf] %v7966_v46  ;;  %7969 = vst [vmem:[%s13869_s1 + $0xb2c] sm:$0xf] %v7968_v47 }
 0x1f7   :  { %7971 = vst [vmem:[%s13869_s1 + $0xbdc] sm:$0xf] %v7970_v48  ;;  %v7972_v49 = vld [vmem:[%s13868_s0 + $0x1ec] sm:$0xf]  ;;  %v7974_v50 = vld [vmem:[%s13868_s0 + $0x13c] sm:$0xf] }
 0x1f8   :  { %v7976_v51 = vld [vmem:[%s13868_s0 + $0x8c] sm:$0xf]  ;;  %7973 = vst [vmem:[%s13869_s1 + $0xc8c] sm:$0xf] %v7972_v49  ;;  %7975 = vst [vmem:[%s13869_s1 + $0xd3c] sm:$0xf] %v7974_v50 }
 0x1f9   :  { %7977 = vst [vmem:[%s13869_s1 + $0xdec] sm:$0xf] %v7976_v51  ;;  %v7978_v52 = vld [vmem:[%s13868_s0 + $0xe3c] sm:$0xf]  ;;  %v7980_v53 = vld [vmem:[%s13868_s0 + $0xd8c] sm:$0xf] }
 0x1fa   :  { %v7982_v54 = vld [vmem:[%s13868_s0 + $0xcdc] sm:$0xf]  ;;  %7979 = vst [vmem:[%s13869_s1 + $0x3c] sm:$0xf] %v7978_v52  ;;  %7981 = vst [vmem:[%s13869_s1 + $0xec] sm:$0xf] %v7980_v53 }
 0x1fb   :  { %7983 = vst [vmem:[%s13869_s1 + $0x19c] sm:$0xf] %v7982_v54  ;;  %v7984_v55 = vld [vmem:[%s13868_s0 + $0xc2c] sm:$0xf]  ;;  %v7986_v56 = vld [vmem:[%s13868_s0 + $0xb7c] sm:$0xf] }
 0x1fc   :  { %v7988_v57 = vld [vmem:[%s13868_s0 + $0xacc] sm:$0xf]  ;;  %7985 = vst [vmem:[%s13869_s1 + $0x24c] sm:$0xf] %v7984_v55  ;;  %7987 = vst [vmem:[%s13869_s1 + $0x2fc] sm:$0xf] %v7986_v56 }
 0x1fd   :  { %7989 = vst [vmem:[%s13869_s1 + $0x3ac] sm:$0xf] %v7988_v57  ;;  %v7990_v58 = vld [vmem:[%s13868_s0 + $0xa1c] sm:$0xf]  ;;  %v7992_v59 = vld [vmem:[%s13868_s0 + $0x96c] sm:$0xf] }
 0x1fe   :  { %v7994_v60 = vld [vmem:[%s13868_s0 + $0x8bc] sm:$0xf]  ;;  %7991 = vst [vmem:[%s13869_s1 + $0x45c] sm:$0xf] %v7990_v58  ;;  %7993 = vst [vmem:[%s13869_s1 + $0x50c] sm:$0xf] %v7992_v59 }
 0x1ff   :  { %7995 = vst [vmem:[%s13869_s1 + $0x5bc] sm:$0xf] %v7994_v60  ;;  %v7996_v61 = vld [vmem:[%s13868_s0 + $0x80c] sm:$0xf]  ;;  %v7998_v62 = vld [vmem:[%s13868_s0 + $0x75c] sm:$0xf] }
 0x200   :  { %v8000_v63 = vld [vmem:[%s13868_s0 + $0x6ac] sm:$0xf]  ;;  %7997 = vst [vmem:[%s13869_s1 + $0x66c] sm:$0xf] %v7996_v61  ;;  %7999 = vst [vmem:[%s13869_s1 + $0x71c] sm:$0xf] %v7998_v62 }
 0x201   :  { %8001 = vst [vmem:[%s13869_s1 + $0x7cc] sm:$0xf] %v8000_v63  ;;  %v8002_v0 = vld [vmem:[%s13868_s0 + $0x5fc] sm:$0xf]  ;;  %v8004_v1 = vld [vmem:[%s13868_s0 + $0x54c] sm:$0xf] }
 0x202   :  { %v8006_v2 = vld [vmem:[%s13868_s0 + $0x49c] sm:$0xf]  ;;  %8003 = vst [vmem:[%s13869_s1 + $0x87c] sm:$0xf] %v8002_v0  ;;  %8005 = vst [vmem:[%s13869_s1 + $0x92c] sm:$0xf] %v8004_v1 }
 0x203   :  { %8007 = vst [vmem:[%s13869_s1 + $0x9dc] sm:$0xf] %v8006_v2  ;;  %v8008_v3 = vld [vmem:[%s13868_s0 + $0x3ec] sm:$0xf]  ;;  %v8010_v4 = vld [vmem:[%s13868_s0 + $0x33c] sm:$0xf] }
 0x204   :  { %v8012_v5 = vld [vmem:[%s13868_s0 + $0x28c] sm:$0xf]  ;;  %8009 = vst [vmem:[%s13869_s1 + $0xa8c] sm:$0xf] %v8008_v3  ;;  %8011 = vst [vmem:[%s13869_s1 + $0xb3c] sm:$0xf] %v8010_v4 }
 0x205   :  { %8013 = vst [vmem:[%s13869_s1 + $0xbec] sm:$0xf] %v8012_v5  ;;  %v8014_v6 = vld [vmem:[%s13868_s0 + $0x1dc] sm:$0xf]  ;;  %v8016_v7 = vld [vmem:[%s13868_s0 + $0x12c] sm:$0xf] }
 0x206   :  { %v8018_v8 = vld [vmem:[%s13868_s0 + $0x7c] sm:$0xf]  ;;  %8015 = vst [vmem:[%s13869_s1 + $0xc9c] sm:$0xf] %v8014_v6  ;;  %8017 = vst [vmem:[%s13869_s1 + $0xd4c] sm:$0xf] %v8016_v7 }
 0x207   :  { %8019 = vst [vmem:[%s13869_s1 + $0xdfc] sm:$0xf] %v8018_v8  ;;  %v8020_v9 = vld [vmem:[%s13868_s0 + $0xe2c] sm:$0xf]  ;;  %v8022_v10 = vld [vmem:[%s13868_s0 + $0xd7c] sm:$0xf] }
 0x208   :  { %v8024_v11 = vld [vmem:[%s13868_s0 + $0xccc] sm:$0xf]  ;;  %8021 = vst [vmem:[%s13869_s1 + $0x4c] sm:$0xf] %v8020_v9  ;;  %8023 = vst [vmem:[%s13869_s1 + $0xfc] sm:$0xf] %v8022_v10 }
 0x209   :  { %8025 = vst [vmem:[%s13869_s1 + $0x1ac] sm:$0xf] %v8024_v11  ;;  %v8026_v12 = vld [vmem:[%s13868_s0 + $0xc1c] sm:$0xf]  ;;  %v8028_v13 = vld [vmem:[%s13868_s0 + $0xb6c] sm:$0xf] }
 0x20a   :  { %v8030_v14 = vld [vmem:[%s13868_s0 + $0xabc] sm:$0xf]  ;;  %8027 = vst [vmem:[%s13869_s1 + $0x25c] sm:$0xf] %v8026_v12  ;;  %8029 = vst [vmem:[%s13869_s1 + $0x30c] sm:$0xf] %v8028_v13 }
 0x20b   :  { %8031 = vst [vmem:[%s13869_s1 + $0x3bc] sm:$0xf] %v8030_v14  ;;  %v8032_v15 = vld [vmem:[%s13868_s0 + $0xa0c] sm:$0xf]  ;;  %v8034_v16 = vld [vmem:[%s13868_s0 + $0x95c] sm:$0xf] }
 0x20c   :  { %v8036_v17 = vld [vmem:[%s13868_s0 + $0x8ac] sm:$0xf]  ;;  %8033 = vst [vmem:[%s13869_s1 + $0x46c] sm:$0xf] %v8032_v15  ;;  %8035 = vst [vmem:[%s13869_s1 + $0x51c] sm:$0xf] %v8034_v16 }
 0x20d   :  { %8037 = vst [vmem:[%s13869_s1 + $0x5cc] sm:$0xf] %v8036_v17  ;;  %v8038_v18 = vld [vmem:[%s13868_s0 + $0x7fc] sm:$0xf]  ;;  %v8040_v19 = vld [vmem:[%s13868_s0 + $0x74c] sm:$0xf] }
 0x20e   :  { %v8042_v20 = vld [vmem:[%s13868_s0 + $0x69c] sm:$0xf]  ;;  %8039 = vst [vmem:[%s13869_s1 + $0x67c] sm:$0xf] %v8038_v18  ;;  %8041 = vst [vmem:[%s13869_s1 + $0x72c] sm:$0xf] %v8040_v19 }
 0x20f   :  { %8043 = vst [vmem:[%s13869_s1 + $0x7dc] sm:$0xf] %v8042_v20  ;;  %v8044_v21 = vld [vmem:[%s13868_s0 + $0x5ec] sm:$0xf]  ;;  %v8046_v22 = vld [vmem:[%s13868_s0 + $0x53c] sm:$0xf] }
 0x210   :  { %v8048_v23 = vld [vmem:[%s13868_s0 + $0x48c] sm:$0xf]  ;;  %8045 = vst [vmem:[%s13869_s1 + $0x88c] sm:$0xf] %v8044_v21  ;;  %8047 = vst [vmem:[%s13869_s1 + $0x93c] sm:$0xf] %v8046_v22 }
 0x211   :  { %8049 = vst [vmem:[%s13869_s1 + $0x9ec] sm:$0xf] %v8048_v23  ;;  %v8050_v24 = vld [vmem:[%s13868_s0 + $0x3dc] sm:$0xf]  ;;  %v8052_v25 = vld [vmem:[%s13868_s0 + $0x32c] sm:$0xf] }
 0x212   :  { %v8054_v26 = vld [vmem:[%s13868_s0 + $0x27c] sm:$0xf]  ;;  %8051 = vst [vmem:[%s13869_s1 + $0xa9c] sm:$0xf] %v8050_v24  ;;  %8053 = vst [vmem:[%s13869_s1 + $0xb4c] sm:$0xf] %v8052_v25 }
 0x213   :  { %8055 = vst [vmem:[%s13869_s1 + $0xbfc] sm:$0xf] %v8054_v26  ;;  %v8056_v27 = vld [vmem:[%s13868_s0 + $0x1cc] sm:$0xf]  ;;  %v8058_v28 = vld [vmem:[%s13868_s0 + $0x11c] sm:$0xf] }
 0x214   :  { %v8060_v29 = vld [vmem:[%s13868_s0 + $0x6c] sm:$0xf]  ;;  %8057 = vst [vmem:[%s13869_s1 + $0xcac] sm:$0xf] %v8056_v27  ;;  %8059 = vst [vmem:[%s13869_s1 + $0xd5c] sm:$0xf] %v8058_v28 }
 0x215   :  { %8061 = vst [vmem:[%s13869_s1 + $0xe0c] sm:$0xf] %v8060_v29  ;;  %v8062_v30 = vld [vmem:[%s13868_s0 + $0xe1c] sm:$0xf]  ;;  %v8064_v31 = vld [vmem:[%s13868_s0 + $0xd6c] sm:$0xf] }
 0x216   :  { %v8066_v32 = vld [vmem:[%s13868_s0 + $0xcbc] sm:$0xf]  ;;  %8063 = vst [vmem:[%s13869_s1 + $0x5c] sm:$0xf] %v8062_v30  ;;  %8065 = vst [vmem:[%s13869_s1 + $0x10c] sm:$0xf] %v8064_v31 }
 0x217   :  { %8067 = vst [vmem:[%s13869_s1 + $0x1bc] sm:$0xf] %v8066_v32  ;;  %v8068_v33 = vld [vmem:[%s13868_s0 + $0xc0c] sm:$0xf]  ;;  %v8070_v34 = vld [vmem:[%s13868_s0 + $0xb5c] sm:$0xf] }
 0x218   :  { %v8072_v35 = vld [vmem:[%s13868_s0 + $0xaac] sm:$0xf]  ;;  %8069 = vst [vmem:[%s13869_s1 + $0x26c] sm:$0xf] %v8068_v33  ;;  %8071 = vst [vmem:[%s13869_s1 + $0x31c] sm:$0xf] %v8070_v34 }
 0x219   :  { %8073 = vst [vmem:[%s13869_s1 + $0x3cc] sm:$0xf] %v8072_v35  ;;  %v8074_v36 = vld [vmem:[%s13868_s0 + $0x9fc] sm:$0xf]  ;;  %v8076_v37 = vld [vmem:[%s13868_s0 + $0x94c] sm:$0xf] }
 0x21a   :  { %v8078_v38 = vld [vmem:[%s13868_s0 + $0x89c] sm:$0xf]  ;;  %8075 = vst [vmem:[%s13869_s1 + $0x47c] sm:$0xf] %v8074_v36  ;;  %8077 = vst [vmem:[%s13869_s1 + $0x52c] sm:$0xf] %v8076_v37 }
 0x21b   :  { %8079 = vst [vmem:[%s13869_s1 + $0x5dc] sm:$0xf] %v8078_v38  ;;  %v8080_v39 = vld [vmem:[%s13868_s0 + $0x7ec] sm:$0xf]  ;;  %v8082_v40 = vld [vmem:[%s13868_s0 + $0x73c] sm:$0xf] }
 0x21c   :  { %v8084_v41 = vld [vmem:[%s13868_s0 + $0x68c] sm:$0xf]  ;;  %8081 = vst [vmem:[%s13869_s1 + $0x68c] sm:$0xf] %v8080_v39  ;;  %8083 = vst [vmem:[%s13869_s1 + $0x73c] sm:$0xf] %v8082_v40 }
 0x21d   :  { %8085 = vst [vmem:[%s13869_s1 + $0x7ec] sm:$0xf] %v8084_v41  ;;  %v8086_v42 = vld [vmem:[%s13868_s0 + $0x5dc] sm:$0xf]  ;;  %v8088_v43 = vld [vmem:[%s13868_s0 + $0x52c] sm:$0xf] }
 0x21e   :  { %v8090_v44 = vld [vmem:[%s13868_s0 + $0x47c] sm:$0xf]  ;;  %8087 = vst [vmem:[%s13869_s1 + $0x89c] sm:$0xf] %v8086_v42  ;;  %8089 = vst [vmem:[%s13869_s1 + $0x94c] sm:$0xf] %v8088_v43 }
 0x21f   :  { %8091 = vst [vmem:[%s13869_s1 + $0x9fc] sm:$0xf] %v8090_v44  ;;  %v8092_v45 = vld [vmem:[%s13868_s0 + $0x3cc] sm:$0xf]  ;;  %v8094_v46 = vld [vmem:[%s13868_s0 + $0x31c] sm:$0xf] }
 0x220   :  { %v8096_v47 = vld [vmem:[%s13868_s0 + $0x26c] sm:$0xf]  ;;  %8093 = vst [vmem:[%s13869_s1 + $0xaac] sm:$0xf] %v8092_v45  ;;  %8095 = vst [vmem:[%s13869_s1 + $0xb5c] sm:$0xf] %v8094_v46 }
 0x221   :  { %8097 = vst [vmem:[%s13869_s1 + $0xc0c] sm:$0xf] %v8096_v47  ;;  %v8098_v48 = vld [vmem:[%s13868_s0 + $0x1bc] sm:$0xf]  ;;  %v8100_v49 = vld [vmem:[%s13868_s0 + $0x10c] sm:$0xf] }
 0x222   :  { %v8102_v50 = vld [vmem:[%s13868_s0 + $0x5c] sm:$0xf]  ;;  %8099 = vst [vmem:[%s13869_s1 + $0xcbc] sm:$0xf] %v8098_v48  ;;  %8101 = vst [vmem:[%s13869_s1 + $0xd6c] sm:$0xf] %v8100_v49 }
 0x223   :  { %8103 = vst [vmem:[%s13869_s1 + $0xe1c] sm:$0xf] %v8102_v50  ;;  %v8104_v51 = vld [vmem:[%s13868_s0 + $0xe0c] sm:$0xf]  ;;  %v8106_v52 = vld [vmem:[%s13868_s0 + $0xd5c] sm:$0xf] }
 0x224   :  { %v8108_v53 = vld [vmem:[%s13868_s0 + $0xcac] sm:$0xf]  ;;  %8105 = vst [vmem:[%s13869_s1 + $0x6c] sm:$0xf] %v8104_v51  ;;  %8107 = vst [vmem:[%s13869_s1 + $0x11c] sm:$0xf] %v8106_v52 }
 0x225   :  { %8109 = vst [vmem:[%s13869_s1 + $0x1cc] sm:$0xf] %v8108_v53  ;;  %v8110_v54 = vld [vmem:[%s13868_s0 + $0xbfc] sm:$0xf]  ;;  %v8112_v55 = vld [vmem:[%s13868_s0 + $0xb4c] sm:$0xf] }
 0x226   :  { %v8114_v56 = vld [vmem:[%s13868_s0 + $0xa9c] sm:$0xf]  ;;  %8111 = vst [vmem:[%s13869_s1 + $0x27c] sm:$0xf] %v8110_v54  ;;  %8113 = vst [vmem:[%s13869_s1 + $0x32c] sm:$0xf] %v8112_v55 }
 0x227   :  { %8115 = vst [vmem:[%s13869_s1 + $0x3dc] sm:$0xf] %v8114_v56  ;;  %v8116_v57 = vld [vmem:[%s13868_s0 + $0x9ec] sm:$0xf]  ;;  %v8118_v58 = vld [vmem:[%s13868_s0 + $0x93c] sm:$0xf] }
 0x228   :  { %v8120_v59 = vld [vmem:[%s13868_s0 + $0x88c] sm:$0xf]  ;;  %8117 = vst [vmem:[%s13869_s1 + $0x48c] sm:$0xf] %v8116_v57  ;;  %8119 = vst [vmem:[%s13869_s1 + $0x53c] sm:$0xf] %v8118_v58 }
 0x229   :  { %8121 = vst [vmem:[%s13869_s1 + $0x5ec] sm:$0xf] %v8120_v59  ;;  %v8122_v60 = vld [vmem:[%s13868_s0 + $0x7dc] sm:$0xf]  ;;  %v8124_v61 = vld [vmem:[%s13868_s0 + $0x72c] sm:$0xf] }
 0x22a   :  { %v8126_v62 = vld [vmem:[%s13868_s0 + $0x67c] sm:$0xf]  ;;  %8123 = vst [vmem:[%s13869_s1 + $0x69c] sm:$0xf] %v8122_v60  ;;  %8125 = vst [vmem:[%s13869_s1 + $0x74c] sm:$0xf] %v8124_v61 }
 0x22b   :  { %8127 = vst [vmem:[%s13869_s1 + $0x7fc] sm:$0xf] %v8126_v62  ;;  %v8128_v63 = vld [vmem:[%s13868_s0 + $0x5cc] sm:$0xf]  ;;  %v8130_v0 = vld [vmem:[%s13868_s0 + $0x51c] sm:$0xf] }
 0x22c   :  { %v8132_v1 = vld [vmem:[%s13868_s0 + $0x46c] sm:$0xf]  ;;  %8129 = vst [vmem:[%s13869_s1 + $0x8ac] sm:$0xf] %v8128_v63  ;;  %8131 = vst [vmem:[%s13869_s1 + $0x95c] sm:$0xf] %v8130_v0 }
 0x22d   :  { %8133 = vst [vmem:[%s13869_s1 + $0xa0c] sm:$0xf] %v8132_v1  ;;  %v8134_v2 = vld [vmem:[%s13868_s0 + $0x3bc] sm:$0xf]  ;;  %v8136_v3 = vld [vmem:[%s13868_s0 + $0x30c] sm:$0xf] }
 0x22e   :  { %v8138_v4 = vld [vmem:[%s13868_s0 + $0x25c] sm:$0xf]  ;;  %8135 = vst [vmem:[%s13869_s1 + $0xabc] sm:$0xf] %v8134_v2  ;;  %8137 = vst [vmem:[%s13869_s1 + $0xb6c] sm:$0xf] %v8136_v3 }
 0x22f   :  { %8139 = vst [vmem:[%s13869_s1 + $0xc1c] sm:$0xf] %v8138_v4  ;;  %v8140_v5 = vld [vmem:[%s13868_s0 + $0x1ac] sm:$0xf]  ;;  %v8142_v6 = vld [vmem:[%s13868_s0 + $0xfc] sm:$0xf] }
 0x230   :  { %v8144_v7 = vld [vmem:[%s13868_s0 + $0x4c] sm:$0xf]  ;;  %8141 = vst [vmem:[%s13869_s1 + $0xccc] sm:$0xf] %v8140_v5  ;;  %8143 = vst [vmem:[%s13869_s1 + $0xd7c] sm:$0xf] %v8142_v6 }
 0x231   :  { %8145 = vst [vmem:[%s13869_s1 + $0xe2c] sm:$0xf] %v8144_v7  ;;  %v8146_v8 = vld [vmem:[%s13868_s0 + $0xdfc] sm:$0xf]  ;;  %v8148_v9 = vld [vmem:[%s13868_s0 + $0xd4c] sm:$0xf] }
 0x232   :  { %v8150_v10 = vld [vmem:[%s13868_s0 + $0xc9c] sm:$0xf]  ;;  %8147 = vst [vmem:[%s13869_s1 + $0x7c] sm:$0xf] %v8146_v8  ;;  %8149 = vst [vmem:[%s13869_s1 + $0x12c] sm:$0xf] %v8148_v9 }
 0x233   :  { %8151 = vst [vmem:[%s13869_s1 + $0x1dc] sm:$0xf] %v8150_v10  ;;  %v8152_v11 = vld [vmem:[%s13868_s0 + $0xbec] sm:$0xf]  ;;  %v8154_v12 = vld [vmem:[%s13868_s0 + $0xb3c] sm:$0xf] }
 0x234   :  { %v8156_v13 = vld [vmem:[%s13868_s0 + $0xa8c] sm:$0xf]  ;;  %8153 = vst [vmem:[%s13869_s1 + $0x28c] sm:$0xf] %v8152_v11  ;;  %8155 = vst [vmem:[%s13869_s1 + $0x33c] sm:$0xf] %v8154_v12 }
 0x235   :  { %8157 = vst [vmem:[%s13869_s1 + $0x3ec] sm:$0xf] %v8156_v13  ;;  %v8158_v14 = vld [vmem:[%s13868_s0 + $0x9dc] sm:$0xf]  ;;  %v8160_v15 = vld [vmem:[%s13868_s0 + $0x92c] sm:$0xf] }
 0x236   :  { %v8162_v16 = vld [vmem:[%s13868_s0 + $0x87c] sm:$0xf]  ;;  %8159 = vst [vmem:[%s13869_s1 + $0x49c] sm:$0xf] %v8158_v14  ;;  %8161 = vst [vmem:[%s13869_s1 + $0x54c] sm:$0xf] %v8160_v15 }
 0x237   :  { %8163 = vst [vmem:[%s13869_s1 + $0x5fc] sm:$0xf] %v8162_v16  ;;  %v8164_v17 = vld [vmem:[%s13868_s0 + $0x7cc] sm:$0xf]  ;;  %v8166_v18 = vld [vmem:[%s13868_s0 + $0x71c] sm:$0xf] }
 0x238   :  { %v8168_v19 = vld [vmem:[%s13868_s0 + $0x66c] sm:$0xf]  ;;  %8165 = vst [vmem:[%s13869_s1 + $0x6ac] sm:$0xf] %v8164_v17  ;;  %8167 = vst [vmem:[%s13869_s1 + $0x75c] sm:$0xf] %v8166_v18 }
 0x239   :  { %8169 = vst [vmem:[%s13869_s1 + $0x80c] sm:$0xf] %v8168_v19  ;;  %v8170_v20 = vld [vmem:[%s13868_s0 + $0x5bc] sm:$0xf]  ;;  %v8172_v21 = vld [vmem:[%s13868_s0 + $0x50c] sm:$0xf] }
 0x23a   :  { %v8174_v22 = vld [vmem:[%s13868_s0 + $0x45c] sm:$0xf]  ;;  %8171 = vst [vmem:[%s13869_s1 + $0x8bc] sm:$0xf] %v8170_v20  ;;  %8173 = vst [vmem:[%s13869_s1 + $0x96c] sm:$0xf] %v8172_v21 }
 0x23b   :  { %8175 = vst [vmem:[%s13869_s1 + $0xa1c] sm:$0xf] %v8174_v22  ;;  %v8176_v23 = vld [vmem:[%s13868_s0 + $0x3ac] sm:$0xf]  ;;  %v8178_v24 = vld [vmem:[%s13868_s0 + $0x2fc] sm:$0xf] }
 0x23c   :  { %v8180_v25 = vld [vmem:[%s13868_s0 + $0x24c] sm:$0xf]  ;;  %8177 = vst [vmem:[%s13869_s1 + $0xacc] sm:$0xf] %v8176_v23  ;;  %8179 = vst [vmem:[%s13869_s1 + $0xb7c] sm:$0xf] %v8178_v24 }
 0x23d   :  { %8181 = vst [vmem:[%s13869_s1 + $0xc2c] sm:$0xf] %v8180_v25  ;;  %v8182_v26 = vld [vmem:[%s13868_s0 + $0x19c] sm:$0xf]  ;;  %v8184_v27 = vld [vmem:[%s13868_s0 + $0xec] sm:$0xf] }
 0x23e   :  { %v8186_v28 = vld [vmem:[%s13868_s0 + $0x3c] sm:$0xf]  ;;  %8183 = vst [vmem:[%s13869_s1 + $0xcdc] sm:$0xf] %v8182_v26  ;;  %8185 = vst [vmem:[%s13869_s1 + $0xd8c] sm:$0xf] %v8184_v27 }
 0x23f   :  { %8187 = vst [vmem:[%s13869_s1 + $0xe3c] sm:$0xf] %v8186_v28  ;;  %v8188_v29 = vld [vmem:[%s13868_s0 + $0xdec] sm:$0xf]  ;;  %v8190_v30 = vld [vmem:[%s13868_s0 + $0xd3c] sm:$0xf] }
 0x240   :  { %v8192_v31 = vld [vmem:[%s13868_s0 + $0xc8c] sm:$0xf]  ;;  %8189 = vst [vmem:[%s13869_s1 + $0x8c] sm:$0xf] %v8188_v29  ;;  %8191 = vst [vmem:[%s13869_s1 + $0x13c] sm:$0xf] %v8190_v30 }
 0x241   :  { %8193 = vst [vmem:[%s13869_s1 + $0x1ec] sm:$0xf] %v8192_v31  ;;  %v8194_v32 = vld [vmem:[%s13868_s0 + $0xbdc] sm:$0xf]  ;;  %v8196_v33 = vld [vmem:[%s13868_s0 + $0xb2c] sm:$0xf] }
 0x242   :  { %v8198_v34 = vld [vmem:[%s13868_s0 + $0xa7c] sm:$0xf]  ;;  %8195 = vst [vmem:[%s13869_s1 + $0x29c] sm:$0xf] %v8194_v32  ;;  %8197 = vst [vmem:[%s13869_s1 + $0x34c] sm:$0xf] %v8196_v33 }
 0x243   :  { %8199 = vst [vmem:[%s13869_s1 + $0x3fc] sm:$0xf] %v8198_v34  ;;  %v8200_v35 = vld [vmem:[%s13868_s0 + $0x9cc] sm:$0xf]  ;;  %v8202_v36 = vld [vmem:[%s13868_s0 + $0x91c] sm:$0xf] }
 0x244   :  { %v8204_v37 = vld [vmem:[%s13868_s0 + $0x86c] sm:$0xf]  ;;  %8201 = vst [vmem:[%s13869_s1 + $0x4ac] sm:$0xf] %v8200_v35  ;;  %8203 = vst [vmem:[%s13869_s1 + $0x55c] sm:$0xf] %v8202_v36 }
 0x245   :  { %8205 = vst [vmem:[%s13869_s1 + $0x60c] sm:$0xf] %v8204_v37  ;;  %v8206_v38 = vld [vmem:[%s13868_s0 + $0x7bc] sm:$0xf]  ;;  %v8208_v39 = vld [vmem:[%s13868_s0 + $0x70c] sm:$0xf] }
 0x246   :  { %v8210_v40 = vld [vmem:[%s13868_s0 + $0x65c] sm:$0xf]  ;;  %8207 = vst [vmem:[%s13869_s1 + $0x6bc] sm:$0xf] %v8206_v38  ;;  %8209 = vst [vmem:[%s13869_s1 + $0x76c] sm:$0xf] %v8208_v39 }
 0x247   :  { %8211 = vst [vmem:[%s13869_s1 + $0x81c] sm:$0xf] %v8210_v40  ;;  %v8212_v41 = vld [vmem:[%s13868_s0 + $0x5ac] sm:$0xf]  ;;  %v8214_v42 = vld [vmem:[%s13868_s0 + $0x4fc] sm:$0xf] }
 0x248   :  { %v8216_v43 = vld [vmem:[%s13868_s0 + $0x44c] sm:$0xf]  ;;  %8213 = vst [vmem:[%s13869_s1 + $0x8cc] sm:$0xf] %v8212_v41  ;;  %8215 = vst [vmem:[%s13869_s1 + $0x97c] sm:$0xf] %v8214_v42 }
 0x249   :  { %8217 = vst [vmem:[%s13869_s1 + $0xa2c] sm:$0xf] %v8216_v43  ;;  %v8218_v44 = vld [vmem:[%s13868_s0 + $0x39c] sm:$0xf]  ;;  %v8220_v45 = vld [vmem:[%s13868_s0 + $0x2ec] sm:$0xf] }
 0x24a   :  { %v8222_v46 = vld [vmem:[%s13868_s0 + $0x23c] sm:$0xf]  ;;  %8219 = vst [vmem:[%s13869_s1 + $0xadc] sm:$0xf] %v8218_v44  ;;  %8221 = vst [vmem:[%s13869_s1 + $0xb8c] sm:$0xf] %v8220_v45 }
 0x24b   :  { %8223 = vst [vmem:[%s13869_s1 + $0xc3c] sm:$0xf] %v8222_v46  ;;  %v8224_v47 = vld [vmem:[%s13868_s0 + $0x18c] sm:$0xf]  ;;  %v8226_v48 = vld [vmem:[%s13868_s0 + $0xdc] sm:$0xf] }
 0x24c   :  { %v8228_v49 = vld [vmem:[%s13868_s0 + $0x2c] sm:$0xf]  ;;  %8225 = vst [vmem:[%s13869_s1 + $0xcec] sm:$0xf] %v8224_v47  ;;  %8227 = vst [vmem:[%s13869_s1 + $0xd9c] sm:$0xf] %v8226_v48 }
 0x24d   :  { %8229 = vst [vmem:[%s13869_s1 + $0xe4c] sm:$0xf] %v8228_v49  ;;  %v8230_v50 = vld [vmem:[%s13868_s0 + $0xddc] sm:$0xf]  ;;  %v8232_v51 = vld [vmem:[%s13868_s0 + $0xd2c] sm:$0xf] }
 0x24e   :  { %v8234_v52 = vld [vmem:[%s13868_s0 + $0xc7c] sm:$0xf]  ;;  %8231 = vst [vmem:[%s13869_s1 + $0x9c] sm:$0xf] %v8230_v50  ;;  %8233 = vst [vmem:[%s13869_s1 + $0x14c] sm:$0xf] %v8232_v51 }
 0x24f   :  { %8235 = vst [vmem:[%s13869_s1 + $0x1fc] sm:$0xf] %v8234_v52  ;;  %v8236_v53 = vld [vmem:[%s13868_s0 + $0xbcc] sm:$0xf]  ;;  %v8238_v54 = vld [vmem:[%s13868_s0 + $0xb1c] sm:$0xf] }
 0x250   :  { %v8240_v55 = vld [vmem:[%s13868_s0 + $0xa6c] sm:$0xf]  ;;  %8237 = vst [vmem:[%s13869_s1 + $0x2ac] sm:$0xf] %v8236_v53  ;;  %8239 = vst [vmem:[%s13869_s1 + $0x35c] sm:$0xf] %v8238_v54 }
 0x251   :  { %8241 = vst [vmem:[%s13869_s1 + $0x40c] sm:$0xf] %v8240_v55  ;;  %v8242_v56 = vld [vmem:[%s13868_s0 + $0x9bc] sm:$0xf]  ;;  %v8244_v57 = vld [vmem:[%s13868_s0 + $0x90c] sm:$0xf] }
 0x252   :  { %v8246_v58 = vld [vmem:[%s13868_s0 + $0x85c] sm:$0xf]  ;;  %8243 = vst [vmem:[%s13869_s1 + $0x4bc] sm:$0xf] %v8242_v56  ;;  %8245 = vst [vmem:[%s13869_s1 + $0x56c] sm:$0xf] %v8244_v57 }
 0x253   :  { %8247 = vst [vmem:[%s13869_s1 + $0x61c] sm:$0xf] %v8246_v58  ;;  %v8248_v59 = vld [vmem:[%s13868_s0 + $0x7ac] sm:$0xf]  ;;  %v8250_v60 = vld [vmem:[%s13868_s0 + $0x6fc] sm:$0xf] }
 0x254   :  { %v8252_v61 = vld [vmem:[%s13868_s0 + $0x64c] sm:$0xf]  ;;  %8249 = vst [vmem:[%s13869_s1 + $0x6cc] sm:$0xf] %v8248_v59  ;;  %8251 = vst [vmem:[%s13869_s1 + $0x77c] sm:$0xf] %v8250_v60 }
 0x255   :  { %8253 = vst [vmem:[%s13869_s1 + $0x82c] sm:$0xf] %v8252_v61  ;;  %v8254_v62 = vld [vmem:[%s13868_s0 + $0x59c] sm:$0xf]  ;;  %v8256_v63 = vld [vmem:[%s13868_s0 + $0x4ec] sm:$0xf] }
 0x256   :  { %v8258_v0 = vld [vmem:[%s13868_s0 + $0x43c] sm:$0xf]  ;;  %8255 = vst [vmem:[%s13869_s1 + $0x8dc] sm:$0xf] %v8254_v62  ;;  %8257 = vst [vmem:[%s13869_s1 + $0x98c] sm:$0xf] %v8256_v63 }
 0x257   :  { %8259 = vst [vmem:[%s13869_s1 + $0xa3c] sm:$0xf] %v8258_v0  ;;  %v8260_v1 = vld [vmem:[%s13868_s0 + $0x38c] sm:$0xf]  ;;  %v8262_v2 = vld [vmem:[%s13868_s0 + $0x2dc] sm:$0xf] }
 0x258   :  { %v8264_v3 = vld [vmem:[%s13868_s0 + $0x22c] sm:$0xf]  ;;  %8261 = vst [vmem:[%s13869_s1 + $0xaec] sm:$0xf] %v8260_v1  ;;  %8263 = vst [vmem:[%s13869_s1 + $0xb9c] sm:$0xf] %v8262_v2 }
 0x259   :  { %8265 = vst [vmem:[%s13869_s1 + $0xc4c] sm:$0xf] %v8264_v3  ;;  %v8266_v4 = vld [vmem:[%s13868_s0 + $0x17c] sm:$0xf]  ;;  %v8268_v5 = vld [vmem:[%s13868_s0 + $0xcc] sm:$0xf] }
 0x25a   :  { %v8270_v6 = vld [vmem:[%s13868_s0 + $0x1c] sm:$0xf]  ;;  %8267 = vst [vmem:[%s13869_s1 + $0xcfc] sm:$0xf] %v8266_v4  ;;  %8269 = vst [vmem:[%s13869_s1 + $0xdac] sm:$0xf] %v8268_v5 }
 0x25b   :  { %8271 = vst [vmem:[%s13869_s1 + $0xe5c] sm:$0xf] %v8270_v6  ;;  %v8272_v7 = vld [vmem:[%s13868_s0 + $0xdcc] sm:$0xf]  ;;  %v8274_v8 = vld [vmem:[%s13868_s0 + $0xd1c] sm:$0xf] }
 0x25c   :  { %v8276_v9 = vld [vmem:[%s13868_s0 + $0xc6c] sm:$0xf]  ;;  %8273 = vst [vmem:[%s13869_s1 + $0xac] sm:$0xf] %v8272_v7  ;;  %8275 = vst [vmem:[%s13869_s1 + $0x15c] sm:$0xf] %v8274_v8 }
 0x25d   :  { %8277 = vst [vmem:[%s13869_s1 + $0x20c] sm:$0xf] %v8276_v9  ;;  %v8278_v10 = vld [vmem:[%s13868_s0 + $0xbbc] sm:$0xf]  ;;  %v8280_v11 = vld [vmem:[%s13868_s0 + $0xb0c] sm:$0xf] }
 0x25e   :  { %v8282_v12 = vld [vmem:[%s13868_s0 + $0xa5c] sm:$0xf]  ;;  %8279 = vst [vmem:[%s13869_s1 + $0x2bc] sm:$0xf] %v8278_v10  ;;  %8281 = vst [vmem:[%s13869_s1 + $0x36c] sm:$0xf] %v8280_v11 }
 0x25f   :  { %8283 = vst [vmem:[%s13869_s1 + $0x41c] sm:$0xf] %v8282_v12  ;;  %v8284_v13 = vld [vmem:[%s13868_s0 + $0x9ac] sm:$0xf]  ;;  %v8286_v14 = vld [vmem:[%s13868_s0 + $0x8fc] sm:$0xf] }
 0x260   :  { %v8288_v15 = vld [vmem:[%s13868_s0 + $0x84c] sm:$0xf]  ;;  %8285 = vst [vmem:[%s13869_s1 + $0x4cc] sm:$0xf] %v8284_v13  ;;  %8287 = vst [vmem:[%s13869_s1 + $0x57c] sm:$0xf] %v8286_v14 }
 0x261   :  { %8289 = vst [vmem:[%s13869_s1 + $0x62c] sm:$0xf] %v8288_v15  ;;  %v8290_v16 = vld [vmem:[%s13868_s0 + $0x79c] sm:$0xf]  ;;  %v8292_v17 = vld [vmem:[%s13868_s0 + $0x6ec] sm:$0xf] }
 0x262   :  { %v8294_v18 = vld [vmem:[%s13868_s0 + $0x63c] sm:$0xf]  ;;  %8291 = vst [vmem:[%s13869_s1 + $0x6dc] sm:$0xf] %v8290_v16  ;;  %8293 = vst [vmem:[%s13869_s1 + $0x78c] sm:$0xf] %v8292_v17 }
 0x263   :  { %8295 = vst [vmem:[%s13869_s1 + $0x83c] sm:$0xf] %v8294_v18  ;;  %v8296_v19 = vld [vmem:[%s13868_s0 + $0x58c] sm:$0xf]  ;;  %v8298_v20 = vld [vmem:[%s13868_s0 + $0x4dc] sm:$0xf] }
 0x264   :  { %v8300_v21 = vld [vmem:[%s13868_s0 + $0x42c] sm:$0xf]  ;;  %8297 = vst [vmem:[%s13869_s1 + $0x8ec] sm:$0xf] %v8296_v19  ;;  %8299 = vst [vmem:[%s13869_s1 + $0x99c] sm:$0xf] %v8298_v20 }
 0x265   :  { %8301 = vst [vmem:[%s13869_s1 + $0xa4c] sm:$0xf] %v8300_v21  ;;  %v8302_v22 = vld [vmem:[%s13868_s0 + $0x37c] sm:$0xf]  ;;  %v8304_v23 = vld [vmem:[%s13868_s0 + $0x2cc] sm:$0xf] }
 0x266   :  { %v8306_v24 = vld [vmem:[%s13868_s0 + $0x21c] sm:$0xf]  ;;  %8303 = vst [vmem:[%s13869_s1 + $0xafc] sm:$0xf] %v8302_v22  ;;  %8305 = vst [vmem:[%s13869_s1 + $0xbac] sm:$0xf] %v8304_v23 }
 0x267   :  { %8307 = vst [vmem:[%s13869_s1 + $0xc5c] sm:$0xf] %v8306_v24  ;;  %v8308_v25 = vld [vmem:[%s13868_s0 + $0x16c] sm:$0xf]  ;;  %v8310_v26 = vld [vmem:[%s13868_s0 + $0xbc] sm:$0xf] }
 0x268   :  { %v8312_v27 = vld [vmem:[%s13868_s0 + $0xc] sm:$0xf]  ;;  %8309 = vst [vmem:[%s13869_s1 + $0xd0c] sm:$0xf] %v8308_v25  ;;  %8311 = vst [vmem:[%s13869_s1 + $0xdbc] sm:$0xf] %v8310_v26 }
 0x269   :  { %8313 = vst [vmem:[%s13869_s1 + $0xe6c] sm:$0xf] %v8312_v27 }

// kernel: deepspeech2_forward.13
= control target key start
LH: loop header
LB: loop body
LE: loop exit
PB: predicated region body
PF: predicated region fallthrough
CT: control target
= control target key end

     0   :  { %s690_s12 = smov 0   ;;  %s692_s13 = smov 0   ;;  %s804_s0 = inlined_call_operand.vmem [shape: f32[2,32,8,4], index: 0, kind: input, shape index: {}]   ;;  %s805_s1 = inlined_call_operand.vmem [shape: f32[2,32,1,4], index: 1, kind: input, shape index: {}]   ;;  %s806_s2 = inlined_call_operand.vmem [shape: f32[2,32,1,4], index: 2, kind: input, shape index: {}]   ;;  %s807_s3 = inlined_call_operand.vmem [shape: f32[2,32,8,4], index: 3, kind: output, shape index: {}]  }
   0x1   :  { %s694_s14 = smov 0   ;;  %s696_s15 = smov 0  }
   0x2   :  { %s698_s16 = smov 0  }
   0x3 LB: > { %s22_s17 = sadd.s32 1, %s660_s14  ;;  %s25_s18 = sadd.s32 1, %s664_s15  ;;  %s668_s16 = sphi %s698_s16, %s13_s16   ;;  %s664_s15 = sphi %s696_s15, %s811_s15   ;;  %s660_s14 = sphi %s694_s14, %s810_s14   ;;  %s656_s13 = sphi %s692_s13, %s809_s13   ;;  %s652_s12 = sphi %s690_s12, %s808_s12  }
   0x4   : > { %p23_p0 = scmp.ge.s32.totalorder %s22_s17, 4  ;;  %p561_p1 = scmp.ge.s32.totalorder %s668_s16, 1 }
   0x5   : > { %p190_p2 = scmp.lt.s32.totalorder %s668_s16, 9 }
   0x6   : > { %s813_s17 = smov (%p23_p0, %s22_s17), 0  ;;  %s815_s18 = smov (!%p23_p0, %s25_s18), %s664_s15 }
   0x7   : > { %p191_p3 = pnand %p561_p1, %p190_p2  ;;  %p27_p4 = scmp.ge.s32.totalorder %s815_s18, 2 }
   0x8   : > { %s562_s19 = sshll.u32 (!%p191_p3), %s652_s12, 3  ;;  %p239_p5 = scmp.lt.s32.totalorder (!%p191_p3), %s656_s13, 1  ;;  %vm428_vm0 = vcmask (!%p191_p3), 31744  }
   0x9   : > { %s817_s18 = smov (%p27_p4, %s815_s18), 0  ;;  %194 = sbr.rel (%p191_p3) target bundleno = 38 (0x26), region = 32 }
   0xa   : > { %p241_p6 = scmp.lt.s32.totalorder (!%p191_p3), %s562_s19, 31 }
  0x10   : > { %s819_s13 = smov (!%p239_p5, %s656_s13), 1  ;;  %s821_s19 = smov (!%p241_p6, %s562_s19), 31 }
  0x11   : > { %s563_s20 = sshll.u32 %s819_s13, 5 }
  0x12   : > { %s720_s21 = sadd.s32 %s563_s20, %s821_s19 }
  0x13   : > { %s564_s22 = sshll.u32 %s720_s21, 3  ;;  %s727_s25 = scalar_lea.vmem %s805_s1, %s720_s21 }
  0x14   : > { %s734_s28 = scalar_lea.vmem %s804_s0, %s564_s22  ;;  %s740_s4 = scalar_lea.vmem %s806_s2, %s720_s21  ;;  %v572_v0 = vld [vmem:[%s727_s25] ss:$0 sm:$0xff]  ;;  %v573_v1 = vld [vmem:[%s727_s25 + $0x1] ss:$0 sm:$0xff]  ;;  %v574_v2 = vld [vmem:[%s727_s25 + $0x2] ss:$0 sm:$0xff] }
  0x15   : > { %v276_v3 = vld [vmem:[%s734_s28] sm:$0xff]  ;;  %v277_v5 = vld [vmem:[%s734_s28 + $0x8] sm:$0xff]  ;;  %v278_v9 = vld [vmem:[%s734_s28 + $0x10] sm:$0xff]  ;;  %s768_s7 = scalar_lea.vmem %s807_s3, %s564_s22 }
  0x16   : > { %v580_v4 = vld [vmem:[%s740_s4] ss:$0 sm:$0xff]  ;;  %v340_v6 = vmul.f32 %v572_v0, %v276_v3  ;;  %v341_v7 = vmul.f32 %v573_v1, %v277_v5  ;;  %v581_v8 = vld [vmem:[%s740_s4 + $0x1] ss:$0 sm:$0xff]  ;;  %v582_v10 = vld [vmem:[%s740_s4 + $0x2] ss:$0 sm:$0xff]  ;;  %v342_v11 = vmul.f32 %v574_v2, %v278_v9 }
  0x17   : > { %v279_v12 = vld [vmem:[%s734_s28 + $0x18] sm:$0xff]  ;;  %v575_v13 = vld [vmem:[%s727_s25 + $0x3] ss:$0 sm:$0xff]  ;;  %v576_v19 = vld [vmem:[%s727_s25 + $0x4] ss:$0 sm:$0xff] }
  0x18   : > { %v583_v14 = vld [vmem:[%s740_s4 + $0x3] ss:$0 sm:$0xff]  ;;  %v404_v15 = vadd.f32 %v580_v4, %v340_v6  ;;  %v405_v16 = vadd.f32 %v581_v8, %v341_v7  ;;  %v343_v17 = vmul.f32 %v575_v13, %v279_v12  ;;  %v584_v20 = vld [vmem:[%s740_s4 + $0x4] ss:$0 sm:$0xff]  ;;  %v406_v21 = vadd.f32 %v582_v10, %v342_v11  ;;  %v281_v23 = vld [vmem:[%s734_s28 + $0x28] sm:$0xff] }
  0x19   : > { %v280_v18 = vld [vmem:[%s734_s28 + $0x20] sm:$0xff]  ;;  %v282_v30 = vld [vmem:[%s734_s28 + $0x30] sm:$0xff]  ;;  %v283_v32 = vld [vmem:[%s734_s28 + $0x38] sm:$0xff] }
  0x1a   : > { %v344_v22 = vmul.f32 %v576_v19, %v280_v18  ;;  %v577_v24 = vld [vmem:[%s727_s25 + $0x5] ss:$0 sm:$0xff]  ;;  %v412_v26 = vmax.f32 %v404_v15, 0.0  ;;  %v413_v27 = vmax.f32 %v405_v16, 0.0  ;;  %v407_v28 = vadd.f32 %v583_v14, %v343_v17  ;;  %v578_v31 = vld [vmem:[%s727_s25 + $0x6] ss:$0 sm:$0xff] }
  0x1b   : > { %v585_v25 = vld [vmem:[%s740_s4 + $0x5] ss:$0 sm:$0xff]  ;;  %v345_v29 = vmul.f32 %v577_v24, %v281_v23  ;;  %v414_v33 = vmax.f32 %v406_v21, 0.0  ;;  %v346_v35 = vmul.f32 %v578_v31, %v282_v30  ;;  %v586_v36 = vld [vmem:[%s740_s4 + $0x6] ss:$0 sm:$0xff] }
  0x1c   : > { %v408_v34 = vadd.f32 %v584_v20, %v344_v22  ;;  %v579_v37 = vld [vmem:[%s727_s25 + $0x7] ss:$0 sm:$0xff]  ;;  %v420_v38 = vmin.f32 %v412_v26, 20.0  ;;  %v421_v39 = vmin.f32 %v413_v27, 20.0  ;;  %v415_v40 = vmax.f32 %v407_v28, 0.0 }
  0x1d   : > { %v409_v41 = vadd.f32 %v585_v25, %v345_v29  ;;  %v587_v42 = vld [vmem:[%s740_s4 + $0x7] ss:$0 sm:$0xff]  ;;  %v422_v43 = vmin.f32 %v414_v33, 20.0  ;;  %v410_v45 = vadd.f32 %v586_v36, %v346_v35  ;;  %v347_v46 = vmul.f32 %v579_v37, %v283_v32 }
  0x1e   : > { %v416_v44 = vmax.f32 %v408_v34, 0.0  ;;  %429 = vst.msk [vmem:[%s768_s7] sm:$0xff] %vm428_vm0, %v420_v38  ;;  %430 = vst.msk [vmem:[%s768_s7 + $0x8] sm:$0xff] %vm428_vm0, %v421_v39  ;;  %v423_v47 = vmin.f32 %v415_v40, 20.0 }
  0x1f   : > { %v417_v48 = vmax.f32 %v409_v41, 0.0  ;;  %431 = vst.msk [vmem:[%s768_s7 + $0x10] sm:$0xff] %vm428_vm0, %v422_v43  ;;  %v418_v50 = vmax.f32 %v410_v45, 0.0  ;;  %v411_v51 = vadd.f32 %v587_v42, %v347_v46 }
  0x20   : > { %v424_v49 = vmin.f32 %v416_v44, 20.0  ;;  %432 = vst.msk [vmem:[%s768_s7 + $0x18] sm:$0xff] %vm428_vm0, %v423_v47 }
  0x21   : > { %v425_v52 = vmin.f32 %v417_v48, 20.0  ;;  %v426_v53 = vmin.f32 %v418_v50, 20.0  ;;  %v419_v54 = vmax.f32 %v411_v51, 0.0 }
  0x22   : > { %433 = vst.msk [vmem:[%s768_s7 + $0x20] sm:$0xff] %vm428_vm0, %v424_v49 }
  0x23   : > { %434 = vst.msk [vmem:[%s768_s7 + $0x28] sm:$0xff] %vm428_vm0, %v425_v52  ;;  %435 = vst.msk [vmem:[%s768_s7 + $0x30] sm:$0xff] %vm428_vm0, %v426_v53  ;;  %v427_v55 = vmin.f32 %v419_v54, 20.0 }
  0x25   : > { %436 = vst.msk [vmem:[%s768_s7 + $0x38] sm:$0xff] %vm428_vm0, %v427_v55 }
  0x26 PF: > { %s13_s16 = sadd.s32 1, %s668_s16   ;;  %s808_s12 = smov %s660_s14 }
  0x27   : > { %p10_p7 = scmp.ge.s32.totalorder %s13_s16, 10   ;;  %s809_s13 = smov %s664_s15 }
  0x28   : > { %s810_s14 = smov %s813_s17  ;;  %s811_s15 = smov %s817_s18 }
  0x29   :  { %12 = sbr.rel (!%p10_p7) target bundleno = 3 (0x3), region = 68 }

// kernel: deepspeech2_forward.14
= control target key start
LH: loop header
LB: loop body
LE: loop exit
PB: predicated region body
PF: predicated region fallthrough
CT: control target
= control target key end

     0   :  { %s690_s12 = smov 0   ;;  %s692_s13 = smov 0   ;;  %s804_s0 = inlined_call_operand.vmem [shape: f32[2,32,4,4], index: 0, kind: input, shape index: {}]   ;;  %s805_s1 = inlined_call_operand.vmem [shape: f32[2,32,1,4], index: 1, kind: input, shape index: {}]   ;;  %s806_s2 = inlined_call_operand.vmem [shape: f32[2,32,1,4], index: 2, kind: input, shape index: {}]   ;;  %s807_s3 = inlined_call_operand.vmem [shape: f32[2,32,4,4], index: 3, kind: output, shape index: {}]  }
   0x1   :  { %s694_s14 = smov 0   ;;  %s696_s15 = smov 0  }
   0x2   :  { %s698_s16 = smov 0  }
   0x3 LB: > { %s22_s17 = sadd.s32 1, %s660_s14  ;;  %s25_s18 = sadd.s32 1, %s664_s15  ;;  %s668_s16 = sphi %s698_s16, %s13_s16   ;;  %s664_s15 = sphi %s696_s15, %s811_s15   ;;  %s660_s14 = sphi %s694_s14, %s810_s14   ;;  %s656_s13 = sphi %s692_s13, %s809_s13   ;;  %s652_s12 = sphi %s690_s12, %s808_s12  }
   0x4   : > { %p23_p0 = scmp.ge.s32.totalorder %s22_s17, 4  ;;  %p561_p1 = scmp.ge.s32.totalorder %s668_s16, 1 }
   0x5   : > { %p190_p2 = scmp.lt.s32.totalorder %s668_s16, 9 }
   0x6   : > { %s813_s17 = smov (%p23_p0, %s22_s17), 0  ;;  %s815_s18 = smov (!%p23_p0, %s25_s18), %s664_s15 }
   0x7   : > { %p191_p3 = pnand %p561_p1, %p190_p2  ;;  %p27_p4 = scmp.ge.s32.totalorder %s815_s18, 2 }
   0x8   : > { %s562_s19 = sshll.u32 (!%p191_p3), %s652_s12, 3  ;;  %p239_p5 = scmp.lt.s32.totalorder (!%p191_p3), %s656_s13, 1  ;;  %vm428_vm0 = vcmask (!%p191_p3), 27648  }
   0x9   : > { %s817_s18 = smov (%p27_p4, %s815_s18), 0  ;;  %194 = sbr.rel (%p191_p3) target bundleno = 38 (0x26), region = 32 }
   0xa   : > { %p241_p6 = scmp.lt.s32.totalorder (!%p191_p3), %s562_s19, 31 }
  0x10   : > { %s819_s13 = smov (!%p239_p5, %s656_s13), 1  ;;  %s821_s19 = smov (!%p241_p6, %s562_s19), 31 }
  0x11   : > { %s563_s20 = sshll.u32 %s819_s13, 5 }
  0x12   : > { %s720_s21 = sadd.s32 %s563_s20, %s821_s19 }
  0x13   : > { %s564_s22 = sshll.u32 %s720_s21, 2  ;;  %s727_s25 = scalar_lea.vmem %s805_s1, %s720_s21 }
  0x14   : > { %s734_s28 = scalar_lea.vmem %s804_s0, %s564_s22  ;;  %s740_s4 = scalar_lea.vmem %s806_s2, %s720_s21  ;;  %v572_v0 = vld [vmem:[%s727_s25] ss:$0 sm:$0xff]  ;;  %v573_v1 = vld [vmem:[%s727_s25 + $0x1] ss:$0 sm:$0xff]  ;;  %v574_v2 = vld [vmem:[%s727_s25 + $0x2] ss:$0 sm:$0xff] }
  0x15   : > { %v276_v3 = vld [vmem:[%s734_s28] sm:$0xf]  ;;  %v277_v5 = vld [vmem:[%s734_s28 + $0x4] sm:$0xf]  ;;  %v278_v9 = vld [vmem:[%s734_s28 + $0x8] sm:$0xf]  ;;  %s767_s7 = scalar_lea.vmem %s807_s3, %s564_s22 }
  0x16   : > { %v580_v4 = vld [vmem:[%s740_s4] ss:$0 sm:$0xff]  ;;  %v340_v6 = vmul.f32 %v572_v0, %v276_v3  ;;  %v341_v7 = vmul.f32 %v573_v1, %v277_v5  ;;  %v581_v8 = vld [vmem:[%s740_s4 + $0x1] ss:$0 sm:$0xff]  ;;  %v582_v10 = vld [vmem:[%s740_s4 + $0x2] ss:$0 sm:$0xff]  ;;  %v342_v11 = vmul.f32 %v574_v2, %v278_v9 }
  0x17   : > { %v279_v12 = vld [vmem:[%s734_s28 + $0xc] sm:$0xf]  ;;  %v575_v13 = vld [vmem:[%s727_s25 + $0x3] ss:$0 sm:$0xff]  ;;  %v280_v18 = vld [vmem:[%s734_s28 + $0x10] sm:$0xf] }
  0x18   : > { %v583_v14 = vld [vmem:[%s740_s4 + $0x3] ss:$0 sm:$0xff]  ;;  %v404_v15 = vadd.f32 %v580_v4, %v340_v6  ;;  %v405_v16 = vadd.f32 %v581_v8, %v341_v7  ;;  %v343_v17 = vmul.f32 %v575_v13, %v279_v12  ;;  %v576_v19 = vld [vmem:[%s727_s25 + $0x4] ss:$0 sm:$0xff]  ;;  %v406_v21 = vadd.f32 %v582_v10, %v342_v11  ;;  %v281_v23 = vld [vmem:[%s734_s28 + $0x14] sm:$0xf] }
  0x19   : > { %v584_v20 = vld [vmem:[%s740_s4 + $0x4] ss:$0 sm:$0xff]  ;;  %v344_v22 = vmul.f32 %v576_v19, %v280_v18  ;;  %v577_v24 = vld [vmem:[%s727_s25 + $0x5] ss:$0 sm:$0xff]  ;;  %v282_v30 = vld [vmem:[%s734_s28 + $0x18] sm:$0xf] }
  0x1a   : > { %v585_v25 = vld [vmem:[%s740_s4 + $0x5] ss:$0 sm:$0xff]  ;;  %v412_v26 = vmax.f32 %v404_v15, 0.0  ;;  %v413_v27 = vmax.f32 %v405_v16, 0.0  ;;  %v407_v28 = vadd.f32 %v583_v14, %v343_v17  ;;  %v345_v29 = vmul.f32 %v577_v24, %v281_v23  ;;  %v578_v31 = vld [vmem:[%s727_s25 + $0x6] ss:$0 sm:$0xff] }
  0x1b   : > { %v414_v32 = vmax.f32 %v406_v21, 0.0  ;;  %v408_v33 = vadd.f32 %v584_v20, %v344_v22  ;;  %v346_v34 = vmul.f32 %v578_v31, %v282_v30  ;;  %v586_v35 = vld [vmem:[%s740_s4 + $0x6] ss:$0 sm:$0xff]  ;;  %v283_v36 = vld [vmem:[%s734_s28 + $0x1c] sm:$0xf] }
  0x1c   : > { %v420_v37 = vmin.f32 %v412_v26, 20.0  ;;  %v421_v38 = vmin.f32 %v413_v27, 20.0  ;;  %v415_v39 = vmax.f32 %v407_v28, 0.0  ;;  %v409_v40 = vadd.f32 %v585_v25, %v345_v29  ;;  %v579_v41 = vld [vmem:[%s727_s25 + $0x7] ss:$0 sm:$0xff] }
  0x1d   : > { %v422_v42 = vmin.f32 %v414_v32, 20.0  ;;  %v416_v43 = vmax.f32 %v408_v33, 0.0  ;;  %v410_v44 = vadd.f32 %v586_v35, %v346_v34  ;;  %v347_v45 = vmul.f32 %v579_v41, %v283_v36  ;;  %v587_v46 = vld [vmem:[%s740_s4 + $0x7] ss:$0 sm:$0xff] }
  0x1e   : > { %429 = vst.msk [vmem:[%s767_s7] sm:$0xf] %vm428_vm0, %v420_v37  ;;  %430 = vst.msk [vmem:[%s767_s7 + $0x4] sm:$0xf] %vm428_vm0, %v421_v38  ;;  %v423_v47 = vmin.f32 %v415_v39, 20.0  ;;  %v417_v48 = vmax.f32 %v409_v40, 0.0 }
  0x1f   : > { %431 = vst.msk [vmem:[%s767_s7 + $0x8] sm:$0xf] %vm428_vm0, %v422_v42  ;;  %v424_v49 = vmin.f32 %v416_v43, 20.0  ;;  %v418_v50 = vmax.f32 %v410_v44, 0.0  ;;  %v411_v51 = vadd.f32 %v587_v46, %v347_v45 }
  0x20   : > { %432 = vst.msk [vmem:[%s767_s7 + $0xc] sm:$0xf] %vm428_vm0, %v423_v47  ;;  %v425_v52 = vmin.f32 %v417_v48, 20.0 }
  0x21   : > { %433 = vst.msk [vmem:[%s767_s7 + $0x10] sm:$0xf] %vm428_vm0, %v424_v49  ;;  %v426_v53 = vmin.f32 %v418_v50, 20.0  ;;  %v419_v54 = vmax.f32 %v411_v51, 0.0 }
  0x22   : > { %434 = vst.msk [vmem:[%s767_s7 + $0x14] sm:$0xf] %vm428_vm0, %v425_v52 }
  0x23   : > { %435 = vst.msk [vmem:[%s767_s7 + $0x18] sm:$0xf] %vm428_vm0, %v426_v53  ;;  %v427_v55 = vmin.f32 %v419_v54, 20.0 }
  0x25   : > { %436 = vst.msk [vmem:[%s767_s7 + $0x1c] sm:$0xf] %vm428_vm0, %v427_v55 }
  0x26 PF: > { %s13_s16 = sadd.s32 1, %s668_s16   ;;  %s808_s12 = smov %s660_s14 }
  0x27   : > { %p10_p7 = scmp.ge.s32.totalorder %s13_s16, 10   ;;  %s809_s13 = smov %s664_s15 }
  0x28   : > { %s810_s14 = smov %s813_s17  ;;  %s811_s15 = smov %s817_s18 }
  0x29   :  { %12 = sbr.rel (!%p10_p7) target bundleno = 3 (0x3), region = 68 }

// kernel: deepspeech2_forward.15
= control target key start
LH: loop header
LB: loop body
LE: loop exit
PB: predicated region body
PF: predicated region fallthrough
CT: control target
= control target key end

     0   :  { %v377_v0 = vmov 0.0   ;;  %vm378_vm0 = vmmov 0   ;;  %vm159_vm1 = vcmask 785408   ;;  %s493_s3 = inlined_call_operand.vmem [shape: bf16[128,96], index: 3, kind: input, shape index: {}]   ;;  %s494_s5 = inlined_call_operand.vmem [shape: bf16[128,96], index: 5, kind: input, shape index: {}]   ;;  %s495_s0 = inlined_call_operand.vmem [shape: f32[8,128], index: 0, kind: input, shape index: {}]   ;;  %s496_s1 = inlined_call_operand.vmem [shape: f32[1,128], index: 1, kind: input, shape index: {}]   ;;  %s497_s2 = inlined_call_operand.vmem [shape: f32[1,128], index: 2, kind: input, shape index: {}]   ;;  %s498_s4 = inlined_call_operand.vmem [shape: f32[1,96], index: 4, kind: input, shape index: {}]   ;;  %s499_s6 = inlined_call_operand.vmem [shape: f32[1,96], index: 6, kind: input, shape index: {}]   ;;  %s500_s7 = inlined_call_operand.vmem [shape: f32[8,96], index: 7, kind: output, shape index: {0}]   ;;  %s501_s8 = inlined_call_operand.vmem [shape: f32[8,96], index: 8, kind: output, shape index: {1}]  }
   0x1   :  { %319 = vmatprep.subr.bf16.mxu0 %v377_v0  ;;  %339 = vmatprep.subr.bf16.mxu1 %v377_v0  ;;  %v361_v1 = vld [vmem:[%s493_s3] sm:$0xff]   ;;  %v363_v3 = vld [vmem:[%s493_s3 + $0x8] sm:$0xff]   ;;  %v365_v5 = vld [vmem:[%s493_s3 + $0x10] sm:$0xff]  }
   0x2   :  { %v362_v2 = vld [vmem:[%s494_s5] sm:$0xff]   ;;  %335 = vmatprep.mubr.msk.bf16.mxu0 %vm378_vm0, %v377_v0  ;;  %355 = vmatprep.mubr.msk.bf16.mxu1 %vm378_vm0, %v377_v0  ;;  %v364_v4 = vld [vmem:[%s494_s5 + $0x8] sm:$0xff]   ;;  %v366_v6 = vld [vmem:[%s494_s5 + $0x10] sm:$0xff]  }
   0x3   :  { %320 = vmatpush3.bf16.msra.mxu0 %v361_v1  ;;  %340 = vmatpush3.bf16.msra.mxu1 %v362_v2  ;;  %v367_v7 = vld [vmem:[%s493_s3 + $0x18] sm:$0xff]   ;;  %v369_v9 = vld [vmem:[%s493_s3 + $0x20] sm:$0xff]   ;;  %v371_v14 = vld [vmem:[%s493_s3 + $0x28] sm:$0xff]  }
   0x4   :  { %321 = vmatprep.subr.bf16.mxu0 %v377_v0  ;;  %341 = vmatprep.subr.bf16.mxu1 %v377_v0  ;;  %v368_v8 = vld [vmem:[%s494_s5 + $0x18] sm:$0xff]   ;;  %v370_v10 = vld [vmem:[%s494_s5 + $0x20] sm:$0xff]   ;;  %v372_v16 = vld [vmem:[%s494_s5 + $0x28] sm:$0xff]  }
   0x5   :  { %v29_v11 = vld [vmem:[%s495_s0] sm:$0xff]  ;;  %v373_v18 = vld [vmem:[%s493_s3 + $0x30] sm:$0xff]   ;;  %v375_v21 = vld [vmem:[%s493_s3 + $0x38] sm:$0xff]  }
   0x6   :  { %v281_v12 = vld [vmem:[%s496_s1] ss:$0 sm:$0xff]  ;;  %v374_v19 = vld [vmem:[%s494_s5 + $0x30] sm:$0xff]   ;;  %v376_v22 = vld [vmem:[%s494_s5 + $0x38] sm:$0xff]  }
   0x7   :  { %322 = vmatpush3.bf16.msra.mxu0 %v363_v3  ;;  %342 = vmatpush3.bf16.msra.mxu1 %v364_v4  ;;  %v37_v13 = vmul.f32 %v281_v12, %v29_v11  ;;  %v282_v15 = vld [vmem:[%s497_s2] ss:$0 sm:$0xff] }
   0x8   :  { %323 = vmatprep.subr.bf16.mxu0 %v377_v0  ;;  %343 = vmatprep.subr.bf16.mxu1 %v377_v0  ;;  %v283_v24 = vld [vmem:[%s498_s4] ss:$0 sm:$0xff] }
   0x9   :  { %v45_v17 = vadd.f32 %v282_v15, %v37_v13  ;;  %v292_v25 = vld [vmem:[%s499_s6] ss:$0 sm:$0xff] }
   0xb   :  { %324 = vmatpush3.bf16.msra.mxu0 %v365_v5  ;;  %344 = vmatpush3.bf16.msra.mxu1 %v366_v6  ;;  %v46_v20 = vmax.f32 %v45_v17, 0.0 }
   0xc   :  { %325 = vmatprep.subr.bf16.mxu0 %v377_v0  ;;  %345 = vmatprep.subr.bf16.mxu1 %v377_v0 }
   0xd   :  { %v47_v23 = vpack.c.bf16 %v46_v20, %v46_v20 }
   0xf   :  { %326 = vmatpush3.bf16.msra.mxu0 %v367_v7  ;;  %346 = vmatpush3.bf16.msra.mxu1 %v368_v8 }
  0x10   :  { %327 = vmatprep.subr.bf16.mxu0 %v377_v0  ;;  %347 = vmatprep.subr.bf16.mxu1 %v377_v0 }
  0x13   :  { %328 = vmatpush3.bf16.msra.mxu0 %v369_v9  ;;  %348 = vmatpush3.bf16.msra.mxu1 %v370_v10 }
  0x14   :  { %329 = vmatprep.subr.bf16.mxu0 %v377_v0  ;;  %349 = vmatprep.subr.bf16.mxu1 %v377_v0 }
  0x17   :  { %330 = vmatpush3.bf16.msra.mxu0 %v371_v14  ;;  %350 = vmatpush3.bf16.msra.mxu1 %v372_v16 }
  0x18   :  { %331 = vmatprep.subr.bf16.mxu0 %v377_v0  ;;  %351 = vmatprep.subr.bf16.mxu1 %v377_v0 }
  0x1b   :  { %332 = vmatpush3.bf16.msra.mxu0 %v373_v18  ;;  %352 = vmatpush3.bf16.msra.mxu1 %v374_v19 }
  0x1c   :  { %333 = vmatprep.subr.bf16.mxu0 %v377_v0  ;;  %353 = vmatprep.subr.bf16.mxu1 %v377_v0 }
  0x1f   :  { %334 = vmatpush3.bf16.msra.mxu0 %v375_v21  ;;  %354 = vmatpush3.bf16.msra.mxu1 %v376_v22 }
  0x22   :  { %336 = vmatmul.mubr.bf16.vlgmr.msra.gmra.mrb[0].mxu0 %v47_v23  ;;  %356 = vmatmul.mubr.bf16.vlgmr.msra.gmra.mrb[0].mxu1 %v47_v23 }
  0xf5   :  { %v153_v26 = vpop.f32.mrb[0].mxu0  ;;  %v266_v28 = vpop.f32.mrb[0].mxu1 }
  0xf6   :  { %v154_v27 = vadd.f32 %v283_v24, %v153_v26  ;;  %v337_v29 = vpop.f32.mrb[1].mxu0  ;;  %v267_v30 = vadd.f32 %v292_v25, %v266_v28  ;;  %v357_v31 = vpop.f32.mrb[1].mxu1 }
  0xf7   :  { %v156_v32 = vpop.f32.mrb[2].mxu0  ;;  %v269_v33 = vpop.f32.mrb[2].mxu1 }
  0xf8   :  { %160 = vst.msk [vmem:[%s500_s7] sm:$0xff] %vm159_vm1, %v154_v27  ;;  %v338_v34 = vpop.f32.mrb[3].mxu0  ;;  %272 = vst.msk [vmem:[%s501_s8] sm:$0xff] %vm159_vm1, %v267_v30  ;;  %v358_v35 = vpop.f32.mrb[3].mxu1 }

// kernel: deepspeech2_forward.16
= control target key start
LH: loop header
LB: loop body
LE: loop exit
PB: predicated region body
PF: predicated region fallthrough
CT: control target
= control target key end

     0   :  { %14 = vsyncpa [#allocation5], 0  ;;  %s1653_s0 = inlined_call_operand.vmem [shape: f32[4,2,96], index: 0, kind: input, shape index: {}]   ;;  %s1654_s1 = inlined_call_operand.vmem [shape: f32[4,2,96], index: 1, kind: input, shape index: {}]   ;;  %s1655_s2 = inlined_call_operand.vmem [shape: s32[2,1], index: 2, kind: input, shape index: {}]   ;;  %s1656_s3 = inlined_call_operand.vmem [shape: bf16[32,96], index: 3, kind: input, shape index: {}]   ;;  %s1657_s4 = inlined_call_operand.hbm [shape: f32[1,96], index: 4, kind: input, shape index: {}]   ;;  %s1658_s5 = inlined_call_operand.vmem [shape: bf16[32,96], index: 5, kind: input, shape index: {}]   ;;  %s1659_s6 = inlined_call_operand.hbm [shape: f32[1,96], index: 6, kind: input, shape index: {}]   ;;  %s1660_s7 = inlined_call_operand.vmem [shape: f32[4,2,32], index: 7, kind: output, shape index: {0}]   ;;  %s1661_s8 = inlined_call_operand.vmem [shape: f32[4,2,32], index: 8, kind: output, shape index: {1}]  }
   0x1   :  { %15 = vsyncpa [#allocation7], 0  ;;  %s1269_s27 = smov [#allocation4]   ;;  %s1270_s29 = smov [#allocation6]  }
   0x2   :  { %s38_s28 = sshll.u32 %s1269_s27, 4  ;;  %s50_s30 = sshll.u32 %s1270_s29, 4  ;;  %s39_s28 = int_to_ptr.vmem [resolvable:$true] %s38_s28  ;;  %s51_s30 = int_to_ptr.vmem [resolvable:$true] %s50_s30 }
   0x3   :  { %s1221_s11 = scalar_lea.hbm %s1657_s4, 16 }
   0x4   :  { %p1222_p0 = scmp.ne.s32.totalorder %s1657_s4, %s1221_s11  ;;  %p1225_p1 = scmp.lt.u32.totalorder %s1221_s11, %s1657_s4 }
   0x6   :  { %p1227_p2 = pnand %p1225_p1, %p1222_p0 }
   0x8   :  { %1230 = shalt.err (!%p1227_p2)
}
   0x9   :  { %s1231_s16 = scalar_lea.vmem %s39_s28, 16  ;;  %s1235_s17 = scalar_lea.vmem %s39_s28, 32 }
   0xa   :  { %p1232_p3 = scmp.ne.s32.totalorder %s39_s28, %s1231_s16  ;;  %p1236_p4 = scmp.lt.s32.totalorder %s39_s28, %s39_s28 }
   0xb   :  { %p1237_p5 = scmp.lt.s32.totalorder %s1235_s17, %s1231_s16 }
   0xd   :  { %p1238_p6 = por %p1237_p5, %p1236_p4 }
   0xf   :  { %p1239_p7 = pnand %p1238_p6, %p1232_p3 }
  0x11   :  { %1242 = shalt.err (!%p1239_p7)
}
  0x12   :  { %41 = dma.hbm_to_vmem [thread:$0]  %s1657_s4, 16, %s39_s28, [#allocation5]  }
  0x13   :  { %s1243_s22 = scalar_lea.hbm %s1659_s6, 16 }
  0x14   :  { %p1244_p8 = scmp.ne.s32.totalorder %s1659_s6, %s1243_s22  ;;  %p1247_p9 = scmp.lt.u32.totalorder %s1243_s22, %s1659_s6 }
  0x16   :  { %p1249_p10 = pnand %p1247_p9, %p1244_p8 }
  0x18   :  { %1252 = shalt.err (!%p1249_p10)
}
  0x19   :  { %s1253_s27 = scalar_lea.vmem %s51_s30, 16  ;;  %s1257_s29 = scalar_lea.vmem %s51_s30, 32 }
  0x1a   :  { %p1254_p11 = scmp.ne.s32.totalorder %s51_s30, %s1253_s27  ;;  %p1258_p12 = scmp.lt.s32.totalorder %s51_s30, %s51_s30 }
  0x1b   :  { %p1259_p13 = scmp.lt.s32.totalorder %s1257_s29, %s1253_s27 }
  0x1d   :  { %p1260_p0 = por %p1259_p13, %p1258_p12 }
  0x1f   :  { %p1261_p1 = pnand %p1260_p0, %p1254_p11 }
  0x21   :  { %1264 = shalt.err (!%p1261_p1)
}
  0x22   :  { %53 = dma.hbm_to_vmem [thread:$0]  %s1659_s6, 16, %s51_s30, [#allocation7]  }
  0x23   :  { %1265 = dma.done.wait [#allocation5], 16  }
  0x24   :  { %1266 = vsyncadd [#allocation5], 4294967280 }
  0x25   :  { %1267 = dma.done.wait [#allocation7], 16  }
  0x26   :  { %1268 = vsyncadd [#allocation7], 4294967280  ;;  %vm93_vm0 = vcmask 254976   ;;  %v1271_v0 = vmov 0.0   ;;  %vm1272_vm1 = vmmov 0   ;;  %v1359_v1 = vld [vmem:[%s1656_s3] sm:$0xff]  }
  0x27   :  { %1075 = vmatprep.subr.bf16.mxu0 %v1271_v0  ;;  %1083 = vmatprep.subr.bf16.mxu1 %v1271_v0  ;;  %94 = vst.msk [vmem:[#allocation2] sm:$0x3] %vm93_vm0, %v1271_v0  ;;  %95 = vst.msk [vmem:[#allocation3] sm:$0x3] %vm93_vm0, %v1271_v0  ;;  %v1364_v2 = vld [vmem:[%s1658_s5] sm:$0xff]   ;;  %v1370_v3 = vld [vmem:[%s1656_s3 + $0x8] sm:$0xff]  }
  0x28   :  { %1079 = vmatprep.mubr.msk.bf16.mxu0 %vm1272_vm1, %v1271_v0  ;;  %1087 = vmatprep.mubr.msk.bf16.mxu1 %vm1272_vm1, %v1271_v0  ;;  %v1377_v4 = vld [vmem:[%s1658_s5 + $0x8] sm:$0xff]   ;;  %vm139_vm2 = vcmask 261120   ;;  %v1273_v9 = vmov 0   ;;  %v1406_v10 = vld [vmem:[#allocation4] ss:$0 sm:$0xff]  ;;  %s1274_s15 = smov 64  }
  0x29   :  { %1076 = vmatpush3.bf16.msra.mxu0 %v1359_v1  ;;  %1084 = vmatpush3.bf16.msra.mxu1 %v1364_v2  ;;  %v1411_v11 = vld [vmem:[%s1655_s2] sm:$0x3]  ;;  %v1413_v13 = vld [vmem:[#allocation6] ss:$0 sm:$0xff]  ;;  %s1275_s19 = smov 32   ;;  %s1276_s20 = smov 96  }
  0x2a   :  { %1077 = vmatprep.subr.bf16.mxu0 %v1271_v0  ;;  %1085 = vmatprep.subr.bf16.mxu1 %v1271_v0  ;;  %vm1001_vm3 = vcmp.gt.s32.totalorder %v1411_v11, 0  ;;  %v119_v25 = vld [vmem:[%s1653_s0] sm:$0x3]  ;;  %v1010_v27 = vld [vmem:[%s1654_s1 + $0x6] sm:$0x3]  ;;  %vm1003_vm4 = vcmp.gt.s32.totalorder %v1411_v11, 3 }
  0x2b   :  { %1147 = vset.pattern.permute.xlu0 %v1273_v9  ;;  %1148 = vset.pattern.permute.xlu1 %v1273_v9  ;;  %v1420_v23 = vsel %vm1001_vm3, 1.0, %v1271_v0  ;;  %v1435_v40 = vsel %vm1003_vm4, 1.0, %v1271_v0  ;;  %vm1017_vm5 = vcmp.gt.s32.totalorder %v1411_v11, 1  ;;  %vm1019_vm6 = vcmp.gt.s32.totalorder %v1411_v11, 2 }
  0x2c   :  { %v313_v24 = vsub.f32 1.0, %v1420_v23  ;;  %v331_v42 = vsub.f32 1.0, %v1435_v40  ;;  %v1149_v43 = vpack.i.bf16 %v1435_v40, %v1420_v23 }
  0x2d   :  { %1078 = vmatpush3.bf16.msra.mxu0 %v1370_v3  ;;  %1086 = vmatpush3.bf16.msra.mxu1 %v1377_v4 }
  0x2e   :  { %v1380_v5 = vld [vmem:[#allocation2] sm:$0x3]  ;;  %v1382_v6 = vld [vmem:[#allocation3] sm:$0x3]  ;;  %1091 = vmatprep.subr.bf16.mxu0 %v1271_v0  ;;  %1099 = vmatprep.subr.bf16.mxu1 %v1271_v0 }
  0x2f   :  { %v120_v7 = vpack.c.bf16 %v1380_v5, %v1380_v5  ;;  %v215_v8 = vpack.c.bf16 %v1382_v6, %v1382_v6 }
  0x31   :  { %1080 = vmatmul.mubr.msk.bf16.vlgmr.msra.gmra.mrb[0].mxu0 %vm139_vm2, %v120_v7  ;;  %1088 = vmatmul.mubr.msk.bf16.vlgmr.msra.gmra.mrb[0].mxu1 %vm139_vm2, %v215_v8 }
  0x32   :  { %1092 = vmatpush3.bf16.msra.mxu0 %v1359_v1  ;;  %1100 = vmatpush3.bf16.msra.mxu1 %v1364_v2 }
  0x33   :  { %1093 = vmatprep.subr.bf16.mxu0 %v1271_v0  ;;  %1101 = vmatprep.subr.bf16.mxu1 %v1271_v0 }
  0x34   :  { %1095 = vmatprep.mubr.msk.bf16.mxu0 %vm1272_vm1, %v1271_v0  ;;  %1103 = vmatprep.mubr.msk.bf16.mxu1 %vm1272_vm1, %v1271_v0 }
  0x36   :  { %1094 = vmatpush3.bf16.msra.mxu0 %v1370_v3  ;;  %1102 = vmatpush3.bf16.msra.mxu1 %v1377_v4 }
  0x37   :  { %1107 = vmatprep.subr.bf16.mxu0 %v1271_v0  ;;  %1115 = vmatprep.subr.bf16.mxu1 %v1271_v0 }
 0x104   :  { %v177_v12 = vpop.f32.mrb[0].mxu0  ;;  %v271_v16 = vpop.f32.mrb[0].mxu1 }
 0x105   :  { %v178_v14 = vadd.f32 %v1406_v10, %v177_v12  ;;  %v1081_v15 = vpop.f32.mrb[1].mxu0  ;;  %v1089_v18 = vpop.f32.mrb[1].mxu1  ;;  %v272_v19 = vadd.f32 %v1413_v13, %v271_v16 }
 0x106   :  { %v180_v17 = vpop.f32.mrb[2].mxu0  ;;  %v274_v20 = vpop.f32.mrb[2].mxu1 }
 0x107   :  { %191 = vrot.lane.b32.xlu0 %v178_v14, %s1274_s15  ;;  %v1082_v21 = vpop.f32.mrb[3].mxu0  ;;  %v1090_v22 = vpop.f32.mrb[3].mxu1  ;;  %v183_v26 = vadd.f32 %v178_v14, %v119_v25  ;;  %v277_v29 = vadd.f32 %v1010_v27, %v272_v19 }
 0x109   :  { %v1009_v28 = vmul.f32 -1.442695, %v183_v26  ;;  %v1015_v30 = vmul.f32 -1.442695, %v277_v29 }
 0x10b   :  { %285 = vrot.lane.b32.xlu0 %v272_v19, %s1274_s15  ;;  %1173 = vpow2.f32 %v1009_v28 }
 0x10c   :  { %1175 = vpow2.f32 %v1015_v30 }
 0x10f   :  { %316 = vperm.xlu0 %1147, %v313_v24  }
 0x115   :  { %v1174_v31 = vpop.eup %1173 }
 0x116   :  { %v187_v32 = vadd.f32 1.0, %v1174_v31  ;;  %v1176_v33 = vpop.eup %1175 }
 0x117   :  { %v281_v34 = vadd.f32 1.0, %v1176_v33 }
 0x118   :  { %1177 = vrcp.f32 %v187_v32 }
 0x119   :  { %1179 = vrcp.f32 %v281_v34 }
 0x122   :  { %v1178_v35 = vpop.eup %1177 }
 0x123   :  { %v1180_v38 = vpop.eup %1179  ;;  %v201_v56 = vsub.f32 1.0, %v1178_v35 }
 0x124   :  { %v295_v62 = vsub.f32 1.0, %v1180_v38 }
 0x179   :  { %v192_v36 = vpop.permute.xlu0 %191 }
 0x17a   :  { %v194_v37 = vmul.f32 %v1178_v35, %v192_v36  ;;  %v1024_v36 = vld [vmem:[%s1654_s1 + $0x4] sm:$0x3] }
 0x17c   :  { %196 = vrot.lane.b32.xlu1 %v194_v37, %s1274_s15 }
 0x17d   :  { %v286_v39 = vpop.permute.xlu0 %285 }
 0x17e   :  { %v288_v41 = vmul.f32 %v1180_v38, %v286_v39 }
 0x180   :  { %290 = vrot.lane.b32.xlu1 %v288_v41, %s1274_s15 }
 0x184   :  { %334 = vperm.xlu1 %1148, %v331_v42  }
 0x188   :  { %1150 = vperm.xlu1 %1148, %v1149_v43  }
 0x18c   :  { %208 = vrot.lane.b32.xlu1 %v1380_v5, %s1275_s19 }
 0x18e   :  { %v317_v49 = vpop.permute.xlu0 %316 }
 0x18f   :  { %v319_v51 = vmul.f32 %v317_v49, %v1380_v5  ;;  %v1492_v49 = vsel %vm1017_vm5, 1.0, %v1271_v0 }
 0x190   :  { %302 = vrot.lane.b32.xlu1 %v1382_v6, %s1275_s19  ;;  %v521_v11 = vsub.f32 1.0, %v1492_v49 }
 0x1ee   :  { %v197_v44 = vpop.permute.xlu1 %196 }
 0x1ef   :  { %v199_v45 = vadd.f32 %v197_v44, %v119_v25 }
 0x1f1   :  { %1181 = vtanh.f32 %v199_v45 }
 0x1f2   :  { %v291_v46 = vpop.permute.xlu1 %290 }
 0x1f3   :  { %v293_v47 = vadd.f32 %v1010_v27, %v291_v46 }
 0x1f5   :  { %1183 = vtanh.f32 %v293_v47 }
 0x1fb   :  { %v1182_v48 = vpop.eup %1181 }
 0x1fc   :  { %203 = vrot.lane.b32.xlu0 %v1182_v48, %s1276_s20 }
 0x1ff   :  { %v1184_v50 = vpop.eup %1183 }
 0x200   :  { %297 = vrot.lane.b32.xlu0 %v1184_v50, %s1276_s20  ;;  %v1495_v50 = vsel %vm1019_vm6, 1.0, %v1271_v0 }
 0x203   :  { %v335_v52 = vpop.permute.xlu1 %334 }
 0x204   :  { %v337_v53 = vmul.f32 %v335_v52, %v1382_v6  ;;  %321 = vrot.lane.b32.xlu0 %v319_v51, %s1275_s19 }
 0x206   :  { %339 = vrot.lane.b32.xlu1 %v337_v53, %s1275_s19 }
 0x207   :  { %v1151_v54 = vpop.permute.xlu1 %1150 }
 0x208   :  { %v1152_v7 = vunpack.i.l.bf16 %v1151_v54  ;;  %v1153_v12 = vunpack.i.h.bf16 %v1151_v54 }
 0x20b   :  { %v209_v55 = vpop.permute.xlu1 %208 }
 0x20c   :  { %v211_v58 = vmul.f32 %v1178_v35, %v209_v55  ;;  %v1021_v35 = vld [vmem:[%s1653_s0 + $0x2] sm:$0x3]  ;;  %v1154_v55 = vpack.i.bf16 %v1495_v50, %v1492_v49 }
 0x20f   :  { %v303_v60 = vpop.permute.xlu1 %302 }
 0x210   :  { %v305_v8 = vmul.f32 %v1180_v38, %v303_v60 }
 0x26e   :  { %v204_v57 = vpop.permute.xlu0 %203 }
 0x26f   :  { %v206_v59 = vmul.f32 %v204_v57, %v201_v56  ;;  %v535_v56 = vsub.f32 1.0, %v1495_v50 }
 0x271   :  { %v212_v61 = vadd.f32 %v211_v58, %v206_v59 }
 0x272   :  { %v298_v63 = vpop.permute.xlu0 %297 }
 0x273   :  { %v300_v9 = vmul.f32 %v298_v63, %v295_v62  ;;  %v1449_v14 = vmul.f32 %v1152_v7, %v212_v61 }
 0x275   :  { %v306_v5 = vadd.f32 %v305_v8, %v300_v9 }
 0x276   :  { %v322_v6 = vpop.permute.xlu0 %321 }
 0x277   :  { %v1452_v15 = vadd.f32 %v322_v6, %v1449_v14  ;;  %v1454_v16 = vmul.f32 %v1153_v12, %v306_v5 }
 0x278   :  { %v340_v17 = vpop.permute.xlu1 %339 }
 0x279   :  { %v1457_v18 = vadd.f32 %v340_v17, %v1454_v16  ;;  %v367_v19 = vpack.c.bf16 %v1452_v15, %v1452_v15 }
 0x27b   :  { %369 = vrot.lane.b32.xlu0 %v367_v19, %s1276_s20  ;;  %v442_v20 = vpack.c.bf16 %v1457_v18, %v1457_v18 }
 0x27d   :  { %444 = vrot.lane.b32.xlu1 %v442_v20, %s1276_s20 }
 0x2ed   :  { %v370_v21 = vpop.permute.xlu0 %369 }
 0x2ee   :  { %1096 = vmatmul.mubr.msk.bf16.vlgmr.msra.gmra.mrb[4].mxu0 %vm139_vm2, %v370_v21 }
 0x2ef   :  { %v445_v22 = vpop.permute.xlu1 %444  ;;  %1108 = vmatpush3.bf16.msra.mxu0 %v1359_v1  ;;  %1111 = vmatprep.mubr.msk.bf16.mxu0 %vm1272_vm1, %v1271_v0 }
 0x2f0   :  { %1104 = vmatmul.mubr.msk.bf16.vlgmr.msra.gmra.mrb[4].mxu1 %vm139_vm2, %v445_v22  ;;  %1109 = vmatprep.subr.bf16.mxu0 %v1271_v0 }
 0x2f1   :  { %1116 = vmatpush3.bf16.msra.mxu1 %v1364_v2  ;;  %1119 = vmatprep.mubr.msk.bf16.mxu1 %vm1272_vm1, %v1271_v0 }
 0x2f2   :  { %1117 = vmatprep.subr.bf16.mxu1 %v1271_v0 }
 0x2f3   :  { %1110 = vmatpush3.bf16.msra.mxu0 %v1370_v3 }
 0x2f4   :  { %1123 = vmatprep.subr.bf16.mxu0 %v1271_v0 }
 0x2f5   :  { %1118 = vmatpush3.bf16.msra.mxu1 %v1377_v4 }
 0x2f6   :  { %1131 = vmatprep.subr.bf16.mxu1 %v1271_v0 }
 0x3c1   :  { %v408_v25 = vpop.f32.mrb[4].mxu0 }
 0x3c2   :  { %v409_v26 = vadd.f32 %v1406_v10, %v408_v25  ;;  %v1097_v27 = vpop.f32.mrb[5].mxu0 }
 0x3c3   :  { %v411_v28 = vpop.f32.mrb[6].mxu0  ;;  %v483_v29 = vpop.f32.mrb[4].mxu1 }
 0x3c4   :  { %v484_v30 = vadd.f32 %v1413_v13, %v483_v29  ;;  %v1105_v31 = vpop.f32.mrb[5].mxu1  ;;  %422 = vrot.lane.b32.xlu0 %v409_v26, %s1274_s15  ;;  %v1098_v32 = vpop.f32.mrb[7].mxu0  ;;  %v414_v37 = vadd.f32 %v1021_v35, %v409_v26 }
 0x3c5   :  { %v486_v33 = vpop.f32.mrb[6].mxu1 }
 0x3c6   :  { %497 = vrot.lane.b32.xlu1 %v484_v30, %s1274_s15  ;;  %v1106_v34 = vpop.f32.mrb[7].mxu1  ;;  %v489_v38 = vadd.f32 %v1024_v36, %v484_v30  ;;  %v1023_v39 = vmul.f32 -1.442695, %v414_v37 }
 0x3c8   :  { %v1026_v41 = vmul.f32 -1.442695, %v489_v38  ;;  %1185 = vpow2.f32 %v1023_v39 }
 0x3ca   :  { %1187 = vpow2.f32 %v1026_v41 }
 0x3d2   :  { %v1186_v43 = vpop.eup %1185 }
 0x3d3   :  { %v418_v45 = vadd.f32 1.0, %v1186_v43 }
 0x3d4   :  { %v1188_v44 = vpop.eup %1187 }
 0x3d5   :  { %v493_v46 = vadd.f32 1.0, %v1188_v44  ;;  %1189 = vrcp.f32 %v418_v45 }
 0x3d7   :  { %1191 = vrcp.f32 %v493_v46 }
 0x3df   :  { %v1190_v47 = vpop.eup %1189 }
 0x3e0   :  { %v432_v9 = vsub.f32 1.0, %v1190_v47  ;;  %v438_v5 = vmul.f32 %v1190_v47, %v1452_v15 }
 0x3e1   :  { %v1192_v52 = vpop.eup %1191 }
 0x3e2   :  { %v507_v17 = vsub.f32 1.0, %v1192_v52  ;;  %v513_v22 = vmul.f32 %v1192_v52, %v1457_v18 }
 0x436   :  { %v423_v48 = vpop.permute.xlu0 %422 }
 0x437   :  { %v425_v51 = vmul.f32 %v1190_v47, %v423_v48 }
 0x438   :  { %v498_v53 = vpop.permute.xlu1 %497 }
 0x439   :  { %v500_v54 = vmul.f32 %v1192_v52, %v498_v53  ;;  %427 = vrot.lane.b32.xlu0 %v425_v51, %s1274_s15 }
 0x43b   :  { %502 = vrot.lane.b32.xlu1 %v500_v54, %s1274_s15 }
 0x43d   :  { %1155 = vperm.xlu0 %1147, %v1154_v55  }
 0x43f   :  { %524 = vperm.xlu1 %1148, %v521_v11  }
 0x441   :  { %538 = vperm.xlu0 %1147, %v535_v56  }
 0x4ab   :  { %v428_v57 = vpop.permute.xlu0 %427 }
 0x4ac   :  { %v430_v58 = vadd.f32 %v1021_v35, %v428_v57 }
 0x4ad   :  { %v503_v59 = vpop.permute.xlu1 %502 }
 0x4ae   :  { %1193 = vtanh.f32 %v430_v58  ;;  %v505_v60 = vadd.f32 %v1024_v36, %v503_v59 }
 0x4b0   :  { %1195 = vtanh.f32 %v505_v60 }
 0x4b8   :  { %v1194_v61 = vpop.eup %1193 }
 0x4b9   :  { %434 = vrot.lane.b32.xlu1 %v1194_v61, %s1276_s20 }
 0x4ba   :  { %v1196_v62 = vpop.eup %1195 }
 0x4bb   :  { %509 = vrot.lane.b32.xlu0 %v1196_v62, %s1276_s20  ;;  %v1159_v62 = vpack.i.bf16 %v1492_v49, %v1495_v50 }
 0x4bc   :  { %v1156_v63 = vpop.permute.xlu0 %1155 }
 0x4bd   :  { %v1157_v20 = vunpack.i.l.bf16 %v1156_v63  ;;  %v1158_v26 = vunpack.i.h.bf16 %v1156_v63 }
 0x4be   :  { %v525_v7 = vpop.permute.xlu1 %524 }
 0x4bf   :  { %v527_v27 = vmul.f32 %v525_v7, %v1452_v15 }
 0x4c0   :  { %v539_v8 = vpop.permute.xlu0 %538 }
 0x4c1   :  { %v541_v30 = vmul.f32 %v539_v8, %v1457_v18 }
 0x52b   :  { %v435_v12 = vpop.permute.xlu1 %434 }
 0x52c   :  { %v437_v6 = vmul.f32 %v435_v12, %v432_v9 }
 0x52d   :  { %v510_v19 = vpop.permute.xlu0 %509 }
 0x52e   :  { %v439_v21 = vadd.f32 %v438_v5, %v437_v6  ;;  %v512_v25 = vmul.f32 %v510_v19, %v507_v17 }
 0x530   :  { %v1512_v28 = vmul.f32 %v1157_v20, %v439_v21  ;;  %v514_v29 = vadd.f32 %v513_v22, %v512_v25 }
 0x532   :  { %v1516_v31 = vadd.f32 %v527_v27, %v1512_v28  ;;  %v1518_v32 = vmul.f32 %v1158_v26, %v514_v29 }
 0x534   :  { %v1521_v33 = vadd.f32 %v541_v30, %v1518_v32  ;;  %v567_v34 = vpack.c.bf16 %v1516_v31, %v1516_v31 }
 0x536   :  { %569 = vrot.lane.b32.xlu1 %v567_v34, %s1276_s20  ;;  %v642_v15 = vpack.c.bf16 %v1521_v33, %v1521_v33 }
 0x538   :  { %644 = vrot.lane.b32.xlu0 %v642_v15, %s1276_s20 }
 0x5a8   :  { %v570_v35 = vpop.permute.xlu1 %569 }
 0x5a9   :  { %1112 = vmatmul.mubr.msk.bf16.vlgmr.msra.gmra.mrb[8].mxu0 %vm139_vm2, %v570_v35 }
 0x5aa   :  { %v645_v18 = vpop.permute.xlu0 %644  ;;  %1124 = vmatpush3.bf16.msra.mxu0 %v1359_v1  ;;  %1127 = vmatprep.mubr.msk.bf16.mxu0 %vm1272_vm1, %v1271_v0 }
 0x5ab   :  { %1120 = vmatmul.mubr.msk.bf16.vlgmr.msra.gmra.mrb[8].mxu1 %vm139_vm2, %v645_v18  ;;  %1125 = vmatprep.subr.bf16.mxu0 %v1271_v0 }
 0x5ac   :  { %1132 = vmatpush3.bf16.msra.mxu1 %v1364_v2  ;;  %1135 = vmatprep.mubr.msk.bf16.mxu1 %vm1272_vm1, %v1271_v0 }
 0x5ad   :  { %1133 = vmatprep.subr.bf16.mxu1 %v1271_v0 }
 0x5ae   :  { %1126 = vmatpush3.bf16.msra.mxu0 %v1370_v3  ;;  %v1033_v3 = vld [vmem:[%s1653_s0 + $0x4] sm:$0x3] }
 0x5b0   :  { %1134 = vmatpush3.bf16.msra.mxu1 %v1377_v4  ;;  %v1036_v4 = vld [vmem:[%s1654_s1 + $0x2] sm:$0x3] }
 0x67c   :  { %v608_v36 = vpop.f32.mrb[8].mxu0 }
 0x67d   :  { %v609_v1 = vadd.f32 %v1406_v10, %v608_v36  ;;  %v1113_v37 = vpop.f32.mrb[9].mxu0 }
 0x67e   :  { %v611_v38 = vpop.f32.mrb[10].mxu0  ;;  %v683_v39 = vpop.f32.mrb[8].mxu1 }
 0x67f   :  { %v684_v41 = vadd.f32 %v1413_v13, %v683_v39  ;;  %v1121_v43 = vpop.f32.mrb[9].mxu1  ;;  %622 = vrot.lane.b32.xlu1 %v609_v1, %s1274_s15  ;;  %v1114_v2 = vpop.f32.mrb[11].mxu0  ;;  %v614_v45 = vadd.f32 %v1033_v3, %v609_v1 }
 0x680   :  { %v686_v44 = vpop.f32.mrb[10].mxu1 }
 0x681   :  { %697 = vrot.lane.b32.xlu0 %v684_v41, %s1274_s15  ;;  %v1122_v0 = vpop.f32.mrb[11].mxu1  ;;  %v689_v46 = vadd.f32 %v1036_v4, %v684_v41  ;;  %v1035_v47 = vmul.f32 -1.442695, %v614_v45 }
 0x683   :  { %v1038_v48 = vmul.f32 -1.442695, %v689_v46  ;;  %1197 = vpow2.f32 %v1035_v47  ;;  %v1045_v47 = vld [vmem:[%s1653_s0 + $0x6] sm:$0x3] }
 0x685   :  { %1199 = vpow2.f32 %v1038_v48 }
 0x68d   :  { %v1198_v51 = vpop.eup %1197 }
 0x68e   :  { %v618_v53 = vadd.f32 1.0, %v1198_v51 }
 0x68f   :  { %v1200_v52 = vpop.eup %1199 }
 0x690   :  { %v693_v54 = vadd.f32 1.0, %v1200_v52  ;;  %1201 = vrcp.f32 %v618_v53 }
 0x692   :  { %1203 = vrcp.f32 %v693_v54 }
 0x69a   :  { %v1202_v55 = vpop.eup %1201 }
 0x69b   :  { %v632_v50 = vsub.f32 1.0, %v1202_v55  ;;  %v638_v49 = vmul.f32 %v1202_v55, %v1516_v31 }
 0x69c   :  { %v1204_v59 = vpop.eup %1203 }
 0x69d   :  { %v707_v20 = vsub.f32 1.0, %v1204_v59  ;;  %v713_v26 = vmul.f32 %v1204_v59, %v1521_v33 }
 0x6f1   :  { %v623_v57 = vpop.permute.xlu1 %622 }
 0x6f2   :  { %v625_v58 = vmul.f32 %v1202_v55, %v623_v57 }
 0x6f3   :  { %v698_v60 = vpop.permute.xlu0 %697 }
 0x6f4   :  { %v700_v61 = vmul.f32 %v1204_v59, %v698_v60  ;;  %627 = vrot.lane.b32.xlu1 %v625_v58, %s1274_s15 }
 0x6f6   :  { %702 = vrot.lane.b32.xlu0 %v700_v61, %s1274_s15 }
 0x6f8   :  { %1160 = vperm.xlu1 %1148, %v1159_v62  }
 0x6fa   :  { %724 = vperm.xlu0 %1147, %v535_v56  }
 0x6fc   :  { %738 = vperm.xlu1 %1148, %v521_v11  }
 0x766   :  { %v628_v63 = vpop.permute.xlu1 %627 }
 0x767   :  { %v630_v7 = vadd.f32 %v1033_v3, %v628_v63 }
 0x768   :  { %v703_v8 = vpop.permute.xlu0 %702 }
 0x769   :  { %1205 = vtanh.f32 %v630_v7  ;;  %v705_v9 = vadd.f32 %v1036_v4, %v703_v8  ;;  %v1164_v7 = vpack.i.bf16 %v1420_v23, %v1435_v40 }
 0x76b   :  { %1207 = vtanh.f32 %v705_v9 }
 0x773   :  { %v1206_v12 = vpop.eup %1205 }
 0x774   :  { %634 = vrot.lane.b32.xlu0 %v1206_v12, %s1276_s20 }
 0x775   :  { %v1208_v5 = vpop.eup %1207 }
 0x776   :  { %709 = vrot.lane.b32.xlu1 %v1208_v5, %s1276_s20 }
 0x777   :  { %v1161_v6 = vpop.permute.xlu1 %1160 }
 0x778   :  { %v1162_v22 = vunpack.i.l.bf16 %v1161_v6  ;;  %v1163_v29 = vunpack.i.h.bf16 %v1161_v6 }
 0x779   :  { %v725_v17 = vpop.permute.xlu0 %724 }
 0x77a   :  { %v727_v30 = vmul.f32 %v725_v17, %v1516_v31 }
 0x77b   :  { %v739_v19 = vpop.permute.xlu1 %738 }
 0x77c   :  { %v741_v35 = vmul.f32 %v739_v19, %v1521_v33 }
 0x7e6   :  { %v635_v56 = vpop.permute.xlu0 %634 }
 0x7e7   :  { %v637_v11 = vmul.f32 %v635_v56, %v632_v50 }
 0x7e8   :  { %v710_v21 = vpop.permute.xlu1 %709 }
 0x7e9   :  { %v639_v25 = vadd.f32 %v638_v49, %v637_v11  ;;  %v712_v27 = vmul.f32 %v710_v21, %v707_v20 }
 0x7eb   :  { %v1564_v34 = vmul.f32 %v1162_v22, %v639_v25  ;;  %v714_v15 = vadd.f32 %v713_v26, %v712_v27 }
 0x7ed   :  { %v1568_v18 = vadd.f32 %v727_v30, %v1564_v34  ;;  %v734_v36 = vmul.f32 %v1163_v29, %v714_v15 }
 0x7ef   :  { %v1570_v1 = vadd.f32 %v741_v35, %v734_v36  ;;  %v767_v37 = vpack.c.bf16 %v1568_v18, %v1568_v18 }
 0x7f1   :  { %769 = vrot.lane.b32.xlu0 %v767_v37, %s1276_s20  ;;  %v841_v38 = vpack.c.bf16 %v1570_v1, %v1570_v1 }
 0x7f3   :  { %843 = vrot.lane.b32.xlu1 %v841_v38, %s1276_s20 }
 0x863   :  { %v770_v31 = vpop.permute.xlu0 %769 }
 0x864   :  { %1128 = vmatmul.mubr.msk.bf16.vlgmr.msra.gmra.mrb[12].mxu0 %vm139_vm2, %v770_v31 }
 0x865   :  { %v844_v33 = vpop.permute.xlu1 %843 }
 0x866   :  { %1136 = vmatmul.mubr.msk.bf16.vlgmr.msra.gmra.mrb[12].mxu1 %vm139_vm2, %v844_v33 }
 0x937   :  { %v808_v39 = vpop.f32.mrb[12].mxu0 }
 0x938   :  { %v809_v41 = vadd.f32 %v1406_v10, %v808_v39  ;;  %v1129_v43 = vpop.f32.mrb[13].mxu0  ;;  %v840_v10 = vld [vmem:[%s1654_s1] sm:$0x3] }
 0x939   :  { %v811_v2 = vpop.f32.mrb[14].mxu0  ;;  %v882_v44 = vpop.f32.mrb[12].mxu1 }
 0x93a   :  { %v883_v0 = vadd.f32 %v1413_v13, %v882_v44  ;;  %v1137_v3 = vpop.f32.mrb[13].mxu1  ;;  %822 = vrot.lane.b32.xlu0 %v809_v41, %s1274_s15  ;;  %v1130_v4 = vpop.f32.mrb[15].mxu0  ;;  %v814_v48 = vadd.f32 %v1045_v47, %v809_v41 }
 0x93b   :  { %v885_v45 = vpop.f32.mrb[14].mxu1 }
 0x93c   :  { %896 = vrot.lane.b32.xlu1 %v883_v0, %s1274_s15  ;;  %v1138_v46 = vpop.f32.mrb[15].mxu1  ;;  %v888_v51 = vadd.f32 %v883_v0, %v840_v10  ;;  %v1047_v52 = vmul.f32 -1.442695, %v814_v48 }
 0x93e   :  { %v1049_v13 = vmul.f32 -1.442695, %v888_v51  ;;  %1209 = vpow2.f32 %v1047_v52 }
 0x940   :  { %1211 = vpow2.f32 %v1049_v13 }
 0x948   :  { %v1210_v53 = vpop.eup %1209 }
 0x949   :  { %v818_v55 = vadd.f32 1.0, %v1210_v53 }
 0x94a   :  { %v1212_v54 = vpop.eup %1211 }
 0x94b   :  { %v892_v57 = vadd.f32 1.0, %v1212_v54  ;;  %1213 = vrcp.f32 %v818_v55 }
 0x94d   :  { %1215 = vrcp.f32 %v892_v57 }
 0x955   :  { %v1214_v58 = vpop.eup %1213 }
 0x957   :  { %v1216_v61 = vpop.eup %1215 }
 0x958   :  { %v912_v11 = vmul.f32 %v1216_v61, %v1570_v1 }
 0x9ac   :  { %v823_v59 = vpop.permute.xlu0 %822 }
 0x9ad   :  { %v825_v60 = vmul.f32 %v1214_v58, %v823_v59 }
 0x9ae   :  { %v897_v62 = vpop.permute.xlu1 %896 }
 0x9af   :  { %v899_v63 = vmul.f32 %v1216_v61, %v897_v62  ;;  %827 = vrot.lane.b32.xlu0 %v825_v60, %s1274_s15 }
 0x9b1   :  { %901 = vrot.lane.b32.xlu1 %v899_v63, %s1274_s15 }
 0x9b3   :  { %1165 = vperm.xlu0 %1147, %v1164_v7  }
 0x9b5   :  { %923 = vperm.xlu1 %1148, %v331_v42   ;;  %v832_v42 = vsub.f32 1.0, %v1214_v58 }
 0x9b7   :  { %937 = vperm.xlu0 %1147, %v313_v24  }
 0xa21   :  { %v828_v8 = vpop.permute.xlu0 %827 }
 0xa22   :  { %v830_v9 = vadd.f32 %v1045_v47, %v828_v8 }
 0xa23   :  { %v902_v12 = vpop.permute.xlu1 %901 }
 0xa24   :  { %1217 = vtanh.f32 %v830_v9  ;;  %v904_v5 = vadd.f32 %v902_v12, %v840_v10 }
 0xa26   :  { %1219 = vtanh.f32 %v904_v5 }
 0xa2e   :  { %v1218_v6 = vpop.eup %1217 }
 0xa2f   :  { %834 = vrot.lane.b32.xlu1 %v1218_v6, %s1276_s20 }
 0xa30   :  { %v1220_v17 = vpop.eup %1219 }
 0xa31   :  { %908 = vrot.lane.b32.xlu0 %v1220_v17, %s1276_s20 }
 0xa32   :  { %v1166_v23 = vpop.permute.xlu0 %1165 }
 0xa33   :  { %344 = vrot.lane.b32.xlu1 %v1449_v14, %s1276_s20  ;;  %v838_v14 = vmul.f32 %v1214_v58, %v1568_v18  ;;  %v1167_v49 = vunpack.i.l.bf16 %v1166_v23  ;;  %v1168_v21 = vunpack.i.h.bf16 %v1166_v23 }
 0xa34   :  { %v924_v24 = vpop.permute.xlu1 %923 }
 0xa35   :  { %350 = vrot.lane.b32.xlu0 %v1454_v16, %s1276_s20  ;;  %v906_v16 = vsub.f32 1.0, %v1216_v61  ;;  %v926_v27 = vmul.f32 %v924_v24, %v1568_v18 }
 0xa36   :  { %v938_v40 = vpop.permute.xlu0 %937 }
 0xa37   :  { %544 = vrot.lane.b32.xlu1 %v1512_v28, %s1276_s20 }
 0xa39   :  { %550 = vrot.lane.b32.xlu0 %v1518_v32, %s1276_s20 }
 0xa3b   :  { %744 = vrot.lane.b32.xlu1 %v1564_v34, %s1276_s20  ;;  %v940_v34 = vmul.f32 %v938_v40, %v1570_v1 }
 0xa3d   :  { %750 = vrot.lane.b32.xlu0 %v734_v36, %s1276_s20 }
 0xaa1   :  { %v835_v19 = vpop.permute.xlu1 %834 }
 0xaa2   :  { %v837_v50 = vmul.f32 %v835_v19, %v832_v42 }
 0xaa3   :  { %v909_v56 = vpop.permute.xlu0 %908 }
 0xaa4   :  { %v839_v28 = vadd.f32 %v838_v14, %v837_v50  ;;  %v911_v32 = vmul.f32 %v909_v56, %v906_v16 }
 0xaa5   :  { %v345_v20 = vpop.permute.xlu1 %344 }
 0xaa6   :  { %v913_v22 = vadd.f32 %v912_v11, %v911_v32  ;;  %348 = vst.msk [vmem:[%s1660_s7] sm:$0x3] %vm93_vm0, %v345_v20  ;;  %v919_v25 = vmul.f32 %v1167_v49, %v839_v28 }
 0xaa7   :  { %v351_v26 = vpop.permute.xlu0 %350 }
 0xaa8   :  { %1016 = vst.msk [vmem:[%s1661_s8 + $0x6] sm:$0x3] %vm93_vm0, %v351_v26  ;;  %943 = vrot.lane.b32.xlu1 %v919_v25, %s1276_s20  ;;  %v933_v29 = vmul.f32 %v1168_v21, %v913_v22  ;;  %v927_v15 = vadd.f32 %v926_v27, %v919_v25 }
 0xaa9   :  { %v545_v30 = vpop.permute.xlu1 %544 }
 0xaaa   :  { %1027 = vst.msk [vmem:[%s1660_s7 + $0x2] sm:$0x3] %vm93_vm0, %v545_v30  ;;  %949 = vrot.lane.b32.xlu0 %v933_v29, %s1276_s20  ;;  %v941_v18 = vadd.f32 %v940_v34, %v933_v29 }
 0xaab   :  { %v551_v35 = vpop.permute.xlu0 %550 }
 0xaac   :  { %1028 = vst.msk [vmem:[%s1661_s8 + $0x4] sm:$0x3] %vm93_vm0, %v551_v35  ;;  %954 = vrot.lane.b32.xlu1 %v927_v15, %s1276_s20 }
 0xaad   :  { %v745_v36 = vpop.permute.xlu1 %744 }
 0xaae   :  { %1039 = vst.msk [vmem:[%s1660_s7 + $0x4] sm:$0x3] %vm93_vm0, %v745_v36  ;;  %959 = vrot.lane.b32.xlu0 %v941_v18, %s1276_s20 }
 0xaaf   :  { %v751_v1 = vpop.permute.xlu0 %750 }
 0xab0   :  { %1040 = vst.msk [vmem:[%s1661_s8 + $0x2] sm:$0x3] %vm93_vm0, %v751_v1 }
 0xb1a   :  { %v944_v37 = vpop.permute.xlu1 %943 }
 0xb1b   :  { %1050 = vst.msk [vmem:[%s1660_s7 + $0x6] sm:$0x3] %vm93_vm0, %v944_v37 }
 0xb1c   :  { %v950_v38 = vpop.permute.xlu0 %949 }
 0xb1d   :  { %952 = vst.msk [vmem:[%s1661_s8] sm:$0x3] %vm93_vm0, %v950_v38 }
 0xb1e   :  { %v955_v31 = vpop.permute.xlu1 %954 }
 0xb1f   :  { %957 = vst.msk [vmem:[#allocation2] sm:$0x3] %vm93_vm0, %v955_v31 }
 0xb20   :  { %v960_v33 = vpop.permute.xlu0 %959 }
 0xb21   :  { %962 = vst.msk [vmem:[#allocation3] sm:$0x3] %vm93_vm0, %v960_v33 }
 0xb22   :  { %985 = vsyncpa [#allocation5], 1 }
 0xb23   :  { %986 = vsyncpa [#allocation7], 1 }

// kernel: deepspeech2_forward.17
= control target key start
LH: loop header
LB: loop body
LE: loop exit
PB: predicated region body
PF: predicated region fallthrough
CT: control target
= control target key end

     0   :  { %v279_v0 = vmov 0.0   ;;  %vm280_vm0 = vmmov 0   ;;  %vm87_vm1 = vcmask 523264   ;;  %vm131_vm2 = vcmask 785408   ;;  %s371_s3 = inlined_call_operand.vmem [shape: bf16[64,96], index: 3, kind: input, shape index: {}]   ;;  %s372_s5 = inlined_call_operand.vmem [shape: bf16[64,96], index: 5, kind: input, shape index: {}]   ;;  %s373_s0 = inlined_call_operand.vmem [shape: f32[8,64], index: 0, kind: input, shape index: {}]   ;;  %s374_s1 = inlined_call_operand.vmem [shape: f32[1,64], index: 1, kind: input, shape index: {}]   ;;  %s375_s2 = inlined_call_operand.vmem [shape: f32[1,64], index: 2, kind: input, shape index: {}]   ;;  %s376_s4 = inlined_call_operand.vmem [shape: f32[1,96], index: 4, kind: input, shape index: {}]   ;;  %s377_s6 = inlined_call_operand.vmem [shape: f32[1,96], index: 6, kind: input, shape index: {}]   ;;  %s378_s7 = inlined_call_operand.vmem [shape: f32[8,96], index: 7, kind: output, shape index: {0}]   ;;  %s379_s8 = inlined_call_operand.vmem [shape: f32[8,96], index: 8, kind: output, shape index: {1}]  }
   0x1   :  { %245 = vmatprep.subr.bf16.mxu0 %v279_v0  ;;  %257 = vmatprep.subr.bf16.mxu1 %v279_v0  ;;  %v271_v1 = vld [vmem:[%s371_s3] sm:$0xff]   ;;  %v273_v3 = vld [vmem:[%s371_s3 + $0x8] sm:$0xff]   ;;  %v275_v5 = vld [vmem:[%s371_s3 + $0x10] sm:$0xff]  }
   0x2   :  { %v272_v2 = vld [vmem:[%s372_s5] sm:$0xff]   ;;  %253 = vmatprep.mubr.msk.bf16.mxu0 %vm280_vm0, %v279_v0  ;;  %265 = vmatprep.mubr.msk.bf16.mxu1 %vm280_vm0, %v279_v0  ;;  %v274_v4 = vld [vmem:[%s372_s5 + $0x8] sm:$0xff]   ;;  %v276_v6 = vld [vmem:[%s372_s5 + $0x10] sm:$0xff]  }
   0x3   :  { %246 = vmatpush3.bf16.msra.mxu0 %v271_v1  ;;  %258 = vmatpush3.bf16.msra.mxu1 %v272_v2  ;;  %v29_v7 = vld [vmem:[%s373_s0] sm:$0xff]  ;;  %v277_v11 = vld [vmem:[%s371_s3 + $0x18] sm:$0xff]  }
   0x4   :  { %247 = vmatprep.subr.bf16.mxu0 %v279_v0  ;;  %259 = vmatprep.subr.bf16.mxu1 %v279_v0  ;;  %v221_v8 = vld [vmem:[%s374_s1] ss:$0 sm:$0xff]  ;;  %v278_v12 = vld [vmem:[%s372_s5 + $0x18] sm:$0xff]  }
   0x5   :  { %v222_v9 = vld [vmem:[%s375_s2] ss:$0 sm:$0xff]  ;;  %v37_v10 = vmul.f32 %v221_v8, %v29_v7 }
   0x6   :  { %v223_v16 = vld [vmem:[%s376_s4] ss:$0 sm:$0xff] }
   0x7   :  { %248 = vmatpush3.bf16.msra.mxu0 %v273_v3  ;;  %260 = vmatpush3.bf16.msra.mxu1 %v274_v4  ;;  %v45_v13 = vadd.f32 %v222_v9, %v37_v10  ;;  %v229_v17 = vld [vmem:[%s377_s6] ss:$0 sm:$0xff] }
   0x8   :  { %249 = vmatprep.subr.bf16.mxu0 %v279_v0  ;;  %261 = vmatprep.subr.bf16.mxu1 %v279_v0 }
   0x9   :  { %v46_v14 = vmax.f32 %v45_v13, 0.0 }
   0xb   :  { %250 = vmatpush3.bf16.msra.mxu0 %v275_v5  ;;  %262 = vmatpush3.bf16.msra.mxu1 %v276_v6  ;;  %v47_v15 = vpack.c.bf16 %v46_v14, %v46_v14 }
   0xc   :  { %251 = vmatprep.subr.bf16.mxu0 %v279_v0  ;;  %263 = vmatprep.subr.bf16.mxu1 %v279_v0 }
   0xf   :  { %252 = vmatpush3.bf16.msra.mxu0 %v277_v11  ;;  %264 = vmatpush3.bf16.msra.mxu1 %v278_v12 }
  0x12   :  { %254 = vmatmul.mubr.msk.bf16.vlgmr.msra.gmra.mrb[0].mxu0 %vm87_vm1, %v47_v15  ;;  %266 = vmatmul.mubr.msk.bf16.vlgmr.msra.gmra.mrb[0].mxu1 %vm87_vm1, %v47_v15 }
  0xe5   :  { %v125_v18 = vpop.f32.mrb[0].mxu0  ;;  %v206_v20 = vpop.f32.mrb[0].mxu1 }
  0xe6   :  { %v126_v19 = vadd.f32 %v223_v16, %v125_v18  ;;  %v255_v21 = vpop.f32.mrb[1].mxu0  ;;  %v207_v22 = vadd.f32 %v229_v17, %v206_v20  ;;  %v267_v23 = vpop.f32.mrb[1].mxu1 }
  0xe7   :  { %v128_v24 = vpop.f32.mrb[2].mxu0  ;;  %v209_v25 = vpop.f32.mrb[2].mxu1 }
  0xe8   :  { %132 = vst.msk [vmem:[%s378_s7] sm:$0xff] %vm131_vm2, %v126_v19  ;;  %v256_v26 = vpop.f32.mrb[3].mxu0  ;;  %212 = vst.msk [vmem:[%s379_s8] sm:$0xff] %vm131_vm2, %v207_v22  ;;  %v268_v27 = vpop.f32.mrb[3].mxu1 }

// kernel: deepspeech2_forward.25
= control target key start
LH: loop header
LB: loop body
LE: loop exit
PB: predicated region body
PF: predicated region fallthrough
CT: control target
= control target key end

     0   :  { %v270_v1 = vmov 0.0   ;;  %vm271_vm0 = vmmov 0   ;;  %s334_s0 = inlined_call_operand.vmem [shape: f32[8,64], index: 0, kind: input, shape index: {}]   ;;  %s335_s1 = inlined_call_operand.vmem [shape: bf16[64,32], index: 1, kind: input, shape index: {}]   ;;  %s336_s2 = inlined_call_operand.vmem [shape: f32[1,32], index: 2, kind: input, shape index: {}]   ;;  %s337_s3 = inlined_call_operand.vmem [shape: bf16[32,128], index: 3, kind: input, shape index: {}]   ;;  %s338_s4 = inlined_call_operand.hbm [shape: f32[8,128], index: 4, kind: output, shape index: {}]  }
   0x1   :  { %v236_v0 = vld [vmem:[%s335_s1] sm:$0xff]   ;;  %213 = vmatprep.subr.bf16.mxu0 %v270_v1  ;;  %225 = vmatprep.subr.bf16.mxu1 %v270_v1  ;;  %v237_v2 = vld [vmem:[%s335_s1 + $0x8] sm:$0xff]   ;;  %v238_v3 = vld [vmem:[%s335_s1 + $0x10] sm:$0xff]  }
   0x2   :  { %214 = vmatpush3.bf16.msra.mxu0 %v236_v0  ;;  %221 = vmatprep.mubr.msk.bf16.mxu0 %vm271_vm0, %v270_v1 }
   0x3   :  { %215 = vmatprep.subr.bf16.mxu0 %v270_v1  ;;  %229 = vmatprep.mubr.msk.bf16.mxu1 %vm271_vm0, %v270_v1 }
   0x6   :  { %216 = vmatpush3.bf16.msra.mxu0 %v237_v2 }
   0x7   :  { %9 = vsyncpa [#allocation3], 0  ;;  %217 = vmatprep.subr.bf16.mxu0 %v270_v1  ;;  %v239_v4 = vld [vmem:[%s335_s1 + $0x18] sm:$0xff]   ;;  %v19_v5 = vld [vmem:[%s334_s0] sm:$0xff]  ;;  %vm60_vm1 = vcmask 523264   ;;  %vm122_vm2 = vcmask 261120   ;;  %v166_v17 = vlaneseq }
   0x8   :  { %v20_v6 = vpack.c.bf16 %v19_v5, %v19_v5  ;;  %v240_v7 = vld [vmem:[%s337_s3] sm:$0xff]   ;;  %v241_v8 = vld [vmem:[%s337_s3 + $0x8] sm:$0xff]   ;;  %s272_s0 = smov [#allocation2]  }
   0x9   :  { %226 = vmatpush3.bf16.msra.mxu1 %v240_v7  ;;  %v196_v9 = vld [vmem:[%s336_s2] ss:$0 sm:$0xff]  ;;  %v167_v18 = vand.u32 127, %v166_v17  ;;  %s188_s2 = sshll.u32 %s272_s0, 4  ;;  %s189_s2 = int_to_ptr.vmem [resolvable:$true] %s188_s2 }
   0xa   :  { %218 = vmatpush3.bf16.msra.mxu0 %v238_v3  ;;  %227 = vmatprep.subr.bf16.mxu1 %v270_v1  ;;  %s246_s3 = scalar_lea.vmem %s189_s2, 128  ;;  %p251_p1 = scmp.lt.s32.totalorder %s189_s2, %s189_s2 }
   0xb   :  { %219 = vmatprep.subr.bf16.mxu0 %v270_v1  ;;  %vm168_vm3 = vcmp.lt.s32.totalorder %v167_v18, 10  ;;  %p247_p0 = scmp.ne.s32.totalorder %s189_s2, %s246_s3  ;;  %p252_p2 = scmp.lt.s32.totalorder %s246_s3, %s246_s3 }
   0xd   :  { %228 = vmatpush3.bf16.msra.mxu1 %v241_v8  ;;  %p253_p3 = por %p252_p2, %p251_p1 }
   0xe   :  { %220 = vmatpush3.bf16.msra.mxu0 %v239_v4 }
   0xf   :  { %p254_p4 = pnand %p253_p3, %p247_p0 }
  0x11   :  { %222 = vmatmul.mubr.msk.bf16.vlgmr.msra.gmra.mrb[0].mxu0 %vm60_vm1, %v20_v6 }
  0xe4   :  { %v98_v10 = vpop.f32.mrb[0].mxu0 }
  0xe5   :  { %v99_v11 = vadd.f32 %v196_v9, %v98_v10  ;;  %v223_v12 = vpop.f32.mrb[1].mxu0 }
  0xe6   :  { %v101_v13 = vpop.f32.mrb[2].mxu0 }
  0xe7   :  { %v104_v14 = vmax.f32 %v99_v11, 0.0  ;;  %v224_v15 = vpop.f32.mrb[3].mxu0 }
  0xe9   :  { %v105_v16 = vpack.c.bf16 %v104_v14, %v104_v14 }
  0xeb   :  { %230 = vmatmul.mubr.msk.bf16.vlgmr.msra.gmra.mrb[0].mxu1 %vm122_vm2, %v105_v16 }
 0x1be   :  { %v160_v19 = vpop.f32.mrb[0].mxu1 }
 0x1bf   :  { %v169_v20 = vsel %vm168_vm3, %v160_v19, -1e+30  ;;  %v231_v21 = vpop.f32.mrb[1].mxu1 }
 0x1c0   :  { %170 = vmax.xlane.f32.xlu0 %v169_v20  ;;  %v163_v22 = vpop.f32.mrb[2].mxu1 }
 0x1c1   :  { %v232_v23 = vpop.f32.mrb[3].mxu1 }
 0x24d   :  { %v171_v24 = vpop.xlane.xlu0 %170 }
 0x24e   :  { %v172_v25 = vsub.f32 %v169_v20, %v171_v24 }
 0x250   :  { %v173_v26 = vmul.f32 1.442695, %v172_v25 }
 0x252   :  { %242 = vpow2.f32 %v173_v26 }
 0x25c   :  { %v243_v27 = vpop.eup %242 }
 0x25d   :  { %175 = vadd.xlane.f32.xlu0 %v243_v27 }
 0x2ea   :  { %v176_v28 = vpop.xlane.xlu0 %175 }
 0x2eb   :  { %244 = vlog2.f32 %v176_v28 }
 0x2f5   :  { %v245_v29 = vpop.eup %244 }
 0x2f6   :  { %v178_v30 = vmul.f32 0.6931472, %v245_v29 }
 0x2f8   :  { %v179_v31 = vadd.f32 %v178_v30, %v171_v24 }
 0x2fa   :  { %v180_v32 = vsub.f32 %v169_v20, %v179_v31 }
 0x2fc   :  { %181 = vst [vmem:[#allocation2] sm:$0xff] %v180_v32 }
 0x2fd   :  { %257 = shalt.err (!%p254_p4)
}
 0x2fe   :  { %s258_s6 = scalar_lea.hbm %s338_s4, 128 }
 0x2ff   :  { %p259_p5 = scmp.ne.s32.totalorder %s338_s4, %s258_s6  ;;  %p262_p6 = scmp.lt.u32.totalorder %s258_s6, %s338_s4 }
 0x301   :  { %p264_p7 = pnand %p262_p6, %p259_p5 }
 0x303   :  { %267 = shalt.err (!%p264_p7)
}
 0x304   :  { %191 = dma.vmem_to_hbm [thread:$0]  %s189_s2, 128, %s338_s4, [#allocation3]  }
 0x305   :  { %268 = dma.done.wait [#allocation3], 128  }
 0x306   :  { %269 = vsyncadd [#allocation3], 4294967168 }
 0x307   :  { %195 = vsyncpa [#allocation3], 1 }

</bundles_post_ra>
